<compile_context>
chip_gen: v7x
topology: tpu7x:2x2x1
jax: 0.10.0
libtpu: 0.0.40
codegen_flags: <defaults>
</compile_context>

<pallas_src>
import numpy as np

import jax
import jax.numpy as jnp
from jax.experimental import pallas as pl
from jax.experimental.pallas import tpu as pltpu

# ----------------------------- model config ---------------------------------
VOCAB = 64            # synthetic vocab (real CLIP: 49408)
MAX_LEN = 8           # max_length (real CLIP: 77 -> pad to 80)
HIDDEN = 128          # hidden size D, multiple of 128 (real CLIP: 768)
NUM_HEADS = 4
HEAD_DIM = HIDDEN // NUM_HEADS
MLP_DIM = 4 * HIDDEN  # FFN inner dim (real CLIP ratio)
NUM_LAYERS = 2        # real CLIP: 12
LN_EPS = 1e-5
DROPOUT_PROB = 0.1
NULL_TOKEN_ID = 0     # token id used for the dropped ("None") prompt
BLOCK_B = 8           # batch elements per grid step (raise to 16-64 for real B)


# ----------------------------- Pallas kernel --------------------------------
def _clip_text_kernel(
    x_ref,      # (BLOCK_B*S, D)          f32   token+pos embeddings (merged tokens)
    mask_ref,   # (BLOCK_B*S, BLOCK_B*S)  f32   block-diagonal causal bias (0 / -1e9)
    norm_ref,   # (L, 6, 1, D)            f32   [ln1_w, ln1_b, ln2_w, ln2_b, b_o, b_fc2]
    wqkv_ref,   # (L, D, 3D)              bf16  fused [Wq*scale | Wk | Wv]
    bqkv_ref,   # (L, 1, 3D)              f32
    wout_ref,   # (L, H, Dh, D)           bf16  W_o split by head (row blocks)
    wfc1_ref,   # (L, D, F)               bf16
    bfc1_ref,   # (L, 1, F)               f32
    wfc2_ref,   # (L, F, D)               bf16
    lnf_ref,    # (2, 1, D)               f32   [lnf_w, lnf_b]
    o_ref,      # (BLOCK_B*S, D)          f32
):
    N, D = x_ref.shape          # N = BLOCK_B * MAX_LEN merged tokens
    bf16 = jnp.bfloat16

    h = x_ref[...]              # (N, D) f32 residual stream
    mask_bias = mask_ref[...]   # (N, N) f32, built once in the wrapper

    def layer_norm(v, w, b):
        mu = jnp.mean(v, axis=-1, keepdims=True)
        xc = v - mu
        var = jnp.mean(xc * xc, axis=-1, keepdims=True)
        return xc * jax.lax.rsqrt(var + LN_EPS) * w + b

    for l in range(NUM_LAYERS):
        # ---- self-attention block (pre-LN) ----
        resid = h
        hn = layer_norm(h, norm_ref[l, 0], norm_ref[l, 1])

        # fused QKV: one (N,D) @ (D,3D) MXU matmul, bf16 in / f32 accumulate.
        # The 1/sqrt(head_dim) scale is already folded into the Q weight.
        qkv = jnp.dot(hn.astype(bf16), wqkv_ref[l],
                      preferred_element_type=jnp.float32) + bqkv_ref[l]
        q = qkv[:, 0 * D:1 * D]              # vreg-aligned 128-wide slices
        k = qkv[:, 1 * D:2 * D]
        v = qkv[:, 2 * D:3 * D]

        attn = norm_ref[l, 4]                # start from output-proj bias (1, D)
        for hd in range(NUM_HEADS):
            lo = hd * HEAD_DIM
            qh = q[:, lo:lo + HEAD_DIM]      # (N, Dh)
            kh = k[:, lo:lo + HEAD_DIM]
            vh = v[:, lo:lo + HEAD_DIM]
            # dense block-diagonal attention over the merged token axis:
            # one (N,Dh)x(Dh,N) and one (N,N)x(N,Dh) MXU matmul per head.
            s = jnp.dot(qh.astype(bf16), kh.T.astype(bf16),
                        preferred_element_type=jnp.float32)      # (N, N)
            s = s + mask_bias
            s = s - jnp.max(s, axis=-1, keepdims=True)
            p = jnp.exp(s)
            p = p * pl.reciprocal(jnp.sum(p, axis=-1, keepdims=True),
                                  approx=True)
            oh = jnp.dot(p.astype(bf16), vh.astype(bf16),
                         preferred_element_type=jnp.float32)     # (N, Dh)
            # fold this head back with its slice of W_o (sum over heads
            # replaces the lane-axis concatenate).
            attn = attn + jnp.dot(oh.astype(bf16), wout_ref[l, hd],
                                  preferred_element_type=jnp.float32)
        h = resid + attn

        # ---- MLP block (pre-LN, quickGELU) ----
        resid = h
        hn = layer_norm(h, norm_ref[l, 2], norm_ref[l, 3])
        f = jnp.dot(hn.astype(bf16), wfc1_ref[l],
                    preferred_element_type=jnp.float32) + bfc1_ref[l]
        f = f * jax.nn.sigmoid(1.702 * f)    # quick_gelu (CLIP activation)
        f = jnp.dot(f.astype(bf16), wfc2_ref[l],
                    preferred_element_type=jnp.float32) + norm_ref[l, 5]
        h = resid + f

    # final LayerNorm -> outputs[0] = last_hidden_state
    h = layer_norm(h, lnf_ref[0], lnf_ref[1])
    o_ref[...] = h.astype(o_ref.dtype)


def _make_mask_bias(block_b, seq):
    """Block-diagonal causal bias on the merged token axis: a token attends
    only to earlier tokens of its own batch element."""
    n = block_b * seq
    r = np.arange(n)[:, None]
    c = np.arange(n)[None, :]
    visible = (c <= r) & ((r // seq) == (c // seq))
    return jnp.asarray(np.where(visible, 0.0, -1e9), dtype=jnp.float32)


def clip_text_encoder(x_emb, params, block_b=BLOCK_B):
    """x_emb: (B, S, D) float32 (token emb + pos emb).  Returns (B, S, D)."""
    B, S, D = x_emb.shape
    bp = pl.cdiv(B, block_b) * block_b
    if bp != B:  # pad batch to a multiple of the batch tile
        x_emb = jnp.concatenate(
            [x_emb, jnp.zeros((bp - B, S, D), x_emb.dtype)], axis=0)

    # Merge (batch, seq) into one token axis so blocks are (block_b*S, 128):
    # fully (8,128)-aligned, lane-dense loads and stores.
    x2d = x_emb.reshape(bp * S, D)
    tile = block_b * S
    mask_bias = _make_mask_bias(block_b, S)   # (tile, tile), grid-invariant

    p = params
    full = lambda a: pl.BlockSpec(a.shape, lambda b: (0,) * a.ndim)
    # NOTE: at real CLIP-L sizes, move the layer axis into the grid (or use
    # pltpu.emit_pipeline) so only 1-2 layers of weights live in VMEM at once.

    out = pl.pallas_call(
        _clip_text_kernel,
        out_shape=jax.ShapeDtypeStruct((bp * S, D), jnp.float32),
        grid=(bp // block_b,),
        in_specs=[
            pl.BlockSpec((tile, D), lambda b: (b, 0)),            # x tokens
            full(mask_bias),
            full(p["norm_vecs"]), full(p["w_qkv"]), full(p["b_qkv"]),
            full(p["w_out"]), full(p["w_fc1"]), full(p["b_fc1"]),
            full(p["w_fc2"]), full(p["lnf"]),
        ],
        out_specs=pl.BlockSpec((tile, D), lambda b: (b, 0)),
        compiler_params=pltpu.CompilerParams(
            dimension_semantics=("parallel",)),
    )(x2d, mask_bias, p["norm_vecs"], p["w_qkv"], p["b_qkv"], p["w_out"],
      p["w_fc1"], p["b_fc1"], p["w_fc2"], p["lnf"])

    return out.reshape(bp, S, D)[:B]


# ----------------------------- TextEmbedder ---------------------------------
def init_params(key):
    """Random CLIP-text weights, pre-packed into the kernel layout:
    fused QKV (D,3D) with the attention scale folded into Wq, head-split
    W_o (H,Dh,D), bf16 matmul weights, and LayerNorm/bias vectors packed
    into one (L,6,1,D) array."""
    ks = jax.random.split(key, 8)
    s = 0.02
    L, D, F, H, Dh = NUM_LAYERS, HIDDEN, MLP_DIM, NUM_HEADS, HEAD_DIM
    attn_scale = float(Dh) ** -0.5

    w_q = jax.random.normal(ks[2], (L, D, D), jnp.float32) * s
    w_k = jax.random.normal(ks[3], (L, D, D), jnp.float32) * s
    w_v = jax.random.normal(ks[4], (L, D, D), jnp.float32) * s
    w_o = jax.random.normal(ks[5], (L, D, D), jnp.float32) * s
    b_q = jnp.zeros((L, 1, D), jnp.float32)
    b_k = jnp.zeros((L, 1, D), jnp.float32)
    b_v = jnp.zeros((L, 1, D), jnp.float32)

    ones = jnp.ones((L, 1, D), jnp.float32)
    zeros = jnp.zeros((L, 1, D), jnp.float32)

    return {
        "tok_emb": jax.random.normal(ks[0], (VOCAB, D), jnp.float32) * s,
        "pos_emb": jax.random.normal(ks[1], (MAX_LEN, D), jnp.float32) * s,
        # [ln1_w, ln1_b, ln2_w, ln2_b, b_o, b_fc2]
        "norm_vecs": jnp.stack([ones, zeros, ones, zeros, zeros, zeros], axis=1),
        # attention scale folded into the Q columns (weights AND bias)
        "w_qkv": jnp.concatenate([w_q * attn_scale, w_k, w_v],
                                 axis=-1).astype(jnp.bfloat16),
        "b_qkv": jnp.concatenate([b_q * attn_scale, b_k, b_v], axis=-1),
        "w_out": w_o.reshape(L, H, Dh, D).astype(jnp.bfloat16),
        "w_fc1": (jax.random.normal(ks[6], (L, D, F), jnp.float32) * s
                  ).astype(jnp.bfloat16),
        "b_fc1": jnp.zeros((L, 1, F), jnp.float32),
        "w_fc2": (jax.random.normal(ks[7], (L, F, D), jnp.float32) * s
                  ).astype(jnp.bfloat16),
        "lnf": jnp.stack([jnp.ones((1, D), jnp.float32),
                          jnp.zeros((1, D), jnp.float32)], axis=0),
    }


def token_drop(token_ids, dropout_prob, force_drop_ids=None, rng=None):
    """Classifier-free-guidance text dropout: dropped prompts become the
    fixed 'None' prompt (here: a NULL token sequence)."""
    n = token_ids.shape[0]
    if force_drop_ids is None:
        rng = np.random.default_rng(0) if rng is None else rng
        drop_ids = rng.uniform(0.0, 1.0, n) < dropout_prob
    else:
        drop_ids = np.asarray(force_drop_ids) == 1
    null_seq = np.full((token_ids.shape[1],), NULL_TOKEN_ID, dtype=np.int32)
    out = np.where(drop_ids[:, None], null_seq[None, :], np.asarray(token_ids))
    return jnp.asarray(out, dtype=jnp.int32)


def text_embedder_forward(token_ids, params, train, force_drop_ids=None,
                          dropout_prob=DROPOUT_PROB):
    """Mirrors TextEmbedder.forward: optional token dropout, then CLIP text
    encoder; returns last_hidden_state (B, S, D)."""
    # TODO(synk): the HuggingFace string tokenizer has no Pallas equivalent;
    # inputs are pre-tokenized int32 ids.
    use_dropout = dropout_prob > 0
    if (train and use_dropout) or (force_drop_ids is not None):
        token_ids = token_drop(token_ids, dropout_prob, force_drop_ids)
    # embedding gather + positional add (glue)
    x = jnp.take(params["tok_emb"], token_ids, axis=0) + params["pos_emb"][None, :, :]
    # transformer stack (Pallas kernel)
    return clip_text_encoder(x.astype(jnp.float32), params)


# --------------------------------- main --------------------------------------
if __name__ == "__main__":
    key = jax.random.PRNGKey(0)
    pkey, tkey = jax.random.split(key)
    params = init_params(pkey)

    B = 16
    token_ids = jax.random.randint(tkey, (B, MAX_LEN), 1, VOCAB, dtype=jnp.int32)

    # deterministic CFG dropout: drop every 4th prompt
    force_drop_ids = np.array([1 if i % 4 == 0 else 0 for i in range(B)],
                              dtype=np.int32)

    out = text_embedder_forward(token_ids, params, train=True,
                                force_drop_ids=force_drop_ids)
    out = jax.block_until_ready(out)

    assert out.shape == (B, MAX_LEN, HIDDEN), out.shape
    assert out.dtype == jnp.float32
    assert bool(jnp.all(jnp.isfinite(out)))
    print("KERNEL_OK")
</pallas_src>

<mosaic_0001>
module attributes {stable_mosaic.version = 11 : i64} {
  func.func @_clip_text_kernel(%arg0: i32, %arg1: memref<64x128xf32, #tpu.memory_space<vmem>>, %arg2: memref<64x64xf32, #tpu.memory_space<vmem>>, %arg3: memref<2x6x1x128xf32, #tpu.memory_space<vmem>>, %arg4: memref<2x128x384xbf16, #tpu.memory_space<vmem>>, %arg5: memref<2x1x384xf32, #tpu.memory_space<vmem>>, %arg6: memref<2x4x32x128xbf16, #tpu.memory_space<vmem>>, %arg7: memref<2x128x512xbf16, #tpu.memory_space<vmem>>, %arg8: memref<2x1x512xf32, #tpu.memory_space<vmem>>, %arg9: memref<2x512x128xbf16, #tpu.memory_space<vmem>>, %arg10: memref<2x1x128xf32, #tpu.memory_space<vmem>>, %arg11: memref<64x128xf32, #tpu.memory_space<vmem>>) attributes {dimension_semantics = [#tpu.dimension_semantics<parallel>], iteration_bounds = array<i64: 2>, scalar_prefetch = 0 : i64, scratch_operands = 0 : i64, tpu.core_type = #tpu.core_type<tc>, window_params = [{transform_indices = @transform_0, window_bounds = array<i64: 64, 128>}, {pipeline_mode = #tpu.pipeline_mode<synchronous>, transform_indices = @transform_1, window_bounds = array<i64: 64, 64>}, {pipeline_mode = #tpu.pipeline_mode<synchronous>, transform_indices = @transform_2, window_bounds = array<i64: 2, 6, 1, 128>}, {pipeline_mode = #tpu.pipeline_mode<synchronous>, transform_indices = @transform_3, window_bounds = array<i64: 2, 128, 384>}, {pipeline_mode = #tpu.pipeline_mode<synchronous>, transform_indices = @transform_4, window_bounds = array<i64: 2, 1, 384>}, {pipeline_mode = #tpu.pipeline_mode<synchronous>, transform_indices = @transform_5, window_bounds = array<i64: 2, 4, 32, 128>}, {pipeline_mode = #tpu.pipeline_mode<synchronous>, transform_indices = @transform_6, window_bounds = array<i64: 2, 128, 512>}, {pipeline_mode = #tpu.pipeline_mode<synchronous>, transform_indices = @transform_7, window_bounds = array<i64: 2, 1, 512>}, {pipeline_mode = #tpu.pipeline_mode<synchronous>, transform_indices = @transform_8, window_bounds = array<i64: 2, 512, 128>}, {pipeline_mode = #tpu.pipeline_mode<synchronous>, transform_indices = @transform_9, window_bounds = array<i64: 2, 1, 128>}, {transform_indices = @transform_10, window_bounds = array<i64: 64, 128>}]} {
    %c0 = arith.constant 0 : index
    %c0_0 = arith.constant 0 : index
    %0 = vector.load %arg1[%c0, %c0_0] : memref<64x128xf32, #tpu.memory_space<vmem>>, vector<64x128xf32>
    %c0_1 = arith.constant 0 : index
    %c0_2 = arith.constant 0 : index
    %1 = vector.load %arg2[%c0_1, %c0_2] : memref<64x64xf32, #tpu.memory_space<vmem>>, vector<64x64xf32>
    %c0_3 = arith.constant 0 : index
    %c0_4 = arith.constant 0 : index
    %c0_5 = arith.constant 0 : index
    %c0_6 = arith.constant 0 : index
    %2 = vector.load %arg3[%c0_3, %c0_4, %c0_5, %c0_6] : memref<2x6x1x128xf32, #tpu.memory_space<vmem>>, vector<1x1x1x128xf32>
    %3 = vector.shape_cast %2 : vector<1x1x1x128xf32> to vector<1x128xf32>
    %c0_7 = arith.constant 0 : index
    %c1 = arith.constant 1 : index
    %c0_8 = arith.constant 0 : index
    %c0_9 = arith.constant 0 : index
    %4 = vector.load %arg3[%c0_7, %c1, %c0_8, %c0_9] : memref<2x6x1x128xf32, #tpu.memory_space<vmem>>, vector<1x1x1x128xf32>
    %5 = vector.shape_cast %4 : vector<1x1x1x128xf32> to vector<1x128xf32>
    %cst = arith.constant dense<0.000000e+00> : vector<64xf32>
    %6 = vector.multi_reduction <add>, %0, %cst [1] : vector<64x128xf32> to vector<64xf32>
    %7 = vector.shape_cast %6 : vector<64xf32> to vector<64x1xf32>
    %cst_10 = arith.constant 1.280000e+02 : f32
    %8 = vector.broadcast %cst_10 : f32 to vector<64x1xf32>
    %9 = arith.divf %7, %8 : vector<64x1xf32>
    %10 = vector.broadcast %9 : vector<64x1xf32> to vector<64x128xf32>
    %11 = arith.subf %0, %10 : vector<64x128xf32>
    %12 = arith.mulf %11, %11 : vector<64x128xf32>
    %cst_11 = arith.constant dense<0.000000e+00> : vector<64xf32>
    %13 = vector.multi_reduction <add>, %12, %cst_11 [1] : vector<64x128xf32> to vector<64xf32>
    %14 = vector.shape_cast %13 : vector<64xf32> to vector<64x1xf32>
    %cst_12 = arith.constant 1.280000e+02 : f32
    %15 = vector.broadcast %cst_12 : f32 to vector<64x1xf32>
    %16 = arith.divf %14, %15 : vector<64x1xf32>
    %cst_13 = arith.constant 9.99999974E-6 : f32
    %17 = vector.broadcast %cst_13 : f32 to vector<64x1xf32>
    %18 = arith.addf %16, %17 : vector<64x1xf32>
    %19 = math.rsqrt %18 : vector<64x1xf32>
    %20 = vector.broadcast %19 : vector<64x1xf32> to vector<64x128xf32>
    %21 = arith.mulf %11, %20 : vector<64x128xf32>
    %22 = vector.broadcast %3 : vector<1x128xf32> to vector<64x128xf32>
    %23 = arith.mulf %21, %22 : vector<64x128xf32>
    %24 = vector.broadcast %5 : vector<1x128xf32> to vector<64x128xf32>
    %25 = arith.addf %23, %24 : vector<64x128xf32>
    %26 = arith.truncf %25 : vector<64x128xf32> to vector<64x128xbf16>
    %c0_14 = arith.constant 0 : index
    %c0_15 = arith.constant 0 : index
    %c0_16 = arith.constant 0 : index
    %27 = vector.load %arg4[%c0_14, %c0_15, %c0_16] : memref<2x128x384xbf16, #tpu.memory_space<vmem>>, vector<1x128x384xbf16>
    %28 = vector.shape_cast %27 : vector<1x128x384xbf16> to vector<128x384xbf16>
    %cst_17 = arith.constant dense<0.000000e+00> : vector<64x384xf32>
    %29 = tpu.matmul %26, %28, %cst_17 {dimension_numbers = #tpu.dot_dimension_numbers<[1], [0], [0], [1], [0, 0, 1, 1], [], []>} : vector<64x128xbf16>, vector<128x384xbf16>, vector<64x384xf32> -> vector<64x384xf32>
    %c0_18 = arith.constant 0 : index
    %c0_19 = arith.constant 0 : index
    %c0_20 = arith.constant 0 : index
    %30 = vector.load %arg5[%c0_18, %c0_19, %c0_20] : memref<2x1x384xf32, #tpu.memory_space<vmem>>, vector<1x1x384xf32>
    %31 = vector.shape_cast %30 : vector<1x1x384xf32> to vector<1x384xf32>
    %32 = vector.broadcast %31 : vector<1x384xf32> to vector<64x384xf32>
    %33 = arith.addf %29, %32 : vector<64x384xf32>
    %34 = vector.extract_strided_slice %33 {offsets = [0, 0], sizes = [64, 128], strides = [1, 1]} : vector<64x384xf32> to vector<64x128xf32>
    %35 = vector.extract_strided_slice %33 {offsets = [0, 128], sizes = [64, 128], strides = [1, 1]} : vector<64x384xf32> to vector<64x128xf32>
    %36 = vector.extract_strided_slice %33 {offsets = [0, 256], sizes = [64, 128], strides = [1, 1]} : vector<64x384xf32> to vector<64x128xf32>
    %c0_21 = arith.constant 0 : index
    %c4 = arith.constant 4 : index
    %c0_22 = arith.constant 0 : index
    %c0_23 = arith.constant 0 : index
    %37 = vector.load %arg3[%c0_21, %c4, %c0_22, %c0_23] : memref<2x6x1x128xf32, #tpu.memory_space<vmem>>, vector<1x1x1x128xf32>
    %38 = vector.shape_cast %37 : vector<1x1x1x128xf32> to vector<1x128xf32>
    %39 = vector.extract_strided_slice %34 {offsets = [0, 0], sizes = [64, 32], strides = [1, 1]} : vector<64x128xf32> to vector<64x32xf32>
    %40 = vector.extract_strided_slice %35 {offsets = [0, 0], sizes = [64, 32], strides = [1, 1]} : vector<64x128xf32> to vector<64x32xf32>
    %41 = vector.extract_strided_slice %36 {offsets = [0, 0], sizes = [64, 32], strides = [1, 1]} : vector<64x128xf32> to vector<64x32xf32>
    %42 = arith.truncf %39 : vector<64x32xf32> to vector<64x32xbf16>
    %43 = tpu.transpose %40, [1, 0] : vector<64x32xf32> -> vector<32x64xf32>
    %44 = arith.truncf %43 : vector<32x64xf32> to vector<32x64xbf16>
    %cst_24 = arith.constant dense<0.000000e+00> : vector<64x64xf32>
    %45 = tpu.matmul %42, %44, %cst_24 {dimension_numbers = #tpu.dot_dimension_numbers<[1], [0], [0], [1], [0, 0, 1, 1], [], []>} : vector<64x32xbf16>, vector<32x64xbf16>, vector<64x64xf32> -> vector<64x64xf32>
    %46 = arith.addf %45, %1 : vector<64x64xf32>
    %cst_25 = arith.constant dense<0xFF800000> : vector<64xf32>
    %47 = vector.multi_reduction <maximumf>, %46, %cst_25 [1] : vector<64x64xf32> to vector<64xf32>
    %48 = vector.shape_cast %47 : vector<64xf32> to vector<64x1xf32>
    %49 = vector.broadcast %48 : vector<64x1xf32> to vector<64x64xf32>
    %50 = arith.subf %46, %49 : vector<64x64xf32>
    %51 = math.exp %50 : vector<64x64xf32>
    %cst_26 = arith.constant dense<0.000000e+00> : vector<64xf32>
    %52 = vector.multi_reduction <add>, %51, %cst_26 [1] : vector<64x64xf32> to vector<64xf32>
    %53 = vector.shape_cast %52 : vector<64xf32> to vector<64x1xf32>
    %54 = tpu.reciprocal %53 {approx = true} : vector<64x1xf32> -> vector<64x1xf32>
    %55 = vector.broadcast %54 : vector<64x1xf32> to vector<64x64xf32>
    %56 = arith.mulf %51, %55 : vector<64x64xf32>
    %57 = arith.truncf %56 : vector<64x64xf32> to vector<64x64xbf16>
    %58 = arith.truncf %41 : vector<64x32xf32> to vector<64x32xbf16>
    %cst_27 = arith.constant dense<0.000000e+00> : vector<64x32xf32>
    %59 = tpu.matmul %57, %58, %cst_27 {dimension_numbers = #tpu.dot_dimension_numbers<[1], [0], [0], [1], [0, 0, 1, 1], [], []>} : vector<64x64xbf16>, vector<64x32xbf16>, vector<64x32xf32> -> vector<64x32xf32>
    %60 = arith.truncf %59 : vector<64x32xf32> to vector<64x32xbf16>
    %c0_28 = arith.constant 0 : index
    %c0_29 = arith.constant 0 : index
    %c0_30 = arith.constant 0 : index
    %c0_31 = arith.constant 0 : index
    %61 = vector.load %arg6[%c0_28, %c0_29, %c0_30, %c0_31] : memref<2x4x32x128xbf16, #tpu.memory_space<vmem>>, vector<1x1x32x128xbf16>
    %62 = vector.shape_cast %61 : vector<1x1x32x128xbf16> to vector<32x128xbf16>
    %cst_32 = arith.constant dense<0.000000e+00> : vector<64x128xf32>
    %63 = tpu.matmul %60, %62, %cst_32 {dimension_numbers = #tpu.dot_dimension_numbers<[1], [0], [0], [1], [0, 0, 1, 1], [], []>} : vector<64x32xbf16>, vector<32x128xbf16>, vector<64x128xf32> -> vector<64x128xf32>
    %64 = vector.broadcast %38 : vector<1x128xf32> to vector<64x128xf32>
    %65 = arith.addf %64, %63 : vector<64x128xf32>
    %66 = vector.extract_strided_slice %34 {offsets = [0, 32], sizes = [64, 32], strides = [1, 1]} : vector<64x128xf32> to vector<64x32xf32>
    %67 = vector.extract_strided_slice %35 {offsets = [0, 32], sizes = [64, 32], strides = [1, 1]} : vector<64x128xf32> to vector<64x32xf32>
    %68 = vector.extract_strided_slice %36 {offsets = [0, 32], sizes = [64, 32], strides = [1, 1]} : vector<64x128xf32> to vector<64x32xf32>
    %69 = arith.truncf %66 : vector<64x32xf32> to vector<64x32xbf16>
    %70 = tpu.transpose %67, [1, 0] : vector<64x32xf32> -> vector<32x64xf32>
    %71 = arith.truncf %70 : vector<32x64xf32> to vector<32x64xbf16>
    %cst_33 = arith.constant dense<0.000000e+00> : vector<64x64xf32>
    %72 = tpu.matmul %69, %71, %cst_33 {dimension_numbers = #tpu.dot_dimension_numbers<[1], [0], [0], [1], [0, 0, 1, 1], [], []>} : vector<64x32xbf16>, vector<32x64xbf16>, vector<64x64xf32> -> vector<64x64xf32>
    %73 = arith.addf %72, %1 : vector<64x64xf32>
    %cst_34 = arith.constant dense<0xFF800000> : vector<64xf32>
    %74 = vector.multi_reduction <maximumf>, %73, %cst_34 [1] : vector<64x64xf32> to vector<64xf32>
    %75 = vector.shape_cast %74 : vector<64xf32> to vector<64x1xf32>
    %76 = vector.broadcast %75 : vector<64x1xf32> to vector<64x64xf32>
    %77 = arith.subf %73, %76 : vector<64x64xf32>
    %78 = math.exp %77 : vector<64x64xf32>
    %cst_35 = arith.constant dense<0.000000e+00> : vector<64xf32>
    %79 = vector.multi_reduction <add>, %78, %cst_35 [1] : vector<64x64xf32> to vector<64xf32>
    %80 = vector.shape_cast %79 : vector<64xf32> to vector<64x1xf32>
    %81 = tpu.reciprocal %80 {approx = true} : vector<64x1xf32> -> vector<64x1xf32>
    %82 = vector.broadcast %81 : vector<64x1xf32> to vector<64x64xf32>
    %83 = arith.mulf %78, %82 : vector<64x64xf32>
    %84 = arith.truncf %83 : vector<64x64xf32> to vector<64x64xbf16>
    %85 = arith.truncf %68 : vector<64x32xf32> to vector<64x32xbf16>
    %cst_36 = arith.constant dense<0.000000e+00> : vector<64x32xf32>
    %86 = tpu.matmul %84, %85, %cst_36 {dimension_numbers = #tpu.dot_dimension_numbers<[1], [0], [0], [1], [0, 0, 1, 1], [], []>} : vector<64x64xbf16>, vector<64x32xbf16>, vector<64x32xf32> -> vector<64x32xf32>
    %87 = arith.truncf %86 : vector<64x32xf32> to vector<64x32xbf16>
    %c0_37 = arith.constant 0 : index
    %c1_38 = arith.constant 1 : index
    %c0_39 = arith.constant 0 : index
    %c0_40 = arith.constant 0 : index
    %88 = vector.load %arg6[%c0_37, %c1_38, %c0_39, %c0_40] : memref<2x4x32x128xbf16, #tpu.memory_space<vmem>>, vector<1x1x32x128xbf16>
    %89 = vector.shape_cast %88 : vector<1x1x32x128xbf16> to vector<32x128xbf16>
    %cst_41 = arith.constant dense<0.000000e+00> : vector<64x128xf32>
    %90 = tpu.matmul %87, %89, %cst_41 {dimension_numbers = #tpu.dot_dimension_numbers<[1], [0], [0], [1], [0, 0, 1, 1], [], []>} : vector<64x32xbf16>, vector<32x128xbf16>, vector<64x128xf32> -> vector<64x128xf32>
    %91 = arith.addf %65, %90 : vector<64x128xf32>
    %92 = vector.extract_strided_slice %34 {offsets = [0, 64], sizes = [64, 32], strides = [1, 1]} : vector<64x128xf32> to vector<64x32xf32>
    %93 = vector.extract_strided_slice %35 {offsets = [0, 64], sizes = [64, 32], strides = [1, 1]} : vector<64x128xf32> to vector<64x32xf32>
    %94 = vector.extract_strided_slice %36 {offsets = [0, 64], sizes = [64, 32], strides = [1, 1]} : vector<64x128xf32> to vector<64x32xf32>
    %95 = arith.truncf %92 : vector<64x32xf32> to vector<64x32xbf16>
    %96 = tpu.transpose %93, [1, 0] : vector<64x32xf32> -> vector<32x64xf32>
    %97 = arith.truncf %96 : vector<32x64xf32> to vector<32x64xbf16>
    %cst_42 = arith.constant dense<0.000000e+00> : vector<64x64xf32>
    %98 = tpu.matmul %95, %97, %cst_42 {dimension_numbers = #tpu.dot_dimension_numbers<[1], [0], [0], [1], [0, 0, 1, 1], [], []>} : vector<64x32xbf16>, vector<32x64xbf16>, vector<64x64xf32> -> vector<64x64xf32>
    %99 = arith.addf %98, %1 : vector<64x64xf32>
    %cst_43 = arith.constant dense<0xFF800000> : vector<64xf32>
    %100 = vector.multi_reduction <maximumf>, %99, %cst_43 [1] : vector<64x64xf32> to vector<64xf32>
    %101 = vector.shape_cast %100 : vector<64xf32> to vector<64x1xf32>
    %102 = vector.broadcast %101 : vector<64x1xf32> to vector<64x64xf32>
    %103 = arith.subf %99, %102 : vector<64x64xf32>
    %104 = math.exp %103 : vector<64x64xf32>
    %cst_44 = arith.constant dense<0.000000e+00> : vector<64xf32>
    %105 = vector.multi_reduction <add>, %104, %cst_44 [1] : vector<64x64xf32> to vector<64xf32>
    %106 = vector.shape_cast %105 : vector<64xf32> to vector<64x1xf32>
    %107 = tpu.reciprocal %106 {approx = true} : vector<64x1xf32> -> vector<64x1xf32>
    %108 = vector.broadcast %107 : vector<64x1xf32> to vector<64x64xf32>
    %109 = arith.mulf %104, %108 : vector<64x64xf32>
    %110 = arith.truncf %109 : vector<64x64xf32> to vector<64x64xbf16>
    %111 = arith.truncf %94 : vector<64x32xf32> to vector<64x32xbf16>
    %cst_45 = arith.constant dense<0.000000e+00> : vector<64x32xf32>
    %112 = tpu.matmul %110, %111, %cst_45 {dimension_numbers = #tpu.dot_dimension_numbers<[1], [0], [0], [1], [0, 0, 1, 1], [], []>} : vector<64x64xbf16>, vector<64x32xbf16>, vector<64x32xf32> -> vector<64x32xf32>
    %113 = arith.truncf %112 : vector<64x32xf32> to vector<64x32xbf16>
    %c0_46 = arith.constant 0 : index
    %c2 = arith.constant 2 : index
    %c0_47 = arith.constant 0 : index
    %c0_48 = arith.constant 0 : index
    %114 = vector.load %arg6[%c0_46, %c2, %c0_47, %c0_48] : memref<2x4x32x128xbf16, #tpu.memory_space<vmem>>, vector<1x1x32x128xbf16>
    %115 = vector.shape_cast %114 : vector<1x1x32x128xbf16> to vector<32x128xbf16>
    %cst_49 = arith.constant dense<0.000000e+00> : vector<64x128xf32>
    %116 = tpu.matmul %113, %115, %cst_49 {dimension_numbers = #tpu.dot_dimension_numbers<[1], [0], [0], [1], [0, 0, 1, 1], [], []>} : vector<64x32xbf16>, vector<32x128xbf16>, vector<64x128xf32> -> vector<64x128xf32>
    %117 = arith.addf %91, %116 : vector<64x128xf32>
    %118 = vector.extract_strided_slice %34 {offsets = [0, 96], sizes = [64, 32], strides = [1, 1]} : vector<64x128xf32> to vector<64x32xf32>
    %119 = vector.extract_strided_slice %35 {offsets = [0, 96], sizes = [64, 32], strides = [1, 1]} : vector<64x128xf32> to vector<64x32xf32>
    %120 = vector.extract_strided_slice %36 {offsets = [0, 96], sizes = [64, 32], strides = [1, 1]} : vector<64x128xf32> to vector<64x32xf32>
    %121 = arith.truncf %118 : vector<64x32xf32> to vector<64x32xbf16>
    %122 = tpu.transpose %119, [1, 0] : vector<64x32xf32> -> vector<32x64xf32>
    %123 = arith.truncf %122 : vector<32x64xf32> to vector<32x64xbf16>
    %cst_50 = arith.constant dense<0.000000e+00> : vector<64x64xf32>
    %124 = tpu.matmul %121, %123, %cst_50 {dimension_numbers = #tpu.dot_dimension_numbers<[1], [0], [0], [1], [0, 0, 1, 1], [], []>} : vector<64x32xbf16>, vector<32x64xbf16>, vector<64x64xf32> -> vector<64x64xf32>
    %125 = arith.addf %124, %1 : vector<64x64xf32>
    %cst_51 = arith.constant dense<0xFF800000> : vector<64xf32>
    %126 = vector.multi_reduction <maximumf>, %125, %cst_51 [1] : vector<64x64xf32> to vector<64xf32>
    %127 = vector.shape_cast %126 : vector<64xf32> to vector<64x1xf32>
    %128 = vector.broadcast %127 : vector<64x1xf32> to vector<64x64xf32>
    %129 = arith.subf %125, %128 : vector<64x64xf32>
    %130 = math.exp %129 : vector<64x64xf32>
    %cst_52 = arith.constant dense<0.000000e+00> : vector<64xf32>
    %131 = vector.multi_reduction <add>, %130, %cst_52 [1] : vector<64x64xf32> to vector<64xf32>
    %132 = vector.shape_cast %131 : vector<64xf32> to vector<64x1xf32>
    %133 = tpu.reciprocal %132 {approx = true} : vector<64x1xf32> -> vector<64x1xf32>
    %134 = vector.broadcast %133 : vector<64x1xf32> to vector<64x64xf32>
    %135 = arith.mulf %130, %134 : vector<64x64xf32>
    %136 = arith.truncf %135 : vector<64x64xf32> to vector<64x64xbf16>
    %137 = arith.truncf %120 : vector<64x32xf32> to vector<64x32xbf16>
    %cst_53 = arith.constant dense<0.000000e+00> : vector<64x32xf32>
    %138 = tpu.matmul %136, %137, %cst_53 {dimension_numbers = #tpu.dot_dimension_numbers<[1], [0], [0], [1], [0, 0, 1, 1], [], []>} : vector<64x64xbf16>, vector<64x32xbf16>, vector<64x32xf32> -> vector<64x32xf32>
    %139 = arith.truncf %138 : vector<64x32xf32> to vector<64x32xbf16>
    %c0_54 = arith.constant 0 : index
    %c3 = arith.constant 3 : index
    %c0_55 = arith.constant 0 : index
    %c0_56 = arith.constant 0 : index
    %140 = vector.load %arg6[%c0_54, %c3, %c0_55, %c0_56] : memref<2x4x32x128xbf16, #tpu.memory_space<vmem>>, vector<1x1x32x128xbf16>
    %141 = vector.shape_cast %140 : vector<1x1x32x128xbf16> to vector<32x128xbf16>
    %cst_57 = arith.constant dense<0.000000e+00> : vector<64x128xf32>
    %142 = tpu.matmul %139, %141, %cst_57 {dimension_numbers = #tpu.dot_dimension_numbers<[1], [0], [0], [1], [0, 0, 1, 1], [], []>} : vector<64x32xbf16>, vector<32x128xbf16>, vector<64x128xf32> -> vector<64x128xf32>
    %143 = arith.addf %117, %142 : vector<64x128xf32>
    %144 = arith.addf %0, %143 : vector<64x128xf32>
    %c0_58 = arith.constant 0 : index
    %c2_59 = arith.constant 2 : index
    %c0_60 = arith.constant 0 : index
    %c0_61 = arith.constant 0 : index
    %145 = vector.load %arg3[%c0_58, %c2_59, %c0_60, %c0_61] : memref<2x6x1x128xf32, #tpu.memory_space<vmem>>, vector<1x1x1x128xf32>
    %146 = vector.shape_cast %145 : vector<1x1x1x128xf32> to vector<1x128xf32>
    %c0_62 = arith.constant 0 : index
    %c3_63 = arith.constant 3 : index
    %c0_64 = arith.constant 0 : index
    %c0_65 = arith.constant 0 : index
    %147 = vector.load %arg3[%c0_62, %c3_63, %c0_64, %c0_65] : memref<2x6x1x128xf32, #tpu.memory_space<vmem>>, vector<1x1x1x128xf32>
    %148 = vector.shape_cast %147 : vector<1x1x1x128xf32> to vector<1x128xf32>
    %cst_66 = arith.constant dense<0.000000e+00> : vector<64xf32>
    %149 = vector.multi_reduction <add>, %144, %cst_66 [1] : vector<64x128xf32> to vector<64xf32>
    %150 = vector.shape_cast %149 : vector<64xf32> to vector<64x1xf32>
    %cst_67 = arith.constant 1.280000e+02 : f32
    %151 = vector.broadcast %cst_67 : f32 to vector<64x1xf32>
    %152 = arith.divf %150, %151 : vector<64x1xf32>
    %153 = vector.broadcast %152 : vector<64x1xf32> to vector<64x128xf32>
    %154 = arith.subf %144, %153 : vector<64x128xf32>
    %155 = arith.mulf %154, %154 : vector<64x128xf32>
    %cst_68 = arith.constant dense<0.000000e+00> : vector<64xf32>
    %156 = vector.multi_reduction <add>, %155, %cst_68 [1] : vector<64x128xf32> to vector<64xf32>
    %157 = vector.shape_cast %156 : vector<64xf32> to vector<64x1xf32>
    %cst_69 = arith.constant 1.280000e+02 : f32
    %158 = vector.broadcast %cst_69 : f32 to vector<64x1xf32>
    %159 = arith.divf %157, %158 : vector<64x1xf32>
    %cst_70 = arith.constant 9.99999974E-6 : f32
    %160 = vector.broadcast %cst_70 : f32 to vector<64x1xf32>
    %161 = arith.addf %159, %160 : vector<64x1xf32>
    %162 = math.rsqrt %161 : vector<64x1xf32>
    %163 = vector.broadcast %162 : vector<64x1xf32> to vector<64x128xf32>
    %164 = arith.mulf %154, %163 : vector<64x128xf32>
    %165 = vector.broadcast %146 : vector<1x128xf32> to vector<64x128xf32>
    %166 = arith.mulf %164, %165 : vector<64x128xf32>
    %167 = vector.broadcast %148 : vector<1x128xf32> to vector<64x128xf32>
    %168 = arith.addf %166, %167 : vector<64x128xf32>
    %169 = arith.truncf %168 : vector<64x128xf32> to vector<64x128xbf16>
    %c0_71 = arith.constant 0 : index
    %c0_72 = arith.constant 0 : index
    %c0_73 = arith.constant 0 : index
    %170 = vector.load %arg7[%c0_71, %c0_72, %c0_73] : memref<2x128x512xbf16, #tpu.memory_space<vmem>>, vector<1x128x512xbf16>
    %171 = vector.shape_cast %170 : vector<1x128x512xbf16> to vector<128x512xbf16>
    %cst_74 = arith.constant dense<0.000000e+00> : vector<64x512xf32>
    %172 = tpu.matmul %169, %171, %cst_74 {dimension_numbers = #tpu.dot_dimension_numbers<[1], [0], [0], [1], [0, 0, 1, 1], [], []>} : vector<64x128xbf16>, vector<128x512xbf16>, vector<64x512xf32> -> vector<64x512xf32>
    %c0_75 = arith.constant 0 : index
    %c0_76 = arith.constant 0 : index
    %c0_77 = arith.constant 0 : index
    %173 = vector.load %arg8[%c0_75, %c0_76, %c0_77] : memref<2x1x512xf32, #tpu.memory_space<vmem>>, vector<1x1x512xf32>
    %174 = vector.shape_cast %173 : vector<1x1x512xf32> to vector<1x512xf32>
    %175 = vector.broadcast %174 : vector<1x512xf32> to vector<64x512xf32>
    %176 = arith.addf %172, %175 : vector<64x512xf32>
    %cst_78 = arith.constant 1.702000e+00 : f32
    %177 = vector.broadcast %cst_78 : f32 to vector<64x512xf32>
    %178 = arith.mulf %177, %176 : vector<64x512xf32>
    %179 = arith.negf %178 : vector<64x512xf32>
    %180 = math.exp %179 : vector<64x512xf32>
    %cst_79 = arith.constant 1.000000e+00 : f32
    %181 = vector.broadcast %cst_79 : f32 to vector<64x512xf32>
    %182 = arith.addf %181, %180 : vector<64x512xf32>
    %183 = arith.divf %181, %182 : vector<64x512xf32>
    %184 = arith.mulf %176, %183 : vector<64x512xf32>
    %185 = arith.truncf %184 : vector<64x512xf32> to vector<64x512xbf16>
    %c0_80 = arith.constant 0 : index
    %c0_81 = arith.constant 0 : index
    %c0_82 = arith.constant 0 : index
    %186 = vector.load %arg9[%c0_80, %c0_81, %c0_82] : memref<2x512x128xbf16, #tpu.memory_space<vmem>>, vector<1x512x128xbf16>
    %187 = vector.shape_cast %186 : vector<1x512x128xbf16> to vector<512x128xbf16>
    %cst_83 = arith.constant dense<0.000000e+00> : vector<64x128xf32>
    %188 = tpu.matmul %185, %187, %cst_83 {dimension_numbers = #tpu.dot_dimension_numbers<[1], [0], [0], [1], [0, 0, 1, 1], [], []>} : vector<64x512xbf16>, vector<512x128xbf16>, vector<64x128xf32> -> vector<64x128xf32>
    %c0_84 = arith.constant 0 : index
    %c5 = arith.constant 5 : index
    %c0_85 = arith.constant 0 : index
    %c0_86 = arith.constant 0 : index
    %189 = vector.load %arg3[%c0_84, %c5, %c0_85, %c0_86] : memref<2x6x1x128xf32, #tpu.memory_space<vmem>>, vector<1x1x1x128xf32>
    %190 = vector.shape_cast %189 : vector<1x1x1x128xf32> to vector<1x128xf32>
    %191 = vector.broadcast %190 : vector<1x128xf32> to vector<64x128xf32>
    %192 = arith.addf %188, %191 : vector<64x128xf32>
    %193 = arith.addf %144, %192 : vector<64x128xf32>
    %c1_87 = arith.constant 1 : index
    %c0_88 = arith.constant 0 : index
    %c0_89 = arith.constant 0 : index
    %c0_90 = arith.constant 0 : index
    %194 = vector.load %arg3[%c1_87, %c0_88, %c0_89, %c0_90] : memref<2x6x1x128xf32, #tpu.memory_space<vmem>>, vector<1x1x1x128xf32>
    %195 = vector.shape_cast %194 : vector<1x1x1x128xf32> to vector<1x128xf32>
    %c1_91 = arith.constant 1 : index
    %c1_92 = arith.constant 1 : index
    %c0_93 = arith.constant 0 : index
    %c0_94 = arith.constant 0 : index
    %196 = vector.load %arg3[%c1_91, %c1_92, %c0_93, %c0_94] : memref<2x6x1x128xf32, #tpu.memory_space<vmem>>, vector<1x1x1x128xf32>
    %197 = vector.shape_cast %196 : vector<1x1x1x128xf32> to vector<1x128xf32>
    %cst_95 = arith.constant dense<0.000000e+00> : vector<64xf32>
    %198 = vector.multi_reduction <add>, %193, %cst_95 [1] : vector<64x128xf32> to vector<64xf32>
    %199 = vector.shape_cast %198 : vector<64xf32> to vector<64x1xf32>
    %cst_96 = arith.constant 1.280000e+02 : f32
    %200 = vector.broadcast %cst_96 : f32 to vector<64x1xf32>
    %201 = arith.divf %199, %200 : vector<64x1xf32>
    %202 = vector.broadcast %201 : vector<64x1xf32> to vector<64x128xf32>
    %203 = arith.subf %193, %202 : vector<64x128xf32>
    %204 = arith.mulf %203, %203 : vector<64x128xf32>
    %cst_97 = arith.constant dense<0.000000e+00> : vector<64xf32>
    %205 = vector.multi_reduction <add>, %204, %cst_97 [1] : vector<64x128xf32> to vector<64xf32>
    %206 = vector.shape_cast %205 : vector<64xf32> to vector<64x1xf32>
    %cst_98 = arith.constant 1.280000e+02 : f32
    %207 = vector.broadcast %cst_98 : f32 to vector<64x1xf32>
    %208 = arith.divf %206, %207 : vector<64x1xf32>
    %cst_99 = arith.constant 9.99999974E-6 : f32
    %209 = vector.broadcast %cst_99 : f32 to vector<64x1xf32>
    %210 = arith.addf %208, %209 : vector<64x1xf32>
    %211 = math.rsqrt %210 : vector<64x1xf32>
    %212 = vector.broadcast %211 : vector<64x1xf32> to vector<64x128xf32>
    %213 = arith.mulf %203, %212 : vector<64x128xf32>
    %214 = vector.broadcast %195 : vector<1x128xf32> to vector<64x128xf32>
    %215 = arith.mulf %213, %214 : vector<64x128xf32>
    %216 = vector.broadcast %197 : vector<1x128xf32> to vector<64x128xf32>
    %217 = arith.addf %215, %216 : vector<64x128xf32>
    %218 = arith.truncf %217 : vector<64x128xf32> to vector<64x128xbf16>
    %c1_100 = arith.constant 1 : index
    %c0_101 = arith.constant 0 : index
    %c0_102 = arith.constant 0 : index
    %219 = vector.load %arg4[%c1_100, %c0_101, %c0_102] : memref<2x128x384xbf16, #tpu.memory_space<vmem>>, vector<1x128x384xbf16>
    %220 = vector.shape_cast %219 : vector<1x128x384xbf16> to vector<128x384xbf16>
    %cst_103 = arith.constant dense<0.000000e+00> : vector<64x384xf32>
    %221 = tpu.matmul %218, %220, %cst_103 {dimension_numbers = #tpu.dot_dimension_numbers<[1], [0], [0], [1], [0, 0, 1, 1], [], []>} : vector<64x128xbf16>, vector<128x384xbf16>, vector<64x384xf32> -> vector<64x384xf32>
    %c1_104 = arith.constant 1 : index
    %c0_105 = arith.constant 0 : index
    %c0_106 = arith.constant 0 : index
    %222 = vector.load %arg5[%c1_104, %c0_105, %c0_106] : memref<2x1x384xf32, #tpu.memory_space<vmem>>, vector<1x1x384xf32>
    %223 = vector.shape_cast %222 : vector<1x1x384xf32> to vector<1x384xf32>
    %224 = vector.broadcast %223 : vector<1x384xf32> to vector<64x384xf32>
    %225 = arith.addf %221, %224 : vector<64x384xf32>
    %226 = vector.extract_strided_slice %225 {offsets = [0, 0], sizes = [64, 128], strides = [1, 1]} : vector<64x384xf32> to vector<64x128xf32>
    %227 = vector.extract_strided_slice %225 {offsets = [0, 128], sizes = [64, 128], strides = [1, 1]} : vector<64x384xf32> to vector<64x128xf32>
    %228 = vector.extract_strided_slice %225 {offsets = [0, 256], sizes = [64, 128], strides = [1, 1]} : vector<64x384xf32> to vector<64x128xf32>
    %c1_107 = arith.constant 1 : index
    %c4_108 = arith.constant 4 : index
    %c0_109 = arith.constant 0 : index
    %c0_110 = arith.constant 0 : index
    %229 = vector.load %arg3[%c1_107, %c4_108, %c0_109, %c0_110] : memref<2x6x1x128xf32, #tpu.memory_space<vmem>>, vector<1x1x1x128xf32>
    %230 = vector.shape_cast %229 : vector<1x1x1x128xf32> to vector<1x128xf32>
    %231 = vector.extract_strided_slice %226 {offsets = [0, 0], sizes = [64, 32], strides = [1, 1]} : vector<64x128xf32> to vector<64x32xf32>
    %232 = vector.extract_strided_slice %227 {offsets = [0, 0], sizes = [64, 32], strides = [1, 1]} : vector<64x128xf32> to vector<64x32xf32>
    %233 = vector.extract_strided_slice %228 {offsets = [0, 0], sizes = [64, 32], strides = [1, 1]} : vector<64x128xf32> to vector<64x32xf32>
    %234 = arith.truncf %231 : vector<64x32xf32> to vector<64x32xbf16>
    %235 = tpu.transpose %232, [1, 0] : vector<64x32xf32> -> vector<32x64xf32>
    %236 = arith.truncf %235 : vector<32x64xf32> to vector<32x64xbf16>
    %cst_111 = arith.constant dense<0.000000e+00> : vector<64x64xf32>
    %237 = tpu.matmul %234, %236, %cst_111 {dimension_numbers = #tpu.dot_dimension_numbers<[1], [0], [0], [1], [0, 0, 1, 1], [], []>} : vector<64x32xbf16>, vector<32x64xbf16>, vector<64x64xf32> -> vector<64x64xf32>
    %238 = arith.addf %237, %1 : vector<64x64xf32>
    %cst_112 = arith.constant dense<0xFF800000> : vector<64xf32>
    %239 = vector.multi_reduction <maximumf>, %238, %cst_112 [1] : vector<64x64xf32> to vector<64xf32>
    %240 = vector.shape_cast %239 : vector<64xf32> to vector<64x1xf32>
    %241 = vector.broadcast %240 : vector<64x1xf32> to vector<64x64xf32>
    %242 = arith.subf %238, %241 : vector<64x64xf32>
    %243 = math.exp %242 : vector<64x64xf32>
    %cst_113 = arith.constant dense<0.000000e+00> : vector<64xf32>
    %244 = vector.multi_reduction <add>, %243, %cst_113 [1] : vector<64x64xf32> to vector<64xf32>
    %245 = vector.shape_cast %244 : vector<64xf32> to vector<64x1xf32>
    %246 = tpu.reciprocal %245 {approx = true} : vector<64x1xf32> -> vector<64x1xf32>
    %247 = vector.broadcast %246 : vector<64x1xf32> to vector<64x64xf32>
    %248 = arith.mulf %243, %247 : vector<64x64xf32>
    %249 = arith.truncf %248 : vector<64x64xf32> to vector<64x64xbf16>
    %250 = arith.truncf %233 : vector<64x32xf32> to vector<64x32xbf16>
    %cst_114 = arith.constant dense<0.000000e+00> : vector<64x32xf32>
    %251 = tpu.matmul %249, %250, %cst_114 {dimension_numbers = #tpu.dot_dimension_numbers<[1], [0], [0], [1], [0, 0, 1, 1], [], []>} : vector<64x64xbf16>, vector<64x32xbf16>, vector<64x32xf32> -> vector<64x32xf32>
    %252 = arith.truncf %251 : vector<64x32xf32> to vector<64x32xbf16>
    %c1_115 = arith.constant 1 : index
    %c0_116 = arith.constant 0 : index
    %c0_117 = arith.constant 0 : index
    %c0_118 = arith.constant 0 : index
    %253 = vector.load %arg6[%c1_115, %c0_116, %c0_117, %c0_118] : memref<2x4x32x128xbf16, #tpu.memory_space<vmem>>, vector<1x1x32x128xbf16>
    %254 = vector.shape_cast %253 : vector<1x1x32x128xbf16> to vector<32x128xbf16>
    %cst_119 = arith.constant dense<0.000000e+00> : vector<64x128xf32>
    %255 = tpu.matmul %252, %254, %cst_119 {dimension_numbers = #tpu.dot_dimension_numbers<[1], [0], [0], [1], [0, 0, 1, 1], [], []>} : vector<64x32xbf16>, vector<32x128xbf16>, vector<64x128xf32> -> vector<64x128xf32>
    %256 = vector.broadcast %230 : vector<1x128xf32> to vector<64x128xf32>
    %257 = arith.addf %256, %255 : vector<64x128xf32>
    %258 = vector.extract_strided_slice %226 {offsets = [0, 32], sizes = [64, 32], strides = [1, 1]} : vector<64x128xf32> to vector<64x32xf32>
    %259 = vector.extract_strided_slice %227 {offsets = [0, 32], sizes = [64, 32], strides = [1, 1]} : vector<64x128xf32> to vector<64x32xf32>
    %260 = vector.extract_strided_slice %228 {offsets = [0, 32], sizes = [64, 32], strides = [1, 1]} : vector<64x128xf32> to vector<64x32xf32>
    %261 = arith.truncf %258 : vector<64x32xf32> to vector<64x32xbf16>
    %262 = tpu.transpose %259, [1, 0] : vector<64x32xf32> -> vector<32x64xf32>
    %263 = arith.truncf %262 : vector<32x64xf32> to vector<32x64xbf16>
    %cst_120 = arith.constant dense<0.000000e+00> : vector<64x64xf32>
    %264 = tpu.matmul %261, %263, %cst_120 {dimension_numbers = #tpu.dot_dimension_numbers<[1], [0], [0], [1], [0, 0, 1, 1], [], []>} : vector<64x32xbf16>, vector<32x64xbf16>, vector<64x64xf32> -> vector<64x64xf32>
    %265 = arith.addf %264, %1 : vector<64x64xf32>
    %cst_121 = arith.constant dense<0xFF800000> : vector<64xf32>
    %266 = vector.multi_reduction <maximumf>, %265, %cst_121 [1] : vector<64x64xf32> to vector<64xf32>
    %267 = vector.shape_cast %266 : vector<64xf32> to vector<64x1xf32>
    %268 = vector.broadcast %267 : vector<64x1xf32> to vector<64x64xf32>
    %269 = arith.subf %265, %268 : vector<64x64xf32>
    %270 = math.exp %269 : vector<64x64xf32>
    %cst_122 = arith.constant dense<0.000000e+00> : vector<64xf32>
    %271 = vector.multi_reduction <add>, %270, %cst_122 [1] : vector<64x64xf32> to vector<64xf32>
    %272 = vector.shape_cast %271 : vector<64xf32> to vector<64x1xf32>
    %273 = tpu.reciprocal %272 {approx = true} : vector<64x1xf32> -> vector<64x1xf32>
    %274 = vector.broadcast %273 : vector<64x1xf32> to vector<64x64xf32>
    %275 = arith.mulf %270, %274 : vector<64x64xf32>
    %276 = arith.truncf %275 : vector<64x64xf32> to vector<64x64xbf16>
    %277 = arith.truncf %260 : vector<64x32xf32> to vector<64x32xbf16>
    %cst_123 = arith.constant dense<0.000000e+00> : vector<64x32xf32>
    %278 = tpu.matmul %276, %277, %cst_123 {dimension_numbers = #tpu.dot_dimension_numbers<[1], [0], [0], [1], [0, 0, 1, 1], [], []>} : vector<64x64xbf16>, vector<64x32xbf16>, vector<64x32xf32> -> vector<64x32xf32>
    %279 = arith.truncf %278 : vector<64x32xf32> to vector<64x32xbf16>
    %c1_124 = arith.constant 1 : index
    %c1_125 = arith.constant 1 : index
    %c0_126 = arith.constant 0 : index
    %c0_127 = arith.constant 0 : index
    %280 = vector.load %arg6[%c1_124, %c1_125, %c0_126, %c0_127] : memref<2x4x32x128xbf16, #tpu.memory_space<vmem>>, vector<1x1x32x128xbf16>
    %281 = vector.shape_cast %280 : vector<1x1x32x128xbf16> to vector<32x128xbf16>
    %cst_128 = arith.constant dense<0.000000e+00> : vector<64x128xf32>
    %282 = tpu.matmul %279, %281, %cst_128 {dimension_numbers = #tpu.dot_dimension_numbers<[1], [0], [0], [1], [0, 0, 1, 1], [], []>} : vector<64x32xbf16>, vector<32x128xbf16>, vector<64x128xf32> -> vector<64x128xf32>
    %283 = arith.addf %257, %282 : vector<64x128xf32>
    %284 = vector.extract_strided_slice %226 {offsets = [0, 64], sizes = [64, 32], strides = [1, 1]} : vector<64x128xf32> to vector<64x32xf32>
    %285 = vector.extract_strided_slice %227 {offsets = [0, 64], sizes = [64, 32], strides = [1, 1]} : vector<64x128xf32> to vector<64x32xf32>
    %286 = vector.extract_strided_slice %228 {offsets = [0, 64], sizes = [64, 32], strides = [1, 1]} : vector<64x128xf32> to vector<64x32xf32>
    %287 = arith.truncf %284 : vector<64x32xf32> to vector<64x32xbf16>
    %288 = tpu.transpose %285, [1, 0] : vector<64x32xf32> -> vector<32x64xf32>
    %289 = arith.truncf %288 : vector<32x64xf32> to vector<32x64xbf16>
    %cst_129 = arith.constant dense<0.000000e+00> : vector<64x64xf32>
    %290 = tpu.matmul %287, %289, %cst_129 {dimension_numbers = #tpu.dot_dimension_numbers<[1], [0], [0], [1], [0, 0, 1, 1], [], []>} : vector<64x32xbf16>, vector<32x64xbf16>, vector<64x64xf32> -> vector<64x64xf32>
    %291 = arith.addf %290, %1 : vector<64x64xf32>
    %cst_130 = arith.constant dense<0xFF800000> : vector<64xf32>
    %292 = vector.multi_reduction <maximumf>, %291, %cst_130 [1] : vector<64x64xf32> to vector<64xf32>
    %293 = vector.shape_cast %292 : vector<64xf32> to vector<64x1xf32>
    %294 = vector.broadcast %293 : vector<64x1xf32> to vector<64x64xf32>
    %295 = arith.subf %291, %294 : vector<64x64xf32>
    %296 = math.exp %295 : vector<64x64xf32>
    %cst_131 = arith.constant dense<0.000000e+00> : vector<64xf32>
    %297 = vector.multi_reduction <add>, %296, %cst_131 [1] : vector<64x64xf32> to vector<64xf32>
    %298 = vector.shape_cast %297 : vector<64xf32> to vector<64x1xf32>
    %299 = tpu.reciprocal %298 {approx = true} : vector<64x1xf32> -> vector<64x1xf32>
    %300 = vector.broadcast %299 : vector<64x1xf32> to vector<64x64xf32>
    %301 = arith.mulf %296, %300 : vector<64x64xf32>
    %302 = arith.truncf %301 : vector<64x64xf32> to vector<64x64xbf16>
    %303 = arith.truncf %286 : vector<64x32xf32> to vector<64x32xbf16>
    %cst_132 = arith.constant dense<0.000000e+00> : vector<64x32xf32>
    %304 = tpu.matmul %302, %303, %cst_132 {dimension_numbers = #tpu.dot_dimension_numbers<[1], [0], [0], [1], [0, 0, 1, 1], [], []>} : vector<64x64xbf16>, vector<64x32xbf16>, vector<64x32xf32> -> vector<64x32xf32>
    %305 = arith.truncf %304 : vector<64x32xf32> to vector<64x32xbf16>
    %c1_133 = arith.constant 1 : index
    %c2_134 = arith.constant 2 : index
    %c0_135 = arith.constant 0 : index
    %c0_136 = arith.constant 0 : index
    %306 = vector.load %arg6[%c1_133, %c2_134, %c0_135, %c0_136] : memref<2x4x32x128xbf16, #tpu.memory_space<vmem>>, vector<1x1x32x128xbf16>
    %307 = vector.shape_cast %306 : vector<1x1x32x128xbf16> to vector<32x128xbf16>
    %cst_137 = arith.constant dense<0.000000e+00> : vector<64x128xf32>
    %308 = tpu.matmul %305, %307, %cst_137 {dimension_numbers = #tpu.dot_dimension_numbers<[1], [0], [0], [1], [0, 0, 1, 1], [], []>} : vector<64x32xbf16>, vector<32x128xbf16>, vector<64x128xf32> -> vector<64x128xf32>
    %309 = arith.addf %283, %308 : vector<64x128xf32>
    %310 = vector.extract_strided_slice %226 {offsets = [0, 96], sizes = [64, 32], strides = [1, 1]} : vector<64x128xf32> to vector<64x32xf32>
    %311 = vector.extract_strided_slice %227 {offsets = [0, 96], sizes = [64, 32], strides = [1, 1]} : vector<64x128xf32> to vector<64x32xf32>
    %312 = vector.extract_strided_slice %228 {offsets = [0, 96], sizes = [64, 32], strides = [1, 1]} : vector<64x128xf32> to vector<64x32xf32>
    %313 = arith.truncf %310 : vector<64x32xf32> to vector<64x32xbf16>
    %314 = tpu.transpose %311, [1, 0] : vector<64x32xf32> -> vector<32x64xf32>
    %315 = arith.truncf %314 : vector<32x64xf32> to vector<32x64xbf16>
    %cst_138 = arith.constant dense<0.000000e+00> : vector<64x64xf32>
    %316 = tpu.matmul %313, %315, %cst_138 {dimension_numbers = #tpu.dot_dimension_numbers<[1], [0], [0], [1], [0, 0, 1, 1], [], []>} : vector<64x32xbf16>, vector<32x64xbf16>, vector<64x64xf32> -> vector<64x64xf32>
    %317 = arith.addf %316, %1 : vector<64x64xf32>
    %cst_139 = arith.constant dense<0xFF800000> : vector<64xf32>
    %318 = vector.multi_reduction <maximumf>, %317, %cst_139 [1] : vector<64x64xf32> to vector<64xf32>
    %319 = vector.shape_cast %318 : vector<64xf32> to vector<64x1xf32>
    %320 = vector.broadcast %319 : vector<64x1xf32> to vector<64x64xf32>
    %321 = arith.subf %317, %320 : vector<64x64xf32>
    %322 = math.exp %321 : vector<64x64xf32>
    %cst_140 = arith.constant dense<0.000000e+00> : vector<64xf32>
    %323 = vector.multi_reduction <add>, %322, %cst_140 [1] : vector<64x64xf32> to vector<64xf32>
    %324 = vector.shape_cast %323 : vector<64xf32> to vector<64x1xf32>
    %325 = tpu.reciprocal %324 {approx = true} : vector<64x1xf32> -> vector<64x1xf32>
    %326 = vector.broadcast %325 : vector<64x1xf32> to vector<64x64xf32>
    %327 = arith.mulf %322, %326 : vector<64x64xf32>
    %328 = arith.truncf %327 : vector<64x64xf32> to vector<64x64xbf16>
    %329 = arith.truncf %312 : vector<64x32xf32> to vector<64x32xbf16>
    %cst_141 = arith.constant dense<0.000000e+00> : vector<64x32xf32>
    %330 = tpu.matmul %328, %329, %cst_141 {dimension_numbers = #tpu.dot_dimension_numbers<[1], [0], [0], [1], [0, 0, 1, 1], [], []>} : vector<64x64xbf16>, vector<64x32xbf16>, vector<64x32xf32> -> vector<64x32xf32>
    %331 = arith.truncf %330 : vector<64x32xf32> to vector<64x32xbf16>
    %c1_142 = arith.constant 1 : index
    %c3_143 = arith.constant 3 : index
    %c0_144 = arith.constant 0 : index
    %c0_145 = arith.constant 0 : index
    %332 = vector.load %arg6[%c1_142, %c3_143, %c0_144, %c0_145] : memref<2x4x32x128xbf16, #tpu.memory_space<vmem>>, vector<1x1x32x128xbf16>
    %333 = vector.shape_cast %332 : vector<1x1x32x128xbf16> to vector<32x128xbf16>
    %cst_146 = arith.constant dense<0.000000e+00> : vector<64x128xf32>
    %334 = tpu.matmul %331, %333, %cst_146 {dimension_numbers = #tpu.dot_dimension_numbers<[1], [0], [0], [1], [0, 0, 1, 1], [], []>} : vector<64x32xbf16>, vector<32x128xbf16>, vector<64x128xf32> -> vector<64x128xf32>
    %335 = arith.addf %309, %334 : vector<64x128xf32>
    %336 = arith.addf %193, %335 : vector<64x128xf32>
    %c1_147 = arith.constant 1 : index
    %c2_148 = arith.constant 2 : index
    %c0_149 = arith.constant 0 : index
    %c0_150 = arith.constant 0 : index
    %337 = vector.load %arg3[%c1_147, %c2_148, %c0_149, %c0_150] : memref<2x6x1x128xf32, #tpu.memory_space<vmem>>, vector<1x1x1x128xf32>
    %338 = vector.shape_cast %337 : vector<1x1x1x128xf32> to vector<1x128xf32>
    %c1_151 = arith.constant 1 : index
    %c3_152 = arith.constant 3 : index
    %c0_153 = arith.constant 0 : index
    %c0_154 = arith.constant 0 : index
    %339 = vector.load %arg3[%c1_151, %c3_152, %c0_153, %c0_154] : memref<2x6x1x128xf32, #tpu.memory_space<vmem>>, vector<1x1x1x128xf32>
    %340 = vector.shape_cast %339 : vector<1x1x1x128xf32> to vector<1x128xf32>
    %cst_155 = arith.constant dense<0.000000e+00> : vector<64xf32>
    %341 = vector.multi_reduction <add>, %336, %cst_155 [1] : vector<64x128xf32> to vector<64xf32>
    %342 = vector.shape_cast %341 : vector<64xf32> to vector<64x1xf32>
    %cst_156 = arith.constant 1.280000e+02 : f32
    %343 = vector.broadcast %cst_156 : f32 to vector<64x1xf32>
    %344 = arith.divf %342, %343 : vector<64x1xf32>
    %345 = vector.broadcast %344 : vector<64x1xf32> to vector<64x128xf32>
    %346 = arith.subf %336, %345 : vector<64x128xf32>
    %347 = arith.mulf %346, %346 : vector<64x128xf32>
    %cst_157 = arith.constant dense<0.000000e+00> : vector<64xf32>
    %348 = vector.multi_reduction <add>, %347, %cst_157 [1] : vector<64x128xf32> to vector<64xf32>
    %349 = vector.shape_cast %348 : vector<64xf32> to vector<64x1xf32>
    %cst_158 = arith.constant 1.280000e+02 : f32
    %350 = vector.broadcast %cst_158 : f32 to vector<64x1xf32>
    %351 = arith.divf %349, %350 : vector<64x1xf32>
    %cst_159 = arith.constant 9.99999974E-6 : f32
    %352 = vector.broadcast %cst_159 : f32 to vector<64x1xf32>
    %353 = arith.addf %351, %352 : vector<64x1xf32>
    %354 = math.rsqrt %353 : vector<64x1xf32>
    %355 = vector.broadcast %354 : vector<64x1xf32> to vector<64x128xf32>
    %356 = arith.mulf %346, %355 : vector<64x128xf32>
    %357 = vector.broadcast %338 : vector<1x128xf32> to vector<64x128xf32>
    %358 = arith.mulf %356, %357 : vector<64x128xf32>
    %359 = vector.broadcast %340 : vector<1x128xf32> to vector<64x128xf32>
    %360 = arith.addf %358, %359 : vector<64x128xf32>
    %361 = arith.truncf %360 : vector<64x128xf32> to vector<64x128xbf16>
    %c1_160 = arith.constant 1 : index
    %c0_161 = arith.constant 0 : index
    %c0_162 = arith.constant 0 : index
    %362 = vector.load %arg7[%c1_160, %c0_161, %c0_162] : memref<2x128x512xbf16, #tpu.memory_space<vmem>>, vector<1x128x512xbf16>
    %363 = vector.shape_cast %362 : vector<1x128x512xbf16> to vector<128x512xbf16>
    %cst_163 = arith.constant dense<0.000000e+00> : vector<64x512xf32>
    %364 = tpu.matmul %361, %363, %cst_163 {dimension_numbers = #tpu.dot_dimension_numbers<[1], [0], [0], [1], [0, 0, 1, 1], [], []>} : vector<64x128xbf16>, vector<128x512xbf16>, vector<64x512xf32> -> vector<64x512xf32>
    %c1_164 = arith.constant 1 : index
    %c0_165 = arith.constant 0 : index
    %c0_166 = arith.constant 0 : index
    %365 = vector.load %arg8[%c1_164, %c0_165, %c0_166] : memref<2x1x512xf32, #tpu.memory_space<vmem>>, vector<1x1x512xf32>
    %366 = vector.shape_cast %365 : vector<1x1x512xf32> to vector<1x512xf32>
    %367 = vector.broadcast %366 : vector<1x512xf32> to vector<64x512xf32>
    %368 = arith.addf %364, %367 : vector<64x512xf32>
    %cst_167 = arith.constant 1.702000e+00 : f32
    %369 = vector.broadcast %cst_167 : f32 to vector<64x512xf32>
    %370 = arith.mulf %369, %368 : vector<64x512xf32>
    %371 = arith.negf %370 : vector<64x512xf32>
    %372 = math.exp %371 : vector<64x512xf32>
    %cst_168 = arith.constant 1.000000e+00 : f32
    %373 = vector.broadcast %cst_168 : f32 to vector<64x512xf32>
    %374 = arith.addf %373, %372 : vector<64x512xf32>
    %375 = arith.divf %373, %374 : vector<64x512xf32>
    %376 = arith.mulf %368, %375 : vector<64x512xf32>
    %377 = arith.truncf %376 : vector<64x512xf32> to vector<64x512xbf16>
    %c1_169 = arith.constant 1 : index
    %c0_170 = arith.constant 0 : index
    %c0_171 = arith.constant 0 : index
    %378 = vector.load %arg9[%c1_169, %c0_170, %c0_171] : memref<2x512x128xbf16, #tpu.memory_space<vmem>>, vector<1x512x128xbf16>
    %379 = vector.shape_cast %378 : vector<1x512x128xbf16> to vector<512x128xbf16>
    %cst_172 = arith.constant dense<0.000000e+00> : vector<64x128xf32>
    %380 = tpu.matmul %377, %379, %cst_172 {dimension_numbers = #tpu.dot_dimension_numbers<[1], [0], [0], [1], [0, 0, 1, 1], [], []>} : vector<64x512xbf16>, vector<512x128xbf16>, vector<64x128xf32> -> vector<64x128xf32>
    %c1_173 = arith.constant 1 : index
    %c5_174 = arith.constant 5 : index
    %c0_175 = arith.constant 0 : index
    %c0_176 = arith.constant 0 : index
    %381 = vector.load %arg3[%c1_173, %c5_174, %c0_175, %c0_176] : memref<2x6x1x128xf32, #tpu.memory_space<vmem>>, vector<1x1x1x128xf32>
    %382 = vector.shape_cast %381 : vector<1x1x1x128xf32> to vector<1x128xf32>
    %383 = vector.broadcast %382 : vector<1x128xf32> to vector<64x128xf32>
    %384 = arith.addf %380, %383 : vector<64x128xf32>
    %385 = arith.addf %336, %384 : vector<64x128xf32>
    %c0_177 = arith.constant 0 : index
    %c0_178 = arith.constant 0 : index
    %c0_179 = arith.constant 0 : index
    %386 = vector.load %arg10[%c0_177, %c0_178, %c0_179] : memref<2x1x128xf32, #tpu.memory_space<vmem>>, vector<1x1x128xf32>
    %387 = vector.shape_cast %386 : vector<1x1x128xf32> to vector<1x128xf32>
    %c1_180 = arith.constant 1 : index
    %c0_181 = arith.constant 0 : index
    %c0_182 = arith.constant 0 : index
    %388 = vector.load %arg10[%c1_180, %c0_181, %c0_182] : memref<2x1x128xf32, #tpu.memory_space<vmem>>, vector<1x1x128xf32>
    %389 = vector.shape_cast %388 : vector<1x1x128xf32> to vector<1x128xf32>
    %cst_183 = arith.constant dense<0.000000e+00> : vector<64xf32>
    %390 = vector.multi_reduction <add>, %385, %cst_183 [1] : vector<64x128xf32> to vector<64xf32>
    %391 = vector.shape_cast %390 : vector<64xf32> to vector<64x1xf32>
    %cst_184 = arith.constant 1.280000e+02 : f32
    %392 = vector.broadcast %cst_184 : f32 to vector<64x1xf32>
    %393 = arith.divf %391, %392 : vector<64x1xf32>
    %394 = vector.broadcast %393 : vector<64x1xf32> to vector<64x128xf32>
    %395 = arith.subf %385, %394 : vector<64x128xf32>
    %396 = arith.mulf %395, %395 : vector<64x128xf32>
    %cst_185 = arith.constant dense<0.000000e+00> : vector<64xf32>
    %397 = vector.multi_reduction <add>, %396, %cst_185 [1] : vector<64x128xf32> to vector<64xf32>
    %398 = vector.shape_cast %397 : vector<64xf32> to vector<64x1xf32>
    %cst_186 = arith.constant 1.280000e+02 : f32
    %399 = vector.broadcast %cst_186 : f32 to vector<64x1xf32>
    %400 = arith.divf %398, %399 : vector<64x1xf32>
    %cst_187 = arith.constant 9.99999974E-6 : f32
    %401 = vector.broadcast %cst_187 : f32 to vector<64x1xf32>
    %402 = arith.addf %400, %401 : vector<64x1xf32>
    %403 = math.rsqrt %402 : vector<64x1xf32>
    %404 = vector.broadcast %403 : vector<64x1xf32> to vector<64x128xf32>
    %405 = arith.mulf %395, %404 : vector<64x128xf32>
    %406 = vector.broadcast %387 : vector<1x128xf32> to vector<64x128xf32>
    %407 = arith.mulf %405, %406 : vector<64x128xf32>
    %408 = vector.broadcast %389 : vector<1x128xf32> to vector<64x128xf32>
    %409 = arith.addf %407, %408 : vector<64x128xf32>
    %c0_188 = arith.constant 0 : index
    %c0_189 = arith.constant 0 : index
    %410 = vector.load %arg11[%c0_188, %c0_189] : memref<64x128xf32, #tpu.memory_space<vmem>>, vector<64x128xf32>
    tpu.vector_store %arg11[%c0_188, %c0_189], %409 {strides = array<i32>} : memref<64x128xf32, #tpu.memory_space<vmem>>, vector<64x128xf32>,
    return
  }
  func.func @transform_0(%arg0: i32) -> (i32, i32) {
    %c0_i32 = arith.constant 0 : i32
    %c0_i32_0 = arith.constant 0 : i32
    return %arg0, %c0_i32 : i32, i32
  }
  func.func @transform_1(%arg0: i32) -> (i32, i32) {
    %c0_i32 = arith.constant 0 : i32
    %c0_i32_0 = arith.constant 0 : i32
    %c0_i32_1 = arith.constant 0 : i32
    return %c0_i32, %c0_i32_0 : i32, i32
  }
  func.func @transform_2(%arg0: i32) -> (i32, i32, i32, i32) {
    %c0_i32 = arith.constant 0 : i32
    %c0_i32_0 = arith.constant 0 : i32
    %c0_i32_1 = arith.constant 0 : i32
    %c0_i32_2 = arith.constant 0 : i32
    %c0_i32_3 = arith.constant 0 : i32
    return %c0_i32, %c0_i32_0, %c0_i32_1, %c0_i32_2 : i32, i32, i32, i32
  }
  func.func @transform_3(%arg0: i32) -> (i32, i32, i32) {
    %c0_i32 = arith.constant 0 : i32
    %c0_i32_0 = arith.constant 0 : i32
    %c0_i32_1 = arith.constant 0 : i32
    %c0_i32_2 = arith.constant 0 : i32
    return %c0_i32, %c0_i32_0, %c0_i32_1 : i32, i32, i32
  }
  func.func @transform_4(%arg0: i32) -> (i32, i32, i32) {
    %c0_i32 = arith.constant 0 : i32
    %c0_i32_0 = arith.constant 0 : i32
    %c0_i32_1 = arith.constant 0 : i32
    %c0_i32_2 = arith.constant 0 : i32
    return %c0_i32, %c0_i32_0, %c0_i32_1 : i32, i32, i32
  }
  func.func @transform_5(%arg0: i32) -> (i32, i32, i32, i32) {
    %c0_i32 = arith.constant 0 : i32
    %c0_i32_0 = arith.constant 0 : i32
    %c0_i32_1 = arith.constant 0 : i32
    %c0_i32_2 = arith.constant 0 : i32
    %c0_i32_3 = arith.constant 0 : i32
    return %c0_i32, %c0_i32_0, %c0_i32_1, %c0_i32_2 : i32, i32, i32, i32
  }
  func.func @transform_6(%arg0: i32) -> (i32, i32, i32) {
    %c0_i32 = arith.constant 0 : i32
    %c0_i32_0 = arith.constant 0 : i32
    %c0_i32_1 = arith.constant 0 : i32
    %c0_i32_2 = arith.constant 0 : i32
    return %c0_i32, %c0_i32_0, %c0_i32_1 : i32, i32, i32
  }
  func.func @transform_7(%arg0: i32) -> (i32, i32, i32) {
    %c0_i32 = arith.constant 0 : i32
    %c0_i32_0 = arith.constant 0 : i32
    %c0_i32_1 = arith.constant 0 : i32
    %c0_i32_2 = arith.constant 0 : i32
    return %c0_i32, %c0_i32_0, %c0_i32_1 : i32, i32, i32
  }
  func.func @transform_8(%arg0: i32) -> (i32, i32, i32) {
    %c0_i32 = arith.constant 0 : i32
    %c0_i32_0 = arith.constant 0 : i32
    %c0_i32_1 = arith.constant 0 : i32
    %c0_i32_2 = arith.constant 0 : i32
    return %c0_i32, %c0_i32_0, %c0_i32_1 : i32, i32, i32
  }
  func.func @transform_9(%arg0: i32) -> (i32, i32, i32) {
    %c0_i32 = arith.constant 0 : i32
    %c0_i32_0 = arith.constant 0 : i32
    %c0_i32_1 = arith.constant 0 : i32
    %c0_i32_2 = arith.constant 0 : i32
    return %c0_i32, %c0_i32_0, %c0_i32_1 : i32, i32, i32
  }
  func.func @transform_10(%arg0: i32) -> (i32, i32) {
    %c0_i32 = arith.constant 0 : i32
    %c0_i32_0 = arith.constant 0 : i32
    return %arg0, %c0_i32 : i32, i32
  }
}

</mosaic_0001>

<bundles_post_ra>
// kernel: tpu_custom_call.1
= control target key start
LH: loop header
LB: loop body
LE: loop exit
PB: predicated region body
PF: predicated region fallthrough
CT: control target
= control target key end

     0   :  { %s12479_s0 = inlined_call_operand.hbm [shape: f32[128,128], index: 0, kind: input, shape index: {}]   ;;  %s12480_s1 = inlined_call_operand.hbm [shape: f32[64,64], index: 1, kind: input, shape index: {}]   ;;  %s12481_s2 = inlined_call_operand.hbm [shape: f32[2,6,1,128], index: 2, kind: input, shape index: {}]   ;;  %s12482_s3 = inlined_call_operand.hbm [shape: bf16[2,128,384], index: 3, kind: input, shape index: {}]   ;;  %s12483_s4 = inlined_call_operand.vmem [shape: f32[2,1,384], index: 4, kind: input, shape index: {}]   ;;  %s12484_s5 = inlined_call_operand.hbm [shape: bf16[2,4,32,128], index: 5, kind: input, shape index: {}]   ;;  %s12485_s6 = inlined_call_operand.hbm [shape: bf16[2,128,512], index: 6, kind: input, shape index: {}]   ;;  %s12486_s7 = inlined_call_operand.vmem [shape: f32[2,1,512], index: 7, kind: input, shape index: {}]   ;;  %s12487_s8 = inlined_call_operand.hbm [shape: bf16[2,512,128], index: 8, kind: input, shape index: {}]   ;;  %s12488_s9 = inlined_call_operand.vmem [shape: f32[2,1,128], index: 9, kind: input, shape index: {}]   ;;  %s12489_s10 = inlined_call_operand.hbm [shape: f32[128,128], index: 10, kind: output, shape index: {}]  }
   0x1   :  { %12516 = sst [smem:[#allocation29_spill]] %s12480_s1 }
   0x2   :  { %12517 = sst [smem:[#allocation30_spill]] %s12489_s10 }
   0x3   :  { %15 = vsyncpa [#allocation3], 0 }
   0x4   :  { %17 = vsyncpa [#allocation3 + $0x1], 0 }
   0x5   :  { %18 = vsyncpa [#allocation6], 0 }
   0x6   :  { %19 = vsyncpa [#allocation9], 0 }
   0x7   :  { %20 = vsyncpa [#allocation12], 0 }
   0x8   :  { %21 = vsyncpa [#allocation4], 0 }
   0x9   :  { %23 = vsyncpa [#allocation4 + $0x1], 0  ;;  %s10087_s13 = smov 0   ;;  %s10089_s14 = smov 0  }
   0xa   :  { %s10091_s15 = smov 0   ;;  %s10093_s16 = smov 0  }
   0xb LB: > { %s10009_s17 = smov [#allocation5]   ;;  %s10108_s19 = sadd.s32 4294967295, %s10007_s16   ;;  %s10007_s16 = sphi %s10093_s16, %s12573_s16   ;;  %s10003_s15 = sphi %s10091_s15, %s12572_s15   ;;  %s9999_s14 = sphi %s10089_s14, %s12571_s14   ;;  %s9995_s13 = sphi %s10087_s13, %s12570_s13  }
   0xc   : > { %s287_s18 = sshll.u32 %s10009_s17, 4  ;;  %p7388_p0 = scmp.ge.s32.totalorder %s10007_s16, 1  ;;  %s10113_s18 = int_to_ptr.vmem [resolvable:$true] %s287_s18 }
   0xd   : > { %p12493_p1 = scmp.eq.s32.totalorder %s10108_s19, 0  ;;  %p275_p2 = scmp.lt.s32.totalorder %s10007_s16, 3 }
   0xe   : > { %s10010_s21 = smov [#allocation8]   ;;  %s12520_s1 = sld [smem:[#allocation29_spill]] }
   0xf   : > { %p10115_p3 = pnand %p7388_p0, %p275_p2  ;;  %s313_s22 = sshll.u32 %s10010_s21, 4  ;;  %s10128_s22 = int_to_ptr.vmem [resolvable:$true] %s313_s22 }
  0x11   : > { %s12518_s20 = scalar_select %p10115_p3, 1, 0 }
  0x12   : > { %p8588_p5 = pneg %p10115_p3 }
  0x14   : > { %p10124_p6 = pnand %p8588_p5, %p12493_p1  ;;  %s9731_s26 = scalar_lea.hbm %s12520_s1, 1024 }
  0x15   : > { %p9732_p7 = scmp.ne.s32.totalorder %s12520_s1, %s9731_s26  ;;  %p9738_p11 = scmp.lt.u32.totalorder %s9731_s26, %s12520_s1 }
  0x16   : > { %p10138_p8 = pneg %p10124_p6 }
  0x18   : > { %p9734_p9 = pnand %p10138_p8, %p9732_p7 }
  0x1a   : > { %p9735_p10 = pneg %p9734_p9 }
  0x1c   : > { %p9740_p12 = pnand %p9738_p11, %p9735_p10 }
  0x1e   : > { %9743 = shalt.err (!%p9740_p12)
}
  0x1f   : > { %s9744_s12 = scalar_lea.vmem %s10113_s18, 1024  ;;  %p9752_p5 = scmp.lt.s32.totalorder %s10113_s18, %s10113_s18 }
  0x20   : > { %p9745_p13 = scmp.ne.s32.totalorder %s10113_s18, %s9744_s12  ;;  %p9753_p4 = scmp.lt.s32.totalorder %s9744_s12, %s9744_s12 }
  0x22   : > { %p9747_p0 = pnand %p9745_p13, %p10138_p8  ;;  %p9754_p7 = por %p9753_p4, %p9752_p5 }
  0x24   : > { %p9748_p2 = pneg %p9747_p0 }
  0x26   : > { %p9755_p9 = pnand %p9754_p7, %p9748_p2 }
  0x28   : > { %9758 = shalt.err (!%p9755_p9)
}
  0x29   : > { %s12491_s17 = smov 128   ;;  %s12492_s21 = smov 8  }
  0x2a   : > { %8591 = dma.hbm_to_vmem [thread:$0]  (!%p10124_p6), %s12520_s1, 1024, %s10113_s18, [#allocation6], %s12491_s17, %s12491_s17, %s12492_s21  }
  0x2b   : > { %s9759_s28 = scalar_lea.hbm %s12482_s3, 6144 }
  0x2c   : > { %p9760_p4 = scmp.ne.s32.totalorder %s12482_s3, %s9759_s28  ;;  %p9766_p12 = scmp.lt.u32.totalorder %s9759_s28, %s12482_s3 }
  0x2e   : > { %p9762_p10 = pnand %p9760_p4, %p10138_p8 }
  0x30   : > { %p9763_p11 = pneg %p9762_p10 }
  0x32   : > { %p9768_p13 = pnand %p9766_p12, %p9763_p11 }
  0x34   : > { %9771 = shalt.err (!%p9768_p13)
}
  0x35   : > { %s9772_s18 = scalar_lea.vmem %s10128_s22, 6144  ;;  %p9780_p7 = scmp.lt.s32.totalorder %s10128_s22, %s10128_s22 }
  0x36   : > { %p9773_p0 = scmp.ne.s32.totalorder %s10128_s22, %s9772_s18  ;;  %p9781_p9 = scmp.lt.s32.totalorder %s9772_s18, %s9772_s18 }
  0x38   : > { %p9775_p2 = pnand %p9773_p0, %p10138_p8  ;;  %p9782_p4 = por %p9781_p9, %p9780_p7 }
  0x3a   : > { %p9776_p5 = pneg %p9775_p2 }
  0x3c   : > { %p9783_p10 = pnand %p9782_p4, %p9776_p5 }
  0x3e   : > { %9786 = shalt.err (!%p9783_p10)
}
  0x3f   : > { %s10013_s24 = smov 192   ;;  %s10014_s10 = smov 12  }
  0x40   : > { %8597 = dma.hbm_to_vmem [thread:$0]  (!%p10124_p6), %s12482_s3, 6144, %s10128_s22, [#allocation9], %s10013_s24, %s10013_s24, %s10014_s10  }
  0x41   : > { %s10015_s27 = smov [#allocation11]   ;;  %s9787_s12 = scalar_lea.hbm %s12485_s6, 8192 }
  0x42   : > { %s342_s28 = sshll.u32 %s10015_s27, 4  ;;  %p9788_p11 = scmp.ne.s32.totalorder %s12485_s6, %s9787_s12  ;;  %s343_s28 = int_to_ptr.vmem [resolvable:$true] %s342_s28 }
  0x43   : > { %p9794_p0 = scmp.lt.u32.totalorder %s9787_s12, %s12485_s6 }
  0x44   : > { %p9790_p12 = pnand %p9788_p11, %p10138_p8 }
  0x46   : > { %p9791_p13 = pneg %p9790_p12 }
  0x48   : > { %p9796_p2 = pnand %p9794_p0, %p9791_p13 }
  0x4a   : > { %9799 = shalt.err (!%p9796_p2)
}
  0x4b   : > { %s9800_s22 = scalar_lea.vmem %s343_s28, 8192  ;;  %p9808_p4 = scmp.lt.s32.totalorder %s343_s28, %s343_s28 }
  0x4c   : > { %p9801_p5 = scmp.ne.s32.totalorder %s343_s28, %s9800_s22  ;;  %p9809_p10 = scmp.lt.s32.totalorder %s9800_s22, %s9800_s22 }
  0x4e   : > { %p9803_p7 = pnand %p9801_p5, %p10138_p8  ;;  %p9810_p1 = por %p9809_p10, %p9808_p4 }
  0x50   : > { %p9804_p9 = pneg %p9803_p7 }
  0x52   : > { %p9811_p3 = pnand %p9810_p1, %p9804_p9 }
  0x54   : > { %9814 = shalt.err (!%p9811_p3)
}
  0x55   : > { %s10016_s17 = smov 256   ;;  %s10017_s24 = smov 16  }
  0x56   : > { %8603 = dma.hbm_to_vmem [thread:$0]  (!%p10124_p6), %s12485_s6, 8192, %s343_s28, [#allocation12], %s10016_s17, %s10016_s17, %s10017_s24  }
  0x57   : > { %s10018_s10 = smov [#allocation7]   ;;  %s9815_s30 = scalar_lea.hbm %s12481_s2, 192 }
  0x58   : > { %s300_s25 = sshll.u32 %s10018_s10, 4  ;;  %p9816_p1 = scmp.ne.s32.totalorder %s12481_s2, %s9815_s30  ;;  %s301_s25 = int_to_ptr.vmem [resolvable:$true] %s300_s25 }
  0x59   : > { %p9822_p12 = scmp.lt.u32.totalorder %s9815_s30, %s12481_s2 }
  0x5a   : > { %p9818_p3 = pnand %p9816_p1, %p10138_p8 }
  0x5c   : > { %p9819_p11 = pneg %p9818_p3 }
  0x5e   : > { %p9824_p13 = pnand %p9822_p12, %p9819_p11 }
  0x60   : > { %9827 = shalt.err (!%p9824_p13)
}
  0x61   : > { %s9828_s28 = scalar_lea.vmem %s301_s25, 192  ;;  %p9836_p7 = scmp.lt.s32.totalorder %s301_s25, %s301_s25 }
  0x62   : > { %p9829_p0 = scmp.ne.s32.totalorder %s301_s25, %s9828_s28  ;;  %p9837_p9 = scmp.lt.s32.totalorder %s9828_s28, %s9828_s28 }
  0x64   : > { %p9831_p2 = pnand %p9829_p0, %p10138_p8  ;;  %p9838_p4 = por %p9837_p9, %p9836_p7 }
  0x66   : > { %p9832_p5 = pneg %p9831_p2 }
  0x68   : > { %p9839_p10 = pnand %p9838_p4, %p9832_p5 }
  0x6a   : > { %9842 = shalt.err (!%p9839_p10)
}
  0x6b   : > { %s10019_s17 = smov 1   ;;  %s10020_s10 = smov [#allocation10]  }
  0x6c   : > { %8594 = dma.hbm_to_vmem [thread:$0]  (!%p10124_p6), %s12481_s2, 192, %s301_s25, [#allocation6], %s10017_s24, %s10017_s24, %s10019_s17  }
  0x6d   : > { %s329_s26 = sshll.u32 %s10020_s10, 4  ;;  %s9843_s11 = scalar_lea.hbm %s12484_s5, 2048  ;;  %s330_s26 = int_to_ptr.vmem [resolvable:$true] %s329_s26 }
  0x6e   : > { %p9844_p1 = scmp.ne.s32.totalorder %s12484_s5, %s9843_s11  ;;  %p9850_p12 = scmp.lt.u32.totalorder %s9843_s11, %s12484_s5 }
  0x70   : > { %p9846_p3 = pnand %p9844_p1, %p10138_p8 }
  0x72   : > { %p9847_p11 = pneg %p9846_p3 }
  0x74   : > { %p9852_p13 = pnand %p9850_p12, %p9847_p11 }
  0x76   : > { %9855 = shalt.err (!%p9852_p13)
}
  0x77   : > { %s9856_s24 = scalar_lea.vmem %s330_s26, 2048  ;;  %p9864_p7 = scmp.lt.s32.totalorder %s330_s26, %s330_s26 }
  0x78   : > { %p9857_p0 = scmp.ne.s32.totalorder %s330_s26, %s9856_s24  ;;  %p9865_p9 = scmp.lt.s32.totalorder %s9856_s24, %s9856_s24 }
  0x7a   : > { %p9859_p2 = pnand %p9857_p0, %p10138_p8  ;;  %p9866_p4 = por %p9865_p9, %p9864_p7 }
  0x7c   : > { %p9860_p5 = pneg %p9859_p2 }
  0x7e   : > { %p9867_p10 = pnand %p9866_p4, %p9860_p5 }
  0x80   : > { %9870 = shalt.err (!%p9867_p10)
}
  0x81   : > { %s10021_s25 = smov 64   ;;  %s10022_s17 = smov 4  }
  0x82   : > { %8600 = dma.hbm_to_vmem [thread:$0]  (!%p10124_p6), %s12484_s5, 2048, %s330_s26, [#allocation9], %s10021_s25, %s10021_s25, %s10022_s17  }
  0x83   : > { %s10023_s10 = smov [#allocation13]   ;;  %s9871_s12 = scalar_lea.hbm %s12487_s8, 8192 }
  0x84   : > { %s358_s27 = sshll.u32 %s10023_s10, 4  ;;  %p9872_p1 = scmp.ne.s32.totalorder %s12487_s8, %s9871_s12  ;;  %s359_s27 = int_to_ptr.vmem [resolvable:$true] %s358_s27 }
  0x85   : > { %p9878_p12 = scmp.lt.u32.totalorder %s9871_s12, %s12487_s8 }
  0x86   : > { %p9874_p3 = pnand %p9872_p1, %p10138_p8 }
  0x88   : > { %p9875_p11 = pneg %p9874_p3 }
  0x8a   : > { %p9880_p13 = pnand %p9878_p12, %p9875_p11 }
  0x8c   : > { %9883 = shalt.err (!%p9880_p13)
}
  0x8d   : > { %s9884_s26 = scalar_lea.vmem %s359_s27, 8192  ;;  %p9892_p7 = scmp.lt.s32.totalorder %s359_s27, %s359_s27 }
  0x8e   : > { %p9885_p0 = scmp.ne.s32.totalorder %s359_s27, %s9884_s26  ;;  %p9893_p9 = scmp.lt.s32.totalorder %s9884_s26, %s9884_s26 }
  0x90   : > { %p9887_p2 = pnand %p9885_p0, %p10138_p8  ;;  %p9894_p4 = por %p9893_p9, %p9892_p7 }
  0x92   : > { %p9888_p5 = pneg %p9887_p2 }
  0x94   : > { %p9895_p10 = pnand %p9894_p4, %p9888_p5 }
  0x96   : > { %9898 = shalt.err (!%p9895_p10)
}
  0x97   : > { %8606 = dma.hbm_to_vmem [thread:$0]  (!%p10124_p6), %s12487_s8, 8192, %s359_s27, [#allocation12], %s10021_s25, %s10021_s25, %s10022_s17  }
  0x98   : > { %s7387_s29 = sadd.s32 4294967294, %s10007_s16   ;;  %s10259_s23 = sadd.s32 1, %s10007_s16  }
  0x99   : > { %s36_s10 = sadd.s32 1, %s10003_s15  ;;  %s33_s30 = ssub.s32 %s10007_s16, %s10259_s23 }
  0x9a   : > { %p43_p8 = scmp.ne.s32.totalorder %s10003_s15, %s9999_s14  ;;  %p34_p1 = scmp.eq.s32.totalorder %s33_s30, 0 }
  0x9b   : > { %p44_p3 = scmp.eq.s32.totalorder %s10007_s16, 0  ;;  %p49_p11 = scmp.ne.s32.totalorder %s9999_s14, %s9995_s13 }
  0x9c   : > { %p262_p12 = scmp.eq.s32.totalorder %s10108_s19, 1  ;;  %p12522_p0 = scmp.eq.s32.totalorder %s10108_s19, 0 }
  0x9d   : > { %s10271_s11 = scalar_select %p34_p1, %s10003_s15, %s36_s10  }
  0x9e   : > { %p45_p13 = por %p44_p3, %p43_p8  ;;  %p10275_p2 = por %p12522_p0, %p49_p11 }
  0x9f   : > { %p10279_p6 = por %p262_p12, %p43_p8  ;;  %p268_p5 = scmp.eq.s32.totalorder %s7387_s29, 1 }
  0xa0   : > { %p8621_p7 = scmp.lt.s32.totalorder %s10007_s16, 2  ;;  %s375_s17 = sand.u32 1, %s10003_s15  }
  0xa1   : > { %s12524_s25 = scalar_select %p10279_p6, 1, 0 }
  0xa2   : > { %p10285_p9 = por %p268_p5, %p49_p11  ;;  %s7396_s18 = sshll.u32 %s375_s17, 6 }
  0xa3   : > { %s7782_s22 = sshll.u32 %s10007_s16, 10  ;;  %s379_s1 = scalar_lea.vmem [#allocation2], %s7396_s18 }
  0xa4   : > { %s12525_s27 = scalar_select %p10285_p9, 1, 0 }
  0xa5   : > { %s10293_s26 = scalar_lea.hbm %s12479_s0, %s7782_s22  ;;  %s386_s21 = sshll.u32 %s379_s1, 4  ;;  %s10299_s21 = int_to_ptr.vmem [resolvable:$true] %s386_s21 }
  0xa6   : > { %p10295_p4 = pnand %p8621_p7, %p45_p13  ;;  %s10301_s10 = scalar_lea.sflag [#allocation3], %s375_s17 }
  0xa7   : > { %s9899_s30 = scalar_lea.hbm %s10293_s26, 1024  ;;  %s9904_s28 = scalar_lea.hbm %s12479_s0, 2048 }
  0xa8   : > { %p9900_p10 = scmp.ne.s32.totalorder %s10293_s26, %s9899_s30  ;;  %p9901_p8 = pneg %p10295_p4 }
  0xa9   : > { %p9905_p11 = scmp.lt.u32.totalorder %s10293_s26, %s12479_s0  ;;  %p9906_p12 = scmp.lt.u32.totalorder %s9904_s28, %s9899_s30 }
  0xaa   : > { %p9902_p1 = pnand %p9901_p8, %p9900_p10  ;;  %p9908_p0 = scmp.lt.u32.totalorder %s9899_s30, %s10293_s26 }
  0xab   : > { %p9907_p13 = por %p9906_p12, %p9905_p11 }
  0xac   : > { %p9903_p3 = pneg %p9902_p1 }
  0xad   : > { %p9909_p5 = por %p9908_p0, %p9907_p13 }
  0xaf   : > { %p9910_p7 = pnand %p9909_p5, %p9903_p3 }
  0xb1   : > { %9913 = shalt.err (!%p9910_p7)
}
  0xb2   : > { %s9914_s17 = scalar_lea.vmem %s10299_s21, 1024  ;;  %s10024_s18 = smov [#allocation2]  }
  0xb3   : > { %p9915_p10 = scmp.ne.s32.totalorder %s10299_s21, %s9914_s17  ;;  %s9919_s22 = sshll.u32 %s10024_s18, 4  ;;  %s9920_s22 = int_to_ptr.vmem [resolvable:$false] %s9919_s22 }
  0xb4   : > { %s9921_s24 = scalar_lea.vmem %s9920_s22, 2048  ;;  %p9922_p6 = scmp.lt.s32.totalorder %s10299_s21, %s9920_s22 }
  0xb5   : > { %p9917_p1 = pnand %p9915_p10, %p9901_p8  ;;  %p9923_p11 = scmp.lt.s32.totalorder %s9921_s24, %s9914_s17 }
  0xb7   : > { %p9918_p9 = pneg %p9917_p1  ;;  %p9924_p12 = por %p9923_p11, %p9922_p6 }
  0xb9   : > { %p9925_p13 = pnand %p9924_p12, %p9918_p9 }
  0xbb   : > { %9928 = shalt.err (!%p9925_p13)
}
  0xbc   : > { %s12527_s30 = smov 8   ;;  %s12528_s28 = smov 128  }
  0xbd   : > { %8610 = dma.hbm_to_vmem [thread:$0]  (!%p10295_p4), %s10293_s26, 1024, %s10299_s21, %s10301_s10, %s12528_s28, %s12528_s28, %s12527_s30  }
  0xbe   : > { %p12529_p8 = scmp.ne.s32.totalorder %s12518_s20, 0 }
  0xc0   : > { %398 = sbr.rel (%p12529_p8) target bundleno = 7641 (0x1dd9), region = 60 }
  0xc7   : > { %s10335_s1 = sand.u32 1, %s9999_s14  }
  0xc8   : > { %s7400_s17 = sshll.u32 %s10335_s1, 6  ;;  %s401_s18 = scalar_lea.sflag [#allocation3], %s10335_s1 }
  0xc9   : > { %s10341_s29 = scalar_lea.vmem [#allocation2], %s7400_s17 }
  0xca   : > { %9974 = dma.done.wait (%p10275_p2), %s401_s18, 1024  }
  0xcb   : > { %9976 = vsyncadd (%p10275_p2), %s401_s18, 4294966272  ;;  %p12530_p6 = scmp.eq.s32.totalorder %s10108_s19, 0 }
  0xcd   : > { %9978 = dma.done.wait (%p12530_p6), [#allocation6], 1216   ;;  %p12531_p9 = pmov %p12530_p6 }
  0xce   : > { %p12532_p4 = pmov %p12530_p6 }
  0xcf   : > { %9980 = vsyncadd (%p12531_p9), [#allocation6], 4294966080 }
  0xd0   : > { %9982 = dma.done.wait (%p12532_p4), [#allocation9], 8192   ;;  %p12533_p3 = pmov %p12532_p4 }
  0xd2   : > { %9984 = vsyncadd (%p12533_p3), [#allocation9], 4294959104  ;;  %p12534_p0 = pmov %p12533_p3 }
  0xd4   : > { %9986 = dma.done.wait (%p12534_p0), [#allocation12], 16384   ;;  %p12535_p5 = pmov %p12534_p0 }
  0xd5   : > { %v468_v0 = vld [vmem:[%s10341_s29] sm:$0xff]  ;;  %v470_v1 = vld [vmem:[%s10341_s29 + $0x10] sm:$0xff]  ;;  %v469_v2 = vld [vmem:[%s10341_s29 + $0x8] sm:$0xff]  ;;  %v12497_v63 = vmov 0   ;;  %vm963_vm0 = vcmask 261120   ;;  %s10026_s26 = smov 96  }
  0xd6   : > { %9988 = vsyncadd (%p12535_p5), [#allocation12], 4294950912  ;;  %487 = vadd.xlane.f32.xlu0 %v468_v0  ;;  %491 = vadd.xlane.f32.xlu1 %v470_v1  ;;  %v471_v3 = vld [vmem:[%s10341_s29 + $0x18] sm:$0xff]  ;;  %v472_v4 = vld [vmem:[%s10341_s29 + $0x20] sm:$0xff]  ;;  %s10027_s21 = smov 64   ;;  %s10028_s10 = smov 32  }
  0xd7   : > { %v473_v5 = vld [vmem:[%s10341_s29 + $0x28] sm:$0xff]  ;;  %v474_v6 = vld [vmem:[%s10341_s29 + $0x30] sm:$0xff]  ;;  %v475_v7 = vld [vmem:[%s10341_s29 + $0x38] sm:$0xff]  ;;  %817 = vmatprep.mubr.bf16.mxu0 %v12497_v63  ;;  %vm1041_vm1 = vcmask 523264   ;;  %s12566_s28 = sld [smem:[#allocation30_spill]]  ;;  %p12567_p7 = scmp.ne.s32.totalorder %s12524_s25, 0 }
  0xd8   : > { %v8875_v8 = vld [vmem:[#allocation8 + $0x4] ss:$12 sps:$4 sm:$0xff]   ;;  %v8877_v9 = vld [vmem:[#allocation8] ss:$12 sps:$4 sm:$0xff]   ;;  %v8878_v10 = vld [vmem:[#allocation8 + $0x1c] ss:$12 sps:$4 sm:$0xff]  }
  0xd9   : > { %v8880_v11 = vld [vmem:[#allocation8 + $0x8] ss:$12 sps:$4 sm:$0xff]   ;;  %785 = vmatprep.subr.bf16.mxu0 %v8875_v8  ;;  %v8881_v44 = vld [vmem:[#allocation8 + $0x18] ss:$12 sps:$4 sm:$0xff]   ;;  %v8884_v46 = vld [vmem:[#allocation8 + $0x20] ss:$12 sps:$4 sm:$0xff]  }
  0xda   : > { %489 = vadd.xlane.f32.xlu0 %v469_v2  ;;  %493 = vadd.xlane.f32.xlu1 %v471_v3  ;;  %v8882_v45 = vld [vmem:[#allocation8 + $0x34] ss:$12 sps:$4 sm:$0xff]   ;;  %v8885_v47 = vld [vmem:[#allocation8 + $0x30] ss:$12 sps:$4 sm:$0xff]   ;;  %v8886_v48 = vld [vmem:[#allocation8 + $0x4c] ss:$12 sps:$4 sm:$0xff]  }
  0xdb   : > { %786 = vmatpush1.bf16.msra.mxu0 %v8877_v9  ;;  %8128 = vmatprep.subr.bf16.mxu1 %v8880_v11  ;;  %v8888_v49 = vld [vmem:[#allocation8 + $0x38] ss:$12 sps:$4 sm:$0xff]   ;;  %v8889_v50 = vld [vmem:[#allocation8 + $0x48] ss:$12 sps:$4 sm:$0xff]   ;;  %v8892_v52 = vld [vmem:[#allocation8 + $0x50] ss:$12 sps:$4 sm:$0xff]  }
  0xdc   : > { %787 = vmatprep.subr.bf16.mxu0 %v8878_v10  ;;  %8129 = vmatpush3.bf16.msra.mxu1 %v8880_v11  ;;  %v8890_v51 = vld [vmem:[#allocation8 + $0x64] ss:$12 sps:$4 sm:$0xff]   ;;  %v8893_v53 = vld [vmem:[#allocation8 + $0x60] ss:$12 sps:$4 sm:$0xff]   ;;  %v8894_v54 = vld [vmem:[#allocation8 + $0x7c] ss:$12 sps:$4 sm:$0xff]  }
  0xdd   : > { %8130 = vmatprep.subr.bf16.mxu1 %v8884_v46  ;;  %v8896_v55 = vld [vmem:[#allocation8 + $0x68] ss:$12 sps:$4 sm:$0xff]   ;;  %v8897_v56 = vld [vmem:[#allocation8 + $0x78] ss:$12 sps:$4 sm:$0xff]   ;;  %v8900_v58 = vld [vmem:[#allocation8 + $0x80] ss:$12 sps:$4 sm:$0xff]  }
  0xde   : > { %495 = vadd.xlane.f32.xlu0 %v472_v4  ;;  %497 = vadd.xlane.f32.xlu1 %v473_v5  ;;  %v8898_v57 = vld [vmem:[#allocation8 + $0x94] ss:$12 sps:$4 sm:$0xff]   ;;  %v8901_v59 = vld [vmem:[#allocation8 + $0x90] ss:$12 sps:$4 sm:$0xff]   ;;  %v8902_v60 = vld [vmem:[#allocation8 + $0xac] ss:$12 sps:$4 sm:$0xff]  }
  0xdf   : > { %788 = vmatpush1.bf16.msra.mxu0 %v8881_v44  ;;  %v8904_v61 = vld [vmem:[#allocation8 + $0x98] ss:$12 sps:$4 sm:$0xff]   ;;  %v8905_v62 = vld [vmem:[#allocation8 + $0xa8] ss:$12 sps:$4 sm:$0xff]   ;;  %s10029_s20 = smov [#allocation14]  }
  0xe0   : > { %789 = vmatprep.subr.bf16.mxu0 %v8882_v45  ;;  %8131 = vmatpush3.bf16.msra.mxu1 %v8884_v46  ;;  %s9933_s12 = sshll.u32 %s10029_s20, 4  ;;  %s9934_s12 = int_to_ptr.vmem [resolvable:$false] %s9933_s12 }
  0xe1   : > { %8132 = vmatprep.subr.bf16.mxu1 %v8888_v49 }
  0xe2   : > { %499 = vadd.xlane.f32.xlu0 %v474_v6  ;;  %501 = vadd.xlane.f32.xlu1 %v475_v7 }
  0xe3   : > { %790 = vmatpush1.bf16.msra.mxu0 %v8885_v47 }
  0xe4   : > { %791 = vmatprep.subr.bf16.mxu0 %v8886_v48  ;;  %8133 = vmatpush3.bf16.msra.mxu1 %v8888_v49 }
  0xe5   : > { %8134 = vmatprep.subr.bf16.mxu1 %v8892_v52 }
  0xe7   : > { %792 = vmatpush1.bf16.msra.mxu0 %v8889_v50 }
  0xe8   : > { %793 = vmatprep.subr.bf16.mxu0 %v8890_v51  ;;  %8135 = vmatpush3.bf16.msra.mxu1 %v8892_v52 }
  0xe9   : > { %8136 = vmatprep.subr.bf16.mxu1 %v8896_v55 }
  0xeb   : > { %794 = vmatpush1.bf16.msra.mxu0 %v8893_v53 }
  0xec   : > { %795 = vmatprep.subr.bf16.mxu0 %v8894_v54  ;;  %8137 = vmatpush3.bf16.msra.mxu1 %v8896_v55 }
  0xed   : > { %8138 = vmatprep.subr.bf16.mxu1 %v8900_v58 }
  0xef   : > { %796 = vmatpush1.bf16.msra.mxu0 %v8897_v56 }
  0xf0   : > { %797 = vmatprep.subr.bf16.mxu0 %v8898_v57  ;;  %8139 = vmatpush3.bf16.msra.mxu1 %v8900_v58 }
  0xf1   : > { %8140 = vmatprep.subr.bf16.mxu1 %v8904_v61 }
  0xf3   : > { %798 = vmatpush1.bf16.msra.mxu0 %v8901_v59 }
  0xf4   : > { %799 = vmatprep.subr.bf16.mxu0 %v8902_v60  ;;  %8141 = vmatpush3.bf16.msra.mxu1 %v8904_v61 }
  0xf7   : > { %800 = vmatpush1.bf16.msra.mxu0 %v8905_v62 }
 0x163   : > { %v488_v12 = vpop.xlane.xlu0 %487  ;;  %v492_v13 = vpop.xlane.xlu1 %491 }
 0x164   : > { %v504_v14 = vmul.f32 0.0078125, %v488_v12  ;;  %v506_v15 = vmul.f32 0.0078125, %v492_v13 }
 0x166   : > { %v10367_v16 = vsub.f32 %v468_v0, %v504_v14  ;;  %v10369_v17 = vsub.f32 %v470_v1, %v506_v15  ;;  %v8906_v0 = vld [vmem:[#allocation8 + $0xb0] ss:$12 sps:$4 sm:$0xff]  }
 0x167   : > { %v490_v18 = vpop.xlane.xlu0 %489  ;;  %v494_v19 = vpop.xlane.xlu1 %493  ;;  %8142 = vmatprep.subr.bf16.mxu1 %v8906_v0 }
 0x168   : > { %v505_v20 = vmul.f32 0.0078125, %v490_v18  ;;  %v520_v21 = vmul.f32 %v10367_v16, %v10367_v16  ;;  %v507_v22 = vmul.f32 0.0078125, %v494_v19  ;;  %v522_v23 = vmul.f32 %v10369_v17, %v10369_v17  ;;  %8143 = vmatpush3.bf16.msra.mxu1 %v8906_v0 }
 0x16a   : > { %528 = vadd.xlane.f32.xlu0 %v520_v21  ;;  %v10375_v24 = vsub.f32 %v469_v2, %v505_v20  ;;  %v10377_v25 = vsub.f32 %v471_v3, %v507_v22 }
 0x16b   : > { %v496_v26 = vpop.xlane.xlu0 %495  ;;  %v498_v27 = vpop.xlane.xlu1 %497 }
 0x16c   : > { %v508_v28 = vmul.f32 0.0078125, %v496_v26  ;;  %v521_v29 = vmul.f32 %v10375_v24, %v10375_v24  ;;  %v509_v30 = vmul.f32 0.0078125, %v498_v27  ;;  %v523_v31 = vmul.f32 %v10377_v25, %v10377_v25 }
 0x16e   : > { %532 = vadd.xlane.f32.xlu0 %v522_v23  ;;  %530 = vadd.xlane.f32.xlu1 %v521_v29  ;;  %v10383_v32 = vsub.f32 %v472_v4, %v508_v28  ;;  %v10385_v33 = vsub.f32 %v473_v5, %v509_v30  ;;  %v7408_v30 = vld [vmem:[#allocation7] ss:$0 sm:$0xff] }
 0x16f   : > { %v500_v34 = vpop.xlane.xlu0 %499  ;;  %v502_v35 = vpop.xlane.xlu1 %501 }
 0x170   : > { %v510_v36 = vmul.f32 0.0078125, %v500_v34  ;;  %v524_v37 = vmul.f32 %v10383_v32, %v10383_v32  ;;  %v511_v38 = vmul.f32 0.0078125, %v502_v35  ;;  %v525_v39 = vmul.f32 %v10385_v33, %v10385_v33 }
 0x172   : > { %534 = vadd.xlane.f32.xlu1 %v523_v31  ;;  %536 = vadd.xlane.f32.xlu0 %v524_v37  ;;  %v10391_v40 = vsub.f32 %v474_v6, %v510_v36  ;;  %v10393_v41 = vsub.f32 %v475_v7, %v511_v38  ;;  %v7409_v38 = vld [vmem:[#allocation7 + $0x1] ss:$0 sm:$0xff] }
 0x174   : > { %v526_v42 = vmul.f32 %v10391_v40, %v10391_v40  ;;  %v527_v43 = vmul.f32 %v10393_v41, %v10393_v41 }
 0x176   : > { %538 = vadd.xlane.f32.xlu1 %v525_v39  ;;  %540 = vadd.xlane.f32.xlu0 %v526_v42 }
 0x17a   : > { %542 = vadd.xlane.f32.xlu1 %v527_v43 }
 0x1f7   : > { %v529_v1 = vpop.xlane.xlu0 %528 }
 0x1f8   : > { %v544_v2 = vmul.f32 0.0078125, %v529_v1 }
 0x1fa   : > { %v552_v3 = vadd.f32 1e-05, %v544_v2 }
 0x1fb   : > { %v531_v4 = vpop.xlane.xlu1 %530  ;;  %v533_v5 = vpop.xlane.xlu0 %532 }
 0x1fc   : > { %9115 = vrsqrt.f32 %v552_v3  ;;  %v545_v6 = vmul.f32 0.0078125, %v531_v4  ;;  %v546_v7 = vmul.f32 0.0078125, %v533_v5  ;;  %v640_v3 = vld [vmem:[%s12483_s4] sm:$0x7] }
 0x1fe   : > { %v553_v8 = vadd.f32 1e-05, %v545_v6  ;;  %v554_v9 = vadd.f32 1e-05, %v546_v7 }
 0x1ff   : > { %v535_v10 = vpop.xlane.xlu1 %534  ;;  %v537_v11 = vpop.xlane.xlu0 %536 }
 0x200   : > { %9117 = vrsqrt.f32 %v553_v8  ;;  %v547_v12 = vmul.f32 0.0078125, %v535_v10  ;;  %v548_v13 = vmul.f32 0.0078125, %v537_v11 }
 0x201   : > { %9119 = vrsqrt.f32 %v554_v9 }
 0x202   : > { %v555_v14 = vadd.f32 1e-05, %v547_v12  ;;  %v556_v15 = vadd.f32 1e-05, %v548_v13 }
 0x203   : > { %v539_v18 = vpop.xlane.xlu1 %538  ;;  %v541_v19 = vpop.xlane.xlu0 %540 }
 0x204   : > { %9121 = vrsqrt.f32 %v555_v14  ;;  %v549_v20 = vmul.f32 0.0078125, %v539_v18  ;;  %v550_v21 = vmul.f32 0.0078125, %v541_v19 }
 0x205   : > { %9123 = vrsqrt.f32 %v556_v15 }
 0x206   : > { %v9116_v22 = vpop.eup %9115  ;;  %v557_v23 = vadd.f32 1e-05, %v549_v20  ;;  %v558_v26 = vadd.f32 1e-05, %v550_v21 }
 0x207   : > { %v543_v27 = vpop.xlane.xlu1 %542  ;;  %v568_v28 = vmul.f32 %v9116_v22, %v10367_v16 }
 0x208   : > { %9125 = vrsqrt.f32 %v557_v23  ;;  %v551_v29 = vmul.f32 0.0078125, %v543_v27 }
 0x209   : > { %9127 = vrsqrt.f32 %v558_v26  ;;  %v582_v37 = vmul.f32 %v7408_v30, %v568_v28 }
 0x20a   : > { %v9118_v31 = vpop.eup %9117  ;;  %v559_v34 = vadd.f32 1e-05, %v551_v29 }
 0x20b   : > { %v9120_v35 = vpop.eup %9119  ;;  %v569_v36 = vmul.f32 %v9118_v31, %v10375_v24  ;;  %v596_v46 = vadd.f32 %v7409_v38, %v582_v37 }
 0x20c   : > { %9129 = vrsqrt.f32 %v559_v34  ;;  %v570_v39 = vmul.f32 %v9120_v35, %v10369_v17 }
 0x20d   : > { %v583_v42 = vmul.f32 %v7408_v30, %v569_v36 }
 0x20e   : > { %v9122_v43 = vpop.eup %9121  ;;  %v584_v44 = vmul.f32 %v7408_v30, %v570_v39 }
 0x20f   : > { %v9124_v45 = vpop.eup %9123  ;;  %v597_v16 = vadd.f32 %v7409_v38, %v583_v42  ;;  %v571_v47 = vmul.f32 %v9122_v43, %v10377_v25 }
 0x210   : > { %v572_v48 = vmul.f32 %v9124_v45, %v10383_v32  ;;  %v598_v52 = vadd.f32 %v7409_v38, %v584_v44 }
 0x211   : > { %v604_v49 = vpack.c.bf16 %v597_v16, %v596_v46  ;;  %v585_v50 = vmul.f32 %v7408_v30, %v571_v47 }
 0x212   : > { %v9126_v51 = vpop.eup %9125  ;;  %v586_v54 = vmul.f32 %v7408_v30, %v572_v48 }
 0x213   : > { %v9128_v24 = vpop.eup %9127  ;;  %818 = vmatmul.mubr.bf16.vlgmr.msra.gmra.mrb[0].mxu0 %v604_v49  ;;  %8144 = vmatprep.mubr.bf16.mxu1 %v604_v49  ;;  %v599_v53 = vadd.f32 %v7409_v38, %v585_v50  ;;  %v573_v17 = vmul.f32 %v9126_v51, %v10385_v33 }
 0x214   : > { %827 = vmatprep.mubr.bf16.mxu0 %v12497_v63  ;;  %v574_v55 = vmul.f32 %v9128_v24, %v10391_v40  ;;  %v600_v32 = vadd.f32 %v7409_v38, %v586_v54  ;;  %v642_v40 = vlaneseq }
 0x215   : > { %v605_v56 = vpack.c.bf16 %v599_v53, %v598_v52  ;;  %v587_v57 = vmul.f32 %v7408_v30, %v573_v17 }
 0x216   : > { %v9130_v25 = vpop.eup %9129  ;;  %v588_v60 = vmul.f32 %v7408_v30, %v574_v55  ;;  %v10411_v2 = vshrl.u32 %v642_v40, 7 }
 0x217   : > { %8145 = vmatmul.mubr.bf16.vlgmr.msra.gmra.mrb[0].mxu1 %v605_v56  ;;  %v601_v58 = vadd.f32 %v7409_v38, %v587_v57  ;;  %v575_v59 = vmul.f32 %v9130_v25, %v10393_v41 }
 0x218   : > { %v602_v0 = vadd.f32 %v7409_v38, %v588_v60  ;;  %12536 = vst [vmem:[#allocation20_spill] sm:$0xff] %v10411_v2  ;;  %v10414_v41 = vsub.s32 0, %v10411_v2  ;;  %v10420_v4 = vsub.s32 1, %v10411_v2  ;;  %v10426_v6 = vsub.s32 2, %v10411_v2 }
 0x219   : > { %v606_v61 = vpack.c.bf16 %v601_v58, %v600_v32  ;;  %v589_v62 = vmul.f32 %v7408_v30, %v575_v59 }
 0x21a   : > { %12537 = vst [vmem:[#allocation21_spill] sm:$0xff] %v10414_v41  ;;  %12538 = vst [vmem:[#allocation22_spill] sm:$0xff] %v10420_v4  ;;  %v10423_v5 = vrot.slane %v640_v3, %v10414_v41  ;;  %v10429_v8 = vrot.slane %v640_v3, %v10420_v4  ;;  %v653_v14 = vrot.slane %v640_v3, %v10426_v6 }
 0x21b   : > { %828 = vmatmul.mubr.bf16.gmra.mrb[4].mxu0 %v605_v56  ;;  %8148 = vmatprep.mubr.bf16.mxu1 %v606_v61  ;;  %v603_v33 = vadd.f32 %v7409_v38, %v589_v62  ;;  %12539 = vst [vmem:[#allocation23_spill] sm:$0xff] %v10426_v6 }
 0x21c   : > { %837 = vmatprep.mubr.bf16.mxu0 %v12497_v63 }
 0x21d   : > { %v607_v1 = vpack.c.bf16 %v603_v33, %v602_v0 }
 0x21f   : > { %8149 = vmatmul.mubr.bf16.gmra.mrb[4].mxu1 %v607_v1 }
 0x223   : > { %838 = vmatmul.mubr.bf16.gmra.mrb[8].mxu0 %v606_v61 }
 0x224   : > { %847 = vmatprep.mubr.bf16.mxu0 %v12497_v63 }
 0x22b   : > { %848 = vmatmul.mubr.bf16.gmra.mrb[12].mxu0 %v607_v1 }
 0x2e6   : > { %v819_v7 = vpop.f32.mrb[0].mxu0 }
 0x2e7   : > { %v821_v9 = vpop.f32.mrb[1].mxu0  ;;  %v820_v11 = vadd.f32 %v819_v7, %v10423_v5 }
 0x2e8   : > { %v823_v10 = vpop.f32.mrb[2].mxu0  ;;  %v10435_v15 = vadd.f32 %v821_v9, %v10429_v8 }
 0x2e9   : > { %v824_v12 = vadd.f32 %v823_v10, %v10423_v5  ;;  %v825_v13 = vpop.f32.mrb[3].mxu0 }
 0x2ea   : > { %v10438_v18 = vadd.f32 %v825_v13, %v10429_v8  ;;  %v8146_v19 = vpop.f32.mrb[0].mxu1 }
 0x2eb   : > { %v10440_v20 = vpack.c.bf16 %v824_v12, %v820_v11  ;;  %v892_v21 = vpop.f32.mrb[1].mxu1  ;;  %v901_v26 = vadd.f32 %v8146_v19, %v653_v14 }
 0x2ec   : > { %v8147_v22 = vpop.f32.mrb[2].mxu1  ;;  %v10444_v23 = vpack.i.bf16 %v10438_v18, %v10435_v15  ;;  %v893_v29 = vadd.f32 %v892_v21, %v653_v14 }
 0x2ed   : > { %v904_v27 = vadd.f32 %v8147_v22, %v653_v14  ;;  %v895_v28 = vpop.f32.mrb[3].mxu1  ;;  %8156 = vmatprep.mubr.msk.bf16.mxu1 %vm963_vm0, %v10440_v20 }
 0x2ee   : > { %v896_v30 = vadd.f32 %v895_v28, %v653_v14  ;;  %8684 = vrot.lane.b32.xlu0 %v10444_v23, %s10026_s26  ;;  %v829_v31 = vpop.f32.mrb[4].mxu0 }
 0x2ef   : > { %v10450_v34 = vpack.c.bf16 %v904_v27, %v901_v26  ;;  %v831_v35 = vpop.f32.mrb[5].mxu0  ;;  %v830_v38 = vadd.f32 %v829_v31, %v10423_v5 }
 0x2f0   : > { %v10452_v36 = vpack.c.bf16 %v896_v30, %v893_v29  ;;  %v833_v37 = vpop.f32.mrb[6].mxu0  ;;  %v832_v43 = vadd.f32 %v831_v35, %v10429_v8 }
 0x2f1   : > { %v834_v39 = vadd.f32 %v833_v37, %v10423_v5  ;;  %v835_v42 = vpop.f32.mrb[7].mxu0 }
 0x2f2   : > { %v836_v44 = vadd.f32 %v835_v42, %v10429_v8  ;;  %v8150_v45 = vpop.f32.mrb[4].mxu1 }
 0x2f3   : > { %v10458_v46 = vpack.c.bf16 %v834_v39, %v830_v38  ;;  %v917_v16 = vadd.f32 %v8150_v45, %v653_v14  ;;  %v908_v47 = vpop.f32.mrb[5].mxu1 }
 0x2f4   : > { %v8151_v48 = vpop.f32.mrb[6].mxu1  ;;  %v10460_v49 = vpack.i.bf16 %v836_v44, %v832_v43  ;;  %v909_v52 = vadd.f32 %v908_v47, %v653_v14 }
 0x2f5   : > { %v920_v50 = vadd.f32 %v8151_v48, %v653_v14  ;;  %v911_v51 = vpop.f32.mrb[7].mxu1 }
 0x2f6   : > { %v912_v24 = vadd.f32 %v911_v51, %v653_v14  ;;  %8689 = vrot.lane.b32.xlu1 %v10460_v49, %s10026_s26  ;;  %v839_v53 = vpop.f32.mrb[8].mxu0 }
 0x2f7   : > { %v10464_v17 = vpack.c.bf16 %v920_v50, %v917_v16  ;;  %v841_v54 = vpop.f32.mrb[9].mxu0  ;;  %v840_v57 = vadd.f32 %v839_v53, %v10423_v5 }
 0x2f8   : > { %v10466_v55 = vpack.c.bf16 %v912_v24, %v909_v52  ;;  %v843_v56 = vpop.f32.mrb[10].mxu0  ;;  %v842_v58 = vadd.f32 %v841_v54, %v10429_v8 }
 0x2f9   : > { %v844_v25 = vadd.f32 %v843_v56, %v10423_v5  ;;  %v845_v32 = vpop.f32.mrb[11].mxu0 }
 0x2fa   : > { %v846_v59 = vadd.f32 %v845_v32, %v10429_v8 }
 0x2fb   : > { %v10472_v60 = vpack.c.bf16 %v844_v25, %v840_v57 }
 0x2fc   : > { %v10474_v61 = vpack.i.bf16 %v846_v59, %v842_v58 }
 0x2fe   : > { %8694 = vrot.lane.b32.xlu1 %v10474_v61, %s10026_s26  ;;  %v849_v62 = vpop.f32.mrb[12].mxu0 }
 0x2ff   : > { %v851_v0 = vpop.f32.mrb[13].mxu0  ;;  %v850_v1 = vadd.f32 %v849_v62, %v10423_v5 }
 0x300   : > { %v853_v33 = vpop.f32.mrb[14].mxu0  ;;  %v852_v7 = vadd.f32 %v851_v0, %v10429_v8 }
 0x301   : > { %v854_v40 = vadd.f32 %v853_v33, %v10423_v5  ;;  %v855_v3 = vpop.f32.mrb[15].mxu0 }
 0x302   : > { %v856_v9 = vadd.f32 %v855_v3, %v10429_v8 }
 0x303   : > { %v10482_v10 = vpack.c.bf16 %v854_v40, %v850_v1 }
 0x304   : > { %v10484_v11 = vpack.i.bf16 %v856_v9, %v852_v7 }
 0x306   : > { %8699 = vrot.lane.b32.xlu1 %v10484_v11, %s10026_s26 }
 0x30a   : > { %8740 = vrot.lane.b32.xlu1 %v10444_v23, %s10027_s21 }
 0x30e   : > { %8745 = vrot.lane.b32.xlu1 %v10460_v49, %s10027_s21 }
 0x312   : > { %8750 = vrot.lane.b32.xlu1 %v10474_v61, %s10027_s21 }
 0x316   : > { %8755 = vrot.lane.b32.xlu1 %v10484_v11, %s10027_s21 }
 0x31a   : > { %1396 = vrot.lane.b32.xlu1 %v10440_v20, %s10026_s26 }
 0x31e   : > { %1398 = vrot.lane.b32.xlu1 %v10458_v46, %s10026_s26 }
 0x322   : > { %1400 = vrot.lane.b32.xlu1 %v10472_v60, %s10026_s26 }
 0x326   : > { %1402 = vrot.lane.b32.xlu1 %v10482_v10, %s10026_s26 }
 0x32a   : > { %1830 = vrot.lane.b32.xlu1 %v10440_v20, %s10027_s21 }
 0x32e   : > { %1832 = vrot.lane.b32.xlu1 %v10458_v46, %s10027_s21 }
 0x332   : > { %1834 = vrot.lane.b32.xlu1 %v10472_v60, %s10027_s21 }
 0x336   : > { %1836 = vrot.lane.b32.xlu1 %v10482_v10, %s10027_s21 }
 0x360   : > { %v8685_v5 = vpop.permute.xlu0 %8684 }
 0x361   : > { %v8686_v8 = vunpack.i.l.bf16 %v8685_v5  ;;  %v8687_v12 = vunpack.i.h.bf16 %v8685_v5 }
 0x363   : > { %v8703_v13 = vpack.i.bf16 %v8686_v8, %v10435_v15  ;;  %v8705_v14 = vpack.i.bf16 %v8687_v12, %v10438_v18 }
 0x365   : > { %8704 = vxpose.xlu0.b32.start [1/8] (short) (narrow) %v8703_v13, 32 }
 0x368   : > { %v8690_v19 = vpop.permute.xlu1 %8689 }
 0x369   : > { %v8691_v21 = vunpack.i.l.bf16 %v8690_v19  ;;  %8706 = vxpose.xlu0.b32.cont [2/8] (short) (narrow) %v8705_v14, 32  ;;  %v8692_v22 = vunpack.i.h.bf16 %v8690_v19 }
 0x36b   : > { %v8707_v26 = vpack.i.bf16 %v8691_v21, %v832_v43  ;;  %v8709_v27 = vpack.i.bf16 %v8692_v22, %v836_v44 }
 0x36d   : > { %8708 = vxpose.xlu0.b32.cont [3/8] (short) (narrow) %v8707_v26, 32 }
 0x370   : > { %v8695_v28 = vpop.permute.xlu1 %8694 }
 0x371   : > { %v8696_v29 = vunpack.i.l.bf16 %v8695_v28  ;;  %8710 = vxpose.xlu0.b32.cont [4/8] (short) (narrow) %v8709_v27, 32  ;;  %v8697_v30 = vunpack.i.h.bf16 %v8695_v28 }
 0x373   : > { %v8711_v31 = vpack.i.bf16 %v8696_v29, %v842_v58  ;;  %v8713_v35 = vpack.i.bf16 %v8697_v30, %v846_v59 }
 0x375   : > { %8712 = vxpose.xlu0.b32.cont [5/8] (short) (narrow) %v8711_v31, 32 }
 0x378   : > { %v8700_v37 = vpop.permute.xlu1 %8699 }
 0x379   : > { %v8701_v38 = vunpack.i.l.bf16 %v8700_v37  ;;  %8714 = vxpose.xlu0.b32.cont [6/8] (short) (narrow) %v8713_v35, 32  ;;  %v8702_v15 = vunpack.i.h.bf16 %v8700_v37 }
 0x37b   : > { %v8715_v39 = vpack.i.bf16 %v8701_v38, %v852_v7  ;;  %v8717_v45 = vpack.i.bf16 %v8702_v15, %v856_v9 }
 0x37c   : > { %v8741_v18 = vpop.permute.xlu1 %8740 }
 0x37d   : > { %8716 = vxpose.xlu0.b32.cont [7/8] (short) (narrow) %v8715_v39, 32  ;;  %v8742_v42 = vunpack.i.l.bf16 %v8741_v18  ;;  %v8743_v16 = vunpack.i.h.bf16 %v8741_v18  ;;  %v10558_v39 = vld [vmem:[#allocation5 + $0x10] sm:$0xff] }
 0x37f   : > { %1796 = vxpose.xlu1.b32.start [1/8] (short) (narrow) %v8742_v42, 32 }
 0x380   : > { %v8746_v43 = vpop.permute.xlu1 %8745 }
 0x381   : > { %8718 = vxpose.xlu0.b32.end [8/8] (short) (narrow) %v8717_v45, 32  ;;  %v8747_v47 = vunpack.i.l.bf16 %v8746_v43  ;;  %v8748_v50 = vunpack.i.h.bf16 %v8746_v43  ;;  %v10562_v45 = vld [vmem:[#allocation5] sm:$0xff] }
 0x383   : > { %1797 = vxpose.xlu1.b32.cont [2/8] (short) (narrow) %v8743_v16, 32 }
 0x384   : > { %v8751_v44 = vpop.permute.xlu1 %8750 }
 0x385   : > { %v8752_v52 = vunpack.i.l.bf16 %v8751_v44  ;;  %v8753_v24 = vunpack.i.h.bf16 %v8751_v44 }
 0x387   : > { %1798 = vxpose.xlu1.b32.cont [3/8] (short) (narrow) %v8747_v47, 32 }
 0x388   : > { %v8756_v48 = vpop.permute.xlu1 %8755 }
 0x389   : > { %v8757_v53 = vunpack.i.l.bf16 %v8756_v48  ;;  %v8758_v54 = vunpack.i.h.bf16 %v8756_v48 }
 0x38b   : > { %1799 = vxpose.xlu1.b32.cont [4/8] (short) (narrow) %v8748_v50, 32 }
 0x38c   : > { %v1397_v51 = vpop.permute.xlu1 %1396 }
 0x38d   : > { %8196 = vmatprep.mubr.msk.bf16.mxu0 %vm963_vm0, %v1397_v51 }
 0x38f   : > { %1800 = vxpose.xlu1.b32.cont [5/8] (short) (narrow) %v8752_v52, 32 }
 0x390   : > { %v1399_v56 = vpop.permute.xlu1 %1398 }
 0x393   : > { %1801 = vxpose.xlu1.b32.cont [6/8] (short) (narrow) %v8753_v24, 32 }
 0x397   : > { %1802 = vxpose.xlu1.b32.cont [7/8] (short) (narrow) %v8757_v53, 32  ;;  %v10578_v53 = vld [vmem:[#allocation5 + $0x18] sm:$0xff] }
 0x39b   : > { %1803 = vxpose.xlu1.b32.end [8/8] (short) (narrow) %v8758_v54, 32  ;;  %v10580_v54 = vld [vmem:[#allocation5 + $0x30] sm:$0xff] }
 0x3aa   : > { %8760 = vrot.lane.b32.xlu0 %v10444_v23, %s10028_s10  ;;  %v1401_v23 = vpop.permute.xlu1 %1400 }
 0x3ae   : > { %2007 = vrot.lane.b32.xlu0 %v10452_v36, %s10027_s21  ;;  %v1403_v57 = vpop.permute.xlu1 %1402 }
 0x3b2   : > { %v1831_v32 = vpop.permute.xlu1 %1830 }
 0x3b6   : > { %v1833_v40 = vpop.permute.xlu1 %1832 }
 0x3b9   : > { %8765 = vrot.lane.b32.xlu1 %v10460_v49, %s10028_s10 }
 0x3ba   : > { %v1835_v13 = vpop.permute.xlu1 %1834 }
 0x3bd   : > { %8770 = vrot.lane.b32.xlu1 %v10474_v61, %s10028_s10 }
 0x3be   : > { %v1837_v14 = vpop.permute.xlu1 %1836 }
 0x3c1   : > { %8775 = vrot.lane.b32.xlu1 %v10484_v11, %s10028_s10 }
 0x3c5   : > { %2009 = vrot.lane.b32.xlu1 %v10450_v34, %s10027_s21 }
 0x3c9   : > { %2011 = vrot.lane.b32.xlu1 %v10466_v55, %s10027_s21 }
 0x3e5   : > { %v8719_v25 = vpop.trf.xlu0 }
 0x3e6   : > { %v8720_v59 = vunpack.i.l.bf16 %v8719_v25  ;;  %v8723_v49 = vunpack.i.h.bf16 %v8719_v25 }
 0x3e9   : > { %v8724_v58 = vpop.trf.xlu0 }
 0x3ea   : > { %v8725_v62 = vunpack.i.l.bf16 %v8724_v58  ;;  %v8728_v0 = vunpack.i.h.bf16 %v8724_v58 }
 0x3ec   : > { %v961_v61 = vpack.c.bf16 %v8725_v62, %v8720_v59  ;;  %v1390_v33 = vpack.c.bf16 %v8728_v0, %v8723_v49 }
 0x3ed   : > { %v8729_v1 = vpop.trf.xlu0 }
 0x3ee   : > { %8152 = vmatprep.subr.bf16.mxu1 %v961_v61  ;;  %8192 = vmatprep.subr.bf16.mxu0 %v1390_v33  ;;  %v8730_v7 = vunpack.i.l.bf16 %v8729_v1  ;;  %v8733_v9 = vunpack.i.h.bf16 %v8729_v1 }
 0x3ef   : > { %8153 = vmatpush3.bf16.msra.mxu1 %v961_v61  ;;  %8193 = vmatpush3.bf16.msra.mxu0 %v1390_v33 }
 0x3f1   : > { %v8734_v3 = vpop.trf.xlu0 }
 0x3f2   : > { %v8735_v11 = vunpack.i.l.bf16 %v8734_v3  ;;  %v8738_v5 = vunpack.i.h.bf16 %v8734_v3 }
 0x3f4   : > { %v962_v8 = vpack.c.bf16 %v8735_v11, %v8730_v7  ;;  %v1391_v12 = vpack.c.bf16 %v8738_v5, %v8733_v9  ;;  %v10607_v7 = vld [vmem:[#allocation5 + $0x20] sm:$0xff]  ;;  %v10614_v5 = vld [vmem:[#allocation5 + $0x38] sm:$0xff] }
 0x3f6   : > { %8154 = vmatprep.subr.bf16.mxu1 %v962_v8  ;;  %8194 = vmatprep.subr.bf16.mxu0 %v1391_v12 }
 0x3f7   : > { %8155 = vmatpush3.bf16.msra.mxu1 %v962_v8  ;;  %8195 = vmatpush3.bf16.msra.mxu0 %v1391_v12 }
 0x3f8   : > { %8164 = vmatprep.subr.bf16.mxu1 %v10452_v36 }
 0x3fa   : > { %8157 = vmatmul.mubr.msk.bf16.vlgmr.msra.gmra.mrb[8].mxu1 %vm963_vm0, %v10458_v46  ;;  %8197 = vmatmul.mubr.msk.bf16.vlgmr.msra.gmra.mrb[16].mxu0 %vm963_vm0, %v1399_v56 }
 0x3fb   : > { %8160 = vmatprep.mubr.msk.bf16.mxu1 %vm963_vm0, %v10472_v60  ;;  %8165 = vmatpush3.bf16.msra.mxu1 %v10452_v36 }
 0x3fc   : > { %8200 = vmatprep.mubr.msk.bf16.mxu0 %vm963_vm0, %v1401_v23  ;;  %8166 = vmatprep.subr.bf16.mxu1 %v10450_v34 }
 0x3ff   : > { %v1812_v19 = vpop.trf.xlu1  ;;  %8167 = vmatpush3.bf16.msra.mxu1 %v10450_v34 }
 0x400   : > { %8168 = vmatprep.subr.bf16.mxu1 %v10466_v55 }
 0x402   : > { %8161 = vmatmul.mubr.msk.bf16.gmra.mrb[12].mxu1 %vm963_vm0, %v10482_v10  ;;  %8201 = vmatmul.mubr.msk.bf16.gmra.mrb[20].mxu0 %vm963_vm0, %v1403_v57  ;;  %v10587_v57 = vld [vmem:[#allocation5 + $0x8] sm:$0xff] }
 0x403   : > { %v1813_v21 = vpop.trf.xlu1  ;;  %8169 = vmatpush3.bf16.msra.mxu1 %v10466_v55  ;;  %8236 = vmatprep.mubr.msk.bf16.mxu0 %vm963_vm0, %v1831_v32 }
 0x404   : > { %v1828_v22 = vpack.c.bf16 %v1813_v21, %v1812_v19  ;;  %8170 = vmatprep.subr.bf16.mxu1 %v10464_v17 }
 0x406   : > { %8232 = vmatprep.subr.bf16.mxu0 %v1828_v22 }
 0x407   : > { %v1814_v26 = vpop.trf.xlu1  ;;  %8171 = vmatpush3.bf16.msra.mxu1 %v10464_v17  ;;  %8233 = vmatpush3.bf16.msra.mxu0 %v1828_v22 }
 0x40b   : > { %v1815_v27 = vpop.trf.xlu1 }
 0x40c   : > { %v1829_v28 = vpack.c.bf16 %v1815_v27, %v1814_v26 }
 0x40e   : > { %8234 = vmatprep.subr.bf16.mxu0 %v1829_v28 }
 0x40f   : > { %8235 = vmatpush3.bf16.msra.mxu0 %v1829_v28 }
 0x412   : > { %8237 = vmatmul.mubr.msk.bf16.vlgmr.msra.gmra.mrb[24].mxu0 %vm963_vm0, %v1833_v40 }
 0x413   : > { %8240 = vmatprep.mubr.msk.bf16.mxu0 %vm963_vm0, %v1835_v13  ;;  %v10621_v13 = vld [vmem:[#allocation5 + $0x28] sm:$0xff] }
 0x41a   : > { %8241 = vmatmul.mubr.msk.bf16.gmra.mrb[28].mxu0 %vm963_vm0, %v1837_v14 }
 0x41c   : > { %v10550_v29 = vpop.permute.xlu0 %8760 }
 0x420   : > { %v2008_v30 = vpop.permute.xlu0 %2007 }
 0x421   : > { %8244 = vmatprep.subr.bf16.mxu0 %v2008_v30 }
 0x422   : > { %8245 = vmatpush3.bf16.msra.mxu0 %v2008_v30 }
 0x42b   : > { %v10552_v31 = vpop.permute.xlu1 %8765 }
 0x42f   : > { %v10554_v35 = vpop.permute.xlu1 %8770 }
 0x433   : > { %v10556_v37 = vpop.permute.xlu1 %8775 }
 0x437   : > { %v2010_v38 = vpop.permute.xlu1 %2009 }
 0x438   : > { %8246 = vmatprep.subr.bf16.mxu0 %v2010_v38 }
 0x439   : > { %8247 = vmatpush3.bf16.msra.mxu0 %v2010_v38 }
 0x43b   : > { %v2012_v15 = vpop.permute.xlu1 %2011 }
 0x43c   : > { %8248 = vmatprep.subr.bf16.mxu0 %v2012_v15 }
 0x43d   : > { %8249 = vmatpush3.bf16.msra.mxu0 %v2012_v15 }
 0x4cd   : > { %v8158_v18 = vpop.f32.mrb[8].mxu1  ;;  %v10560_v42 = vpop.f32.mrb[16].mxu0 }
 0x4ce   : > { %v10565_v43 = vadd.f32 %v8158_v18, %v10558_v39  ;;  %v1010_v16 = vpop.f32.mrb[9].mxu1  ;;  %v10567_v44 = vpop.f32.mrb[17].mxu0 }
 0x4cf   : > { %v8159_v47 = vpop.f32.mrb[10].mxu1  ;;  %v10569_v48 = vpop.f32.mrb[18].mxu0  ;;  %v10572_v50 = vadd.f32 %v1010_v16, %v10562_v45 }
 0x4d0   : > { %v1013_v51 = vpop.f32.mrb[11].mxu1  ;;  %v10574_v52 = vpop.f32.mrb[19].mxu0  ;;  %v1048_v24 = vsel %vm1041_vm1, %v10565_v43, -inf  ;;  %v10583_v56 = vadd.f32 %v8159_v47, %v10578_v53 }
 0x4d1   : > { %1049 = vmax.xlane.f32.xlu0 %v1048_v24  ;;  %v1042_v23 = vsel %vm1041_vm1, %v10572_v50, -inf  ;;  %v10599_v61 = vadd.f32 %v1013_v51, %v10587_v57 }
 0x4d2   : > { %v1051_v3 = vsel %vm1041_vm1, %v10583_v56, -inf }
 0x4d3   : > { %v1045_v11 = vsel %vm1041_vm1, %v10599_v61, -inf }
 0x4d5   : > { %v8162_v25 = vpop.f32.mrb[12].mxu1  ;;  %v10589_v32 = vpop.f32.mrb[20].mxu0  ;;  %1043 = vmax.xlane.f32.xlu0 %v1042_v23 }
 0x4d6   : > { %v10592_v58 = vadd.f32 %v8162_v25, %v10580_v54  ;;  %v1026_v59 = vpop.f32.mrb[13].mxu1  ;;  %v10594_v49 = vpop.f32.mrb[21].mxu0 }
 0x4d7   : > { %v8163_v62 = vpop.f32.mrb[14].mxu1  ;;  %v10596_v0 = vpop.f32.mrb[22].mxu0  ;;  %v10610_v9 = vadd.f32 %v1026_v59, %v10607_v7 }
 0x4d8   : > { %v1029_v33 = vpop.f32.mrb[15].mxu1  ;;  %v10601_v1 = vpop.f32.mrb[23].mxu0  ;;  %v1060_v40 = vsel %vm1041_vm1, %v10592_v58, -inf  ;;  %v10617_v8 = vadd.f32 %v8163_v62, %v10614_v5 }
 0x4d9   : > { %1061 = vmax.xlane.f32.xlu1 %v1060_v40  ;;  %1052 = vmax.xlane.f32.xlu0 %v1051_v3  ;;  %v1054_v12 = vsel %vm1041_vm1, %v10610_v9, -inf  ;;  %v10624_v14 = vadd.f32 %v1029_v33, %v10621_v13 }
 0x4da   : > { %v1063_v19 = vsel %vm1041_vm1, %v10617_v8, -inf }
 0x4db   : > { %v1057_v30 = vsel %vm1041_vm1, %v10624_v14, -inf }
 0x4dd   : > { %1046 = vmax.xlane.f32.xlu0 %v1045_v11 }
 0x4e1   : > { %1055 = vmax.xlane.f32.xlu0 %v1054_v12 }
 0x4e5   : > { %v8238_v21 = vpop.f32.mrb[24].mxu0  ;;  %1064 = vmax.xlane.f32.xlu0 %v1063_v19 }
 0x4e6   : > { %v1884_v22 = vpop.f32.mrb[25].mxu0  ;;  %v10629_v27 = vadd.f32 %v8238_v21, %v10558_v39 }
 0x4e7   : > { %v8239_v26 = vpop.f32.mrb[26].mxu0  ;;  %v10636_v38 = vadd.f32 %v1884_v22, %v10562_v45 }
 0x4e8   : > { %v1887_v28 = vpop.f32.mrb[27].mxu0  ;;  %v1921_v15 = vsel %vm1041_vm1, %v10629_v27, -inf  ;;  %v10641_v51 = vadd.f32 %v8239_v26, %v10578_v53 }
 0x4e9   : > { %1058 = vmax.xlane.f32.xlu0 %v1057_v30  ;;  %v1915_v23 = vsel %vm1041_vm1, %v10636_v38, -inf  ;;  %v10646_v25 = vadd.f32 %v1887_v28, %v10587_v57 }
 0x4ea   : > { %2013 = vrot.lane.b32.xlu1 %v10464_v17, %s10027_s21  ;;  %v1924_v59 = vsel %vm1041_vm1, %v10641_v51, -inf }
 0x4eb   : > { %v1918_v33 = vsel %vm1041_vm1, %v10646_v25, -inf }
 0x4ed   : > { %v8242_v18 = vpop.f32.mrb[28].mxu0  ;;  %1922 = vmax.xlane.f32.xlu0 %v1921_v15 }
 0x4ee   : > { %v1900_v16 = vpop.f32.mrb[29].mxu0  ;;  %v10651_v62 = vadd.f32 %v8242_v18, %v10580_v54 }
 0x4ef   : > { %v8243_v47 = vpop.f32.mrb[30].mxu0  ;;  %v10656_v40 = vadd.f32 %v1900_v16, %v10607_v7 }
 0x4f0   : > { %v1903_v24 = vpop.f32.mrb[31].mxu0  ;;  %v1933_v3 = vsel %vm1041_vm1, %v10651_v62, -inf  ;;  %v10661_v11 = vadd.f32 %v8243_v47, %v10614_v5 }
 0x4f1   : > { %1916 = vmax.xlane.f32.xlu0 %v1915_v23  ;;  %v1927_v12 = vsel %vm1041_vm1, %v10656_v40, -inf  ;;  %v10666_v19 = vadd.f32 %v1903_v24, %v10621_v13 }
 0x4f2   : > { %v1936_v21 = vsel %vm1041_vm1, %v10661_v11, -inf }
 0x4f3   : > { %v1930_v22 = vsel %vm1041_vm1, %v10666_v19, -inf }
 0x4f5   : > { %1925 = vmax.xlane.f32.xlu0 %v1924_v59 }
 0x4f9   : > { %1919 = vmax.xlane.f32.xlu0 %v1918_v33 }
 0x4fd   : > { %1934 = vmax.xlane.f32.xlu0 %v1933_v3 }
 0x501   : > { %1928 = vmax.xlane.f32.xlu0 %v1927_v12 }
 0x505   : > { %1937 = vmax.xlane.f32.xlu0 %v1936_v21 }
 0x509   : > { %1931 = vmax.xlane.f32.xlu0 %v1930_v22 }
 0x55e   : > { %v1050_v26 = vpop.xlane.xlu0 %1049 }
 0x55f   : > { %v1068_v28 = vsub.f32 %v10565_v43, %v1050_v26 }
 0x561   : > { %v1078_v30 = vmul.f32 1.442695, %v1068_v28 }
 0x562   : > { %v1044_v15 = vpop.xlane.xlu0 %1043 }
 0x563   : > { %9131 = vpow2.f32 %v1078_v30  ;;  %v1066_v18 = vsub.f32 %v10572_v50, %v1044_v15 }
 0x565   : > { %v1074_v16 = vmul.f32 1.442695, %v1066_v18 }
 0x566   : > { %v1062_v47 = vpop.xlane.xlu1 %1061  ;;  %v1053_v24 = vpop.xlane.xlu0 %1052 }
 0x567   : > { %9133 = vpow2.f32 %v1074_v16  ;;  %v1072_v23 = vsub.f32 %v10592_v58, %v1062_v47  ;;  %v1069_v59 = vsub.f32 %v10583_v56, %v1053_v24 }
 0x569   : > { %v1086_v33 = vmul.f32 1.442695, %v1072_v23  ;;  %v1080_v3 = vmul.f32 1.442695, %v1069_v59 }
 0x56a   : > { %v2014_v12 = vpop.permute.xlu1 %2013  ;;  %v1047_v21 = vpop.xlane.xlu0 %1046 }
 0x56b   : > { %9135 = vpow2.f32 %v1086_v33  ;;  %v1067_v43 = vsub.f32 %v10599_v61, %v1047_v21  ;;  %8250 = vmatprep.subr.bf16.mxu0 %v2014_v12 }
 0x56c   : > { %9137 = vpow2.f32 %v1080_v3  ;;  %8251 = vmatpush3.bf16.msra.mxu0 %v2014_v12 }
 0x56d   : > { %v10677_v22 = vpop.eup %9131  ;;  %v1076_v50 = vmul.f32 1.442695, %v1067_v43 }
 0x56e   : > { %v1056_v26 = vpop.xlane.xlu0 %1055  ;;  %v1096_v28 = vsel %vm1041_vm1, %v10677_v22, 0.0 }
 0x56f   : > { %9139 = vpow2.f32 %v1076_v50  ;;  %v1070_v56 = vsub.f32 %v10610_v9, %v1056_v26  ;;  %1097 = vadd.xlane.f32.xlu0 %v1096_v28 }
 0x571   : > { %v10682_v58 = vpop.eup %9133  ;;  %v1082_v30 = vmul.f32 1.442695, %v1070_v56 }
 0x572   : > { %v1065_v15 = vpop.xlane.xlu0 %1064  ;;  %v1090_v61 = vsel %vm1041_vm1, %v10682_v58, 0.0 }
 0x573   : > { %9141 = vpow2.f32 %v1082_v30  ;;  %v1073_v18 = vsub.f32 %v10617_v8, %v1065_v15  ;;  %1091 = vadd.xlane.f32.xlu0 %v1090_v61 }
 0x575   : > { %v10687_v16 = vpop.eup %9135  ;;  %v1088_v47 = vmul.f32 1.442695, %v1073_v18 }
 0x576   : > { %v10689_v24 = vpop.eup %9137  ;;  %v1059_v23 = vpop.xlane.xlu0 %1058  ;;  %v1108_v9 = vsel %vm1041_vm1, %v10687_v16, 0.0 }
 0x577   : > { %9143 = vpow2.f32 %v1088_v47  ;;  %v1071_v59 = vsub.f32 %v10624_v14, %v1059_v23  ;;  %1109 = vadd.xlane.f32.xlu0 %v1108_v9  ;;  %v1099_v33 = vsel %vm1041_vm1, %v10689_v24, 0.0 }
 0x578   : > { %1100 = vadd.xlane.f32.xlu1 %v1099_v33 }
 0x579   : > { %v10696_v3 = vpop.eup %9139  ;;  %v1084_v8 = vmul.f32 1.442695, %v1071_v59 }
 0x57a   : > { %v1093_v12 = vsel %vm1041_vm1, %v10696_v3, 0.0  ;;  %v1923_v56 = vpop.xlane.xlu0 %1922 }
 0x57b   : > { %9145 = vpow2.f32 %v1084_v8  ;;  %v1941_v61 = vsub.f32 %v10629_v27, %v1923_v56 }
 0x57c   : > { %1094 = vadd.xlane.f32.xlu1 %v1093_v12 }
 0x57d   : > { %v10700_v21 = vpop.eup %9141  ;;  %v1951_v47 = vmul.f32 1.442695, %v1941_v61 }
 0x57e   : > { %v1102_v43 = vsel %vm1041_vm1, %v10700_v21, 0.0  ;;  %v1917_v30 = vpop.xlane.xlu0 %1916 }
 0x57f   : > { %1103 = vadd.xlane.f32.xlu0 %v1102_v43  ;;  %v1939_v23 = vsub.f32 %v10636_v38, %v1917_v30  ;;  %9147 = vpow2.f32 %v1951_v47 }
 0x581   : > { %v10704_v14 = vpop.eup %9143  ;;  %v1947_v33 = vmul.f32 1.442695, %v1939_v23 }
 0x582   : > { %v1111_v50 = vsel %vm1041_vm1, %v10704_v14, 0.0  ;;  %v1926_v15 = vpop.xlane.xlu0 %1925 }
 0x583   : > { %1112 = vadd.xlane.f32.xlu1 %v1111_v50  ;;  %v1942_v9 = vsub.f32 %v10641_v51, %v1926_v15  ;;  %9149 = vpow2.f32 %v1947_v33 }
 0x585   : > { %v10708_v26 = vpop.eup %9145  ;;  %v1953_v12 = vmul.f32 1.442695, %v1942_v9 }
 0x586   : > { %v1105_v28 = vsel %vm1041_vm1, %v10708_v26, 0.0  ;;  %v1920_v18 = vpop.xlane.xlu0 %1919 }
 0x587   : > { %1106 = vadd.xlane.f32.xlu1 %v1105_v28  ;;  %v1940_v8 = vsub.f32 %v10646_v25, %v1920_v18  ;;  %9151 = vpow2.f32 %v1953_v12 }
 0x589   : > { %v10722_v28 = vpop.eup %9147 }
 0x58a   : > { %v1935_v59 = vpop.xlane.xlu0 %1934  ;;  %v1969_v51 = vsel %vm1041_vm1, %v10722_v28, 0.0 }
 0x58b   : > { %v1945_v43 = vsub.f32 %v10651_v62, %v1935_v59 }
 0x58d   : > { %v1959_v27 = vmul.f32 1.442695, %v1945_v43  ;;  %v10726_v56 = vpop.eup %9149 }
 0x58e   : > { %v1963_v62 = vsel %vm1041_vm1, %v10726_v56, 0.0 }
 0x591   : > { %v10728_v25 = vpop.eup %9151 }
 0x595   : > { %2260 = vrot.lane.b32.xlu0 %v10440_v20, %s10028_s10  ;;  %v1949_v20 = vmul.f32 1.442695, %v1940_v8 }
 0x597   : > { %9153 = vpow2.f32 %v1949_v20 }
 0x598   : > { %2262 = vrot.lane.b32.xlu1 %v10458_v46, %s10028_s10  ;;  %v1929_v46 = vpop.xlane.xlu0 %1928  ;;  %9155 = vpow2.f32 %v1959_v27 }
 0x599   : > { %v1943_v50 = vsub.f32 %v10656_v40, %v1929_v46  ;;  %v1972_v40 = vsel %vm1041_vm1, %v10728_v25, 0.0  ;;  %v8762_v46 = vunpack.i.l.bf16 %v10550_v29 }
 0x59b   : > { %v1955_v38 = vmul.f32 1.442695, %v1943_v50 }
 0x59c   : > { %v1938_v9 = vpop.xlane.xlu0 %1937 }
 0x59d   : > { %9157 = vpow2.f32 %v1955_v38  ;;  %v1946_v59 = vsub.f32 %v10661_v11, %v1938_v9  ;;  %v8768_v38 = vunpack.i.h.bf16 %v10552_v31 }
 0x59f   : > { %v1961_v8 = vmul.f32 1.442695, %v1946_v59 }
 0x5a0   : > { %v1932_v33 = vpop.xlane.xlu0 %1931 }
 0x5a1   : > { %v10732_v30 = vpop.eup %9153  ;;  %v1944_v12 = vsub.f32 %v10666_v19, %v1932_v33  ;;  %9159 = vpow2.f32 %v1961_v8  ;;  %v8767_v19 = vunpack.i.l.bf16 %v10552_v31  ;;  %v8778_v31 = vunpack.i.h.bf16 %v10556_v37 }
 0x5a2   : > { %v1966_v15 = vsel %vm1041_vm1, %v10732_v30, 0.0  ;;  %v10738_v61 = vpop.eup %9155 }
 0x5a3   : > { %v1981_v18 = vsel %vm1041_vm1, %v10738_v61, 0.0  ;;  %v1957_v20 = vmul.f32 1.442695, %v1944_v12 }
 0x5a5   : > { %9161 = vpow2.f32 %v1957_v20 }
 0x5a7   : > { %v10742_v47 = vpop.eup %9157 }
 0x5a8   : > { %v1975_v23 = vsel %vm1041_vm1, %v10742_v47, 0.0 }
 0x5ab   : > { %v10750_v43 = vpop.eup %9159 }
 0x5ac   : > { %v1984_v27 = vsel %vm1041_vm1, %v10750_v43, 0.0 }
 0x5af   : > { %v10755_v50 = vpop.eup %9161 }
 0x5b0   : > { %v1978_v11 = vsel %vm1041_vm1, %v10755_v50, 0.0 }
 0x5b4   : > { %1970 = vadd.xlane.f32.xlu0 %v1969_v51  ;;  %v8772_v51 = vunpack.i.l.bf16 %v10554_v35 }
 0x5b8   : > { %1964 = vadd.xlane.f32.xlu0 %v1963_v62 }
 0x5bc   : > { %1973 = vadd.xlane.f32.xlu0 %v1972_v40  ;;  %1967 = vadd.xlane.f32.xlu1 %v1966_v15  ;;  %v8773_v40 = vunpack.i.h.bf16 %v10554_v35 }
 0x5c0   : > { %1982 = vadd.xlane.f32.xlu0 %v1981_v18 }
 0x5c4   : > { %1976 = vadd.xlane.f32.xlu0 %v1975_v23 }
 0x5cd   : > { %2264 = vrot.lane.b32.xlu1 %v10472_v60, %s10028_s10  ;;  %v8763_v60 = vunpack.i.h.bf16 %v10550_v29  ;;  %v8777_v29 = vunpack.i.l.bf16 %v10556_v37 }
 0x5f1   : > { %2226 = vxpose.xlu0.b32.start [1/8] (short) (narrow) %v8762_v46, 32  ;;  %1985 = vadd.xlane.f32.xlu1 %v1984_v27 }
 0x5f5   : > { %2227 = vxpose.xlu0.b32.cont [2/8] (short) (narrow) %v8763_v60, 32  ;;  %1979 = vadd.xlane.f32.xlu1 %v1978_v11 }
 0x5f9   : > { %2228 = vxpose.xlu0.b32.cont [3/8] (short) (narrow) %v8767_v19, 32 }
 0x5fc   : > { %v1098_v62 = vpop.xlane.xlu0 %1097 }
 0x5fd   : > { %2229 = vxpose.xlu0.b32.cont [4/8] (short) (narrow) %v8768_v38, 32 }
 0x600   : > { %v1092_v15 = vpop.xlane.xlu0 %1091 }
 0x601   : > { %2230 = vxpose.xlu0.b32.cont [5/8] (short) (narrow) %v8772_v51, 32 }
 0x604   : > { %v1110_v9 = vpop.xlane.xlu0 %1109 }
 0x605   : > { %v1101_v18 = vpop.xlane.xlu1 %1100  ;;  %2231 = vxpose.xlu0.b32.cont [6/8] (short) (narrow) %v8773_v40, 32 }
 0x606   : > { %2266 = vrot.lane.b32.xlu1 %v10482_v10, %s10028_s10  ;;  %9163 = vrcp.f32 %v1101_v18 }
 0x607   : > { %9165 = vrcp.f32 %v1092_v15 }
 0x608   : > { %9167 = vrcp.f32 %v1098_v62 }
 0x609   : > { %v1095_v23 = vpop.xlane.xlu1 %1094  ;;  %2232 = vxpose.xlu0.b32.cont [7/8] (short) (narrow) %v8777_v29, 32  ;;  %v10781_v29 = vadd.f32 %v10567_v44, %v10562_v45  ;;  %v10798_v44 = vadd.f32 %v10569_v48, %v10578_v53  ;;  %v10814_v48 = vadd.f32 %v10589_v32, %v10580_v54 }
 0x60a   : > { %9169 = vrcp.f32 %v1095_v23  ;;  %v10786_v23 = vadd.f32 %v10574_v52, %v10587_v57 }
 0x60c   : > { %v1104_v59 = vpop.xlane.xlu0 %1103 }
 0x60d   : > { %2233 = vxpose.xlu0.b32.end [8/8] (short) (narrow) %v8778_v31, 32  ;;  %v1490_v31 = vsel %vm1041_vm1, %v10798_v44, -inf }
 0x610   : > { %v1113_v35 = vpop.xlane.xlu1 %1112  ;;  %v9164_v33 = vpop.eup %9163 }
 0x611   : > { %v9166_v8 = vpop.eup %9165  ;;  %9171 = vrcp.f32 %v1113_v35  ;;  %v1125_v20 = vmul.f32 %v9164_v33, %v10689_v24  ;;  %v1499_v35 = vsel %vm1041_vm1, %v10814_v48, -inf }
 0x612   : > { %v9168_v12 = vpop.eup %9167  ;;  %9173 = vrcp.f32 %v1104_v59  ;;  %v1122_v27 = vmul.f32 %v9166_v8, %v10682_v58 }
 0x613   : > { %9175 = vrcp.f32 %v1110_v9  ;;  %v1124_v37 = vmul.f32 %v9168_v12, %v10677_v22 }
 0x614   : > { %v9170_v10 = vpop.eup %9169  ;;  %v1107_v46 = vpop.xlane.xlu1 %1106 }
 0x615   : > { %9177 = vrcp.f32 %v1107_v46  ;;  %v1123_v60 = vmul.f32 %v9170_v10, %v10696_v3  ;;  %v1131_v19 = vpack.c.bf16 %v1125_v20, %v1124_v37  ;;  %v8907_v10 = vld [vmem:[#allocation10] sm:$0xff]   ;;  %v8908_v46 = vld [vmem:[#allocation10 + $0x8] sm:$0xff]  }
 0x616   : > { %8180 = vmatprep.subr.bf16.mxu1 %v8907_v10 }
 0x617   : > { %v1130_v11 = vpack.c.bf16 %v1123_v60, %v1122_v27 }
 0x618   : > { %v2263_v8 = vpop.permute.xlu1 %2262 }
 0x619   : > { %8172 = vmatprep.mubr.msk.bf16.mxu1 %vm1041_vm1, %v1130_v11 }
 0x61a   : > { %8173 = vmatmul.mubr.msk.bf16.vlgmr.msra.gmra.mrb[16].mxu1 %vm1041_vm1, %v1131_v19 }
 0x61b   : > { %v9172_v38 = vpop.eup %9171  ;;  %8181 = vmatpush3.bf16.msra.mxu1 %v8907_v10 }
 0x61c   : > { %v9174_v51 = vpop.eup %9173  ;;  %v1129_v24 = vmul.f32 %v9172_v38, %v10704_v14  ;;  %v1484_v14 = vsel %vm1041_vm1, %v10786_v23, -inf  ;;  %8182 = vmatprep.subr.bf16.mxu1 %v8908_v46 }
 0x61d   : > { %v9176_v62 = vpop.eup %9175  ;;  %v1126_v15 = vmul.f32 %v9174_v51, %v10700_v21  ;;  %v1481_v21 = vsel %vm1041_vm1, %v10781_v29, -inf }
 0x61e   : > { %v1128_v3 = vmul.f32 %v9176_v62, %v10687_v16  ;;  %v10792_v16 = vadd.f32 %v10560_v42, %v10558_v39  ;;  %v10808_v42 = vadd.f32 %v10601_v1, %v10621_v13  ;;  %v10824_v1 = vpop.permute.xlu0 %2260 }
 0x61f   : > { %v9178_v40 = vpop.eup %9177  ;;  %8183 = vmatpush3.bf16.msra.mxu1 %v8908_v46 }
 0x620   : > { %v1127_v58 = vmul.f32 %v9178_v40, %v10708_v26  ;;  %v1133_v22 = vpack.c.bf16 %v1129_v24, %v1128_v3  ;;  %v1487_v52 = vsel %vm1041_vm1, %v10792_v16, -inf  ;;  %v10804_v26 = vadd.f32 %v10594_v49, %v10607_v7 }
 0x621   : > { %v1496_v59 = vsel %vm1041_vm1, %v10808_v42, -inf  ;;  %v10822_v49 = vadd.f32 %v10596_v0, %v10614_v5 }
 0x622   : > { %v1132_v18 = vpack.c.bf16 %v1127_v58, %v1126_v15  ;;  %v1493_v9 = vsel %vm1041_vm1, %v10804_v26, -inf }
 0x623   : > { %v1502_v33 = vsel %vm1041_vm1, %v10822_v49, -inf }
 0x624   : > { %8176 = vmatprep.mubr.msk.bf16.mxu1 %vm1041_vm1, %v1132_v18 }
 0x625   : > { %8177 = vmatmul.mubr.msk.bf16.gmra.mrb[20].mxu1 %vm1041_vm1, %v1133_v22 }
 0x62a   : > { %1482 = vmax.xlane.f32.xlu1 %v1481_v21 }
 0x62e   : > { %1485 = vmax.xlane.f32.xlu1 %v1484_v14 }
 0x632   : > { %1488 = vmax.xlane.f32.xlu1 %v1487_v52 }
 0x636   : > { %1491 = vmax.xlane.f32.xlu1 %v1490_v31 }
 0x63a   : > { %1494 = vmax.xlane.f32.xlu0 %v1493_v9  ;;  %1497 = vmax.xlane.f32.xlu1 %v1496_v59 }
 0x63e   : > { %1500 = vmax.xlane.f32.xlu1 %v1499_v35 }
 0x641   : > { %v1971_v32 = vpop.xlane.xlu0 %1970 }
 0x642   : > { %1503 = vmax.xlane.f32.xlu1 %v1502_v33 }
 0x645   : > { %v1965_v12 = vpop.xlane.xlu0 %1964 }
 0x646   : > { %9179 = vrcp.f32 %v1965_v12 }
 0x647   : > { %9181 = vrcp.f32 %v1971_v32 }
 0x649   : > { %v1968_v0 = vpop.xlane.xlu1 %1967  ;;  %v1974_v20 = vpop.xlane.xlu0 %1973 }
 0x64a   : > { %9183 = vrcp.f32 %v1968_v0 }
 0x64b   : > { %9185 = vrcp.f32 %v1974_v20 }
 0x64d   : > { %v1983_v15 = vpop.xlane.xlu0 %1982  ;;  %v2265_v21 = vpop.permute.xlu1 %2264 }
 0x650   : > { %1577 = vrot.lane.b32.xlu0 %v10452_v36, %s10026_s26  ;;  %v9180_v27 = vpop.eup %9179 }
 0x651   : > { %v9182_v60 = vpop.eup %9181  ;;  %v1995_v19 = vmul.f32 %v9180_v27, %v10726_v56  ;;  %v1977_v58 = vpop.xlane.xlu0 %1976 }
 0x652   : > { %v1997_v51 = vmul.f32 %v9182_v60, %v10722_v28 }
 0x654   : > { %v9184_v37 = vpop.eup %9183 }
 0x655   : > { %v9186_v11 = vpop.eup %9185  ;;  %v1996_v38 = vmul.f32 %v9184_v37, %v10732_v30 }
 0x656   : > { %v1998_v62 = vmul.f32 %v9186_v11, %v10728_v25 }
 0x657   : > { %v2003_v40 = vpack.c.bf16 %v1996_v38, %v1995_v19 }
 0x658   : > { %v2004_v24 = vpack.c.bf16 %v1998_v62, %v1997_v51 }
 0x659   : > { %8252 = vmatprep.mubr.msk.bf16.mxu0 %vm1041_vm1, %v2003_v40 }
 0x65a   : > { %8253 = vmatmul.mubr.msk.bf16.vlgmr.msra.gmra.mrb[32].mxu0 %vm1041_vm1, %v2004_v24 }
 0x671   : > { %v2242_v3 = vpop.trf.xlu0 }
 0x675   : > { %v2243_v18 = vpop.trf.xlu0 }
 0x676   : > { %v2258_v22 = vpack.c.bf16 %v2243_v18, %v2242_v3 }
 0x678   : > { %8272 = vmatprep.subr.bf16.mxu0 %v2258_v22 }
 0x679   : > { %8273 = vmatpush3.bf16.msra.mxu0 %v2258_v22  ;;  %v2244_v56 = vpop.trf.xlu0 }
 0x67d   : > { %v2245_v30 = vpop.trf.xlu0 }
 0x67e   : > { %v1986_v14 = vpop.xlane.xlu1 %1985  ;;  %v2259_v28 = vpack.c.bf16 %v2245_v30, %v2244_v56 }
 0x67f   : > { %9187 = vrcp.f32 %v1986_v14 }
 0x680   : > { %8274 = vmatprep.subr.bf16.mxu0 %v2259_v28  ;;  %9189 = vrcp.f32 %v1977_v58 }
 0x681   : > { %8275 = vmatpush3.bf16.msra.mxu0 %v2259_v28  ;;  %9191 = vrcp.f32 %v1983_v15 }
 0x682   : > { %v1980_v25 = vpop.xlane.xlu1 %1979 }
 0x683   : > { %9193 = vrcp.f32 %v1980_v25 }
 0x689   : > { %v9188_v52 = vpop.eup %9187 }
 0x68a   : > { %v9190_v31 = vpop.eup %9189  ;;  %v2002_v35 = vmul.f32 %v9188_v52, %v10750_v43  ;;  %v2267_v43 = vpop.permute.xlu1 %2266 }
 0x68b   : > { %v9192_v9 = vpop.eup %9191  ;;  %v1999_v32 = vmul.f32 %v9190_v31, %v10742_v47 }
 0x68c   : > { %v2001_v12 = vmul.f32 %v9192_v9, %v10738_v61 }
 0x68d   : > { %v9194_v59 = vpop.eup %9193 }
 0x68e   : > { %v2000_v33 = vmul.f32 %v9194_v59, %v10755_v50  ;;  %v2006_v0 = vpack.c.bf16 %v2002_v35, %v2001_v12 }
 0x690   : > { %v2005_v10 = vpack.c.bf16 %v2000_v33, %v1999_v32 }
 0x692   : > { %8256 = vmatprep.mubr.msk.bf16.mxu0 %vm1041_vm1, %v2005_v10 }
 0x693   : > { %8257 = vmatmul.mubr.msk.bf16.gmra.mrb[36].mxu0 %vm1041_vm1, %v2006_v0 }
 0x694   : > { %8276 = vmatprep.mubr.msk.bf16.mxu0 %vm963_vm0, %v10824_v1 }
 0x69b   : > { %8277 = vmatmul.mubr.msk.bf16.vlgmr.msra.gmra.mrb[40].mxu0 %vm963_vm0, %v2263_v8 }
 0x69c   : > { %8280 = vmatprep.mubr.msk.bf16.mxu0 %vm963_vm0, %v2265_v21 }
 0x6a3   : > { %8281 = vmatmul.mubr.msk.bf16.gmra.mrb[44].mxu0 %vm963_vm0, %v2267_v43 }
 0x6a4   : > { %3010 = vmatprep.mubr.bf16.mxu0 %v12497_v63 }
 0x6b7   : > { %v1483_v47 = vpop.xlane.xlu1 %1482 }
 0x6b8   : > { %v1505_v61 = vsub.f32 %v10781_v29, %v1483_v47 }
 0x6ba   : > { %v1513_v50 = vmul.f32 1.442695, %v1505_v61 }
 0x6bb   : > { %v1486_v20 = vpop.xlane.xlu1 %1485 }
 0x6bc   : > { %9195 = vpow2.f32 %v1513_v50  ;;  %v1506_v46 = vsub.f32 %v10786_v23, %v1486_v20 }
 0x6be   : > { %v1515_v27 = vmul.f32 1.442695, %v1506_v46 }
 0x6bf   : > { %v1489_v60 = vpop.xlane.xlu1 %1488 }
 0x6c0   : > { %9197 = vpow2.f32 %v1515_v27  ;;  %v1507_v1 = vsub.f32 %v10792_v16, %v1489_v60 }
 0x6c2   : > { %v1517_v8 = vmul.f32 1.442695, %v1507_v1 }
 0x6c3   : > { %v1492_v37 = vpop.xlane.xlu1 %1491 }
 0x6c4   : > { %9199 = vpow2.f32 %v1517_v8  ;;  %v1508_v11 = vsub.f32 %v10798_v44, %v1492_v37 }
 0x6c6   : > { %v10854_v19 = vpop.eup %9195  ;;  %v1519_v38 = vmul.f32 1.442695, %v1508_v11 }
 0x6c7   : > { %v1498_v51 = vpop.xlane.xlu1 %1497  ;;  %v1495_v29 = vpop.xlane.xlu0 %1494  ;;  %v1529_v62 = vsel %vm1041_vm1, %v10854_v19, 0.0 }
 0x6c8   : > { %9201 = vpow2.f32 %v1519_v38  ;;  %v1510_v23 = vsub.f32 %v10808_v42, %v1498_v51  ;;  %v1509_v40 = vsub.f32 %v10804_v26, %v1495_v29  ;;  %1530 = vadd.xlane.f32.xlu1 %v1529_v62 }
 0x6ca   : > { %v10860_v16 = vpop.eup %9197  ;;  %v1521_v24 = vmul.f32 1.442695, %v1509_v40  ;;  %v1523_v15 = vmul.f32 1.442695, %v1510_v23 }
 0x6cb   : > { %v1501_v58 = vpop.xlane.xlu1 %1500  ;;  %v1578_v44 = vpop.permute.xlu0 %1577  ;;  %v1532_v3 = vsel %vm1041_vm1, %v10860_v16, 0.0 }
 0x6cc   : > { %v1511_v18 = vsub.f32 %v10814_v48, %v1501_v58  ;;  %1533 = vadd.xlane.f32.xlu1 %v1532_v3  ;;  %8204 = vmatprep.subr.bf16.mxu1 %v1578_v44  ;;  %9203 = vpow2.f32 %v1521_v24 }
 0x6cd   : > { %9205 = vpow2.f32 %v1523_v15 }
 0x6ce   : > { %v10865_v22 = vpop.eup %9199  ;;  %v1525_v42 = vmul.f32 1.442695, %v1511_v18 }
 0x6cf   : > { %v1504_v26 = vpop.xlane.xlu1 %1503  ;;  %v1535_v56 = vsel %vm1041_vm1, %v10865_v22, 0.0 }
 0x6d0   : > { %v1512_v21 = vsub.f32 %v10822_v49, %v1504_v26  ;;  %1536 = vadd.xlane.f32.xlu1 %v1535_v56  ;;  %9207 = vpow2.f32 %v1525_v42 }
 0x6d2   : > { %v10870_v30 = vpop.eup %9201  ;;  %v1527_v14 = vmul.f32 1.442695, %v1512_v21 }
 0x6d3   : > { %v1538_v48 = vsel %vm1041_vm1, %v10870_v30, 0.0 }
 0x6d4   : > { %1539 = vadd.xlane.f32.xlu1 %v1538_v48  ;;  %9209 = vpow2.f32 %v1527_v14 }
 0x6d6   : > { %v10874_v28 = vpop.eup %9203 }
 0x6d7   : > { %v1541_v25 = vsel %vm1041_vm1, %v10874_v28, 0.0  ;;  %v10878_v52 = vpop.eup %9205 }
 0x6d8   : > { %1542 = vadd.xlane.f32.xlu1 %v1541_v25  ;;  %v1544_v49 = vsel %vm1041_vm1, %v10878_v52, 0.0 }
 0x6da   : > { %v10882_v31 = vpop.eup %9207 }
 0x6db   : > { %v1547_v9 = vsel %vm1041_vm1, %v10882_v31, 0.0 }
 0x6dc   : > { %1545 = vadd.xlane.f32.xlu1 %v1544_v49 }
 0x6de   : > { %v10886_v59 = vpop.eup %9209 }
 0x6df   : > { %v1550_v35 = vsel %vm1041_vm1, %v10886_v59, 0.0 }
 0x6e0   : > { %1548 = vadd.xlane.f32.xlu1 %v1547_v9 }
 0x6e4   : > { %1551 = vadd.xlane.f32.xlu1 %v1550_v35 }
 0x6ed   : > { %v8174_v32 = vpop.f32.mrb[16].mxu1 }
 0x6ee   : > { %v1184_v33 = vpop.f32.mrb[17].mxu1 }
 0x6ef   : > { %v8175_v12 = vpop.f32.mrb[18].mxu1 }
 0x6f0   : > { %v1216_v10 = vpack.c.bf16 %v8175_v12, %v8174_v32  ;;  %v1187_v0 = vpop.f32.mrb[19].mxu1 }
 0x6f1   : > { %v1215_v43 = vpack.c.bf16 %v1187_v0, %v1184_v33 }
 0x6f3   : > { %8184 = vmatprep.mubr.msk.bf16.mxu1 %vm963_vm0, %v1215_v43 }
 0x6f4   : > { %8185 = vmatmul.mubr.msk.bf16.vlgmr.msra.gmra.mrb[24].mxu1 %vm963_vm0, %v1216_v10 }
 0x6f5   : > { %8205 = vmatpush3.bf16.msra.mxu1 %v1578_v44  ;;  %1579 = vrot.lane.b32.xlu1 %v10450_v34, %s10026_s26 }
 0x6f8   : > { %v8178_v47 = vpop.f32.mrb[20].mxu1 }
 0x6f9   : > { %v1200_v61 = vpop.f32.mrb[21].mxu1  ;;  %1581 = vrot.lane.b32.xlu1 %v10466_v55, %s10026_s26 }
 0x6fa   : > { %v8179_v50 = vpop.f32.mrb[22].mxu1 }
 0x6fb   : > { %v1218_v20 = vpack.c.bf16 %v8179_v50, %v8178_v47  ;;  %v1203_v46 = vpop.f32.mrb[23].mxu1 }
 0x6fc   : > { %v1217_v27 = vpack.c.bf16 %v1203_v46, %v1200_v61 }
 0x6fd   : > { %1583 = vrot.lane.b32.xlu1 %v10464_v17, %s10026_s26 }
 0x6fe   : > { %8188 = vmatprep.mubr.msk.bf16.mxu1 %vm963_vm0, %v1217_v27 }
 0x6ff   : > { %8189 = vmatmul.mubr.msk.bf16.gmra.mrb[28].mxu1 %vm963_vm0, %v1218_v20 }
 0x72d   : > { %v10900_v60 = vpop.f32.mrb[32].mxu0 }
 0x72e   : > { %v10902_v1 = vpop.f32.mrb[33].mxu0 }
 0x72f   : > { %v10904_v8 = vpop.f32.mrb[34].mxu0 }
 0x730   : > { %v2097_v37 = vpack.c.bf16 %v10904_v8, %v10900_v60  ;;  %v10908_v11 = vpop.f32.mrb[35].mxu0 }
 0x731   : > { %v2096_v38 = vpack.c.bf16 %v10908_v11, %v10902_v1 }
 0x755   : > { %v1531_v51 = vpop.xlane.xlu1 %1530 }
 0x756   : > { %9211 = vrcp.f32 %v1531_v51 }
 0x759   : > { %v1534_v29 = vpop.xlane.xlu1 %1533 }
 0x75a   : > { %9213 = vrcp.f32 %v1534_v29 }
 0x75d   : > { %v1537_v62 = vpop.xlane.xlu1 %1536 }
 0x760   : > { %v9212_v40 = vpop.eup %9211 }
 0x761   : > { %v1540_v23 = vpop.xlane.xlu1 %1539  ;;  %v1561_v15 = vmul.f32 %v9212_v40, %v10854_v19 }
 0x762   : > { %9215 = vrcp.f32 %v1540_v23 }
 0x764   : > { %v9214_v24 = vpop.eup %9213 }
 0x765   : > { %v1562_v58 = vmul.f32 %v9214_v24, %v10860_v16  ;;  %v1543_v44 = vpop.xlane.xlu1 %1542 }
 0x766   : > { %v10914_v3 = vpop.f32.mrb[36].mxu0 }
 0x767   : > { %v10916_v18 = vpop.f32.mrb[37].mxu0  ;;  %v1569_v42 = vpack.c.bf16 %v1562_v58, %v1561_v15 }
 0x768   : > { %v10918_v26 = vpop.f32.mrb[38].mxu0 }
 0x769   : > { %v2099_v56 = vpack.c.bf16 %v10918_v26, %v10914_v3  ;;  %8212 = vmatprep.mubr.msk.bf16.mxu1 %vm1041_vm1, %v1569_v42  ;;  %v10923_v21 = vpop.f32.mrb[39].mxu0  ;;  %v1546_v14 = vpop.xlane.xlu1 %1545 }
 0x76a   : > { %v2098_v19 = vpack.c.bf16 %v10923_v21, %v10916_v18  ;;  %9217 = vrcp.f32 %v1546_v14 }
 0x76b   : > { %9219 = vrcp.f32 %v1537_v62 }
 0x76c   : > { %9221 = vrcp.f32 %v1543_v44  ;;  %v9216_v20 = vpop.eup %9215 }
 0x76d   : > { %v1549_v16 = vpop.xlane.xlu1 %1548  ;;  %v1564_v24 = vmul.f32 %v9216_v20, %v10870_v30 }
 0x76e   : > { %v8278_v48 = vpop.f32.mrb[40].mxu0 }
 0x76f   : > { %v2314_v25 = vpop.f32.mrb[41].mxu0  ;;  %v10931_v32 = vadd.f32 %v8278_v48, %v10558_v39 }
 0x770   : > { %v10928_v49 = vadd.f32 %v2314_v25, %v10562_v45  ;;  %v8279_v9 = vpop.f32.mrb[42].mxu0 }
 0x771   : > { %v2317_v35 = vpop.f32.mrb[43].mxu0  ;;  %v1552_v12 = vpop.xlane.xlu1 %1551  ;;  %v10941_v0 = vadd.f32 %v8279_v9, %v10578_v53  ;;  %v2351_v39 = vsel %vm1041_vm1, %v10931_v32, -inf }
 0x772   : > { %v10934_v33 = vadd.f32 %v2317_v35, %v10587_v57  ;;  %v2345_v10 = vsel %vm1041_vm1, %v10928_v49, -inf  ;;  %9223 = vrcp.f32 %v1552_v12  ;;  %v8910_v35 = vld [vmem:[#allocation10 + $0x18] sm:$0xff]   ;;  %v10975_v12 = vld [vmem:[#allocation10 + $0x20] sm:$0xff]  }
 0x773   : > { %2346 = vmax.xlane.f32.xlu0 %v2345_v10  ;;  %9225 = vrcp.f32 %v1549_v16  ;;  %v2354_v51 = vsel %vm1041_vm1, %v10941_v0, -inf }
 0x774   : > { %v2348_v45 = vsel %vm1041_vm1, %v10934_v33, -inf  ;;  %v9218_v29 = vpop.eup %9217 }
 0x775   : > { %2349 = vmax.xlane.f32.xlu1 %v2348_v45  ;;  %v1580_v43 = vpop.permute.xlu1 %1579  ;;  %v9220_v62 = vpop.eup %9219  ;;  %v1566_v44 = vmul.f32 %v9218_v29, %v10878_v52 }
 0x776   : > { %v8282_v47 = vpop.f32.mrb[44].mxu0  ;;  %8206 = vmatprep.subr.bf16.mxu1 %v1580_v43  ;;  %v1563_v42 = vmul.f32 %v9220_v62, %v10865_v22 }
 0x777   : > { %v2330_v57 = vpop.f32.mrb[45].mxu0  ;;  %2352 = vmax.xlane.f32.xlu0 %v2351_v39  ;;  %8207 = vmatpush3.bf16.msra.mxu1 %v1580_v43 }
 0x778   : > { %v8283_v61 = vpop.f32.mrb[46].mxu0  ;;  %v10946_v46 = vadd.f32 %v2330_v57, %v10607_v7  ;;  %v9222_v7 = vpop.eup %9221  ;;  %v1570_v30 = vpack.c.bf16 %v1564_v24, %v1563_v42 }
 0x779   : > { %v2333_v50 = vpop.f32.mrb[47].mxu0  ;;  %v1582_v27 = vpop.permute.xlu1 %1581  ;;  %v10954_v23 = vadd.f32 %v8283_v61, %v10614_v5  ;;  %v1565_v14 = vmul.f32 %v9222_v7, %v10874_v28  ;;  %v8909_v28 = vld [vmem:[#allocation10 + $0x10] sm:$0xff]  }
 0x77a   : > { %v10949_v53 = vadd.f32 %v2333_v50, %v10621_v13  ;;  %8208 = vmatprep.subr.bf16.mxu1 %v1582_v27  ;;  %v2339_v13 = vadd.f32 %v8282_v47, %v10580_v54  ;;  %v2357_v58 = vsel %vm1041_vm1, %v10946_v46, -inf }
 0x77b   : > { %2355 = vmax.xlane.f32.xlu0 %v2354_v51  ;;  %8209 = vmatpush3.bf16.msra.mxu1 %v1582_v27  ;;  %v2366_v5 = vsel %vm1041_vm1, %v10954_v23, -inf  ;;  %v1571_v48 = vpack.c.bf16 %v1566_v44, %v1565_v14 }
 0x77c   : > { %v2360_v40 = vsel %vm1041_vm1, %v10949_v53, -inf  ;;  %v9224_v16 = vpop.eup %9223  ;;  %v2363_v54 = vsel %vm1041_vm1, %v2339_v13, -inf }
 0x77d   : > { %2361 = vmax.xlane.f32.xlu1 %v2360_v40  ;;  %v1584_v15 = vpop.permute.xlu1 %1583  ;;  %v9226_v52 = vpop.eup %9225  ;;  %v1568_v22 = vmul.f32 %v9224_v16, %v10886_v59 }
 0x77e   : > { %8210 = vmatprep.subr.bf16.mxu1 %v1584_v15  ;;  %v1567_v25 = vmul.f32 %v9226_v52, %v10882_v31 }
 0x77f   : > { %2358 = vmax.xlane.f32.xlu0 %v2357_v58  ;;  %8211 = vmatpush3.bf16.msra.mxu1 %v1584_v15 }
 0x780   : > { %v1572_v9 = vpack.c.bf16 %v1568_v22, %v1567_v25  ;;  %8220 = vmatprep.subr.bf16.mxu1 %v8909_v28 }
 0x781   : > { %2367 = vmax.xlane.f32.xlu1 %v2366_v5 }
 0x782   : > { %8213 = vmatmul.mubr.msk.bf16.vlgmr.msra.gmra.mrb[32].mxu1 %vm1041_vm1, %v1570_v30 }
 0x783   : > { %2364 = vmax.xlane.f32.xlu0 %v2363_v54  ;;  %8216 = vmatprep.mubr.msk.bf16.mxu1 %vm1041_vm1, %v1571_v48 }
 0x784   : > { %8221 = vmatpush3.bf16.msra.mxu1 %v8909_v28 }
 0x785   : > { %8222 = vmatprep.subr.bf16.mxu1 %v8910_v35 }
 0x788   : > { %8223 = vmatpush3.bf16.msra.mxu1 %v8910_v35 }
 0x789   : > { %8260 = vmatprep.subr.bf16.mxu1 %v10975_v12 }
 0x78a   : > { %8217 = vmatmul.mubr.msk.bf16.gmra.mrb[36].mxu1 %vm1041_vm1, %v1572_v9 }
 0x799   : > { %2437 = vrot.lane.b32.xlu0 %v10452_v36, %s10028_s10 }
 0x800   : > { %v2347_v10 = vpop.xlane.xlu0 %2346 }
 0x801   : > { %v2369_v59 = vsub.f32 %v10928_v49, %v2347_v10 }
 0x802   : > { %v2350_v31 = vpop.xlane.xlu1 %2349 }
 0x803   : > { %v2377_v47 = vmul.f32 1.442695, %v2369_v59  ;;  %v2370_v36 = vsub.f32 %v10934_v33, %v2350_v31 }
 0x804   : > { %v2353_v45 = vpop.xlane.xlu0 %2352 }
 0x805   : > { %v2371_v43 = vsub.f32 %v10931_v32, %v2353_v45  ;;  %v2379_v20 = vmul.f32 1.442695, %v2370_v36  ;;  %v8912_v45 = vld [vmem:[#allocation10 + $0x28] sm:$0xff]  }
 0x807   : > { %v2381_v39 = vmul.f32 1.442695, %v2371_v43 }
 0x808   : > { %v2356_v57 = vpop.xlane.xlu0 %2355 }
 0x809   : > { %9227 = vpow2.f32 %v2381_v39  ;;  %v2372_v61 = vsub.f32 %v10941_v0, %v2356_v57 }
 0x80a   : > { %v2362_v50 = vpop.xlane.xlu1 %2361  ;;  %9229 = vpow2.f32 %v2377_v47 }
 0x80b   : > { %v2383_v27 = vmul.f32 1.442695, %v2372_v61 }
 0x80c   : > { %v2359_v51 = vpop.xlane.xlu0 %2358 }
 0x80d   : > { %9231 = vpow2.f32 %v2383_v27  ;;  %v2373_v49 = vsub.f32 %v10946_v46, %v2359_v51  ;;  %v2374_v46 = vsub.f32 %v10949_v53, %v2362_v50 }
 0x80e   : > { %9233 = vpow2.f32 %v2379_v20  ;;  %v2368_v29 = vpop.xlane.xlu1 %2367 }
 0x80f   : > { %v2385_v33 = vmul.f32 1.442695, %v2373_v49  ;;  %v2376_v7 = vsub.f32 %v10954_v23, %v2368_v29  ;;  %v2387_v5 = vmul.f32 1.442695, %v2374_v46 }
 0x810   : > { %v2365_v62 = vpop.xlane.xlu0 %2364 }
 0x811   : > { %v2375_v32 = vsub.f32 %v2339_v13, %v2365_v62  ;;  %v2391_v44 = vmul.f32 1.442695, %v2376_v7  ;;  %v8913_v62 = vld [vmem:[#allocation10 + $0x30] sm:$0xff]  }
 0x813   : > { %v10983_v40 = vpop.eup %9227  ;;  %v2389_v24 = vmul.f32 1.442695, %v2375_v32 }
 0x814   : > { %v2399_v0 = vsel %vm1041_vm1, %v10983_v40, 0.0  ;;  %v10988_v15 = vpop.eup %9229 }
 0x815   : > { %9235 = vpow2.f32 %v2389_v24  ;;  %2400 = vadd.xlane.f32.xlu0 %v2399_v0  ;;  %v2393_v13 = vsel %vm1041_vm1, %v10988_v15, 0.0 }
 0x816   : > { %9237 = vpow2.f32 %v2385_v33 }
 0x817   : > { %v10990_v58 = vpop.eup %9231  ;;  %9239 = vpow2.f32 %v2391_v44 }
 0x818   : > { %v2402_v23 = vsel %vm1041_vm1, %v10990_v58, 0.0  ;;  %v9234_v42 = vpop.eup %9233  ;;  %9241 = vpow2.f32 %v2387_v5 }
 0x819   : > { %2394 = vadd.xlane.f32.xlu0 %v2393_v13  ;;  %2403 = vadd.xlane.f32.xlu1 %v2402_v23  ;;  %v2396_v14 = vsel %vm1041_vm1, %v9234_v42, 0.0 }
 0x81d   : > { %2397 = vadd.xlane.f32.xlu1 %v2396_v14 }
 0x81f   : > { %v10998_v30 = vpop.eup %9235 }
 0x820   : > { %v2411_v53 = vsel %vm1041_vm1, %v10998_v30, 0.0  ;;  %v11002_v16 = vpop.eup %9237 }
 0x821   : > { %2412 = vadd.xlane.f32.xlu1 %v2411_v53  ;;  %v2405_v54 = vsel %vm1041_vm1, %v11002_v16, 0.0  ;;  %v11006_v48 = vpop.eup %9239 }
 0x822   : > { %v2414_v52 = vsel %vm1041_vm1, %v11006_v48, 0.0  ;;  %v11010_v22 = vpop.eup %9241 }
 0x823   : > { %v2408_v25 = vsel %vm1041_vm1, %v11010_v22, 0.0 }
 0x825   : > { %2406 = vadd.xlane.f32.xlu1 %v2405_v54 }
 0x829   : > { %2415 = vadd.xlane.f32.xlu1 %v2414_v52 }
 0x82d   : > { %2409 = vadd.xlane.f32.xlu1 %v2408_v25 }
 0x82f   : > { %2441 = vrot.lane.b32.xlu0 %v10466_v55, %s10028_s10 }
 0x833   : > { %2443 = vrot.lane.b32.xlu0 %v10464_v17, %s10028_s10 }
 0x83e   : > { %2439 = vrot.lane.b32.xlu1 %v10450_v34, %s10028_s10  ;;  %v2438_v34 = vpop.permute.xlu0 %2437 }
 0x855   : > { %v8214_v9 = vpop.f32.mrb[32].mxu1 }
 0x856   : > { %v1635_v28 = vpop.f32.mrb[33].mxu1 }
 0x857   : > { %v8215_v35 = vpop.f32.mrb[34].mxu1 }
 0x858   : > { %v1667_v10 = vpack.c.bf16 %v8215_v35, %v8214_v9  ;;  %v1638_v59 = vpop.f32.mrb[35].mxu1  ;;  %v7448_v9 = vld [vmem:[#allocation7 + $0x4] ss:$0 sm:$0xff] }
 0x859   : > { %v1666_v31 = vpack.c.bf16 %v1638_v59, %v1635_v28 }
 0x85b   : > { %8224 = vmatprep.mubr.msk.bf16.mxu1 %vm963_vm0, %v1666_v31 }
 0x85c   : > { %8225 = vmatmul.mubr.msk.bf16.vlgmr.msra.gmra.mrb[24].mxu1 %vm963_vm0, %v1667_v10 }
 0x85d   : > { %8261 = vmatpush3.bf16.msra.mxu1 %v10975_v12  ;;  %v8218_v55 = vpop.f32.mrb[36].mxu1 }
 0x85e   : > { %v1651_v43 = vpop.f32.mrb[37].mxu1  ;;  %8262 = vmatprep.subr.bf16.mxu1 %v8912_v45 }
 0x85f   : > { %v8219_v17 = vpop.f32.mrb[38].mxu1 }
 0x860   : > { %v1669_v47 = vpack.c.bf16 %v8219_v17, %v8218_v55  ;;  %v1654_v36 = vpop.f32.mrb[39].mxu1  ;;  %v9707_v55 = vld [vmem:[%s10341_s29] sm:$0xff] }
 0x861   : > { %v1668_v39 = vpack.c.bf16 %v1654_v36, %v1651_v43  ;;  %8263 = vmatpush3.bf16.msra.mxu1 %v8912_v45 }
 0x862   : > { %8284 = vmatprep.subr.bf16.mxu1 %v2438_v34 }
 0x863   : > { %8228 = vmatprep.mubr.msk.bf16.mxu1 %vm963_vm0, %v1668_v39 }
 0x864   : > { %8229 = vmatmul.mubr.msk.bf16.gmra.mrb[28].mxu1 %vm963_vm0, %v1669_v47  ;;  %v9708_v47 = vld [vmem:[%s10341_s29 + $0x8] sm:$0xff] }
 0x865   : > { %8264 = vmatprep.mubr.msk.bf16.mxu1 %vm963_vm0, %v2096_v38 }
 0x86c   : > { %8265 = vmatmul.mubr.msk.bf16.vlgmr.msra.gmra.mrb[24].mxu1 %vm963_vm0, %v2097_v37 }
 0x86d   : > { %8285 = vmatpush3.bf16.msra.mxu1 %v2438_v34  ;;  %8268 = vmatprep.mubr.msk.bf16.mxu1 %vm963_vm0, %v2098_v19  ;;  %v9709_v34 = vld [vmem:[%s10341_s29 + $0x10] sm:$0xff] }
 0x874   : > { %8269 = vmatmul.mubr.msk.bf16.gmra.mrb[28].mxu1 %vm963_vm0, %v2099_v56 }
 0x8a2   : > { %v2401_v12 = vpop.xlane.xlu0 %2400 }
 0x8a6   : > { %v2404_v1 = vpop.xlane.xlu1 %2403  ;;  %v2395_v11 = vpop.xlane.xlu0 %2394 }
 0x8a7   : > { %9243 = vrcp.f32 %v2395_v11 }
 0x8aa   : > { %v2398_v38 = vpop.xlane.xlu1 %2397  ;;  %v2442_v26 = vpop.permute.xlu0 %2441 }
 0x8ab   : > { %9245 = vrcp.f32 %v2398_v38 }
 0x8ac   : > { %9247 = vrcp.f32 %v2404_v1 }
 0x8ad   : > { %9249 = vrcp.f32 %v2401_v12 }
 0x8ae   : > { %v2413_v60 = vpop.xlane.xlu1 %2412  ;;  %v2444_v51 = vpop.permute.xlu0 %2443 }
 0x8b1   : > { %v9244_v37 = vpop.eup %9243 }
 0x8b2   : > { %v2407_v8 = vpop.xlane.xlu1 %2406  ;;  %v2425_v18 = vmul.f32 %v9244_v37, %v10988_v15 }
 0x8b3   : > { %9251 = vrcp.f32 %v2407_v8  ;;  %v9710_v8 = vld [vmem:[%s10341_s29 + $0x18] sm:$0xff] }
 0x8b5   : > { %v9246_v57 = vpop.eup %9245 }
 0x8b6   : > { %v2416_v61 = vpop.xlane.xlu1 %2415  ;;  %v2426_v21 = vmul.f32 %v9246_v57, %v9234_v42  ;;  %v9248_v50 = vpop.eup %9247 }
 0x8b7   : > { %v9250_v20 = vpop.eup %9249  ;;  %v2428_v29 = vmul.f32 %v9248_v50, %v10990_v58  ;;  %v9713_v50 = vld [vmem:[%s10341_s29 + $0x38] sm:$0xff] }
 0x8b8   : > { %v2433_v19 = vpack.c.bf16 %v2426_v21, %v2425_v18  ;;  %v2427_v33 = vmul.f32 %v9250_v20, %v10983_v40  ;;  %v8914_v40 = vld [vmem:[#allocation10 + $0x38] sm:$0xff]  }
 0x8b9   : > { %v9711_v21 = vld [vmem:[%s10341_s29 + $0x28] sm:$0xff] }
 0x8ba   : > { %v2410_v3 = vpop.xlane.xlu1 %2409  ;;  %8292 = vmatprep.mubr.msk.bf16.mxu1 %vm1041_vm1, %v2433_v19  ;;  %v2434_v24 = vpack.c.bf16 %v2428_v29, %v2427_v33  ;;  %v8917_v29 = vld [vmem:[#allocation11 + $0x4] ss:$16 sps:$4 sm:$0xff]  }
 0x8bb   : > { %9253 = vrcp.f32 %v2410_v3  ;;  %v8923_v33 = vld [vmem:[#allocation11 + $0x24] ss:$16 sps:$4 sm:$0xff]   ;;  %2978 = vmatprep.subr.bf16.mxu0 %v8917_v29 }
 0x8bc   : > { %9255 = vrcp.f32 %v2416_v61  ;;  %v8947_v29 = vld [vmem:[#allocation11 + $0xa4] ss:$16 sps:$4 sm:$0xff]  }
 0x8bd   : > { %9257 = vrcp.f32 %v2413_v60  ;;  %v9252_v27 = vpop.eup %9251 }
 0x8be   : > { %v2440_v56 = vpop.permute.xlu1 %2439  ;;  %v2429_v7 = vmul.f32 %v9252_v27, %v11002_v16  ;;  %v9714_v27 = vld [vmem:[%s10341_s29 + $0x30] sm:$0xff] }
 0x8bf   : > { %8286 = vmatprep.subr.bf16.mxu1 %v2440_v56 }
 0x8c0   : > { %8287 = vmatpush3.bf16.msra.mxu1 %v2440_v56 }
 0x8c1   : > { %8288 = vmatprep.subr.bf16.mxu1 %v2442_v26 }
 0x8c4   : > { %8289 = vmatpush3.bf16.msra.mxu1 %v2442_v26  ;;  %v9712_v26 = vld [vmem:[%s10341_s29 + $0x20] sm:$0xff] }
 0x8c5   : > { %v9254_v49 = vpop.eup %9253  ;;  %8290 = vmatprep.subr.bf16.mxu1 %v2444_v51 }
 0x8c6   : > { %v2430_v32 = vmul.f32 %v9254_v49, %v11010_v22  ;;  %v9256_v0 = vpop.eup %9255  ;;  %v8915_v49 = vld [vmem:[#allocation11] ss:$16 sps:$4 sm:$0xff]  }
 0x8c7   : > { %v9258_v46 = vpop.eup %9257  ;;  %v2432_v58 = vmul.f32 %v9256_v0, %v11006_v48  ;;  %2979 = vmatpush1.bf16.msra.mxu0 %v8915_v49  ;;  %v8924_v0 = vld [vmem:[#allocation11 + $0x28] ss:$16 sps:$4 sm:$0xff]  }
 0x8c8   : > { %8291 = vmatpush3.bf16.msra.mxu1 %v2444_v51  ;;  %v2435_v15 = vpack.c.bf16 %v2430_v32, %v2429_v7  ;;  %v2431_v44 = vmul.f32 %v9258_v46, %v10998_v30  ;;  %v8920_v32 = vld [vmem:[#allocation11 + $0xc] ss:$16 sps:$4 sm:$0xff]   ;;  %2980 = vmatprep.subr.bf16.mxu0 %v8923_v33  ;;  %v8942_v49 = vld [vmem:[#allocation11 + $0x88] ss:$16 sps:$4 sm:$0xff]  }
 0x8c9   : > { %8300 = vmatprep.subr.bf16.mxu1 %v8913_v62  ;;  %v8926_v7 = vld [vmem:[#allocation11 + $0x2c] ss:$16 sps:$4 sm:$0xff]   ;;  %v8948_v33 = vld [vmem:[#allocation11 + $0xa8] ss:$16 sps:$4 sm:$0xff]  }
 0x8ca   : > { %v2436_v13 = vpack.c.bf16 %v2432_v58, %v2431_v44 }
 0x8cb   : > { %8293 = vmatmul.mubr.msk.bf16.vlgmr.msra.gmra.mrb[40].mxu1 %vm1041_vm1, %v2434_v24  ;;  %v8921_v24 = vld [vmem:[#allocation11 + $0x20] ss:$16 sps:$4 sm:$0xff]  }
 0x8cc   : > { %8296 = vmatprep.mubr.msk.bf16.mxu1 %vm1041_vm1, %v2435_v15  ;;  %8301 = vmatpush3.bf16.msra.mxu1 %v8913_v62  ;;  %v8918_v62 = vld [vmem:[#allocation11 + $0x8] ss:$16 sps:$4 sm:$0xff]  }
 0x8cd   : > { %8302 = vmatprep.subr.bf16.mxu1 %v8914_v40  ;;  %2981 = vmatpush1.bf16.msra.mxu0 %v8921_v24  ;;  %v8956_v24 = vld [vmem:[#allocation11 + $0xcc] ss:$16 sps:$4 sm:$0xff]  }
 0x8d0   : > { %8303 = vmatpush3.bf16.msra.mxu1 %v8914_v40 }
 0x8d1   : > { %3051 = vmatprep.subr.bf16.mxu1 %v8920_v32  ;;  %v8945_v32 = vld [vmem:[#allocation11 + $0xa0] ss:$16 sps:$4 sm:$0xff]  }
 0x8d3   : > { %8297 = vmatmul.mubr.msk.bf16.gmra.mrb[44].mxu1 %vm1041_vm1, %v2436_v13 }
 0x99e   : > { %v8294_v23 = vpop.f32.mrb[40].mxu1 }
 0x99f   : > { %v2495_v42 = vpop.f32.mrb[41].mxu1 }
 0x9a0   : > { %v8295_v5 = vpop.f32.mrb[42].mxu1 }
 0x9a1   : > { %v2527_v14 = vpack.c.bf16 %v8295_v5, %v8294_v23  ;;  %v2498_v53 = vpop.f32.mrb[43].mxu1 }
 0x9a2   : > { %v2526_v16 = vpack.c.bf16 %v2498_v53, %v2495_v42 }
 0x9a4   : > { %8304 = vmatprep.mubr.msk.bf16.mxu1 %vm963_vm0, %v2526_v16 }
 0x9a5   : > { %8305 = vmatmul.mubr.msk.bf16.vlgmr.msra.gmra.mrb[24].mxu1 %vm963_vm0, %v2527_v14 }
 0x9a6   : > { %v8298_v54 = vpop.f32.mrb[44].mxu1  ;;  %3052 = vmatpush1.bf16.msra.mxu1 %v8918_v62  ;;  %v8950_v62 = vld [vmem:[#allocation11 + $0xac] ss:$16 sps:$4 sm:$0xff]  }
 0x9a7   : > { %v2511_v48 = vpop.f32.mrb[45].mxu1  ;;  %3053 = vmatprep.subr.bf16.mxu1 %v8926_v7  ;;  %v8953_v7 = vld [vmem:[#allocation11 + $0xc4] ss:$16 sps:$4 sm:$0xff]  }
 0x9a8   : > { %v8299_v30 = vpop.f32.mrb[46].mxu1 }
 0x9a9   : > { %v2529_v52 = vpack.c.bf16 %v8299_v30, %v8298_v54  ;;  %v2514_v22 = vpop.f32.mrb[47].mxu1 }
 0x9aa   : > { %v2528_v25 = vpack.c.bf16 %v2514_v22, %v2511_v48  ;;  %3054 = vmatpush1.bf16.msra.mxu1 %v8924_v0  ;;  %v8951_v0 = vld [vmem:[#allocation11 + $0xc0] ss:$16 sps:$4 sm:$0xff]  }
 0x9ac   : > { %8308 = vmatprep.mubr.msk.bf16.mxu1 %vm963_vm0, %v2528_v25 }
 0x9ad   : > { %8309 = vmatmul.mubr.msk.bf16.gmra.mrb[28].mxu1 %vm963_vm0, %v2529_v52 }
 0x9ae   : > { %3083 = vmatprep.mubr.bf16.mxu1 %v12497_v63 }
 0xa78   : > { %v8306_v28 = vpop.f32.mrb[24].mxu1 }
 0xa79   : > { %v2593_v35 = vpop.f32.mrb[25].mxu1  ;;  %v8496_v45 = vadd.f32 %v8306_v28, %v7448_v9 }
 0xa7a   : > { %v8497_v10 = vadd.f32 %v7448_v9, %v2593_v35  ;;  %v8307_v59 = vpop.f32.mrb[26].mxu1 }
 0xa7b   : > { %v2596_v31 = vpop.f32.mrb[27].mxu1  ;;  %v11065_v39 = vadd.f32 %v9709_v34, %v8496_v45  ;;  %v8498_v12 = vadd.f32 %v8307_v59, %v7448_v9 }
 0xa7c   : > { %v11058_v43 = vadd.f32 %v9707_v55, %v8497_v10  ;;  %v8499_v17 = vadd.f32 %v7448_v9, %v2596_v31 }
 0xa7d   : > { %v11070_v37 = vadd.f32 %v9710_v8, %v8498_v12  ;;  %v8927_v8 = vld [vmem:[#allocation11 + $0x40] ss:$16 sps:$4 sm:$0xff]  }
 0xa7e   : > { %v11061_v36 = vadd.f32 %v9708_v47, %v8499_v17  ;;  %2644 = vadd.xlane.f32.xlu0 %v11058_v43 }
 0xa7f   : > { %12540 = vst [vmem:[#allocation24_spill] sm:$0xff] %v11070_v37 }
 0xa80   : > { %2646 = vadd.xlane.f32.xlu1 %v11061_v36  ;;  %v8310_v1 = vpop.f32.mrb[28].mxu1 }
 0xa81   : > { %v2609_v11 = vpop.f32.mrb[29].mxu1  ;;  %v8500_v3 = vadd.f32 %v8310_v1, %v7448_v9 }
 0xa82   : > { %2648 = vadd.xlane.f32.xlu0 %v11065_v39  ;;  %v8311_v38 = vpop.f32.mrb[30].mxu1  ;;  %v8501_v57 = vadd.f32 %v7448_v9, %v2609_v11 }
 0xa83   : > { %v2612_v60 = vpop.f32.mrb[31].mxu1  ;;  %v8502_v18 = vadd.f32 %v8311_v38, %v7448_v9  ;;  %v11085_v51 = vadd.f32 %v9714_v27, %v8500_v3  ;;  %v8929_v38 = vld [vmem:[#allocation11 + $0x44] ss:$16 sps:$4 sm:$0xff]   ;;  %v8936_v3 = vld [vmem:[#allocation11 + $0x68] ss:$16 sps:$4 sm:$0xff]  }
 0xa84   : > { %v8503_v61 = vadd.f32 %v7448_v9, %v2612_v60  ;;  %v11077_v56 = vadd.f32 %v9712_v26, %v8501_v57  ;;  %v8932_v60 = vld [vmem:[#allocation11 + $0x4c] ss:$16 sps:$4 sm:$0xff]   ;;  %v8930_v57 = vld [vmem:[#allocation11 + $0x48] ss:$16 sps:$4 sm:$0xff]   ;;  %2982 = vmatprep.subr.bf16.mxu0 %v8929_v38  ;;  %v8941_v26 = vld [vmem:[#allocation11 + $0x84] ss:$16 sps:$4 sm:$0xff]  }
 0xa85   : > { %v11081_v20 = vadd.f32 %v9713_v50, %v8502_v18  ;;  %12544 = vst [vmem:[#allocation28_spill] sm:$0xff] %v11085_v51  ;;  %3055 = vmatprep.subr.bf16.mxu1 %v8932_v60  ;;  %2983 = vmatpush1.bf16.msra.mxu0 %v8927_v8  ;;  %v8938_v18 = vld [vmem:[#allocation11 + $0x6c] ss:$16 sps:$4 sm:$0xff]   ;;  %v8939_v27 = vld [vmem:[#allocation11 + $0x80] ss:$16 sps:$4 sm:$0xff]  }
 0xa86   : > { %v11073_v19 = vadd.f32 %v9711_v21, %v8503_v61  ;;  %2650 = vadd.xlane.f32.xlu0 %v11070_v37  ;;  %12542 = vst [vmem:[#allocation26_spill] sm:$0xff] %v11077_v56  ;;  %3056 = vmatpush1.bf16.msra.mxu1 %v8930_v57  ;;  %v8935_v61 = vld [vmem:[#allocation11 + $0x64] ss:$16 sps:$4 sm:$0xff]   ;;  %v8933_v21 = vld [vmem:[#allocation11 + $0x60] ss:$16 sps:$4 sm:$0xff]  }
 0xa87   : > { %12543 = vst [vmem:[#allocation27_spill] sm:$0xff] %v11081_v20  ;;  %2984 = vmatprep.subr.bf16.mxu0 %v8935_v61  ;;  %3057 = vmatprep.subr.bf16.mxu1 %v8938_v18  ;;  %v8944_v50 = vld [vmem:[#allocation11 + $0x8c] ss:$16 sps:$4 sm:$0xff]  }
 0xa88   : > { %12541 = vst [vmem:[#allocation25_spill] sm:$0xff] %v11073_v19  ;;  %2654 = vadd.xlane.f32.xlu1 %v11073_v19 }
 0xa89   : > { %2985 = vmatpush1.bf16.msra.mxu0 %v8933_v21 }
 0xa8a   : > { %2652 = vadd.xlane.f32.xlu0 %v11077_v56  ;;  %3058 = vmatpush1.bf16.msra.mxu1 %v8936_v3 }
 0xa8b   : > { %2986 = vmatprep.subr.bf16.mxu0 %v8941_v26  ;;  %3059 = vmatprep.subr.bf16.mxu1 %v8944_v50 }
 0xa8c   : > { %2658 = vadd.xlane.f32.xlu1 %v11081_v20 }
 0xa8d   : > { %2987 = vmatpush1.bf16.msra.mxu0 %v8939_v27 }
 0xa8e   : > { %2656 = vadd.xlane.f32.xlu0 %v11085_v51  ;;  %3060 = vmatpush1.bf16.msra.mxu1 %v8942_v49 }
 0xa8f   : > { %2988 = vmatprep.subr.bf16.mxu0 %v8947_v29  ;;  %3061 = vmatprep.subr.bf16.mxu1 %v8950_v62  ;;  %v7492_v29 = vld [vmem:[#allocation7 + $0x3] ss:$0 sm:$0xff] }
 0xa91   : > { %2989 = vmatpush1.bf16.msra.mxu0 %v8945_v32 }
 0xa92   : > { %3062 = vmatpush1.bf16.msra.mxu1 %v8948_v33  ;;  %2990 = vmatprep.subr.bf16.mxu0 %v8953_v7 }
 0xa93   : > { %3063 = vmatprep.subr.bf16.mxu1 %v8956_v24 }
 0xa95   : > { %2991 = vmatpush1.bf16.msra.mxu0 %v8951_v0 }
 0xb0b   : > { %v2645_v15 = vpop.xlane.xlu0 %2644 }
 0xb0c   : > { %v2660_v46 = vmul.f32 0.0078125, %v2645_v15  ;;  %v8954_v15 = vld [vmem:[#allocation11 + $0xc8] ss:$16 sps:$4 sm:$0xff]  }
 0xb0d   : > { %v2647_v58 = vpop.xlane.xlu1 %2646  ;;  %3064 = vmatpush1.bf16.msra.mxu1 %v8954_v15 }
 0xb0e   : > { %v11090_v44 = vsub.f32 %v11058_v43, %v2660_v46  ;;  %v2661_v13 = vmul.f32 0.0078125, %v2647_v58  ;;  %v8957_v46 = vld [vmem:[#allocation11 + $0xe0] ss:$16 sps:$4 sm:$0xff]   ;;  %v8959_v58 = vld [vmem:[#allocation11 + $0xe4] ss:$16 sps:$4 sm:$0xff]  }
 0xb0f   : > { %v2649_v40 = vpop.xlane.xlu0 %2648  ;;  %2992 = vmatprep.subr.bf16.mxu0 %v8959_v58 }
 0xb10   : > { %v11093_v23 = vsub.f32 %v11061_v36, %v2661_v13  ;;  %v2662_v42 = vmul.f32 0.0078125, %v2649_v40  ;;  %v2676_v5 = vmul.f32 %v11090_v44, %v11090_v44  ;;  %v8960_v13 = vld [vmem:[#allocation11 + $0xe8] ss:$16 sps:$4 sm:$0xff]   ;;  %v8962_v40 = vld [vmem:[#allocation11 + $0xec] ss:$16 sps:$4 sm:$0xff]   ;;  %2993 = vmatpush1.bf16.msra.mxu0 %v8957_v46 }
 0xb11   : > { %3065 = vmatprep.subr.bf16.mxu1 %v8962_v40 }
 0xb12   : > { %v11098_v14 = vsub.f32 %v11065_v39, %v2662_v42  ;;  %2684 = vadd.xlane.f32.xlu0 %v2676_v5  ;;  %v2677_v53 = vmul.f32 %v11093_v23, %v11093_v23  ;;  %3066 = vmatpush1.bf16.msra.mxu1 %v8960_v13 }
 0xb13   : > { %v2651_v16 = vpop.xlane.xlu0 %2650 }
 0xb14   : > { %v2663_v54 = vmul.f32 0.0078125, %v2651_v16  ;;  %2686 = vadd.xlane.f32.xlu1 %v2677_v53  ;;  %v2678_v48 = vmul.f32 %v11098_v14, %v11098_v14 }
 0xb15   : > { %v2655_v30 = vpop.xlane.xlu1 %2654 }
 0xb16   : > { %v11105_v52 = vsub.f32 %v11070_v37, %v2663_v54  ;;  %v2665_v22 = vmul.f32 0.0078125, %v2655_v30  ;;  %2688 = vadd.xlane.f32.xlu0 %v2678_v48 }
 0xb17   : > { %v2653_v25 = vpop.xlane.xlu0 %2652 }
 0xb18   : > { %v11108_v9 = vsub.f32 %v11073_v19, %v2665_v22  ;;  %v2664_v28 = vmul.f32 0.0078125, %v2653_v25  ;;  %v2679_v35 = vmul.f32 %v11105_v52, %v11105_v52 }
 0xb19   : > { %v2659_v10 = vpop.xlane.xlu1 %2658 }
 0xb1a   : > { %v11113_v59 = vsub.f32 %v11077_v56, %v2664_v28  ;;  %v2667_v31 = vmul.f32 0.0078125, %v2659_v10  ;;  %2690 = vadd.xlane.f32.xlu1 %v2679_v35  ;;  %v2681_v34 = vmul.f32 %v11108_v9, %v11108_v9 }
 0xb1b   : > { %v2657_v45 = vpop.xlane.xlu0 %2656 }
 0xb1c   : > { %v11116_v55 = vsub.f32 %v11081_v20, %v2667_v31  ;;  %v2666_v17 = vmul.f32 0.0078125, %v2657_v45  ;;  %v2680_v47 = vmul.f32 %v11113_v59, %v11113_v59 }
 0xb1e   : > { %v11123_v12 = vsub.f32 %v11085_v51, %v2666_v17  ;;  %2692 = vadd.xlane.f32.xlu0 %v2680_v47  ;;  %2694 = vadd.xlane.f32.xlu1 %v2681_v34  ;;  %v2683_v11 = vmul.f32 %v11116_v55, %v11116_v55 }
 0xb20   : > { %v2682_v1 = vmul.f32 %v11123_v12, %v11123_v12 }
 0xb22   : > { %2696 = vadd.xlane.f32.xlu0 %v2682_v1  ;;  %2698 = vadd.xlane.f32.xlu1 %v2683_v11  ;;  %v7491_v1 = vld [vmem:[#allocation7 + $0x2] ss:$0 sm:$0xff] }
 0xb9f   : > { %v2685_v42 = vpop.xlane.xlu0 %2684 }
 0xba0   : > { %v2700_v5 = vmul.f32 0.0078125, %v2685_v42 }
 0xba1   : > { %v2687_v53 = vpop.xlane.xlu1 %2686 }
 0xba2   : > { %v2708_v16 = vadd.f32 1e-05, %v2700_v5  ;;  %v2701_v54 = vmul.f32 0.0078125, %v2687_v53 }
 0xba3   : > { %v2689_v48 = vpop.xlane.xlu0 %2688 }
 0xba4   : > { %9259 = vrsqrt.f32 %v2708_v16  ;;  %v2709_v30 = vadd.f32 1e-05, %v2701_v54  ;;  %v2702_v22 = vmul.f32 0.0078125, %v2689_v48 }
 0xba6   : > { %9261 = vrsqrt.f32 %v2709_v30  ;;  %v2710_v25 = vadd.f32 1e-05, %v2702_v22 }
 0xba7   : > { %v2691_v28 = vpop.xlane.xlu1 %2690 }
 0xba8   : > { %9263 = vrsqrt.f32 %v2710_v25  ;;  %v2703_v35 = vmul.f32 0.0078125, %v2691_v28 }
 0xbaa   : > { %v2711_v10 = vadd.f32 1e-05, %v2703_v35 }
 0xbab   : > { %v2693_v31 = vpop.xlane.xlu0 %2692  ;;  %v2695_v45 = vpop.xlane.xlu1 %2694 }
 0xbac   : > { %9265 = vrsqrt.f32 %v2711_v10  ;;  %v2704_v17 = vmul.f32 0.0078125, %v2693_v31  ;;  %v2705_v47 = vmul.f32 0.0078125, %v2695_v45  ;;  %v8963_v45 = vld [vmem:[#allocation13 + $0x40] sm:$0xff]  }
 0xbad   : > { %7876 = vmatprep.subr.bf16.mxu0 %v8963_v45 }
 0xbae   : > { %v9260_v34 = vpop.eup %9259  ;;  %v2712_v11 = vadd.f32 1e-05, %v2704_v17  ;;  %v2713_v38 = vadd.f32 1e-05, %v2705_v47  ;;  %v8964_v17 = vld [vmem:[#allocation13 + $0xc0] sm:$0xff]  }
 0xbaf   : > { %v2724_v60 = vmul.f32 %v9260_v34, %v11090_v44  ;;  %v2697_v8 = vpop.xlane.xlu0 %2696  ;;  %v2699_v57 = vpop.xlane.xlu1 %2698  ;;  %v8965_v47 = vld [vmem:[#allocation13] sm:$0xff]   ;;  %7916 = vmatprep.subr.bf16.mxu1 %v8964_v17  ;;  %v8968_v34 = vld [vmem:[#allocation13 + $0xc8] sm:$0xff]  }
 0xbb0   : > { %v9262_v61 = vpop.eup %9261  ;;  %9267 = vrsqrt.f32 %v2712_v11  ;;  %v2706_v18 = vmul.f32 0.0078125, %v2697_v8  ;;  %v2707_v21 = vmul.f32 0.0078125, %v2699_v57  ;;  %v8970_v11 = vld [vmem:[#allocation13 + $0x88] sm:$0xff]   ;;  %v8973_v8 = vld [vmem:[#allocation13 + $0x10] sm:$0xff]  }
 0xbb1   : > { %v2738_v3 = vmul.f32 %v7491_v1, %v2724_v60  ;;  %v2725_v26 = vmul.f32 %v9262_v61, %v11093_v23  ;;  %9269 = vrsqrt.f32 %v2713_v38  ;;  %v8971_v38 = vld [vmem:[#allocation13 + $0x50] sm:$0xff]   ;;  %v8975_v61 = vld [vmem:[#allocation13 + $0x58] sm:$0xff]  }
 0xbb2   : > { %v9264_v50 = vpop.eup %9263  ;;  %v2714_v27 = vadd.f32 1e-05, %v2706_v18  ;;  %v2715_v49 = vadd.f32 1e-05, %v2707_v21  ;;  %v8972_v60 = vld [vmem:[#allocation13 + $0xd0] sm:$0xff]   ;;  %v8976_v18 = vld [vmem:[#allocation13 + $0xd8] sm:$0xff]  }
 0xbb3   : > { %v2739_v62 = vmul.f32 %v7491_v1, %v2725_v26  ;;  %v2752_v32 = vadd.f32 %v7492_v29, %v2738_v3  ;;  %v2726_v44 = vmul.f32 %v9264_v50, %v11098_v14  ;;  %v8974_v57 = vld [vmem:[#allocation13 + $0x90] sm:$0xff]   ;;  %v8977_v21 = vld [vmem:[#allocation13 + $0x18] sm:$0xff]   ;;  %v8979_v26 = vld [vmem:[#allocation13 + $0x60] sm:$0xff]  }
 0xbb4   : > { %9271 = vrsqrt.f32 %v2714_v27  ;;  %v8978_v3 = vld [vmem:[#allocation13 + $0x98] sm:$0xff]   ;;  %v8980_v50 = vld [vmem:[#allocation13 + $0xe0] sm:$0xff]  }
 0xbb5   : > { %v2753_v33 = vadd.f32 %v7492_v29, %v2739_v62  ;;  %9273 = vrsqrt.f32 %v2715_v49  ;;  %v2740_v15 = vmul.f32 %v7491_v1, %v2726_v44  ;;  %v8981_v27 = vld [vmem:[#allocation13 + $0x20] sm:$0xff]   ;;  %v8984_v62 = vld [vmem:[#allocation13 + $0xe8] sm:$0xff]   ;;  %v8987_v44 = vld [vmem:[#allocation13 + $0x70] sm:$0xff]  }
 0xbb6   : > { %v9266_v7 = vpop.eup %9265  ;;  %v8982_v49 = vld [vmem:[#allocation13 + $0xa0] sm:$0xff]  }
 0xbb7   : > { %v2760_v24 = vpack.c.bf16 %v2753_v33, %v2752_v32  ;;  %v2727_v0 = vmul.f32 %v9266_v7, %v11105_v52  ;;  %v2754_v42 = vadd.f32 %v7492_v29, %v2740_v15  ;;  %v8985_v32 = vld [vmem:[#allocation13 + $0x28] sm:$0xff]   ;;  %v8988_v7 = vld [vmem:[#allocation13 + $0xf0] sm:$0xff]   ;;  %v8991_v15 = vld [vmem:[#allocation13 + $0x78] sm:$0xff]  }
 0xbb8   : > { %v8986_v33 = vld [vmem:[#allocation13 + $0xa8] sm:$0xff]  }
 0xbb9   : > { %3011 = vmatmul.mubr.bf16.vlgmr.msra.gmra.mrb[48].mxu0 %v2760_v24  ;;  %3084 = vmatmul.mubr.bf16.vlgmr.msra.gmra.mrb[48].mxu1 %v2760_v24  ;;  %v2741_v23 = vmul.f32 %v7491_v1, %v2727_v0  ;;  %v8989_v24 = vld [vmem:[#allocation13 + $0x30] sm:$0xff]  }
 0xbba   : > { %v9268_v46 = vpop.eup %9267  ;;  %3020 = vmatprep.mubr.bf16.mxu0 %v12497_v63  ;;  %3093 = vmatprep.mubr.bf16.mxu1 %v12497_v63  ;;  %v8990_v0 = vld [vmem:[#allocation13 + $0xb0] sm:$0xff]  }
 0xbbb   : > { %v9270_v58 = vpop.eup %9269  ;;  %v2755_v13 = vadd.f32 %v7492_v29, %v2741_v23  ;;  %v2728_v40 = vmul.f32 %v9268_v46, %v11113_v59  ;;  %7877 = vmatpush3.bf16.msra.mxu0 %v8965_v47  ;;  %v8992_v23 = vld [vmem:[#allocation13 + $0xf8] sm:$0xff]  }
 0xbbc   : > { %v2729_v14 = vmul.f32 %v9270_v58, %v11108_v9  ;;  %v8993_v46 = vld [vmem:[#allocation13 + $0x38] sm:$0xff]  }
 0xbbd   : > { %v2761_v53 = vpack.c.bf16 %v2755_v13, %v2754_v42  ;;  %v2742_v16 = vmul.f32 %v7491_v1, %v2728_v40  ;;  %v8994_v58 = vld [vmem:[#allocation13 + $0xb8] sm:$0xff]   ;;  %v2796_v13 = vld [vmem:[%s12486_s7] sm:$0xf]  ;;  %v12496_v40 = vsub.s32 3, %v10411_v2 }
 0xbbe   : > { %v9272_v5 = vpop.eup %9271  ;;  %v2743_v52 = vmul.f32 %v7491_v1, %v2729_v14  ;;  %v11148_v14 = vrot.slane %v2796_v13, %v10414_v41  ;;  %v11151_v42 = vrot.slane %v2796_v13, %v10426_v6 }
 0xbbf   : > { %v9274_v54 = vpop.eup %9273  ;;  %v2756_v48 = vadd.f32 %v7492_v29, %v2742_v16  ;;  %v2730_v22 = vmul.f32 %v9272_v5, %v11123_v12  ;;  %v8966_v12 = vld [vmem:[#allocation13 + $0x80] sm:$0xff]   ;;  %v11154_v5 = vrot.slane %v2796_v13, %v10420_v4 }
 0xbc0   : > { %v2757_v30 = vadd.f32 %v7492_v29, %v2743_v52  ;;  %v2731_v59 = vmul.f32 %v9274_v54, %v11116_v55  ;;  %7917 = vmatpush3.bf16.msra.mxu1 %v8966_v12  ;;  %v8967_v55 = vld [vmem:[#allocation13 + $0x48] sm:$0xff]  }
 0xbc1   : > { %3021 = vmatmul.mubr.bf16.gmra.mrb[52].mxu0 %v2761_v53  ;;  %3094 = vmatmul.mubr.bf16.gmra.mrb[52].mxu1 %v2761_v53  ;;  %v2744_v9 = vmul.f32 %v7491_v1, %v2730_v22  ;;  %v11158_v53 = vrot.slane %v2796_v13, %v12496_v40 }
 0xbc2   : > { %3030 = vmatprep.mubr.bf16.mxu0 %v12497_v63  ;;  %3103 = vmatprep.mubr.bf16.mxu1 %v12497_v63  ;;  %v2762_v25 = vpack.c.bf16 %v2757_v30, %v2756_v48  ;;  %v2745_v28 = vmul.f32 %v7491_v1, %v2731_v59  ;;  %v8969_v1 = vld [vmem:[#allocation13 + $0x8] sm:$0xff]  }
 0xbc3   : > { %v2758_v35 = vadd.f32 %v7492_v29, %v2744_v9  ;;  %7878 = vmatprep.subr.bf16.mxu0 %v8967_v55  ;;  %7918 = vmatprep.subr.bf16.mxu1 %v8968_v34 }
 0xbc4   : > { %v2759_v10 = vadd.f32 %v7492_v29, %v2745_v28  ;;  %7879 = vmatpush3.bf16.msra.mxu0 %v8969_v1  ;;  %7919 = vmatpush3.bf16.msra.mxu1 %v8970_v11  ;;  %v8983_v29 = vld [vmem:[#allocation13 + $0x68] sm:$0xff]  }
 0xbc5   : > { %7880 = vmatprep.subr.bf16.mxu0 %v8971_v38  ;;  %7920 = vmatprep.subr.bf16.mxu1 %v8972_v60 }
 0xbc6   : > { %v2763_v31 = vpack.c.bf16 %v2759_v10, %v2758_v35 }
 0xbc8   : > { %7881 = vmatpush3.bf16.msra.mxu0 %v8973_v8  ;;  %7921 = vmatpush3.bf16.msra.mxu1 %v8974_v57 }
 0xbc9   : > { %3031 = vmatmul.mubr.bf16.gmra.mrb[56].mxu0 %v2762_v25  ;;  %3104 = vmatmul.mubr.bf16.gmra.mrb[56].mxu1 %v2762_v25 }
 0xbca   : > { %3040 = vmatprep.mubr.bf16.mxu0 %v12497_v63  ;;  %3113 = vmatprep.mubr.bf16.mxu1 %v12497_v63 }
 0xbcb   : > { %7882 = vmatprep.subr.bf16.mxu0 %v8975_v61  ;;  %7922 = vmatprep.subr.bf16.mxu1 %v8976_v18 }
 0xbcc   : > { %7883 = vmatpush3.bf16.msra.mxu0 %v8977_v21  ;;  %7923 = vmatpush3.bf16.msra.mxu1 %v8978_v3 }
 0xbcd   : > { %7884 = vmatprep.subr.bf16.mxu0 %v8979_v26  ;;  %7924 = vmatprep.subr.bf16.mxu1 %v8980_v50 }
 0xbd0   : > { %7885 = vmatpush3.bf16.msra.mxu0 %v8981_v27  ;;  %7925 = vmatpush3.bf16.msra.mxu1 %v8982_v49 }
 0xbd1   : > { %3041 = vmatmul.mubr.bf16.gmra.mrb[60].mxu0 %v2763_v31  ;;  %3114 = vmatmul.mubr.bf16.gmra.mrb[60].mxu1 %v2763_v31 }
 0xbd2   : > { %7886 = vmatprep.subr.bf16.mxu0 %v8983_v29  ;;  %7926 = vmatprep.subr.bf16.mxu1 %v8984_v62 }
 0xbd4   : > { %7887 = vmatpush3.bf16.msra.mxu0 %v8985_v32  ;;  %7927 = vmatpush3.bf16.msra.mxu1 %v8986_v33 }
 0xbd5   : > { %7888 = vmatprep.subr.bf16.mxu0 %v8987_v44  ;;  %7928 = vmatprep.subr.bf16.mxu1 %v8988_v7 }
 0xbd8   : > { %7889 = vmatpush3.bf16.msra.mxu0 %v8989_v24  ;;  %7929 = vmatpush3.bf16.msra.mxu1 %v8990_v0 }
 0xbd9   : > { %7890 = vmatprep.subr.bf16.mxu0 %v8991_v15  ;;  %7930 = vmatprep.subr.bf16.mxu1 %v8992_v23 }
 0xbdc   : > { %7891 = vmatpush3.bf16.msra.mxu0 %v8993_v46  ;;  %7931 = vmatpush3.bf16.msra.mxu1 %v8994_v58 }
 0xc8c   : > { %v3012_v16 = vpop.f32.mrb[48].mxu0  ;;  %v3085_v52 = vpop.f32.mrb[48].mxu1 }
 0xc8d   : > { %v11161_v54 = vadd.f32 %v3012_v16, %v11148_v14  ;;  %v11164_v48 = vadd.f32 %v3085_v52, %v11151_v42  ;;  %v3014_v30 = vpop.f32.mrb[49].mxu0  ;;  %v3087_v22 = vpop.f32.mrb[49].mxu1 }
 0xc8e   : > { %v11167_v59 = vadd.f32 %v3014_v30, %v11154_v5  ;;  %v11170_v25 = vadd.f32 %v3087_v22, %v11158_v53  ;;  %v3016_v9 = vpop.f32.mrb[50].mxu0  ;;  %v3089_v28 = vpop.f32.mrb[50].mxu1 }
 0xc8f   : > { %v7525_v35 = vmul.f32 -1.702, %v11161_v54  ;;  %v7527_v10 = vmul.f32 -1.702, %v11164_v48  ;;  %v11175_v31 = vadd.f32 %v3016_v9, %v11148_v14  ;;  %v11178_v45 = vadd.f32 %v3089_v28, %v11151_v42  ;;  %v3018_v17 = vpop.f32.mrb[51].mxu0  ;;  %v3091_v47 = vpop.f32.mrb[51].mxu1 }
 0xc90   : > { %v7526_v12 = vmul.f32 -1.702, %v11167_v59  ;;  %v7528_v55 = vmul.f32 -1.702, %v11170_v25  ;;  %v11183_v34 = vadd.f32 %v3018_v17, %v11154_v5  ;;  %v11186_v1 = vadd.f32 %v3091_v47, %v11158_v53 }
 0xc91   : > { %v3188_v11 = vmul.f32 1.442695, %v7525_v35  ;;  %v3192_v38 = vmul.f32 1.442695, %v7527_v10  ;;  %v7529_v60 = vmul.f32 -1.702, %v11175_v31 }
 0xc92   : > { %v3190_v8 = vmul.f32 1.442695, %v7526_v12  ;;  %v3194_v57 = vmul.f32 1.442695, %v7528_v55  ;;  %v7531_v61 = vmul.f32 -1.702, %v11178_v45 }
 0xc93   : > { %9275 = vpow2.f32 %v3188_v11  ;;  %v3196_v18 = vmul.f32 1.442695, %v7529_v60  ;;  %v7530_v21 = vmul.f32 -1.702, %v11183_v34  ;;  %v7532_v3 = vmul.f32 -1.702, %v11186_v1 }
 0xc94   : > { %9277 = vpow2.f32 %v3192_v38  ;;  %v3200_v26 = vmul.f32 1.442695, %v7531_v61  ;;  %v3022_v50 = vpop.f32.mrb[52].mxu0  ;;  %v3095_v27 = vpop.f32.mrb[52].mxu1 }
 0xc95   : > { %9279 = vpow2.f32 %v3190_v8  ;;  %v3198_v49 = vmul.f32 1.442695, %v7530_v21  ;;  %v3202_v29 = vmul.f32 1.442695, %v7532_v3  ;;  %v11193_v62 = vadd.f32 %v3022_v50, %v11148_v14  ;;  %v3024_v32 = vpop.f32.mrb[53].mxu0  ;;  %v3097_v33 = vpop.f32.mrb[53].mxu1 }
 0xc96   : > { %9281 = vpow2.f32 %v3194_v57  ;;  %v11196_v44 = vadd.f32 %v3095_v27, %v11151_v42  ;;  %v11199_v7 = vadd.f32 %v3024_v32, %v11154_v5  ;;  %v11202_v24 = vadd.f32 %v3097_v33, %v11158_v53  ;;  %v3026_v0 = vpop.f32.mrb[54].mxu0  ;;  %v3099_v15 = vpop.f32.mrb[54].mxu1 }
 0xc97   : > { %9283 = vpow2.f32 %v3196_v18  ;;  %v7533_v23 = vmul.f32 -1.702, %v11193_v62  ;;  %v11206_v46 = vadd.f32 %v3026_v0, %v11148_v14  ;;  %v3028_v58 = vpop.f32.mrb[55].mxu0  ;;  %v3101_v13 = vpop.f32.mrb[55].mxu1  ;;  %v11213_v28 = vadd.f32 %v3099_v15, %v11151_v42 }
 0xc98   : > { %9285 = vpow2.f32 %v3200_v26  ;;  %v7535_v16 = vmul.f32 -1.702, %v11196_v44  ;;  %v7534_v52 = vmul.f32 -1.702, %v11199_v7  ;;  %v7536_v30 = vmul.f32 -1.702, %v11202_v24 }
 0xc99   : > { %9287 = vpow2.f32 %v3198_v49  ;;  %v3204_v22 = vmul.f32 1.442695, %v7533_v23  ;;  %v7537_v9 = vmul.f32 -1.702, %v11206_v46  ;;  %v7539_v61 = vmul.f32 -1.702, %v11213_v28 }
 0xc9a   : > { %9289 = vpow2.f32 %v3202_v29  ;;  %v3208_v35 = vmul.f32 1.442695, %v7535_v16  ;;  %v3206_v10 = vmul.f32 1.442695, %v7534_v52  ;;  %v3210_v17 = vmul.f32 1.442695, %v7536_v30 }
 0xc9b   : > { %9291 = vpow2.f32 %v3204_v22  ;;  %v3212_v47 = vmul.f32 1.442695, %v7537_v9  ;;  %v11217_v18 = vadd.f32 %v3028_v58, %v11154_v5  ;;  %v11220_v32 = vadd.f32 %v3101_v13, %v11158_v53 }
 0xc9c   : > { %9293 = vpow2.f32 %v3208_v35  ;;  %v3032_v12 = vpop.f32.mrb[56].mxu0  ;;  %v3105_v55 = vpop.f32.mrb[56].mxu1  ;;  %v3216_v16 = vmul.f32 1.442695, %v7539_v61 }
 0xc9d   : > { %v9276_v11 = vpop.eup %9275  ;;  %9295 = vpow2.f32 %v3206_v10  ;;  %v3034_v38 = vpop.f32.mrb[57].mxu0  ;;  %v7538_v52 = vmul.f32 -1.702, %v11217_v18  ;;  %v11224_v9 = vadd.f32 %v3032_v12, %v11148_v14  ;;  %v11227_v35 = vadd.f32 %v3105_v55, %v11151_v42 }
 0xc9e   : > { %v3107_v60 = vpop.f32.mrb[57].mxu1  ;;  %v9278_v8 = vpop.eup %9277  ;;  %v3252_v57 = vadd.f32 1.0, %v9276_v11  ;;  %9297 = vpow2.f32 %v3210_v17  ;;  %v7540_v17 = vmul.f32 -1.702, %v11220_v32 }
 0xc9f   : > { %v3036_v21 = vpop.f32.mrb[58].mxu0  ;;  %v3109_v3 = vpop.f32.mrb[58].mxu1  ;;  %v3254_v50 = vadd.f32 1.0, %v9278_v8  ;;  %9299 = vpow2.f32 %v3212_v47  ;;  %v11231_v47 = vadd.f32 %v3034_v38, %v11154_v5  ;;  %v3214_v38 = vmul.f32 1.442695, %v7538_v52 }
 0xca0   : > { %v9280_v26 = vpop.eup %9279  ;;  %v3038_v27 = vpop.f32.mrb[59].mxu0  ;;  %9301 = vrcp.f32 %v3252_v57  ;;  %v11237_v12 = vadd.f32 %v3036_v21, %v11148_v14  ;;  %v7543_v21 = vmul.f32 -1.702, %v11227_v35  ;;  %v3218_v41 = vmul.f32 1.442695, %v7540_v17 }
 0xca1   : > { %v9282_v49 = vpop.eup %9281  ;;  %v3253_v29 = vadd.f32 1.0, %v9280_v26  ;;  %v3111_v33 = vpop.f32.mrb[59].mxu1  ;;  %9303 = vrcp.f32 %v3254_v50  ;;  %v11234_v26 = vadd.f32 %v3107_v60, %v11158_v53 }
 0xca2   : > { %v9284_v0 = vpop.eup %9283  ;;  %v3255_v15 = vadd.f32 1.0, %v9282_v49  ;;  %v11264_v4 = vadd.f32 %v3111_v33, %v11158_v53  ;;  %v3224_v20 = vmul.f32 1.442695, %v7543_v21 }
 0xca3   : > { %v9286_v23 = vpop.eup %9285  ;;  %9305 = vrcp.f32 %v3253_v29  ;;  %v3256_v58 = vadd.f32 1.0, %v9284_v0  ;;  %v11244_v0 = vadd.f32 %v3109_v3, %v11151_v42 }
 0xca4   : > { %v9288_v30 = vpop.eup %9287  ;;  %9307 = vrcp.f32 %v3255_v15  ;;  %v3258_v22 = vadd.f32 1.0, %v9286_v23  ;;  %v3042_v11 = vpop.f32.mrb[60].mxu0 }
 0xca5   : > { %v9290_v13 = vpop.eup %9289  ;;  %9309 = vrcp.f32 %v3256_v58  ;;  %v3257_v10 = vadd.f32 1.0, %v9288_v30  ;;  %v3115_v8 = vpop.f32.mrb[60].mxu1  ;;  %v7541_v58 = vmul.f32 -1.702, %v11224_v9  ;;  %v7547_v6 = vmul.f32 -1.702, %v11244_v0 }
 0xca6   : > { %v9292_v57 = vpop.eup %9291  ;;  %9311 = vrcp.f32 %v3258_v22  ;;  %v3259_v61 = vadd.f32 1.0, %v9290_v13  ;;  %v11239_v55 = vpop.f32.mrb[61].mxu0  ;;  %v11267_v51 = vadd.f32 %v3042_v11, %v11148_v14  ;;  %v7548_v11 = vmul.f32 -1.702, %v11264_v4 }
 0xca7   : > { %v11241_v50 = vpop.f32.mrb[61].mxu1  ;;  %v9294_v49 = vpop.eup %9293  ;;  %9313 = vrcp.f32 %v3257_v10  ;;  %v3260_v29 = vadd.f32 1.0, %v9292_v57  ;;  %v7542_v10 = vmul.f32 -1.702, %v11231_v47  ;;  %v3232_v17 = vmul.f32 1.442695, %v7547_v6 }
 0xca8   : > { %v11246_v15 = vpop.f32.mrb[62].mxu0  ;;  %v9296_v23 = vpop.eup %9295  ;;  %9315 = vrcp.f32 %v3259_v61  ;;  %v3262_v60 = vadd.f32 1.0, %v9294_v49  ;;  %v7544_v61 = vmul.f32 -1.702, %v11234_v26  ;;  %v7545_v49 = vmul.f32 -1.702, %v11237_v12 }
 0xca9   : > { %v11250_v30 = vpop.f32.mrb[62].mxu1  ;;  %v9298_v22 = vpop.eup %9297  ;;  %9317 = vrcp.f32 %v3260_v29  ;;  %v3261_v13 = vadd.f32 1.0, %v9296_v23  ;;  %v11261_v29 = vadd.f32 %v3038_v27, %v11154_v5  ;;  %v11270_v27 = vadd.f32 %v3115_v8, %v11151_v42 }
 0xcaa   : > { %v11253_v52 = vpop.f32.mrb[63].mxu0  ;;  %v11255_v3 = vpop.f32.mrb[63].mxu1  ;;  %9319 = vrcp.f32 %v3262_v60  ;;  %v3263_v40 = vadd.f32 1.0, %v9298_v22  ;;  %v3220_v22 = vmul.f32 1.442695, %v7541_v58 }
 0xcab   : > { %v9300_v57 = vpop.eup %9299  ;;  %9321 = vrcp.f32 %v3261_v13  ;;  %v3226_v19 = vmul.f32 1.442695, %v7544_v61  ;;  %v7546_v33 = vmul.f32 -1.702, %v11261_v29 }
 0xcac   : > { %v9302_v63 = vpop.eup %9301  ;;  %v3264_v2 = vadd.f32 1.0, %v9300_v57  ;;  %9323 = vrcp.f32 %v3263_v40  ;;  %v3222_v57 = vmul.f32 1.442695, %v7542_v10  ;;  %v3228_v40 = vmul.f32 1.442695, %v7545_v49 }
 0xcad   : > { %v9304_v23 = vpop.eup %9303 }
 0xcae   : > { %v9306_v60 = vpop.eup %9305  ;;  %9325 = vrcp.f32 %v3264_v2  ;;  %v3348_v2 = vmul.f32 %v9302_v63, %v11161_v54  ;;  %v3350_v21 = vmul.f32 %v9304_v23, %v11164_v48  ;;  %v7551_v63 = vmul.f32 -1.702, %v11270_v27 }
 0xcaf   : > { %v9308_v13 = vpop.eup %9307  ;;  %9327 = vpow2.f32 %v3216_v16  ;;  %v3349_v48 = vmul.f32 %v9306_v60, %v11167_v59 }
 0xcb0   : > { %v9310_v56 = vpop.eup %9309  ;;  %9329 = vpow2.f32 %v3214_v38  ;;  %v7549_v38 = vmul.f32 -1.702, %v11267_v51 }
 0xcb1   : > { %v9312_v37 = vpop.eup %9311  ;;  %v3352_v58 = vmul.f32 %v9310_v56, %v11175_v31  ;;  %9331 = vpow2.f32 %v3218_v41  ;;  %v3230_v41 = vmul.f32 1.442695, %v7546_v33 }
 0xcb2   : > { %v9314_v16 = vpop.eup %9313  ;;  %v3354_v8 = vmul.f32 %v9312_v37, %v11178_v45  ;;  %9333 = vpow2.f32 %v3220_v22  ;;  %v3234_v45 = vmul.f32 1.442695, %v7548_v11  ;;  %v3236_v23 = vmul.f32 1.442695, %v7549_v38 }
 0xcb3   : > { %v9316_v10 = vpop.eup %9315  ;;  %v3380_v6 = vpack.c.bf16 %v3352_v58, %v3348_v2  ;;  %v3353_v61 = vmul.f32 %v9314_v16, %v11183_v34  ;;  %9335 = vpow2.f32 %v3224_v20  ;;  %v3351_v20 = vmul.f32 %v9308_v13, %v11170_v25 }
 0xcb4   : > { %v9318_v54 = vpop.eup %9317  ;;  %v3382_v56 = vpack.c.bf16 %v3354_v8, %v3350_v21  ;;  %9337 = vpow2.f32 %v3222_v57  ;;  %v3355_v37 = vmul.f32 %v9316_v10, %v11186_v1  ;;  %v3240_v22 = vmul.f32 1.442695, %v7551_v63 }
 0xcb5   : > { %v11281_v31 = vpop.eup %9319  ;;  %9339 = vpow2.f32 %v3226_v19  ;;  %v3381_v57 = vpack.c.bf16 %v3353_v61, %v3349_v48  ;;  %v11291_v59 = vmul.f32 %v9318_v54, %v11193_v62  ;;  %v11300_v16 = vadd.f32 %v11239_v55, %v11154_v5 }
 0xcb6   : > { %v11285_v49 = vpop.eup %9321  ;;  %9341 = vpow2.f32 %v3228_v40  ;;  %v3383_v1 = vpack.c.bf16 %v3355_v37, %v3351_v20  ;;  %v11304_v38 = vadd.f32 %v11241_v50, %v11158_v53  ;;  %v11308_v61 = vadd.f32 %v11246_v15, %v11148_v14 }
 0xcb7   : > { %v11287_v34 = vpop.eup %9323  ;;  %9343 = vpow2.f32 %v3232_v17  ;;  %3692 = vmatprep.mubr.bf16.mxu0 %v3381_v57  ;;  %v11312_v55 = vadd.f32 %v11250_v30, %v11151_v42  ;;  %v7550_v50 = vmul.f32 -1.702, %v11300_v16  ;;  %v11317_v48 = vadd.f32 %v11253_v52, %v11154_v5 }
 0xcb8   : > { %v9326_v33 = vpop.eup %9325  ;;  %9345 = vpow2.f32 %v3230_v41  ;;  %3693 = vmatmul.mubr.bf16.vlgmr.msra.gmra.mrb[64].mxu0 %v3380_v6  ;;  %3757 = vmatprep.mubr.bf16.mxu1 %v3383_v1  ;;  %v7552_v15 = vmul.f32 -1.702, %v11304_v38 }
 0xcb9   : > { %v9328_v2 = vpop.eup %9327  ;;  %v11294_v19 = vmul.f32 %v9326_v33, %v11206_v46  ;;  %9347 = vpow2.f32 %v3234_v45  ;;  %3758 = vmatmul.mubr.bf16.vlgmr.msra.gmra.mrb[64].mxu1 %v3382_v56  ;;  %v11322_v45 = vadd.f32 %v11255_v3, %v11158_v53  ;;  %v7555_v5 = vmul.f32 -1.702, %v11312_v55 }
 0xcba   : > { %v9330_v60 = vpop.eup %9329  ;;  %v3266_v40 = vadd.f32 1.0, %v9328_v2  ;;  %9349 = vpow2.f32 %v3236_v23  ;;  %v7553_v23 = vmul.f32 -1.702, %v11308_v61  ;;  %v3238_v57 = vmul.f32 1.442695, %v7550_v50 }
 0xcbb   : > { %v9332_v25 = vpop.eup %9331  ;;  %v3265_v13 = vadd.f32 1.0, %v9330_v60  ;;  %9351 = vpow2.f32 %v3240_v22  ;;  %v3384_v17 = vpack.c.bf16 %v11294_v19, %v11291_v59  ;;  %v7554_v33 = vmul.f32 -1.702, %v11317_v48 }
 0xcbc   : > { %v9334_v58 = vpop.eup %9333  ;;  %9353 = vrcp.f32 %v3266_v40  ;;  %v3267_v62 = vadd.f32 1.0, %v9332_v25  ;;  %v3242_v1 = vmul.f32 1.442695, %v7552_v15  ;;  %v7556_v53 = vmul.f32 -1.702, %v11322_v45 }
 0xcbd   : > { %v9336_v46 = vpop.eup %9335  ;;  %9355 = vrcp.f32 %v3265_v13  ;;  %v3268_v11 = vadd.f32 1.0, %v9334_v58  ;;  %v3358_v60 = vmul.f32 %v11281_v31, %v11196_v44  ;;  %v3244_v25 = vmul.f32 1.442695, %v7553_v23 }
 0xcbe   : > { %v9338_v21 = vpop.eup %9337  ;;  %9357 = vrcp.f32 %v3267_v62  ;;  %v3270_v8 = vadd.f32 1.0, %v9336_v46  ;;  %v3357_v58 = vmul.f32 %v11285_v49, %v11199_v7  ;;  %v3359_v62 = vmul.f32 %v11287_v34, %v11202_v24 }
 0xcbf   : > { %v9340_v10 = vpop.eup %9339  ;;  %9359 = vrcp.f32 %v3268_v11  ;;  %v3269_v6 = vadd.f32 1.0, %v9338_v21  ;;  %v3248_v11 = vmul.f32 1.442695, %v7555_v5 }
 0xcc0   : > { %v9342_v63 = vpop.eup %9341  ;;  %9361 = vrcp.f32 %v3270_v8  ;;  %v3271_v54 = vadd.f32 1.0, %v9340_v10  ;;  %v3246_v10 = vmul.f32 1.442695, %v7554_v33 }
 0xcc1   : > { %v9344_v56 = vpop.eup %9343  ;;  %9363 = vrcp.f32 %v3269_v6  ;;  %v3272_v41 = vadd.f32 1.0, %v9342_v63 }
 0xcc2   : > { %v9346_v37 = vpop.eup %9345  ;;  %9365 = vrcp.f32 %v3271_v54  ;;  %v3274_v14 = vadd.f32 1.0, %v9344_v56 }
 0xcc3   : > { %v9348_v42 = vpop.eup %9347  ;;  %9367 = vrcp.f32 %v3272_v41  ;;  %v3273_v30 = vadd.f32 1.0, %v9346_v37 }
 0xcc4   : > { %v9350_v20 = vpop.eup %9349  ;;  %9369 = vrcp.f32 %v3274_v14  ;;  %v3275_v22 = vadd.f32 1.0, %v9348_v42 }
 0xcc5   : > { %v9352_v52 = vpop.eup %9351  ;;  %9371 = vrcp.f32 %v3273_v30  ;;  %v3276_v15 = vadd.f32 1.0, %v9350_v20 }
 0xcc6   : > { %v9354_v2 = vpop.eup %9353  ;;  %9373 = vrcp.f32 %v3275_v22 }
 0xcc7   : > { %v9356_v3 = vpop.eup %9355  ;;  %v3362_v40 = vmul.f32 %v9354_v2, %v11213_v28  ;;  %9375 = vpow2.f32 %v3238_v57  ;;  %v3250_v28 = vmul.f32 1.442695, %v7556_v53 }
 0xcc8   : > { %v9358_v13 = vpop.eup %9357  ;;  %v3361_v46 = vmul.f32 %v9356_v3, %v11217_v18  ;;  %9377 = vpow2.f32 %v3242_v1 }
 0xcc9   : > { %v9360_v21 = vpop.eup %9359  ;;  %v3363_v8 = vmul.f32 %v9358_v13, %v11220_v32  ;;  %v3386_v6 = vpack.c.bf16 %v3362_v40, %v3358_v60  ;;  %9379 = vpow2.f32 %v3244_v25 }
 0xcca   : > { %v9362_v44 = vpop.eup %9361  ;;  %v3385_v31 = vpack.c.bf16 %v3361_v46, %v3357_v58  ;;  %9381 = vpow2.f32 %v3248_v11  ;;  %v3364_v32 = vmul.f32 %v9360_v21, %v11224_v9 }
 0xccb   : > { %v9364_v63 = vpop.eup %9363  ;;  %v3387_v54 = vpack.c.bf16 %v3363_v8, %v3359_v62  ;;  %9383 = vpow2.f32 %v3246_v10  ;;  %v3366_v56 = vmul.f32 %v9362_v44, %v11227_v35 }
 0xccc   : > { %v9366_v7 = vpop.eup %9365  ;;  %3700 = vmatprep.mubr.bf16.mxu0 %v3385_v31  ;;  %9385 = vpow2.f32 %v3250_v28  ;;  %v3365_v37 = vmul.f32 %v9364_v63, %v11231_v47 }
 0xccd   : > { %v9368_v24 = vpop.eup %9367  ;;  %3765 = vmatprep.mubr.bf16.mxu1 %v3387_v54  ;;  %3701 = vmatmul.mubr.bf16.gmra.mrb[68].mxu0 %v3384_v17  ;;  %v3367_v19 = vmul.f32 %v9366_v7, %v11234_v26  ;;  %v3278_v17 = vadd.f32 1.0, %v9352_v52  ;;  %9387 = vrcp.f32 %v3276_v15 }
 0xcce   : > { %v9370_v18 = vpop.eup %9369  ;;  %v3368_v49 = vmul.f32 %v9368_v24, %v11237_v12  ;;  %3766 = vmatmul.mubr.bf16.gmra.mrb[68].mxu1 %v3386_v6 }
 0xccf   : > { %v9372_v34 = vpop.eup %9371  ;;  %v3370_v41 = vmul.f32 %v9370_v18, %v11244_v0  ;;  %9389 = vrcp.f32 %v3278_v17 }
 0xcd0   : > { %v9374_v50 = vpop.eup %9373  ;;  %v3369_v14 = vmul.f32 %v9372_v34, %v11261_v29  ;;  %v3388_v59 = vpack.c.bf16 %v3368_v49, %v3364_v32 }
 0xcd1   : > { %v3371_v9 = vmul.f32 %v9374_v50, %v11264_v4  ;;  %v3390_v12 = vpack.c.bf16 %v3370_v41, %v3366_v56  ;;  %v9376_v30 = vpop.eup %9375 }
 0xcd2   : > { %v3389_v42 = vpack.c.bf16 %v3369_v14, %v3365_v37  ;;  %v9378_v22 = vpop.eup %9377  ;;  %v3277_v35 = vadd.f32 1.0, %v9376_v30 }
 0xcd3   : > { %v3391_v23 = vpack.c.bf16 %v3371_v9, %v3367_v19  ;;  %v9380_v0 = vpop.eup %9379  ;;  %v3279_v47 = vadd.f32 1.0, %v9378_v22 }
 0xcd4   : > { %3708 = vmatprep.mubr.bf16.mxu0 %v3389_v42  ;;  %v9382_v29 = vpop.eup %9381  ;;  %9391 = vrcp.f32 %v3277_v35  ;;  %v3280_v20 = vadd.f32 1.0, %v9380_v0 }
 0xcd5   : > { %3773 = vmatprep.mubr.bf16.mxu1 %v3391_v23  ;;  %3709 = vmatmul.mubr.bf16.gmra.mrb[72].mxu0 %v3388_v59  ;;  %v9384_v26 = vpop.eup %9383  ;;  %9393 = vrcp.f32 %v3279_v47  ;;  %v3282_v4 = vadd.f32 1.0, %v9382_v29 }
 0xcd6   : > { %3774 = vmatmul.mubr.bf16.gmra.mrb[72].mxu1 %v3390_v12  ;;  %v9386_v5 = vpop.eup %9385  ;;  %9395 = vrcp.f32 %v3280_v20  ;;  %v3281_v52 = vadd.f32 1.0, %v9384_v26 }
 0xcd7   : > { %9397 = vrcp.f32 %v3282_v4  ;;  %v3283_v57 = vadd.f32 1.0, %v9386_v5  ;;  %v9388_v33 = vpop.eup %9387 }
 0xcd8   : > { %9399 = vrcp.f32 %v3281_v52  ;;  %v3372_v40 = vmul.f32 %v9388_v33, %v11267_v51  ;;  %v12546_v33 = vld [vmem:[#allocation24_spill] sm:$0xff] }
 0xcd9   : > { %9401 = vrcp.f32 %v3283_v57  ;;  %v9390_v2 = vpop.eup %9389 }
 0xcda   : > { %v3374_v58 = vmul.f32 %v9390_v2, %v11270_v27  ;;  %v12545_v27 = vmov 0  }
 0xcde   : > { %v9392_v1 = vpop.eup %9391 }
 0xcdf   : > { %v9394_v53 = vpop.eup %9393  ;;  %v3373_v11 = vmul.f32 %v9392_v1, %v11300_v16 }
 0xce0   : > { %v9396_v3 = vpop.eup %9395  ;;  %v3375_v10 = vmul.f32 %v9394_v53, %v11304_v38 }
 0xce1   : > { %v9398_v60 = vpop.eup %9397  ;;  %v3376_v25 = vmul.f32 %v9396_v3, %v11308_v61 }
 0xce2   : > { %v9400_v13 = vpop.eup %9399  ;;  %v3378_v62 = vmul.f32 %v9398_v60, %v11312_v55  ;;  %v11357_v55 = vld [vmem:[#allocation7 + $0x5] ss:$0 sm:$0xff] }
 0xce3   : > { %v9402_v46 = vpop.eup %9401  ;;  %v3377_v21 = vmul.f32 %v9400_v13, %v11317_v48  ;;  %v3392_v8 = vpack.c.bf16 %v3376_v25, %v3372_v40 }
 0xce4   : > { %v3379_v6 = vmul.f32 %v9402_v46, %v11322_v45  ;;  %v3394_v44 = vpack.c.bf16 %v3378_v62, %v3374_v58  ;;  %v12547_v46 = vld [vmem:[#allocation26_spill] sm:$0xff] }
 0xce5   : > { %v3393_v28 = vpack.c.bf16 %v3377_v21, %v3373_v11  ;;  %v12548_v21 = vld [vmem:[#allocation25_spill] sm:$0xff] }
 0xce6   : > { %v3395_v51 = vpack.c.bf16 %v3379_v6, %v3375_v10 }
 0xce7   : > { %3716 = vmatprep.mubr.bf16.mxu0 %v3393_v28 }
 0xce8   : > { %3781 = vmatprep.mubr.bf16.mxu1 %v3395_v51  ;;  %3717 = vmatmul.mubr.bf16.gmra.mrb[76].mxu0 %v3392_v8 }
 0xce9   : > { %3782 = vmatmul.mubr.bf16.gmra.mrb[76].mxu1 %v3394_v44  ;;  %4133 = vmatprep.mubr.bf16.mxu0 %v12545_v27 }
 0xd8b   : > { %v7892_v61 = vpop.f32.mrb[64].mxu0 }
 0xd8c   : > { %v7893_v16 = vpop.f32.mrb[65].mxu0  ;;  %v7932_v31 = vpop.f32.mrb[64].mxu1 }
 0xd8d   : > { %v7894_v48 = vadd.f32 %v7893_v16, %v7892_v61  ;;  %v7895_v63 = vpop.f32.mrb[66].mxu0  ;;  %v7933_v54 = vpop.f32.mrb[65].mxu1 }
 0xd8e   : > { %v7896_v38 = vpop.f32.mrb[67].mxu0  ;;  %v7934_v7 = vadd.f32 %v7933_v54, %v7932_v31  ;;  %v7935_v24 = vpop.f32.mrb[66].mxu1 }
 0xd8f   : > { %v3695_v45 = vadd.f32 %v7894_v48, %v11357_v55  ;;  %v7897_v18 = vadd.f32 %v7896_v38, %v7895_v63  ;;  %v7936_v32 = vpop.f32.mrb[67].mxu1 }
 0xd90   : > { %v7937_v56 = vadd.f32 %v7936_v32, %v7935_v24  ;;  %v12549_v32 = vld [vmem:[#allocation28_spill] sm:$0xff] }
 0xd91   : > { %v3760_v49 = vadd.f32 %v7934_v7, %v3695_v45  ;;  %v3698_v34 = vadd.f32 %v7897_v18, %v11357_v55 }
 0xd93   : > { %v3763_v41 = vadd.f32 %v7937_v56, %v3698_v34  ;;  %v11362_v50 = vadd.f32 %v3760_v49, %v11058_v43  ;;  %v12550_v34 = vld [vmem:[#allocation27_spill] sm:$0xff] }
 0xd95   : > { %3802 = vadd.xlane.f32.xlu0 %v11362_v50  ;;  %v11366_v37 = vadd.f32 %v3763_v41, %v11061_v36  ;;  %v8995_v41 = vld [vmem:[#allocation8 + $0xc0] ss:$12 sps:$4 sm:$0xff]  }
 0xd97   : > { %3804 = vadd.xlane.f32.xlu1 %v11366_v37 }
 0xda0   : > { %v7898_v14 = vpop.f32.mrb[68].mxu0 }
 0xda1   : > { %v7938_v15 = vpop.f32.mrb[68].mxu1  ;;  %v7899_v59 = vpop.f32.mrb[69].mxu0 }
 0xda2   : > { %v7900_v19 = vadd.f32 %v7899_v59, %v7898_v14  ;;  %v7939_v9 = vpop.f32.mrb[69].mxu1  ;;  %v7901_v17 = vpop.f32.mrb[70].mxu0  ;;  %v8997_v14 = vld [vmem:[#allocation8 + $0xc4] ss:$12 sps:$4 sm:$0xff]  }
 0xda3   : > { %v7940_v12 = vadd.f32 %v7939_v9, %v7938_v15  ;;  %v7941_v42 = vpop.f32.mrb[70].mxu1  ;;  %v7902_v30 = vpop.f32.mrb[71].mxu0  ;;  %v9000_v15 = vld [vmem:[#allocation8 + $0xdc] ss:$12 sps:$4 sm:$0xff]   ;;  %4101 = vmatprep.subr.bf16.mxu0 %v8997_v14  ;;  %v8998_v59 = vld [vmem:[#allocation8 + $0xd8] ss:$12 sps:$4 sm:$0xff]  }
 0xda4   : > { %v3703_v23 = vadd.f32 %v7900_v19, %v11357_v55  ;;  %v7903_v43 = vadd.f32 %v7902_v30, %v7901_v17  ;;  %v7942_v22 = vpop.f32.mrb[71].mxu1  ;;  %4102 = vmatpush1.bf16.msra.mxu0 %v8995_v41  ;;  %v9026_v41 = vld [vmem:[#allocation8 + $0x170] ss:$12 sps:$4 sm:$0xff]  }
 0xda5   : > { %v7943_v35 = vadd.f32 %v7942_v22, %v7941_v42  ;;  %4103 = vmatprep.subr.bf16.mxu0 %v9000_v15 }
 0xda6   : > { %v3768_v0 = vadd.f32 %v7940_v12, %v3703_v23  ;;  %v3706_v36 = vadd.f32 %v7903_v43, %v11357_v55 }
 0xda8   : > { %v3771_v47 = vadd.f32 %v7943_v35, %v3706_v36  ;;  %v7904_v29 = vpop.f32.mrb[72].mxu0  ;;  %v11372_v20 = vadd.f32 %v3768_v0, %v11065_v39  ;;  %4104 = vmatpush1.bf16.msra.mxu0 %v8998_v59 }
 0xda9   : > { %v7944_v26 = vpop.f32.mrb[72].mxu1  ;;  %v7905_v4 = vpop.f32.mrb[73].mxu0 }
 0xdaa   : > { %v7906_v5 = vadd.f32 %v7905_v4, %v7904_v29  ;;  %v7945_v52 = vpop.f32.mrb[73].mxu1  ;;  %v7907_v57 = vpop.f32.mrb[74].mxu0  ;;  %3806 = vadd.xlane.f32.xlu0 %v11372_v20  ;;  %v11376_v2 = vadd.f32 %v3771_v47, %v12546_v33 }
 0xdab   : > { %v7946_v1 = vadd.f32 %v7945_v52, %v7944_v26  ;;  %v7947_v53 = vpop.f32.mrb[74].mxu1  ;;  %v7908_v3 = vpop.f32.mrb[75].mxu0 }
 0xdac   : > { %v3711_v60 = vadd.f32 %v7906_v5, %v11357_v55  ;;  %v7909_v40 = vadd.f32 %v7908_v3, %v7907_v57  ;;  %v7948_v25 = vpop.f32.mrb[75].mxu1  ;;  %3808 = vadd.xlane.f32.xlu1 %v11376_v2 }
 0xdad   : > { %v7949_v39 = vadd.f32 %v7948_v25, %v7947_v53  ;;  %v9004_v25 = vld [vmem:[#allocation8 + $0xc8] ss:$12 sps:$4 sm:$0xff]  }
 0xdae   : > { %v3776_v13 = vadd.f32 %v7946_v1, %v3711_v60  ;;  %v3714_v58 = vadd.f32 %v7909_v40, %v11357_v55  ;;  %v9001_v60 = vld [vmem:[#allocation8 + $0xf0] ss:$12 sps:$4 sm:$0xff]   ;;  %v9003_v40 = vld [vmem:[#allocation8 + $0xf4] ss:$12 sps:$4 sm:$0xff]   ;;  %8312 = vmatprep.subr.bf16.mxu1 %v9004_v25 }
 0xdaf   : > { %4105 = vmatprep.subr.bf16.mxu0 %v9003_v40  ;;  %8313 = vmatpush3.bf16.msra.mxu1 %v9004_v25 }
 0xdb0   : > { %v3779_v62 = vadd.f32 %v7949_v39, %v3714_v58  ;;  %v11382_v11 = vadd.f32 %v3776_v13, %v12547_v46  ;;  %v9007_v39 = vld [vmem:[#allocation8 + $0x10c] ss:$12 sps:$4 sm:$0xff]   ;;  %4106 = vmatpush1.bf16.msra.mxu0 %v9001_v60  ;;  %v9005_v58 = vld [vmem:[#allocation8 + $0x108] ss:$12 sps:$4 sm:$0xff]  }
 0xdb1   : > { %v9008_v13 = vld [vmem:[#allocation8 + $0xe0] ss:$12 sps:$4 sm:$0xff]   ;;  %4107 = vmatprep.subr.bf16.mxu0 %v9007_v39  ;;  %v9012_v46 = vld [vmem:[#allocation8 + $0xf8] ss:$12 sps:$4 sm:$0xff]  }
 0xdb2   : > { %3810 = vadd.xlane.f32.xlu0 %v11382_v11  ;;  %v11386_v8 = vadd.f32 %v3779_v62, %v12548_v21  ;;  %8314 = vmatprep.subr.bf16.mxu1 %v9008_v13  ;;  %v9011_v62 = vld [vmem:[#allocation8 + $0x124] ss:$12 sps:$4 sm:$0xff]   ;;  %v9009_v21 = vld [vmem:[#allocation8 + $0x120] ss:$12 sps:$4 sm:$0xff]  }
 0xdb3   : > { %8315 = vmatpush3.bf16.msra.mxu1 %v9008_v13 }
 0xdb4   : > { %3812 = vadd.xlane.f32.xlu1 %v11386_v8  ;;  %4108 = vmatpush1.bf16.msra.mxu0 %v9005_v58 }
 0xdb5   : > { %4109 = vmatprep.subr.bf16.mxu0 %v9011_v62  ;;  %8316 = vmatprep.subr.bf16.mxu1 %v9012_v46 }
 0xdb7   : > { %8317 = vmatpush3.bf16.msra.mxu1 %v9012_v46 }
 0xdb8   : > { %4110 = vmatpush1.bf16.msra.mxu0 %v9009_v21 }
 0xdbb   : > { %v7910_v10 = vpop.f32.mrb[76].mxu0 }
 0xdbc   : > { %v7950_v6 = vpop.f32.mrb[76].mxu1  ;;  %v7911_v44 = vpop.f32.mrb[77].mxu0 }
 0xdbd   : > { %v7912_v28 = vadd.f32 %v7911_v44, %v7910_v10  ;;  %v7951_v51 = vpop.f32.mrb[77].mxu1  ;;  %v7913_v61 = vpop.f32.mrb[78].mxu0  ;;  %v9015_v10 = vld [vmem:[#allocation8 + $0x13c] ss:$12 sps:$4 sm:$0xff]  }
 0xdbe   : > { %v7952_v16 = vadd.f32 %v7951_v51, %v7950_v6  ;;  %v7953_v31 = vpop.f32.mrb[78].mxu1  ;;  %v7914_v48 = vpop.f32.mrb[79].mxu0  ;;  %v9016_v6 = vld [vmem:[#allocation8 + $0x110] ss:$12 sps:$4 sm:$0xff]   ;;  %v9013_v51 = vld [vmem:[#allocation8 + $0x138] ss:$12 sps:$4 sm:$0xff]   ;;  %4111 = vmatprep.subr.bf16.mxu0 %v9015_v10 }
 0xdbf   : > { %v3719_v63 = vadd.f32 %v7912_v28, %v11357_v55  ;;  %v7915_v54 = vadd.f32 %v7914_v48, %v7913_v61  ;;  %v7954_v38 = vpop.f32.mrb[79].mxu1  ;;  %8318 = vmatprep.subr.bf16.mxu1 %v9016_v6  ;;  %v9019_v48 = vld [vmem:[#allocation8 + $0x154] ss:$12 sps:$4 sm:$0xff]   ;;  %4112 = vmatpush1.bf16.msra.mxu0 %v9013_v51 }
 0xdc0   : > { %v7955_v45 = vadd.f32 %v7954_v38, %v7953_v31  ;;  %8319 = vmatpush3.bf16.msra.mxu1 %v9016_v6  ;;  %4113 = vmatprep.subr.bf16.mxu0 %v9019_v48 }
 0xdc1   : > { %v3784_v7 = vadd.f32 %v7952_v16, %v3719_v63  ;;  %v3722_v24 = vadd.f32 %v7915_v54, %v11357_v55  ;;  %v9020_v63 = vld [vmem:[#allocation8 + $0x128] ss:$12 sps:$4 sm:$0xff]  }
 0xdc2   : > { %8320 = vmatprep.subr.bf16.mxu1 %v9020_v63 }
 0xdc3   : > { %v3787_v18 = vadd.f32 %v7955_v45, %v3722_v24  ;;  %v11392_v49 = vadd.f32 %v3784_v7, %v12549_v32  ;;  %v9017_v45 = vld [vmem:[#allocation8 + $0x150] ss:$12 sps:$4 sm:$0xff]   ;;  %v9023_v7 = vld [vmem:[#allocation8 + $0x16c] ss:$12 sps:$4 sm:$0xff]   ;;  %v9021_v32 = vld [vmem:[#allocation8 + $0x168] ss:$12 sps:$4 sm:$0xff]  }
 0xdc4   : > { %4114 = vmatpush1.bf16.msra.mxu0 %v9017_v45  ;;  %8321 = vmatpush3.bf16.msra.mxu1 %v9020_v63 }
 0xdc5   : > { %3814 = vadd.xlane.f32.xlu0 %v11392_v49  ;;  %v11396_v56 = vadd.f32 %v3787_v18, %v12550_v34  ;;  %v9024_v18 = vld [vmem:[#allocation8 + $0x140] ss:$12 sps:$4 sm:$0xff]   ;;  %4115 = vmatprep.subr.bf16.mxu0 %v9023_v7  ;;  %v9025_v34 = vld [vmem:[#allocation8 + $0x158] ss:$12 sps:$4 sm:$0xff]  }
 0xdc6   : > { %8322 = vmatprep.subr.bf16.mxu1 %v9024_v18 }
 0xdc7   : > { %3816 = vadd.xlane.f32.xlu1 %v11396_v56 }
 0xdc8   : > { %4116 = vmatpush1.bf16.msra.mxu0 %v9021_v32  ;;  %8323 = vmatpush3.bf16.msra.mxu1 %v9024_v18 }
 0xdc9   : > { %8324 = vmatprep.subr.bf16.mxu1 %v9025_v34 }
 0xdcc   : > { %8325 = vmatpush3.bf16.msra.mxu1 %v9025_v34 }
 0xdcd   : > { %8326 = vmatprep.subr.bf16.mxu1 %v9026_v41 }
 0xdd0   : > { %8327 = vmatpush3.bf16.msra.mxu1 %v9026_v41 }
 0xe22   : > { %v3803_v55 = vpop.xlane.xlu0 %3802 }
 0xe23   : > { %v3818_v19 = vmul.f32 0.0078125, %v3803_v55 }
 0xe24   : > { %v3805_v9 = vpop.xlane.xlu1 %3804 }
 0xe25   : > { %v11400_v17 = vsub.f32 %v11362_v50, %v3818_v19  ;;  %v3819_v12 = vmul.f32 0.0078125, %v3805_v9 }
 0xe27   : > { %v11403_v42 = vsub.f32 %v11366_v37, %v3819_v12  ;;  %v3834_v30 = vmul.f32 %v11400_v17, %v11400_v17 }
 0xe29   : > { %3842 = vadd.xlane.f32.xlu0 %v3834_v30  ;;  %v3835_v23 = vmul.f32 %v11403_v42, %v11403_v42  ;;  %v11439_v30 = vld [vmem:[#allocation7 + $0x6] ss:$0 sm:$0xff] }
 0xe2b   : > { %3844 = vadd.xlane.f32.xlu1 %v3835_v23 }
 0xe37   : > { %v3807_v43 = vpop.xlane.xlu0 %3806 }
 0xe38   : > { %v3820_v22 = vmul.f32 0.0078125, %v3807_v43 }
 0xe39   : > { %v3809_v35 = vpop.xlane.xlu1 %3808 }
 0xe3a   : > { %v11410_v0 = vsub.f32 %v11372_v20, %v3820_v22  ;;  %v3821_v36 = vmul.f32 0.0078125, %v3809_v35 }
 0xe3c   : > { %v11413_v47 = vsub.f32 %v11376_v2, %v3821_v36  ;;  %v3836_v29 = vmul.f32 %v11410_v0, %v11410_v0 }
 0xe3e   : > { %3846 = vadd.xlane.f32.xlu0 %v3836_v29  ;;  %v3837_v26 = vmul.f32 %v11413_v47, %v11413_v47  ;;  %v7591_v29 = vld [vmem:[#allocation7 + $0x7] ss:$0 sm:$0xff] }
 0xe3f   : > { %v3811_v4 = vpop.xlane.xlu0 %3810 }
 0xe40   : > { %v3822_v5 = vmul.f32 0.0078125, %v3811_v4  ;;  %3848 = vadd.xlane.f32.xlu1 %v3837_v26 }
 0xe41   : > { %v3813_v52 = vpop.xlane.xlu1 %3812 }
 0xe42   : > { %v11420_v57 = vsub.f32 %v11382_v11, %v3822_v5  ;;  %v3823_v33 = vmul.f32 0.0078125, %v3813_v52 }
 0xe44   : > { %v11423_v1 = vsub.f32 %v11386_v8, %v3823_v33  ;;  %v3838_v53 = vmul.f32 %v11420_v57, %v11420_v57 }
 0xe46   : > { %3850 = vadd.xlane.f32.xlu0 %v3838_v53  ;;  %v3839_v3 = vmul.f32 %v11423_v1, %v11423_v1 }
 0xe48   : > { %3852 = vadd.xlane.f32.xlu1 %v3839_v3 }
 0xe52   : > { %v3815_v44 = vpop.xlane.xlu0 %3814 }
 0xe53   : > { %v3824_v28 = vmul.f32 0.0078125, %v3815_v44 }
 0xe54   : > { %v3817_v61 = vpop.xlane.xlu1 %3816 }
 0xe55   : > { %v11430_v16 = vsub.f32 %v11392_v49, %v3824_v28  ;;  %v3825_v31 = vmul.f32 0.0078125, %v3817_v61 }
 0xe57   : > { %v11433_v54 = vsub.f32 %v11396_v56, %v3825_v31  ;;  %v3840_v38 = vmul.f32 %v11430_v16, %v11430_v16 }
 0xe59   : > { %3854 = vadd.xlane.f32.xlu0 %v3840_v38  ;;  %v3841_v24 = vmul.f32 %v11433_v54, %v11433_v54 }
 0xe5b   : > { %3856 = vadd.xlane.f32.xlu1 %v3841_v24 }
 0xeb6   : > { %v3843_v14 = vpop.xlane.xlu0 %3842 }
 0xeb7   : > { %v3858_v15 = vmul.f32 0.0078125, %v3843_v14 }
 0xeb8   : > { %v3845_v59 = vpop.xlane.xlu1 %3844 }
 0xeb9   : > { %v3866_v55 = vadd.f32 1e-05, %v3858_v15  ;;  %v3859_v19 = vmul.f32 0.0078125, %v3845_v59 }
 0xebb   : > { %9403 = vrsqrt.f32 %v3866_v55  ;;  %v3867_v9 = vadd.f32 1e-05, %v3859_v19 }
 0xebd   : > { %9405 = vrsqrt.f32 %v3867_v9 }
 0xec5   : > { %v9404_v12 = vpop.eup %9403 }
 0xec6   : > { %v3882_v23 = vmul.f32 %v9404_v12, %v11400_v17 }
 0xec7   : > { %v9406_v43 = vpop.eup %9405 }
 0xec8   : > { %v3896_v22 = vmul.f32 %v11439_v30, %v3882_v23  ;;  %v3883_v35 = vmul.f32 %v9406_v43, %v11403_v42 }
 0xeca   : > { %v3897_v26 = vmul.f32 %v11439_v30, %v3883_v35  ;;  %v3910_v53 = vadd.f32 %v7591_v29, %v3896_v22  ;;  %v7592_v22 = vld [vmem:[%s12483_s4 + $0x3] sm:$0x7] }
 0xecb   : > { %v3847_v36 = vpop.xlane.xlu0 %3846  ;;  %v12551_v35 = vld [vmem:[#allocation22_spill] sm:$0xff] }
 0xecc   : > { %v3860_v4 = vmul.f32 0.0078125, %v3847_v36  ;;  %v3911_v3 = vadd.f32 %v7591_v29, %v3897_v26  ;;  %v11464_v36 = vrot.slane %v7592_v22, %v12551_v35 }
 0xecd   : > { %v3849_v5 = vpop.xlane.xlu1 %3848 }
 0xece   : > { %v3868_v52 = vadd.f32 1e-05, %v3860_v4  ;;  %v3861_v33 = vmul.f32 0.0078125, %v3849_v5  ;;  %v3918_v40 = vpack.c.bf16 %v3911_v3, %v3910_v53 }
 0xed0   : > { %9407 = vrsqrt.f32 %v3868_v52  ;;  %v3869_v60 = vadd.f32 1e-05, %v3861_v33  ;;  %4134 = vmatmul.mubr.bf16.vlgmr.msra.gmra.mrb[80].mxu0 %v3918_v40  ;;  %8328 = vmatprep.mubr.bf16.mxu1 %v3918_v40  ;;  %v12553_v40 = vld [vmem:[#allocation23_spill] sm:$0xff] }
 0xed1   : > { %4143 = vmatprep.mubr.bf16.mxu0 %v12545_v27 }
 0xed2   : > { %9409 = vrsqrt.f32 %v3869_v60 }
 0xed3   : > { %v3851_v17 = vpop.xlane.xlu0 %3850 }
 0xed4   : > { %v3862_v42 = vmul.f32 0.0078125, %v3851_v17  ;;  %v3969_v17 = vrot.slane %v7592_v22, %v12553_v40 }
 0xed5   : > { %v3853_v25 = vpop.xlane.xlu1 %3852 }
 0xed6   : > { %v3870_v39 = vadd.f32 1e-05, %v3862_v42  ;;  %v3863_v13 = vmul.f32 0.0078125, %v3853_v25 }
 0xed8   : > { %9411 = vrsqrt.f32 %v3870_v39  ;;  %v3871_v58 = vadd.f32 1e-05, %v3863_v13 }
 0xeda   : > { %v9408_v62 = vpop.eup %9407  ;;  %9413 = vrsqrt.f32 %v3871_v58 }
 0xedb   : > { %v3884_v46 = vmul.f32 %v9408_v62, %v11410_v0 }
 0xedc   : > { %v9410_v21 = vpop.eup %9409 }
 0xedd   : > { %v3885_v10 = vmul.f32 %v9410_v21, %v11413_v47  ;;  %v3898_v6 = vmul.f32 %v11439_v30, %v3884_v46 }
 0xedf   : > { %v3899_v44 = vmul.f32 %v11439_v30, %v3885_v10  ;;  %v3912_v28 = vadd.f32 %v7591_v29, %v3898_v6 }
 0xee1   : > { %v3913_v51 = vadd.f32 %v7591_v29, %v3899_v44 }
 0xee2   : > { %v9412_v61 = vpop.eup %9411 }
 0xee3   : > { %v3919_v31 = vpack.c.bf16 %v3913_v51, %v3912_v28  ;;  %v3886_v48 = vmul.f32 %v9412_v61, %v11420_v57 }
 0xee4   : > { %v9414_v63 = vpop.eup %9413 }
 0xee5   : > { %4144 = vmatmul.mubr.bf16.gmra.mrb[84].mxu0 %v3919_v31  ;;  %8329 = vmatmul.mubr.bf16.vlgmr.msra.gmra.mrb[80].mxu1 %v3919_v31  ;;  %v3887_v38 = vmul.f32 %v9414_v63, %v11423_v1  ;;  %v3900_v0 = vmul.f32 %v11439_v30, %v3886_v48 }
 0xee6   : > { %4153 = vmatprep.mubr.bf16.mxu0 %v12545_v27  ;;  %v3855_v45 = vpop.xlane.xlu0 %3854 }
 0xee7   : > { %v3901_v47 = vmul.f32 %v11439_v30, %v3887_v38  ;;  %v3864_v7 = vmul.f32 0.0078125, %v3855_v45  ;;  %v3914_v24 = vadd.f32 %v7591_v29, %v3900_v0 }
 0xee8   : > { %v3857_v32 = vpop.xlane.xlu1 %3856 }
 0xee9   : > { %v3915_v18 = vadd.f32 %v7591_v29, %v3901_v47  ;;  %v3872_v34 = vadd.f32 1e-05, %v3864_v7  ;;  %v3865_v41 = vmul.f32 0.0078125, %v3857_v32 }
 0xeeb   : > { %v3920_v14 = vpack.c.bf16 %v3915_v18, %v3914_v24  ;;  %9415 = vrsqrt.f32 %v3872_v34  ;;  %v3873_v57 = vadd.f32 1e-05, %v3865_v41 }
 0xeed   : > { %4154 = vmatmul.mubr.bf16.gmra.mrb[88].mxu0 %v3920_v14  ;;  %8332 = vmatprep.mubr.bf16.mxu1 %v3920_v14  ;;  %9417 = vrsqrt.f32 %v3873_v57 }
 0xeee   : > { %4163 = vmatprep.mubr.bf16.mxu0 %v12545_v27 }
 0xef5   : > { %v9416_v1 = vpop.eup %9415 }
 0xef6   : > { %v3888_v15 = vmul.f32 %v9416_v1, %v11430_v16  ;;  %v12552_v16 = vld [vmem:[#allocation21_spill] sm:$0xff] }
 0xef7   : > { %v9418_v59 = vpop.eup %9417  ;;  %v11467_v26 = vrot.slane %v7592_v22, %v12552_v16 }
 0xef8   : > { %v3889_v55 = vmul.f32 %v9418_v59, %v11433_v54  ;;  %v3902_v19 = vmul.f32 %v11439_v30, %v3888_v15 }
 0xefa   : > { %v3903_v9 = vmul.f32 %v11439_v30, %v3889_v55  ;;  %v3916_v12 = vadd.f32 %v7591_v29, %v3902_v19 }
 0xefc   : > { %v3917_v23 = vadd.f32 %v7591_v29, %v3903_v9 }
 0xefe   : > { %v3921_v43 = vpack.c.bf16 %v3917_v23, %v3916_v12 }
 0xf00   : > { %4164 = vmatmul.mubr.bf16.gmra.mrb[92].mxu0 %v3921_v43  ;;  %8333 = vmatmul.mubr.bf16.gmra.mrb[84].mxu1 %v3921_v43 }
 0xfa3   : > { %v4135_v54 = vpop.f32.mrb[80].mxu0 }
 0xfa4   : > { %v4137_v4 = vpop.f32.mrb[81].mxu0  ;;  %v4136_v29 = vadd.f32 %v4135_v54, %v11467_v26 }
 0xfa5   : > { %v4138_v5 = vadd.f32 %v4137_v4, %v11464_v36  ;;  %v4139_v30 = vpop.f32.mrb[82].mxu0 }
 0xfa6   : > { %v4140_v52 = vadd.f32 %v4139_v30, %v11467_v26  ;;  %v4141_v33 = vpop.f32.mrb[83].mxu0 }
 0xfa7   : > { %v4142_v53 = vadd.f32 %v4141_v33, %v11464_v36  ;;  %4245 = vxpose.xlu0.b32.start [1/8] (short) (narrow) %v4138_v5, 32 }
 0xfa8   : > { %v11473_v3 = vpack.c.bf16 %v4140_v52, %v4136_v29 }
 0xfa9   : > { %v11475_v60 = vpack.i.bf16 %v4142_v53, %v4138_v5 }
 0xfaa   : > { %8340 = vmatprep.mubr.msk.bf16.mxu0 %vm963_vm0, %v11473_v3 }
 0xfab   : > { %8780 = vrot.lane.b32.xlu1 %v11475_v60, %s10026_s26  ;;  %4246 = vxpose.xlu0.b32.cont [2/8] (short) (narrow) %v4142_v53, 32 }
 0xfb8   : > { %v4145_v42 = vpop.f32.mrb[84].mxu0  ;;  %v8330_v25 = vpop.f32.mrb[80].mxu1 }
 0xfb9   : > { %v4146_v39 = vadd.f32 %v4145_v42, %v11467_v26  ;;  %v4147_v13 = vpop.f32.mrb[85].mxu0  ;;  %v4208_v58 = vpop.f32.mrb[81].mxu1  ;;  %v4217_v10 = vadd.f32 %v8330_v25, %v3969_v17 }
 0xfba   : > { %v4148_v62 = vadd.f32 %v4147_v13, %v11464_v36  ;;  %v4149_v46 = vpop.f32.mrb[86].mxu0  ;;  %v8331_v21 = vpop.f32.mrb[82].mxu1  ;;  %v4209_v61 = vadd.f32 %v4208_v58, %v3969_v17 }
 0xfbb   : > { %v4150_v6 = vadd.f32 %v4149_v46, %v11467_v26  ;;  %v4220_v44 = vadd.f32 %v8331_v21, %v3969_v17  ;;  %v4151_v28 = vpop.f32.mrb[87].mxu0  ;;  %v4211_v51 = vpop.f32.mrb[83].mxu1  ;;  %v11540_v21 = vld [vmem:[#allocation5 + $0x10] sm:$0xff] }
 0xfbc   : > { %v4152_v31 = vadd.f32 %v4151_v28, %v11464_v36  ;;  %v4212_v48 = vadd.f32 %v4211_v51, %v3969_v17  ;;  %4247 = vxpose.xlu0.b32.cont [3/8] (short) (narrow) %v4148_v62, 32  ;;  %v11543_v28 = vld [vmem:[#allocation5] sm:$0xff] }
 0xfbd   : > { %v11486_v63 = vpack.c.bf16 %v4150_v6, %v4146_v39  ;;  %v11488_v38 = vpack.c.bf16 %v4220_v44, %v4217_v10 }
 0xfbe   : > { %v11490_v0 = vpack.c.bf16 %v4212_v48, %v4209_v61  ;;  %v11492_v47 = vpack.i.bf16 %v4152_v31, %v4148_v62  ;;  %v11547_v48 = vld [vmem:[#allocation5 + $0x18] sm:$0xff] }
 0xfc0   : > { %8348 = vmatprep.subr.bf16.mxu1 %v11490_v0  ;;  %8785 = vrot.lane.b32.xlu1 %v11492_v47, %s10026_s26  ;;  %v4155_v45 = vpop.f32.mrb[88].mxu0 }
 0xfc1   : > { %4248 = vxpose.xlu0.b32.cont [4/8] (short) (narrow) %v4152_v31, 32  ;;  %v4156_v7 = vadd.f32 %v4155_v45, %v11467_v26  ;;  %v4157_v24 = vpop.f32.mrb[89].mxu0  ;;  %8349 = vmatpush3.bf16.msra.mxu1 %v11490_v0 }
 0xfc2   : > { %v4158_v18 = vadd.f32 %v4157_v24, %v11464_v36  ;;  %v4159_v32 = vpop.f32.mrb[90].mxu0  ;;  %8350 = vmatprep.subr.bf16.mxu1 %v11488_v38 }
 0xfc3   : > { %v4160_v34 = vadd.f32 %v4159_v32, %v11467_v26  ;;  %v4161_v41 = vpop.f32.mrb[91].mxu0 }
 0xfc4   : > { %v4162_v14 = vadd.f32 %v4161_v41, %v11464_v36 }
 0xfc5   : > { %v11503_v57 = vpack.c.bf16 %v4160_v34, %v4156_v7  ;;  %4249 = vxpose.xlu0.b32.cont [5/8] (short) (narrow) %v4158_v18, 32  ;;  %8351 = vmatpush3.bf16.msra.mxu1 %v11488_v38  ;;  %v11551_v34 = vld [vmem:[#allocation5 + $0x8] sm:$0xff] }
 0xfc6   : > { %v11506_v1 = vpack.i.bf16 %v4162_v14, %v4158_v18 }
 0xfc8   : > { %8790 = vrot.lane.b32.xlu1 %v11506_v1, %s10026_s26 }
 0xfc9   : > { %4250 = vxpose.xlu0.b32.cont [6/8] (short) (narrow) %v4162_v14, 32 }
 0xfd3   : > { %v4165_v15 = vpop.f32.mrb[92].mxu0  ;;  %v8334_v59 = vpop.f32.mrb[84].mxu1 }
 0xfd4   : > { %v4166_v55 = vadd.f32 %v4165_v15, %v11467_v26  ;;  %v4167_v19 = vpop.f32.mrb[93].mxu0  ;;  %v4224_v9 = vpop.f32.mrb[85].mxu1  ;;  %v4233_v22 = vadd.f32 %v8334_v59, %v3969_v17  ;;  %v11555_v59 = vld [vmem:[#allocation5 + $0x30] sm:$0xff] }
 0xfd5   : > { %v4168_v12 = vadd.f32 %v4167_v19, %v11464_v36  ;;  %v4169_v23 = vpop.f32.mrb[94].mxu0  ;;  %v8335_v43 = vpop.f32.mrb[86].mxu1  ;;  %v4225_v29 = vadd.f32 %v4224_v9, %v3969_v17  ;;  %v11559_v9 = vld [vmem:[#allocation5 + $0x20] sm:$0xff] }
 0xfd6   : > { %v4170_v54 = vadd.f32 %v4169_v23, %v11467_v26  ;;  %v4236_v4 = vadd.f32 %v8335_v43, %v3969_v17  ;;  %v4171_v5 = vpop.f32.mrb[95].mxu0  ;;  %v4227_v30 = vpop.f32.mrb[87].mxu1  ;;  %v11563_v43 = vld [vmem:[#allocation5 + $0x38] sm:$0xff] }
 0xfd7   : > { %v4172_v52 = vadd.f32 %v4171_v5, %v11464_v36  ;;  %v4228_v33 = vadd.f32 %v4227_v30, %v3969_v17  ;;  %4251 = vxpose.xlu0.b32.cont [7/8] (short) (narrow) %v4168_v12, 32 }
 0xfd8   : > { %v11514_v53 = vpack.c.bf16 %v4170_v54, %v4166_v55  ;;  %v11516_v42 = vpack.c.bf16 %v4236_v4, %v4233_v22  ;;  %v11567_v4 = vld [vmem:[#allocation5 + $0x28] sm:$0xff] }
 0xfd9   : > { %v11518_v25 = vpack.c.bf16 %v4228_v33, %v4225_v29  ;;  %v11520_v39 = vpack.i.bf16 %v4172_v52, %v4168_v12 }
 0xfdb   : > { %8352 = vmatprep.subr.bf16.mxu1 %v11518_v25  ;;  %8795 = vrot.lane.b32.xlu1 %v11520_v39, %s10026_s26 }
 0xfdc   : > { %4252 = vxpose.xlu0.b32.end [8/8] (short) (narrow) %v4172_v52, 32  ;;  %8353 = vmatpush3.bf16.msra.mxu1 %v11518_v25 }
 0xfdd   : > { %8354 = vmatprep.subr.bf16.mxu1 %v11516_v42 }
 0xfdf   : > { %8800 = vrot.lane.b32.xlu1 %v11475_v60, %s10027_s21 }
 0xfe0   : > { %8355 = vmatpush3.bf16.msra.mxu1 %v11516_v42 }
 0xfe3   : > { %8810 = vrot.lane.b32.xlu1 %v11506_v1, %s10027_s21 }
0x1005   : > { %8805 = vrot.lane.b32.xlu0 %v11492_v47, %s10027_s21 }
0x101d   : > { %v11572_v52 = vpop.permute.xlu1 %8780 }
0x1032   : > { %v11574_v33 = vpop.permute.xlu1 %8785 }
0x1040   : > { %v4261_v36 = vpop.trf.xlu0 }
0x1044   : > { %v4262_v26 = vpop.trf.xlu0 }
0x1045   : > { %v4277_v17 = vpack.c.bf16 %v4262_v26, %v4261_v36  ;;  %v11576_v36 = vpop.permute.xlu1 %8790 }
0x1047   : > { %8336 = vmatprep.subr.bf16.mxu0 %v4277_v17 }
0x1048   : > { %8337 = vmatpush3.bf16.msra.mxu0 %v4277_v17  ;;  %v4263_v13 = vpop.trf.xlu0 }
0x104c   : > { %v4264_v58 = vpop.trf.xlu0 }
0x104d   : > { %v4278_v62 = vpack.c.bf16 %v4264_v58, %v4263_v13  ;;  %v11578_v26 = vpop.permute.xlu1 %8795 }
0x104f   : > { %8338 = vmatprep.subr.bf16.mxu0 %v4278_v62 }
0x1050   : > { %8339 = vmatpush3.bf16.msra.mxu0 %v4278_v62 }
0x1051   : > { %v11580_v17 = vpop.permute.xlu1 %8800 }
0x1053   : > { %8341 = vmatmul.mubr.msk.bf16.vlgmr.msra.gmra.mrb[96].mxu0 %vm963_vm0, %v11486_v63 }
0x1054   : > { %8344 = vmatprep.mubr.msk.bf16.mxu0 %vm963_vm0, %v11503_v57 }
0x1055   : > { %v11582_v13 = vpop.permute.xlu1 %8810 }
0x105b   : > { %8345 = vmatmul.mubr.msk.bf16.gmra.mrb[100].mxu0 %vm963_vm0, %v11514_v53 }
0x1126   : > { %v8342_v46 = vpop.f32.mrb[96].mxu0 }
0x1127   : > { %v4334_v10 = vadd.f32 %v11540_v21, %v8342_v46  ;;  %v4325_v6 = vpop.f32.mrb[97].mxu0 }
0x1128   : > { %v8343_v44 = vpop.f32.mrb[98].mxu0  ;;  %v4326_v51 = vadd.f32 %v11543_v28, %v4325_v6 }
0x1129   : > { %v4328_v61 = vpop.f32.mrb[99].mxu0  ;;  %v4362_v31 = vsel %vm1041_vm1, %v4334_v10, -inf  ;;  %v4337_v45 = vadd.f32 %v11547_v48, %v8343_v44 }
0x112a   : > { %4363 = vmax.xlane.f32.xlu1 %v4362_v31  ;;  %v4356_v7 = vsel %vm1041_vm1, %v4326_v51, -inf  ;;  %v4329_v41 = vadd.f32 %v11551_v34, %v4328_v61 }
0x112b   : > { %v4365_v15 = vsel %vm1041_vm1, %v4337_v45, -inf }
0x112c   : > { %v4359_v19 = vsel %vm1041_vm1, %v4329_v41, -inf }
0x112e   : > { %4357 = vmax.xlane.f32.xlu1 %v4356_v7  ;;  %v8346_v24 = vpop.f32.mrb[100].mxu0 }
0x112f   : > { %v4341_v18 = vpop.f32.mrb[101].mxu0  ;;  %v4350_v55 = vadd.f32 %v11555_v59, %v8346_v24 }
0x1130   : > { %v8347_v32 = vpop.f32.mrb[102].mxu0  ;;  %v4342_v12 = vadd.f32 %v11559_v9, %v4341_v18 }
0x1131   : > { %v4344_v14 = vpop.f32.mrb[103].mxu0  ;;  %v4374_v23 = vsel %vm1041_vm1, %v4350_v55, -inf  ;;  %v4353_v22 = vadd.f32 %v11563_v43, %v8347_v32 }
0x1132   : > { %4366 = vmax.xlane.f32.xlu1 %v4365_v15  ;;  %v4368_v54 = vsel %vm1041_vm1, %v4342_v12, -inf  ;;  %v4345_v5 = vadd.f32 %v11567_v4, %v4344_v14 }
0x1133   : > { %v4377_v30 = vsel %vm1041_vm1, %v4353_v22, -inf }
0x1134   : > { %v4371_v29 = vsel %vm1041_vm1, %v4345_v5, -inf }
0x1136   : > { %4360 = vmax.xlane.f32.xlu1 %v4359_v19 }
0x113a   : > { %4375 = vmax.xlane.f32.xlu1 %v4374_v23 }
0x113e   : > { %4369 = vmax.xlane.f32.xlu1 %v4368_v54 }
0x1142   : > { %4378 = vmax.xlane.f32.xlu1 %v4377_v30 }
0x1146   : > { %4372 = vmax.xlane.f32.xlu1 %v4371_v29 }
0x11b7   : > { %v4364_v58 = vpop.xlane.xlu1 %4363 }
0x11b8   : > { %v4382_v62 = vsub.f32 %v4334_v10, %v4364_v58 }
0x11ba   : > { %v4392_v46 = vmul.f32 1.442695, %v4382_v62 }
0x11bb   : > { %v4358_v6 = vpop.xlane.xlu1 %4357 }
0x11bc   : > { %9419 = vpow2.f32 %v4392_v46  ;;  %v4380_v44 = vsub.f32 %v4326_v51, %v4358_v6 }
0x11be   : > { %v4388_v61 = vmul.f32 1.442695, %v4380_v44 }
0x11bf   : > { %v4367_v31 = vpop.xlane.xlu1 %4366 }
0x11c0   : > { %9421 = vpow2.f32 %v4388_v61  ;;  %v4383_v7 = vsub.f32 %v4337_v45, %v4367_v31 }
0x11c2   : > { %v4394_v24 = vmul.f32 1.442695, %v4383_v7 }
0x11c3   : > { %v4361_v18 = vpop.xlane.xlu1 %4360 }
0x11c4   : > { %9423 = vpow2.f32 %v4394_v24  ;;  %v4381_v32 = vsub.f32 %v4329_v41, %v4361_v18 }
0x11c6   : > { %v11584_v14 = vpop.eup %9419  ;;  %v4390_v15 = vmul.f32 1.442695, %v4381_v32 }
0x11c7   : > { %v4376_v19 = vpop.xlane.xlu1 %4375  ;;  %v4410_v23 = vsel %vm1041_vm1, %v11584_v14, 0.0 }
0x11c8   : > { %9425 = vpow2.f32 %v4390_v15  ;;  %v4386_v10 = vsub.f32 %v4350_v55, %v4376_v19  ;;  %4411 = vadd.xlane.f32.xlu1 %v4410_v23 }
0x11ca   : > { %v11588_v54 = vpop.eup %9421  ;;  %v4400_v51 = vmul.f32 1.442695, %v4386_v10  ;;  %v8802_v10 = vunpack.i.l.bf16 %v11580_v17 }
0x11cb   : > { %v4370_v30 = vpop.xlane.xlu1 %4369  ;;  %v4404_v45 = vsel %vm1041_vm1, %v11588_v54, 0.0 }
0x11cc   : > { %9427 = vpow2.f32 %v4400_v51  ;;  %v4384_v29 = vsub.f32 %v4342_v12, %v4370_v30  ;;  %4405 = vadd.xlane.f32.xlu1 %v4404_v45  ;;  %v8782_v51 = vunpack.i.l.bf16 %v11572_v52  ;;  %v8803_v30 = vunpack.i.h.bf16 %v11580_v17 }
0x11ce   : > { %v11592_v41 = vpop.eup %9423  ;;  %v4396_v58 = vmul.f32 1.442695, %v4384_v29  ;;  %v8819_v45 = vpack.i.bf16 %v8802_v10, %v8782_v51  ;;  %v8806_v29 = vpop.permute.xlu0 %8805 }
0x11cf   : > { %v4379_v62 = vpop.xlane.xlu1 %4378  ;;  %v4413_v46 = vsel %vm1041_vm1, %v11592_v41, 0.0 }
0x11d0   : > { %9429 = vpow2.f32 %v4396_v58  ;;  %v4387_v55 = vsub.f32 %v4353_v22, %v4379_v62  ;;  %4414 = vadd.xlane.f32.xlu1 %v4413_v46  ;;  %v8783_v58 = vunpack.i.h.bf16 %v11572_v52  ;;  %v8808_v62 = vunpack.i.h.bf16 %v8806_v29 }
0x11d1   : > { %v8813_v52 = vunpack.i.h.bf16 %v11582_v13 }
0x11d2   : > { %v11596_v6 = vpop.eup %9425  ;;  %v4402_v44 = vmul.f32 1.442695, %v4387_v55  ;;  %v8788_v55 = vunpack.i.h.bf16 %v11574_v33 }
0x11d3   : > { %v4373_v61 = vpop.xlane.xlu1 %4372  ;;  %v4407_v31 = vsel %vm1041_vm1, %v11596_v6, 0.0 }
0x11d4   : > { %9431 = vpow2.f32 %v4402_v44  ;;  %v4385_v12 = vsub.f32 %v4345_v5, %v4373_v61  ;;  %4408 = vadd.xlane.f32.xlu0 %v4407_v31  ;;  %v8825_v17 = vpack.i.bf16 %v8808_v62, %v8788_v55  ;;  %v8792_v44 = vunpack.i.l.bf16 %v11576_v36 }
0x11d5   : > { %v8793_v31 = vunpack.i.h.bf16 %v11576_v36 }
0x11d6   : > { %v11600_v7 = vpop.eup %9427  ;;  %v4398_v24 = vmul.f32 1.442695, %v4385_v12 }
0x11d7   : > { %v4422_v18 = vsel %vm1041_vm1, %v11600_v7, 0.0  ;;  %v8829_v12 = vpack.i.bf16 %v8813_v52, %v8793_v31 }
0x11d8   : > { %9433 = vpow2.f32 %v4398_v24  ;;  %4423 = vadd.xlane.f32.xlu1 %v4422_v18 }
0x11da   : > { %v11604_v22 = vpop.eup %9429 }
0x11db   : > { %v4416_v32 = vsel %vm1041_vm1, %v11604_v22, 0.0 }
0x11dc   : > { %4417 = vadd.xlane.f32.xlu1 %v4416_v32 }
0x11de   : > { %v11608_v15 = vpop.eup %9431 }
0x11df   : > { %v4425_v5 = vsel %vm1041_vm1, %v11608_v15, 0.0 }
0x11e0   : > { %4426 = vadd.xlane.f32.xlu1 %v4425_v5 }
0x11e2   : > { %v11612_v19 = vpop.eup %9433 }
0x11e3   : > { %v4419_v23 = vsel %vm1041_vm1, %v11612_v19, 0.0 }
0x11e4   : > { %4420 = vadd.xlane.f32.xlu0 %v4419_v23 }
0x11f1   : > { %4711 = vrot.lane.b32.xlu1 %v11473_v3, %s10026_s26 }
0x11f5   : > { %4713 = vrot.lane.b32.xlu1 %v11486_v63, %s10026_s26 }
0x11f9   : > { %4715 = vrot.lane.b32.xlu1 %v11503_v57, %s10026_s26 }
0x11fa   : > { %8815 = vrot.lane.b32.xlu0 %v11520_v39, %s10027_s21 }
0x11fe   : > { %4717 = vrot.lane.b32.xlu0 %v11514_v53, %s10026_s26 }
0x1202   : > { %5145 = vrot.lane.b32.xlu0 %v11473_v3, %s10027_s21 }
0x1206   : > { %5147 = vrot.lane.b32.xlu0 %v11486_v63, %s10027_s21 }
0x120a   : > { %5149 = vrot.lane.b32.xlu0 %v11503_v57, %s10027_s21 }
0x120e   : > { %5151 = vrot.lane.b32.xlu0 %v11514_v53, %s10027_s21 }
0x1212   : > { %8856 = vrot.lane.b32.xlu0 %v11475_v60, %s10028_s10  ;;  %v8821_v60 = vpack.i.bf16 %v8803_v30, %v8783_v58 }
0x1216   : > { %8861 = vrot.lane.b32.xlu0 %v11492_v47, %s10028_s10  ;;  %v8807_v47 = vunpack.i.l.bf16 %v8806_v29 }
0x121a   : > { %8866 = vrot.lane.b32.xlu0 %v11506_v1, %s10028_s10  ;;  %v8787_v1 = vunpack.i.l.bf16 %v11574_v33 }
0x121c   : > { %v8823_v46 = vpack.i.bf16 %v8807_v47, %v8787_v1 }
0x121e   : > { %8871 = vrot.lane.b32.xlu0 %v11520_v39, %s10028_s10  ;;  %v8812_v39 = vunpack.i.l.bf16 %v11582_v13 }
0x1220   : > { %v8827_v61 = vpack.i.bf16 %v8812_v39, %v8792_v44 }
0x1222   : > { %8820 = vxpose.xlu1.b32.start [1/8] (short) (narrow) %v8819_v45, 32  ;;  %5324 = vrot.lane.b32.xlu0 %v11488_v38, %s10027_s21 }
0x1226   : > { %8822 = vxpose.xlu1.b32.cont [2/8] (short) (narrow) %v8821_v60, 32 }
0x122a   : > { %8824 = vxpose.xlu1.b32.cont [3/8] (short) (narrow) %v8823_v46, 32 }
0x122e   : > { %8826 = vxpose.xlu1.b32.cont [4/8] (short) (narrow) %v8825_v17, 32 }
0x1232   : > { %8828 = vxpose.xlu1.b32.cont [5/8] (short) (narrow) %v8827_v61, 32 }
0x1236   : > { %8830 = vxpose.xlu1.b32.cont [6/8] (short) (narrow) %v8829_v12, 32 }
0x1255   : > { %v4412_v24 = vpop.xlane.xlu1 %4411 }
0x1259   : > { %v4406_v18 = vpop.xlane.xlu1 %4405 }
0x125d   : > { %v4415_v32 = vpop.xlane.xlu1 %4414 }
0x125e   : > { %9435 = vrcp.f32 %v4415_v32 }
0x125f   : > { %9437 = vrcp.f32 %v4406_v18 }
0x1260   : > { %9439 = vrcp.f32 %v4412_v24 }
0x1261   : > { %v4409_v33 = vpop.xlane.xlu0 %4408 }
0x1262   : > { %9441 = vrcp.f32 %v4409_v33 }
0x1265   : > { %v4424_v5 = vpop.xlane.xlu1 %4423 }
0x1268   : > { %v9436_v23 = vpop.eup %9435 }
0x1269   : > { %v4418_v10 = vpop.xlane.xlu1 %4417  ;;  %v9438_v51 = vpop.eup %9437  ;;  %v4439_v45 = vmul.f32 %v9436_v23, %v11592_v41  ;;  %v8797_v41 = vunpack.i.l.bf16 %v11578_v26 }
0x126a   : > { %v9440_v30 = vpop.eup %9439  ;;  %v4436_v29 = vmul.f32 %v9438_v51, %v11588_v54 }
0x126b   : > { %v4438_v60 = vmul.f32 %v9440_v30, %v11584_v14  ;;  %v8798_v14 = vunpack.i.h.bf16 %v11578_v26  ;;  %v9027_v26 = vld [vmem:[#allocation10 + $0x40] sm:$0xff]  }
0x126c   : > { %v9442_v13 = vpop.eup %9441  ;;  %8364 = vmatprep.subr.bf16.mxu0 %v9027_v26 }
0x126d   : > { %v4427_v36 = vpop.xlane.xlu1 %4426  ;;  %v4437_v58 = vmul.f32 %v9442_v13, %v11596_v6  ;;  %v4445_v1 = vpack.c.bf16 %v4439_v45, %v4438_v60  ;;  %8365 = vmatpush3.bf16.msra.mxu0 %v9027_v26 }
0x126e   : > { %9443 = vrcp.f32 %v4427_v36 }
0x126f   : > { %v4444_v47 = vpack.c.bf16 %v4437_v58, %v4436_v29  ;;  %9445 = vrcp.f32 %v4418_v10 }
0x1270   : > { %9447 = vrcp.f32 %v4424_v5 }
0x1271   : > { %v4421_v62 = vpop.xlane.xlu0 %4420  ;;  %8356 = vmatprep.mubr.msk.bf16.mxu1 %vm1041_vm1, %v4444_v47  ;;  %v4712_v5 = vpop.permute.xlu1 %4711 }
0x1272   : > { %9449 = vrcp.f32 %v4421_v62  ;;  %8357 = vmatmul.mubr.msk.bf16.vlgmr.msra.gmra.mrb[88].mxu1 %vm1041_vm1, %v4445_v1 }
0x1275   : > { %v8816_v46 = vpop.permute.xlu0 %8815 }
0x1276   : > { %v8817_v55 = vunpack.i.l.bf16 %v8816_v46  ;;  %v8818_v54 = vunpack.i.h.bf16 %v8816_v46 }
0x1278   : > { %v8831_v39 = vpack.i.bf16 %v8817_v55, %v8797_v41  ;;  %v9444_v6 = vpop.eup %9443  ;;  %v8833_v61 = vpack.i.bf16 %v8818_v54, %v8798_v14 }
0x1279   : > { %v9446_v17 = vpop.eup %9445  ;;  %v4443_v31 = vmul.f32 %v9444_v6, %v11608_v15  ;;  %v4718_v15 = vpop.permute.xlu0 %4717 }
0x127a   : > { %8832 = vxpose.xlu1.b32.cont [7/8] (short) (narrow) %v8831_v39, 32  ;;  %v9448_v44 = vpop.eup %9447  ;;  %v4440_v12 = vmul.f32 %v9446_v17, %v11604_v22  ;;  %v4714_v22 = vpop.permute.xlu1 %4713 }
0x127b   : > { %v4442_v18 = vmul.f32 %v9448_v44, %v11600_v7  ;;  %v9028_v7 = vld [vmem:[#allocation10 + $0x48] sm:$0xff]  }
0x127c   : > { %v9450_v52 = vpop.eup %9449  ;;  %8366 = vmatprep.subr.bf16.mxu0 %v9028_v7 }
0x127d   : > { %v4441_v24 = vmul.f32 %v9450_v52, %v11612_v19  ;;  %v4447_v33 = vpack.c.bf16 %v4443_v31, %v4442_v18  ;;  %8367 = vmatpush3.bf16.msra.mxu0 %v9028_v7  ;;  %v5146_v23 = vpop.permute.xlu0 %5145 }
0x127e   : > { %8834 = vxpose.xlu1.b32.end [8/8] (short) (narrow) %v8833_v61, 32  ;;  %v4716_v19 = vpop.permute.xlu1 %4715 }
0x127f   : > { %v4446_v32 = vpack.c.bf16 %v4441_v24, %v4440_v12 }
0x1281   : > { %8360 = vmatprep.mubr.msk.bf16.mxu1 %vm1041_vm1, %v4446_v32  ;;  %v5148_v51 = vpop.permute.xlu0 %5147 }
0x1282   : > { %8361 = vmatmul.mubr.msk.bf16.gmra.mrb[92].mxu1 %vm1041_vm1, %v4447_v33 }
0x1283   : > { %8380 = vmatprep.mubr.msk.bf16.mxu1 %vm963_vm0, %v4712_v5 }
0x1285   : > { %v5150_v58 = vpop.permute.xlu0 %5149 }
0x1289   : > { %v5152_v55 = vpop.permute.xlu0 %5151 }
0x128d   : > { %v11676_v14 = vpop.permute.xlu0 %8856 }
0x1291   : > { %v11679_v44 = vpop.permute.xlu0 %8861 }
0x1295   : > { %v11683_v52 = vpop.permute.xlu0 %8866 }
0x1299   : > { %v11687_v61 = vpop.permute.xlu0 %8871 }
0x129c   : > { %5322 = vrot.lane.b32.xlu1 %v11490_v0, %s10027_s21 }
0x129d   : > { %v5325_v12 = vpop.permute.xlu0 %5324 }
0x12a0   : > { %5326 = vrot.lane.b32.xlu1 %v11518_v25, %s10027_s21 }
0x12a4   : > { %5328 = vrot.lane.b32.xlu1 %v11516_v42, %s10027_s21 }
0x12e2   : > { %v8835_v10 = vpop.trf.xlu1 }
0x12e3   : > { %v8836_v45 = vunpack.i.l.bf16 %v8835_v10  ;;  %v8839_v41 = vunpack.i.h.bf16 %v8835_v10 }
0x12e6   : > { %v8840_v30 = vpop.trf.xlu1 }
0x12e7   : > { %v8841_v13 = vunpack.i.l.bf16 %v8840_v30  ;;  %v8844_v47 = vunpack.i.h.bf16 %v8840_v30 }
0x12e9   : > { %v4705_v36 = vpack.c.bf16 %v8841_v13, %v8836_v45  ;;  %v5143_v54 = vpack.c.bf16 %v8844_v47, %v8839_v41 }
0x12ea   : > { %v8845_v29 = vpop.trf.xlu1 }
0x12eb   : > { %8376 = vmatprep.subr.bf16.mxu1 %v4705_v36  ;;  %v8846_v62 = vunpack.i.l.bf16 %v8845_v29  ;;  %v8849_v6 = vunpack.i.h.bf16 %v8845_v29 }
0x12ec   : > { %8377 = vmatpush3.bf16.msra.mxu1 %v4705_v36 }
0x12ee   : > { %v8850_v60 = vpop.trf.xlu1 }
0x12ef   : > { %v8851_v1 = vunpack.i.l.bf16 %v8850_v60  ;;  %v8854_v39 = vunpack.i.h.bf16 %v8850_v60 }
0x12f1   : > { %v4706_v46 = vpack.c.bf16 %v8851_v1, %v8846_v62  ;;  %v5144_v17 = vpack.c.bf16 %v8854_v39, %v8849_v6 }
0x12f3   : > { %8378 = vmatprep.subr.bf16.mxu1 %v4706_v46 }
0x12f4   : > { %8379 = vmatpush3.bf16.msra.mxu1 %v4706_v46 }
0x12f5   : > { %8416 = vmatprep.subr.bf16.mxu1 %v5143_v54 }
0x12f7   : > { %8381 = vmatmul.mubr.msk.bf16.vlgmr.msra.gmra.mrb[96].mxu1 %vm963_vm0, %v4714_v22 }
0x12f8   : > { %8384 = vmatprep.mubr.msk.bf16.mxu1 %vm963_vm0, %v4716_v19  ;;  %8417 = vmatpush3.bf16.msra.mxu1 %v5143_v54 }
0x12f9   : > { %8418 = vmatprep.subr.bf16.mxu1 %v5144_v17 }
0x12fc   : > { %8419 = vmatpush3.bf16.msra.mxu1 %v5144_v17 }
0x12ff   : > { %8385 = vmatmul.mubr.msk.bf16.gmra.mrb[100].mxu1 %vm963_vm0, %v4718_v15 }
0x1300   : > { %8420 = vmatprep.mubr.msk.bf16.mxu1 %vm963_vm0, %v5146_v23 }
0x1307   : > { %8421 = vmatmul.mubr.msk.bf16.vlgmr.msra.gmra.mrb[104].mxu1 %vm963_vm0, %v5148_v51 }
0x1308   : > { %8424 = vmatprep.mubr.msk.bf16.mxu1 %vm963_vm0, %v5150_v58 }
0x130e   : > { %v5323_v31 = vpop.permute.xlu1 %5322 }
0x130f   : > { %8425 = vmatmul.mubr.msk.bf16.gmra.mrb[108].mxu1 %vm963_vm0, %v5152_v55  ;;  %8428 = vmatprep.subr.bf16.mxu1 %v5323_v31 }
0x1310   : > { %8429 = vmatpush3.bf16.msra.mxu1 %v5323_v31 }
0x1311   : > { %8430 = vmatprep.subr.bf16.mxu1 %v5325_v12 }
0x1312   : > { %v5327_v24 = vpop.permute.xlu1 %5326 }
0x1314   : > { %8431 = vmatpush3.bf16.msra.mxu1 %v5325_v12 }
0x1315   : > { %8432 = vmatprep.subr.bf16.mxu1 %v5327_v24 }
0x1316   : > { %v5329_v18 = vpop.permute.xlu1 %5328 }
0x1318   : > { %8433 = vmatpush3.bf16.msra.mxu1 %v5327_v24 }
0x1319   : > { %8434 = vmatprep.subr.bf16.mxu1 %v5329_v18 }
0x131c   : > { %8435 = vmatpush3.bf16.msra.mxu1 %v5329_v18 }
0x1345   : > { %v8358_v32 = vpop.f32.mrb[88].mxu1 }
0x1346   : > { %v4498_v33 = vpop.f32.mrb[89].mxu1 }
0x1347   : > { %v8359_v5 = vpop.f32.mrb[90].mxu1 }
0x1348   : > { %v4530_v26 = vpack.c.bf16 %v8359_v5, %v8358_v32  ;;  %v4501_v7 = vpop.f32.mrb[91].mxu1 }
0x1349   : > { %v4529_v22 = vpack.c.bf16 %v4501_v7, %v4498_v33 }
0x134b   : > { %8368 = vmatprep.mubr.msk.bf16.mxu0 %vm963_vm0, %v4529_v22 }
0x134c   : > { %8369 = vmatmul.mubr.msk.bf16.vlgmr.msra.gmra.mrb[104].mxu0 %vm963_vm0, %v4530_v26 }
0x1355   : > { %v8362_v15 = vpop.f32.mrb[92].mxu1 }
0x1356   : > { %v4514_v19 = vpop.f32.mrb[93].mxu1 }
0x1357   : > { %v8363_v23 = vpop.f32.mrb[94].mxu1 }
0x1358   : > { %v4532_v10 = vpack.c.bf16 %v8363_v23, %v8362_v15  ;;  %v4517_v51 = vpop.f32.mrb[95].mxu1 }
0x1359   : > { %v4531_v30 = vpack.c.bf16 %v4517_v51, %v4514_v19 }
0x135b   : > { %8372 = vmatprep.mubr.msk.bf16.mxu0 %vm963_vm0, %v4531_v30 }
0x135c   : > { %8373 = vmatmul.mubr.msk.bf16.gmra.mrb[108].mxu0 %vm963_vm0, %v4532_v10 }
0x13ca   : > { %v11694_v13 = vpop.f32.mrb[96].mxu1 }
0x13cb   : > { %v11696_v45 = vpop.f32.mrb[97].mxu1 }
0x13cc   : > { %v11698_v36 = vpop.f32.mrb[98].mxu1 }
0x13cd   : > { %v11700_v29 = vpop.f32.mrb[99].mxu1 }
0x13d2   : > { %v11702_v58 = vpop.f32.mrb[100].mxu1 }
0x13d3   : > { %v11704_v60 = vpop.f32.mrb[101].mxu1 }
0x13d4   : > { %v11706_v47 = vpop.f32.mrb[102].mxu1 }
0x13d5   : > { %v11708_v1 = vpop.f32.mrb[103].mxu1 }
0x13da   : > { %v8422_v62 = vpop.f32.mrb[104].mxu1 }
0x13db   : > { %v5208_v46 = vadd.f32 %v11540_v21, %v8422_v62  ;;  %v5199_v41 = vpop.f32.mrb[105].mxu1 }
0x13dc   : > { %v8423_v55 = vpop.f32.mrb[106].mxu1  ;;  %v5200_v54 = vadd.f32 %v11543_v28, %v5199_v41 }
0x13dd   : > { %v5202_v39 = vpop.f32.mrb[107].mxu1  ;;  %v5236_v6 = vsel %vm1041_vm1, %v5208_v46, -inf  ;;  %v5211_v17 = vadd.f32 %v11547_v48, %v8423_v55 }
0x13de   : > { %5237 = vmax.xlane.f32.xlu0 %v5236_v6  ;;  %v5230_v31 = vsel %vm1041_vm1, %v5200_v54, -inf  ;;  %v5203_v32 = vadd.f32 %v11551_v34, %v5202_v39 }
0x13df   : > { %v5239_v26 = vsel %vm1041_vm1, %v5211_v17, -inf }
0x13e0   : > { %v5233_v15 = vsel %vm1041_vm1, %v5203_v32, -inf }
0x13e2   : > { %v8426_v12 = vpop.f32.mrb[108].mxu1  ;;  %5231 = vmax.xlane.f32.xlu0 %v5230_v31 }
0x13e3   : > { %v5215_v24 = vpop.f32.mrb[109].mxu1  ;;  %v5224_v22 = vadd.f32 %v11555_v59, %v8426_v12 }
0x13e4   : > { %v8427_v18 = vpop.f32.mrb[110].mxu1  ;;  %v5216_v19 = vadd.f32 %v11559_v9, %v5215_v24 }
0x13e5   : > { %v5227_v33 = vadd.f32 %v11563_v43, %v8427_v18  ;;  %v5218_v5 = vpop.f32.mrb[111].mxu1  ;;  %v5248_v23 = vsel %vm1041_vm1, %v5224_v22, -inf }
0x13e6   : > { %5240 = vmax.xlane.f32.xlu0 %v5239_v26  ;;  %v5219_v10 = vadd.f32 %v11567_v4, %v5218_v5  ;;  %v5242_v51 = vsel %vm1041_vm1, %v5216_v19, -inf }
0x13e7   : > { %v5251_v7 = vsel %vm1041_vm1, %v5227_v33, -inf }
0x13e8   : > { %5252 = vmax.xlane.f32.xlu1 %v5251_v7  ;;  %v5245_v30 = vsel %vm1041_vm1, %v5219_v10, -inf }
0x13ea   : > { %5234 = vmax.xlane.f32.xlu0 %v5233_v15 }
0x13ee   : > { %5249 = vmax.xlane.f32.xlu0 %v5248_v23 }
0x13f2   : > { %5243 = vmax.xlane.f32.xlu0 %v5242_v51 }
0x13f6   : > { %5246 = vmax.xlane.f32.xlu0 %v5245_v30 }
0x13f9   : > { %5577 = vrot.lane.b32.xlu1 %v11486_v63, %s10028_s10 }
0x140c   : > { %5575 = vrot.lane.b32.xlu0 %v11473_v3, %s10028_s10 }
0x146b   : > { %v5238_v62 = vpop.xlane.xlu0 %5237 }
0x146c   : > { %v5256_v41 = vsub.f32 %v5208_v46, %v5238_v62 }
0x146e   : > { %v5266_v55 = vmul.f32 1.442695, %v5256_v41 }
0x146f   : > { %v5232_v39 = vpop.xlane.xlu0 %5231 }
0x1470   : > { %9451 = vpow2.f32 %v5266_v55  ;;  %v5254_v6 = vsub.f32 %v5200_v54, %v5232_v39  ;;  %v8858_v55 = vunpack.i.l.bf16 %v11676_v14 }
0x1472   : > { %v5262_v31 = vmul.f32 1.442695, %v5254_v6 }
0x1473   : > { %v5241_v3 = vpop.xlane.xlu0 %5240 }
0x1474   : > { %9453 = vpow2.f32 %v5262_v31  ;;  %v5257_v54 = vsub.f32 %v5211_v17, %v5241_v3  ;;  %v8859_v17 = vunpack.i.h.bf16 %v11676_v14  ;;  %v8864_v14 = vunpack.i.h.bf16 %v11679_v44 }
0x1475   : > { %v5253_v41 = vpop.xlane.xlu1 %5252 }
0x1476   : > { %v5268_v26 = vmul.f32 1.442695, %v5257_v54  ;;  %v5261_v39 = vsub.f32 %v5227_v33, %v5253_v41  ;;  %v8863_v33 = vunpack.i.l.bf16 %v11679_v44  ;;  %v11780_v41 = vadd.f32 %v11543_v28, %v11696_v45 }
0x1477   : > { %v5235_v46 = vpop.xlane.xlu0 %5234  ;;  %v11804_v45 = vadd.f32 %v11559_v9, %v11704_v60 }
0x1478   : > { %v5255_v7 = vsub.f32 %v5203_v32, %v5235_v46  ;;  %9455 = vpow2.f32 %v5268_v26  ;;  %v5276_v32 = vmul.f32 1.442695, %v5261_v39  ;;  %v11786_v39 = vadd.f32 %v11551_v34, %v11700_v29 }
0x147a   : > { %v11730_v12 = vpop.eup %9451  ;;  %v5264_v15 = vmul.f32 1.442695, %v5255_v7  ;;  %v4799_v28 = vsel %vm1041_vm1, %v11786_v39, -inf }
0x147b   : > { %v5284_v24 = vsel %vm1041_vm1, %v11730_v12, 0.0  ;;  %v5250_v5 = vpop.xlane.xlu0 %5249 }
0x147c   : > { %5285 = vadd.xlane.f32.xlu1 %v5284_v24  ;;  %v5260_v23 = vsub.f32 %v5224_v22, %v5250_v5  ;;  %9457 = vpow2.f32 %v5264_v15  ;;  %v8868_v5 = vunpack.i.l.bf16 %v11683_v52  ;;  %v8869_v15 = vunpack.i.h.bf16 %v11683_v52 }
0x147d   : > { %v11776_v52 = vadd.f32 %v11567_v4, %v11708_v1  ;;  %v11798_v4 = vadd.f32 %v11547_v48, %v11698_v36  ;;  %v4808_v48 = vsel %vm1041_vm1, %v11804_v45, -inf  ;;  %v11818_v36 = vadd.f32 %v11563_v43, %v11706_v47  ;;  %v5578_v1 = vpop.permute.xlu1 %5577 }
0x147e   : > { %v11734_v18 = vpop.eup %9453  ;;  %v5274_v30 = vmul.f32 1.442695, %v5260_v23 }
0x147f   : > { %v5278_v63 = vsel %vm1041_vm1, %v11734_v18, 0.0  ;;  %v5244_v51 = vpop.xlane.xlu0 %5243  ;;  %v4817_v29 = vsel %vm1041_vm1, %v11818_v36, -inf }
0x1480   : > { %5279 = vadd.xlane.f32.xlu0 %v5278_v63  ;;  %v5258_v62 = vsub.f32 %v5216_v19, %v5244_v51  ;;  %9459 = vpow2.f32 %v5274_v30  ;;  %v8873_v51 = vunpack.i.l.bf16 %v11687_v61 }
0x1482   : > { %v5270_v6 = vmul.f32 1.442695, %v5258_v62  ;;  %v11741_v31 = vpop.eup %9455  ;;  %v8874_v62 = vunpack.i.h.bf16 %v11687_v61  ;;  %v4796_v61 = vsel %vm1041_vm1, %v11780_v41, -inf }
0x1483   : > { %v5287_v22 = vsel %vm1041_vm1, %v11741_v31, 0.0 }
0x1484   : > { %9461 = vpow2.f32 %v5270_v6 }
0x1485   : > { %9463 = vpow2.f32 %v5276_v32 }
0x1486   : > { %v11746_v63 = vpop.eup %9457 }
0x1487   : > { %v5281_v3 = vsel %vm1041_vm1, %v11746_v63, 0.0 }
0x148a   : > { %v11751_v46 = vpop.eup %9459 }
0x148d   : > { %5579 = vrot.lane.b32.xlu1 %v11503_v57, %s10028_s10  ;;  %v5247_v57 = vpop.xlane.xlu0 %5246 }
0x148e   : > { %v5259_v24 = vsub.f32 %v5219_v10, %v5247_v57  ;;  %v5296_v10 = vsel %vm1041_vm1, %v11751_v46, 0.0  ;;  %v11756_v54 = vpop.eup %9461 }
0x148f   : > { %v5290_v26 = vsel %vm1041_vm1, %v11756_v54, 0.0  ;;  %v11761_v7 = vpop.eup %9463 }
0x1490   : > { %v5272_v19 = vmul.f32 1.442695, %v5259_v24  ;;  %v5299_v44 = vsel %vm1041_vm1, %v11761_v7, 0.0 }
0x1492   : > { %9465 = vpow2.f32 %v5272_v19 }
0x149c   : > { %v11766_v23 = vpop.eup %9465 }
0x149d   : > { %v5293_v30 = vsel %vm1041_vm1, %v11766_v23, 0.0 }
0x14ad   : > { %5541 = vxpose.xlu0.b32.start [1/8] (short) (narrow) %v8858_v55, 32  ;;  %v4811_v55 = vsel %vm1041_vm1, %v11776_v52, -inf }
0x14b1   : > { %5542 = vxpose.xlu0.b32.cont [2/8] (short) (narrow) %v8859_v17, 32  ;;  %5288 = vadd.xlane.f32.xlu1 %v5287_v22 }
0x14b5   : > { %5543 = vxpose.xlu0.b32.cont [3/8] (short) (narrow) %v8863_v33, 32  ;;  %5282 = vadd.xlane.f32.xlu1 %v5281_v3 }
0x14b9   : > { %5544 = vxpose.xlu0.b32.cont [4/8] (short) (narrow) %v8864_v14, 32  ;;  %5297 = vadd.xlane.f32.xlu1 %v5296_v10 }
0x14bd   : > { %5545 = vxpose.xlu0.b32.cont [5/8] (short) (narrow) %v8868_v5, 32  ;;  %5291 = vadd.xlane.f32.xlu1 %v5290_v26 }
0x14c1   : > { %5546 = vxpose.xlu0.b32.cont [6/8] (short) (narrow) %v8869_v15, 32  ;;  %5300 = vadd.xlane.f32.xlu1 %v5299_v44 }
0x14c5   : > { %5547 = vxpose.xlu0.b32.cont [7/8] (short) (narrow) %v8873_v51, 32  ;;  %5294 = vadd.xlane.f32.xlu1 %v5293_v30 }
0x14c9   : > { %5548 = vxpose.xlu0.b32.end [8/8] (short) (narrow) %v8874_v62, 32 }
0x14d6   : > { %5581 = vrot.lane.b32.xlu1 %v11514_v53, %s10028_s10  ;;  %v11792_v53 = vadd.f32 %v11540_v21, %v11694_v13  ;;  %v4805_v21 = vsel %vm1041_vm1, %v11798_v4, -inf  ;;  %v11810_v13 = vadd.f32 %v11555_v59, %v11702_v58  ;;  %v5576_v59 = vpop.permute.xlu0 %5575 }
0x14d8   : > { %v4802_v34 = vsel %vm1041_vm1, %v11792_v53, -inf  ;;  %v4814_v9 = vsel %vm1041_vm1, %v11810_v13, -inf }
0x14f6   : > { %4812 = vmax.xlane.f32.xlu0 %v4811_v55 }
0x14fa   : > { %4797 = vmax.xlane.f32.xlu1 %v4796_v61 }
0x14fe   : > { %4800 = vmax.xlane.f32.xlu1 %v4799_v28 }
0x1502   : > { %4803 = vmax.xlane.f32.xlu1 %v4802_v34 }
0x1506   : > { %4806 = vmax.xlane.f32.xlu1 %v4805_v21 }
0x1509   : > { %v5286_v17 = vpop.xlane.xlu1 %5285 }
0x150a   : > { %4809 = vmax.xlane.f32.xlu1 %v4808_v48 }
0x150c   : > { %4894 = vrot.lane.b32.xlu0 %v11488_v38, %s10026_s26 }
0x150d   : > { %v5280_v58 = vpop.xlane.xlu0 %5279  ;;  %v5580_v32 = vpop.permute.xlu1 %5579 }
0x150e   : > { %4815 = vmax.xlane.f32.xlu1 %v4814_v9 }
0x1512   : > { %4818 = vmax.xlane.f32.xlu1 %v4817_v29 }
0x152d   : > { %v5557_v60 = vpop.trf.xlu0 }
0x1531   : > { %v5558_v6 = vpop.trf.xlu0 }
0x1532   : > { %v5573_v57 = vpack.c.bf16 %v5558_v6, %v5557_v60 }
0x1534   : > { %8456 = vmatprep.subr.bf16.mxu1 %v5573_v57 }
0x1535   : > { %v5559_v22 = vpop.trf.xlu0 }
0x1539   : > { %v5560_v51 = vpop.trf.xlu0 }
0x153a   : > { %v5574_v61 = vpack.c.bf16 %v5560_v51, %v5559_v22 }
0x153e   : > { %v5289_v24 = vpop.xlane.xlu1 %5288 }
0x153f   : > { %9467 = vrcp.f32 %v5289_v24 }
0x1540   : > { %9469 = vrcp.f32 %v5280_v58 }
0x1541   : > { %9471 = vrcp.f32 %v5286_v17 }
0x1542   : > { %v5283_v43 = vpop.xlane.xlu1 %5282 }
0x1543   : > { %9473 = vrcp.f32 %v5283_v43 }
0x1546   : > { %v5298_v47 = vpop.xlane.xlu1 %5297 }
0x1549   : > { %v9468_v33 = vpop.eup %9467 }
0x154a   : > { %v5292_v19 = vpop.xlane.xlu1 %5291  ;;  %v9470_v3 = vpop.eup %9469  ;;  %v5313_v5 = vmul.f32 %v9468_v33, %v11741_v31 }
0x154b   : > { %v9472_v14 = vpop.eup %9471  ;;  %v5310_v15 = vmul.f32 %v9470_v3, %v11734_v18 }
0x154c   : > { %v5312_v30 = vmul.f32 %v9472_v14, %v11730_v12 }
0x154d   : > { %v9474_v10 = vpop.eup %9473 }
0x154e   : > { %v5301_v26 = vpop.xlane.xlu1 %5300  ;;  %v5311_v44 = vmul.f32 %v9474_v10, %v11746_v63  ;;  %v5319_v55 = vpack.c.bf16 %v5313_v5, %v5312_v30 }
0x154f   : > { %9475 = vrcp.f32 %v5301_v26 }
0x1550   : > { %v5318_v62 = vpack.c.bf16 %v5311_v44, %v5310_v15  ;;  %9477 = vrcp.f32 %v5292_v19 }
0x1551   : > { %9479 = vrcp.f32 %v5298_v47 }
0x1552   : > { %v5295_v28 = vpop.xlane.xlu1 %5294  ;;  %8436 = vmatprep.mubr.msk.bf16.mxu1 %vm1041_vm1, %v5318_v62 }
0x1553   : > { %9481 = vrcp.f32 %v5295_v28  ;;  %8437 = vmatmul.mubr.msk.bf16.vlgmr.msra.gmra.mrb[112].mxu1 %vm1041_vm1, %v5319_v55 }
0x1554   : > { %8457 = vmatpush3.bf16.msra.mxu1 %v5573_v57 }
0x1555   : > { %8458 = vmatprep.subr.bf16.mxu1 %v5574_v61 }
0x1556   : > { %v5582_v60 = vpop.permute.xlu1 %5581 }
0x1558   : > { %8459 = vmatpush3.bf16.msra.mxu1 %v5574_v61 }
0x1559   : > { %v9476_v18 = vpop.eup %9475 }
0x155a   : > { %v9478_v31 = vpop.eup %9477  ;;  %v5317_v12 = vmul.f32 %v9476_v18, %v11761_v7 }
0x155b   : > { %v9480_v63 = vpop.eup %9479  ;;  %v5314_v21 = vmul.f32 %v9478_v31, %v11756_v54 }
0x155c   : > { %v5316_v9 = vmul.f32 %v9480_v63, %v11751_v46 }
0x155d   : > { %v9482_v34 = vpop.eup %9481 }
0x155e   : > { %v5315_v48 = vmul.f32 %v9482_v34, %v11766_v23  ;;  %v5321_v58 = vpack.c.bf16 %v5317_v12, %v5316_v9 }
0x1560   : > { %v5320_v29 = vpack.c.bf16 %v5315_v48, %v5314_v21 }
0x1562   : > { %8440 = vmatprep.mubr.msk.bf16.mxu1 %vm1041_vm1, %v5320_v29 }
0x1563   : > { %8441 = vmatmul.mubr.msk.bf16.gmra.mrb[116].mxu1 %vm1041_vm1, %v5321_v58 }
0x1564   : > { %8460 = vmatprep.mubr.msk.bf16.mxu1 %vm963_vm0, %v5576_v59 }
0x156b   : > { %8461 = vmatmul.mubr.msk.bf16.vlgmr.msra.gmra.mrb[120].mxu1 %vm963_vm0, %v5578_v1 }
0x156c   : > { %8464 = vmatprep.mubr.msk.bf16.mxu1 %vm963_vm0, %v5580_v32 }
0x1573   : > { %8465 = vmatmul.mubr.msk.bf16.gmra.mrb[124].mxu1 %vm963_vm0, %v5582_v60 }
0x1574   : > { %6327 = vmatprep.mubr.bf16.mxu1 %v12545_v27 }
0x1583   : > { %v4813_v32 = vpop.xlane.xlu0 %4812 }
0x1584   : > { %v4825_v22 = vsub.f32 %v11776_v52, %v4813_v32 }
0x1586   : > { %v4838_v14 = vmul.f32 1.442695, %v4825_v22 }
0x1587   : > { %v4798_v54 = vpop.xlane.xlu1 %4797 }
0x1588   : > { %v4820_v46 = vsub.f32 %v11780_v41, %v4798_v54 }
0x158a   : > { %v4828_v7 = vmul.f32 1.442695, %v4820_v46 }
0x158b   : > { %v4801_v23 = vpop.xlane.xlu1 %4800 }
0x158c   : > { %9483 = vpow2.f32 %v4828_v7  ;;  %v4821_v6 = vsub.f32 %v11786_v39, %v4801_v23 }
0x158e   : > { %v4830_v57 = vmul.f32 1.442695, %v4821_v6 }
0x158f   : > { %v4804_v17 = vpop.xlane.xlu1 %4803 }
0x1590   : > { %9485 = vpow2.f32 %v4830_v57  ;;  %v4822_v59 = vsub.f32 %v11792_v53, %v4804_v17 }
0x1592   : > { %v4832_v1 = vmul.f32 1.442695, %v4822_v59 }
0x1593   : > { %v4807_v24 = vpop.xlane.xlu1 %4806 }
0x1594   : > { %9487 = vpow2.f32 %v4832_v1  ;;  %v4823_v43 = vsub.f32 %v11798_v4, %v4807_v24 }
0x1596   : > { %v9484_v47 = vpop.eup %9483  ;;  %v4834_v41 = vmul.f32 1.442695, %v4823_v43 }
0x1597   : > { %v4810_v33 = vpop.xlane.xlu1 %4809  ;;  %v4844_v19 = vsel %vm1041_vm1, %v9484_v47, 0.0 }
0x1598   : > { %9489 = vpow2.f32 %v4834_v41  ;;  %v4824_v39 = vsub.f32 %v11804_v45, %v4810_v33  ;;  %4845 = vadd.xlane.f32.xlu1 %v4844_v19 }
0x159a   : > { %v9486_v3 = vpop.eup %9485  ;;  %v4836_v53 = vmul.f32 1.442695, %v4824_v39 }
0x159b   : > { %v4816_v10 = vpop.xlane.xlu1 %4815  ;;  %v4847_v5 = vsel %vm1041_vm1, %v9486_v3, 0.0 }
0x159c   : > { %9491 = vpow2.f32 %v4836_v53  ;;  %v4826_v4 = vsub.f32 %v11810_v13, %v4816_v10  ;;  %4848 = vadd.xlane.f32.xlu1 %v4847_v5 }
0x159d   : > { %9493 = vpow2.f32 %v4838_v14 }
0x159e   : > { %v11850_v26 = vpop.eup %9487  ;;  %v4840_v52 = vmul.f32 1.442695, %v4826_v4  ;;  %v9724_v4 = vld [vmem:[#allocation5 + $0x10] sm:$0xff] }
0x159f   : > { %v4819_v15 = vpop.xlane.xlu1 %4818  ;;  %v4850_v44 = vsel %vm1041_vm1, %v11850_v26, 0.0 }
0x15a0   : > { %v4827_v45 = vsub.f32 %v11818_v36, %v4819_v15  ;;  %4851 = vadd.xlane.f32.xlu1 %v4850_v44  ;;  %9495 = vpow2.f32 %v4840_v52  ;;  %v9725_v15 = vld [vmem:[#allocation5 + $0x8] sm:$0xff] }
0x15a2   : > { %v11855_v51 = vpop.eup %9489  ;;  %v4842_v30 = vmul.f32 1.442695, %v4827_v45 }
0x15a3   : > { %v4853_v62 = vsel %vm1041_vm1, %v11855_v51, 0.0 }
0x15a4   : > { %4854 = vadd.xlane.f32.xlu1 %v4853_v62  ;;  %9497 = vpow2.f32 %v4842_v30 }
0x15a6   : > { %v11859_v13 = vpop.eup %9491 }
0x15a7   : > { %v4856_v55 = vsel %vm1041_vm1, %v11859_v13, 0.0  ;;  %v11863_v61 = vpop.eup %9493 }
0x15a8   : > { %4857 = vadd.xlane.f32.xlu1 %v4856_v55  ;;  %v4859_v36 = vsel %vm1041_vm1, %v11863_v61, 0.0  ;;  %v9726_v55 = vld [vmem:[#allocation5 + $0x18] sm:$0xff] }
0x15aa   : > { %v11867_v28 = vpop.eup %9495 }
0x15ab   : > { %v4862_v18 = vsel %vm1041_vm1, %v11867_v28, 0.0 }
0x15ac   : > { %4860 = vadd.xlane.f32.xlu1 %v4859_v36 }
0x15ae   : > { %v11871_v31 = vpop.eup %9497 }
0x15af   : > { %v4865_v63 = vsel %vm1041_vm1, %v11871_v31, 0.0 }
0x15b0   : > { %4863 = vadd.xlane.f32.xlu1 %v4862_v18 }
0x15b4   : > { %4866 = vadd.xlane.f32.xlu1 %v4865_v63 }
0x15c5   : > { %4892 = vrot.lane.b32.xlu1 %v11490_v0, %s10026_s26 }
0x15c9   : > { %4896 = vrot.lane.b32.xlu1 %v11518_v25, %s10026_s26 }
0x15cd   : > { %4898 = vrot.lane.b32.xlu1 %v11516_v42, %s10026_s26  ;;  %s9935_s26 = scalar_lea.vmem %s9934_s12, 2048 }
0x1625   : > { %v4846_v34 = vpop.xlane.xlu1 %4845 }
0x1626   : > { %v11881_v12 = vpop.f32.mrb[112].mxu1  ;;  %9499 = vrcp.f32 %v4846_v34  ;;  %v4895_v34 = vpop.permute.xlu0 %4894 }
0x1627   : > { %v11883_v21 = vpop.f32.mrb[113].mxu1 }
0x1628   : > { %v11885_v48 = vpop.f32.mrb[114].mxu1 }
0x1629   : > { %v5412_v9 = vpack.c.bf16 %v11885_v48, %v11881_v12  ;;  %v11889_v29 = vpop.f32.mrb[115].mxu1  ;;  %v4849_v58 = vpop.xlane.xlu1 %4848 }
0x162a   : > { %v5411_v60 = vpack.c.bf16 %v11889_v29, %v11883_v21  ;;  %9501 = vrcp.f32 %v4849_v58 }
0x162d   : > { %v4852_v54 = vpop.xlane.xlu1 %4851 }
0x1630   : > { %v9500_v7 = vpop.eup %9499 }
0x1631   : > { %v4855_v46 = vpop.xlane.xlu1 %4854  ;;  %v4876_v57 = vmul.f32 %v9500_v7, %v9484_v47 }
0x1632   : > { %9503 = vrcp.f32 %v4855_v46  ;;  %v9727_v46 = vld [vmem:[#allocation5 + $0x20] sm:$0xff] }
0x1634   : > { %v9502_v23 = vpop.eup %9501 }
0x1635   : > { %v4858_v6 = vpop.xlane.xlu1 %4857  ;;  %v4877_v17 = vmul.f32 %v9502_v23, %v9486_v3  ;;  %v9723_v3 = vld [vmem:[#allocation5] sm:$0xff] }
0x1636   : > { %v11893_v59 = vpop.f32.mrb[116].mxu1 }
0x1637   : > { %v11895_v1 = vpop.f32.mrb[117].mxu1  ;;  %v4884_v32 = vpack.c.bf16 %v4877_v17, %v4876_v57 }
0x1638   : > { %v11897_v24 = vpop.f32.mrb[118].mxu1 }
0x1639   : > { %v5414_v43 = vpack.c.bf16 %v11897_v24, %v11893_v59  ;;  %8396 = vmatprep.mubr.msk.bf16.mxu0 %vm1041_vm1, %v4884_v32  ;;  %v11902_v22 = vpop.f32.mrb[119].mxu1  ;;  %v4861_v41 = vpop.xlane.xlu1 %4860  ;;  %v9729_v32 = vld [vmem:[#allocation5 + $0x28] sm:$0xff] }
0x163a   : > { %v5413_v33 = vpack.c.bf16 %v11902_v22, %v11895_v1  ;;  %9505 = vrcp.f32 %v4861_v41 }
0x163b   : > { %9507 = vrcp.f32 %v4852_v54  ;;  %v9728_v54 = vld [vmem:[#allocation5 + $0x30] sm:$0xff] }
0x163c   : > { %9509 = vrcp.f32 %v4858_v6 }
0x163d   : > { %v4864_v47 = vpop.xlane.xlu1 %4863 }
0x163e   : > { %v8462_v19 = vpop.f32.mrb[120].mxu1 }
0x163f   : > { %v5629_v39 = vpop.f32.mrb[121].mxu1  ;;  %v11908_v52 = vadd.f32 %v9724_v4, %v8462_v19 }
0x1640   : > { %v11906_v14 = vadd.f32 %v9723_v3, %v5629_v39  ;;  %v8463_v53 = vpop.f32.mrb[122].mxu1  ;;  %v9504_v3 = vpop.eup %9503 }
0x1641   : > { %v5632_v10 = vpop.f32.mrb[123].mxu1  ;;  %v4867_v5 = vpop.xlane.xlu1 %4866  ;;  %v11916_v36 = vadd.f32 %v9726_v55, %v8463_v53  ;;  %v5666_v63 = vsel %vm1041_vm1, %v11908_v52, -inf  ;;  %v9730_v53 = vld [vmem:[#allocation5 + $0x38] sm:$0xff]  ;;  %v4879_v55 = vmul.f32 %v9504_v3, %v11855_v51 }
0x1642   : > { %v11910_v44 = vadd.f32 %v9725_v15, %v5632_v10  ;;  %v5660_v45 = vsel %vm1041_vm1, %v11906_v14, -inf  ;;  %9511 = vrcp.f32 %v4867_v5 }
0x1643   : > { %5661 = vmax.xlane.f32.xlu0 %v5660_v45  ;;  %v5669_v39 = vsel %vm1041_vm1, %v11916_v36, -inf  ;;  %9513 = vrcp.f32 %v4864_v47 }
0x1644   : > { %v5663_v30 = vsel %vm1041_vm1, %v11910_v44, -inf  ;;  %v9506_v45 = vpop.eup %9505 }
0x1645   : > { %5664 = vmax.xlane.f32.xlu1 %v5663_v30  ;;  %v4893_v62 = vpop.permute.xlu1 %4892  ;;  %v9508_v30 = vpop.eup %9507 }
0x1646   : > { %8388 = vmatprep.subr.bf16.mxu0 %v4893_v62  ;;  %v8466_v18 = vpop.f32.mrb[124].mxu1  ;;  %v9510_v5 = vpop.eup %9509 }
0x1647   : > { %v5645_v58 = vpop.f32.mrb[125].mxu1  ;;  %5667 = vmax.xlane.f32.xlu0 %v5666_v63  ;;  %8389 = vmatpush3.bf16.msra.mxu0 %v4893_v62  ;;  %v11922_v17 = vadd.f32 %v9728_v54, %v8466_v18  ;;  %v4881_v18 = vmul.f32 %v9506_v45, %v11863_v61  ;;  %v4878_v63 = vmul.f32 %v9508_v30, %v11850_v26  ;;  %v9029_v26 = vld [vmem:[#allocation10 + $0x50] sm:$0xff]   ;;  %v11951_v61 = vld [vmem:[#allocation10 + $0x60] sm:$0xff]  }
0x1648   : > { %v11920_v7 = vadd.f32 %v9727_v46, %v5645_v58  ;;  %8390 = vmatprep.subr.bf16.mxu0 %v4895_v34  ;;  %v8467_v23 = vpop.f32.mrb[126].mxu1 }
0x1649   : > { %v5648_v57 = vpop.f32.mrb[127].mxu1  ;;  %v4897_v19 = vpop.permute.xlu1 %4896  ;;  %v11930_v10 = vadd.f32 %v9730_v53, %v8467_v23  ;;  %v5678_v15 = vsel %vm1041_vm1, %v11922_v17, -inf  ;;  %v4885_v58 = vpack.c.bf16 %v4879_v55, %v4878_v63 }
0x164a   : > { %v11924_v41 = vadd.f32 %v9729_v32, %v5648_v57  ;;  %v5672_v6 = vsel %vm1041_vm1, %v11920_v7, -inf }
0x164b   : > { %5670 = vmax.xlane.f32.xlu0 %v5669_v39  ;;  %5673 = vmax.xlane.f32.xlu1 %v5672_v6  ;;  %v5681_v47 = vsel %vm1041_vm1, %v11930_v10, -inf }
0x164c   : > { %8391 = vmatpush3.bf16.msra.mxu0 %v4895_v34  ;;  %v5675_v4 = vsel %vm1041_vm1, %v11924_v41, -inf  ;;  %v4880_v34 = vmul.f32 %v9510_v5, %v11859_v13  ;;  %v9512_v46 = vpop.eup %9511  ;;  %v9030_v13 = vld [vmem:[#allocation10 + $0x58] sm:$0xff]  }
0x164d   : > { %8392 = vmatprep.subr.bf16.mxu0 %v4897_v19  ;;  %v4899_v62 = vpop.permute.xlu1 %4898  ;;  %v9514_v57 = vpop.eup %9513  ;;  %v4883_v51 = vmul.f32 %v9512_v46, %v11871_v31 }
0x164e   : > { %v4886_v23 = vpack.c.bf16 %v4881_v18, %v4880_v34  ;;  %v4882_v54 = vmul.f32 %v9514_v57, %v11867_v28 }
0x164f   : > { %5676 = vmax.xlane.f32.xlu0 %v5675_v4  ;;  %5679 = vmax.xlane.f32.xlu1 %v5678_v15 }
0x1650   : > { %8393 = vmatpush3.bf16.msra.mxu0 %v4897_v19  ;;  %v4887_v32 = vpack.c.bf16 %v4883_v51, %v4882_v54 }
0x1651   : > { %8394 = vmatprep.subr.bf16.mxu0 %v4899_v62 }
0x1653   : > { %5682 = vmax.xlane.f32.xlu0 %v5681_v47 }
0x1654   : > { %8395 = vmatpush3.bf16.msra.mxu0 %v4899_v62 }
0x1655   : > { %8404 = vmatprep.subr.bf16.mxu0 %v9029_v26 }
0x1657   : > { %8397 = vmatmul.mubr.msk.bf16.vlgmr.msra.gmra.mrb[112].mxu0 %vm1041_vm1, %v4885_v58 }
0x1658   : > { %8400 = vmatprep.mubr.msk.bf16.mxu0 %vm1041_vm1, %v4886_v23  ;;  %8405 = vmatpush3.bf16.msra.mxu0 %v9029_v26 }
0x1659   : > { %8406 = vmatprep.subr.bf16.mxu0 %v9030_v13 }
0x165c   : > { %8407 = vmatpush3.bf16.msra.mxu0 %v9030_v13 }
0x165d   : > { %8444 = vmatprep.subr.bf16.mxu0 %v11951_v61 }
0x165f   : > { %8401 = vmatmul.mubr.msk.bf16.gmra.mrb[116].mxu0 %vm1041_vm1, %v4887_v32 }
0x1660   : > { %5752 = vrot.lane.b32.xlu1 %v11490_v0, %s10028_s10 }
0x1664   : > { %5754 = vrot.lane.b32.xlu1 %v11488_v38, %s10028_s10 }
0x16d0   : > { %v5662_v28 = vpop.xlane.xlu0 %5661 }
0x16d1   : > { %v5684_v31 = vsub.f32 %v11906_v14, %v5662_v28 }
0x16d2   : > { %v5665_v19 = vpop.xlane.xlu1 %5664 }
0x16d3   : > { %v5692_v6 = vmul.f32 1.442695, %v5684_v31  ;;  %v5685_v38 = vsub.f32 %v11910_v44, %v5665_v19 }
0x16d4   : > { %v5668_v39 = vpop.xlane.xlu0 %5667 }
0x16d5   : > { %v5686_v0 = vsub.f32 %v11908_v52, %v5668_v39  ;;  %v5694_v45 = vmul.f32 1.442695, %v5685_v38 }
0x16d7   : > { %v5696_v3 = vmul.f32 1.442695, %v5686_v0 }
0x16d8   : > { %v5671_v53 = vpop.xlane.xlu0 %5670  ;;  %v5674_v4 = vpop.xlane.xlu1 %5673 }
0x16d9   : > { %9515 = vpow2.f32 %v5696_v3  ;;  %v5687_v15 = vsub.f32 %v11916_v36, %v5671_v53  ;;  %v5688_v52 = vsub.f32 %v11920_v7, %v5674_v4  ;;  %v9032_v4 = vld [vmem:[#allocation10 + $0x68] sm:$0xff]  }
0x16da   : > { %9517 = vpow2.f32 %v5692_v6 }
0x16db   : > { %v5698_v30 = vmul.f32 1.442695, %v5687_v15  ;;  %v5700_v18 = vmul.f32 1.442695, %v5688_v52 }
0x16dc   : > { %v5677_v62 = vpop.xlane.xlu0 %5676  ;;  %v5680_v5 = vpop.xlane.xlu1 %5679 }
0x16dd   : > { %9519 = vpow2.f32 %v5698_v30  ;;  %v5690_v14 = vsub.f32 %v11922_v17, %v5680_v5  ;;  %v5689_v17 = vsub.f32 %v11924_v41, %v5677_v62 }
0x16de   : > { %9521 = vpow2.f32 %v5694_v45 }
0x16df   : > { %v5704_v55 = vmul.f32 1.442695, %v5690_v14 }
0x16e0   : > { %v5683_v47 = vpop.xlane.xlu0 %5682 }
0x16e1   : > { %9523 = vpow2.f32 %v5704_v55  ;;  %v5691_v63 = vsub.f32 %v11930_v10, %v5683_v47  ;;  %v5702_v10 = vmul.f32 1.442695, %v5689_v17 }
0x16e2   : > { %9525 = vpow2.f32 %v5700_v18 }
0x16e3   : > { %v11960_v44 = vpop.eup %9515  ;;  %v5706_v7 = vmul.f32 1.442695, %v5691_v63 }
0x16e4   : > { %v5714_v36 = vsel %vm1041_vm1, %v11960_v44, 0.0  ;;  %v11965_v34 = vpop.eup %9517 }
0x16e5   : > { %5715 = vadd.xlane.f32.xlu1 %v5714_v36  ;;  %v5708_v23 = vsel %vm1041_vm1, %v11965_v34, 0.0  ;;  %9527 = vpow2.f32 %v5706_v7  ;;  %v9033_v36 = vld [vmem:[#allocation10 + $0x70] sm:$0xff]  }
0x16e6   : > { %9529 = vpow2.f32 %v5702_v10 }
0x16e7   : > { %v11967_v58 = vpop.eup %9519 }
0x16e8   : > { %v5717_v46 = vsel %vm1041_vm1, %v11967_v58, 0.0  ;;  %v11974_v57 = vpop.eup %9521 }
0x16e9   : > { %5718 = vadd.xlane.f32.xlu0 %v5717_v46  ;;  %5709 = vadd.xlane.f32.xlu1 %v5708_v23  ;;  %v5711_v51 = vsel %vm1041_vm1, %v11974_v57, 0.0 }
0x16eb   : > { %v11978_v54 = vpop.eup %9523 }
0x16ec   : > { %v5726_v41 = vsel %vm1041_vm1, %v11978_v54, 0.0  ;;  %v11982_v32 = vpop.eup %9525 }
0x16ed   : > { %5712 = vadd.xlane.f32.xlu0 %v5711_v51  ;;  %v5720_v26 = vsel %vm1041_vm1, %v11982_v32, 0.0 }
0x16ef   : > { %v11986_v13 = vpop.eup %9527 }
0x16f0   : > { %v5729_v28 = vsel %vm1041_vm1, %v11986_v13, 0.0  ;;  %v11990_v31 = vpop.eup %9529 }
0x16f1   : > { %5727 = vadd.xlane.f32.xlu0 %v5726_v41  ;;  %v5723_v19 = vsel %vm1041_vm1, %v11990_v31, 0.0 }
0x16f5   : > { %5721 = vadd.xlane.f32.xlu0 %v5720_v26 }
0x16f9   : > { %5730 = vadd.xlane.f32.xlu0 %v5729_v28  ;;  %v9034_v28 = vld [vmem:[#allocation10 + $0x78] sm:$0xff]  }
0x16fa   : > { %5758 = vrot.lane.b32.xlu1 %v11516_v42, %s10028_s10 }
0x16fd   : > { %5724 = vadd.xlane.f32.xlu0 %v5723_v19 }
0x1713   : > { %5756 = vrot.lane.b32.xlu0 %v11518_v25, %s10028_s10  ;;  %v5753_v25 = vpop.permute.xlu1 %5752  ;;  %s12399_s10 = scalar_lea.vmem [#allocation14], %s7400_s17  ;;  %s7783_s17 = sshll.u32 %s10108_s19, 10 }
0x1714   : > { %s7257_s22 = sshll.u32 %s12399_s10, 4  ;;  %s12430_s18 = scalar_lea.hbm %s12566_s28, %s7783_s17  ;;  %s12432_s22 = int_to_ptr.vmem [resolvable:$true] %s7257_s22 }
0x1715   : > { %s7244_s19 = scalar_lea.sflag [#allocation4], %s10335_s1  ;;  %s9929_s29 = scalar_lea.vmem %s12432_s22, 1024 }
0x1716   : > { %p9930_p2 = scmp.ne.s32.totalorder %s12432_s22, %s9929_s29  ;;  %p9936_p11 = scmp.lt.s32.totalorder %s12432_s22, %s9934_s12 }
0x1717   : > { %p9937_p12 = scmp.lt.s32.totalorder %s9935_s26, %s9929_s29 }
0x1718   : > { %p9931_p10 = pnand %p9930_p2, %p12567_p7 }
0x1719   : > { %p9938_p13 = por %p9937_p12, %p9936_p11 }
0x171a   : > { %p9932_p1 = pneg %p9931_p10 }
0x171c   : > { %p9939_p8 = pnand %p9938_p13, %p9932_p1 }
0x172a   : > { %v8398_v39 = vpop.f32.mrb[112].mxu0 }
0x172b   : > { %v4950_v0 = vpop.f32.mrb[113].mxu0 }
0x172c   : > { %v8399_v6 = vpop.f32.mrb[114].mxu0 }
0x172d   : > { %v4982_v38 = vpack.c.bf16 %v8399_v6, %v8398_v39  ;;  %v4953_v3 = vpop.f32.mrb[115].mxu0 }
0x172e   : > { %v4981_v53 = vpack.c.bf16 %v4953_v3, %v4950_v0 }
0x1730   : > { %8408 = vmatprep.mubr.msk.bf16.mxu0 %vm963_vm0, %v4981_v53 }
0x1731   : > { %8409 = vmatmul.mubr.msk.bf16.vlgmr.msra.gmra.mrb[104].mxu0 %vm963_vm0, %v4982_v38 }
0x1732   : > { %8445 = vmatpush3.bf16.msra.mxu0 %v11951_v61  ;;  %v8402_v42 = vpop.f32.mrb[116].mxu0  ;;  %v5755_v61 = vpop.permute.xlu1 %5754 }
0x1733   : > { %v4966_v15 = vpop.f32.mrb[117].mxu0  ;;  %8446 = vmatprep.subr.bf16.mxu0 %v9032_v4 }
0x1734   : > { %v8403_v45 = vpop.f32.mrb[118].mxu0 }
0x1735   : > { %v4984_v30 = vpack.c.bf16 %v8403_v45, %v8402_v42  ;;  %v4969_v62 = vpop.f32.mrb[119].mxu0  ;;  %v7631_v42 = vld [vmem:[#allocation7 + $0xa] ss:$0 sm:$0xff] }
0x1736   : > { %v4983_v5 = vpack.c.bf16 %v4969_v62, %v4966_v15  ;;  %8447 = vmatpush3.bf16.msra.mxu0 %v9032_v4 }
0x1737   : > { %8468 = vmatprep.subr.bf16.mxu0 %v5753_v25 }
0x1738   : > { %8412 = vmatprep.mubr.msk.bf16.mxu0 %vm963_vm0, %v4983_v5 }
0x1739   : > { %8413 = vmatmul.mubr.msk.bf16.gmra.mrb[108].mxu0 %vm963_vm0, %v4984_v30 }
0x173a   : > { %8448 = vmatprep.mubr.msk.bf16.mxu0 %vm963_vm0, %v5411_v60 }
0x1741   : > { %8449 = vmatmul.mubr.msk.bf16.vlgmr.msra.gmra.mrb[104].mxu0 %vm963_vm0, %v5412_v9 }
0x1742   : > { %8469 = vmatpush3.bf16.msra.mxu0 %v5753_v25  ;;  %8452 = vmatprep.mubr.msk.bf16.mxu0 %vm963_vm0, %v5413_v33 }
0x1743   : > { %8470 = vmatprep.subr.bf16.mxu0 %v5755_v61 }
0x1746   : > { %8471 = vmatpush3.bf16.msra.mxu0 %v5755_v61 }
0x1749   : > { %8453 = vmatmul.mubr.msk.bf16.gmra.mrb[108].mxu0 %vm963_vm0, %v5414_v43 }
0x1772   : > { %v5716_v21 = vpop.xlane.xlu1 %5715 }
0x1776   : > { %v5719_v29 = vpop.xlane.xlu0 %5718  ;;  %v5710_v60 = vpop.xlane.xlu1 %5709 }
0x1777   : > { %9531 = vrcp.f32 %v5710_v60 }
0x177a   : > { %v5713_v12 = vpop.xlane.xlu0 %5712  ;;  %v5759_v18 = vpop.permute.xlu1 %5758 }
0x177b   : > { %9533 = vrcp.f32 %v5713_v12 }
0x177c   : > { %9535 = vrcp.f32 %v5719_v29 }
0x177d   : > { %9537 = vrcp.f32 %v5716_v21 }
0x177e   : > { %v5728_v48 = vpop.xlane.xlu0 %5727 }
0x1781   : > { %v9532_v14 = vpop.eup %9531 }
0x1782   : > { %v5722_v9 = vpop.xlane.xlu0 %5721  ;;  %v5740_v33 = vmul.f32 %v9532_v14, %v11965_v34 }
0x1783   : > { %9539 = vrcp.f32 %v5722_v9 }
0x1785   : > { %v9534_v1 = vpop.eup %9533 }
0x1786   : > { %v5731_v22 = vpop.xlane.xlu0 %5730  ;;  %v5741_v52 = vmul.f32 %v9534_v1, %v11974_v57  ;;  %v9536_v43 = vpop.eup %9535 }
0x1787   : > { %v9538_v47 = vpop.eup %9537  ;;  %v5743_v63 = vmul.f32 %v9536_v43, %v11967_v58  ;;  %v9037_v43 = vld [vmem:[#allocation11 + $0x104] ss:$16 sps:$4 sm:$0xff]  }
0x1788   : > { %v5748_v59 = vpack.c.bf16 %v5741_v52, %v5740_v33  ;;  %v5742_v17 = vmul.f32 %v9538_v47, %v11960_v44  ;;  %v9040_v47 = vld [vmem:[#allocation11 + $0x10c] ss:$16 sps:$4 sm:$0xff]   ;;  %6295 = vmatprep.subr.bf16.mxu1 %v9037_v43 }
0x1789   : > { %v9070_v43 = vld [vmem:[#allocation11 + $0x1ac] ss:$16 sps:$4 sm:$0xff]  }
0x178a   : > { %v5725_v24 = vpop.xlane.xlu0 %5724  ;;  %8476 = vmatprep.mubr.msk.bf16.mxu0 %vm1041_vm1, %v5748_v59  ;;  %v5749_v46 = vpack.c.bf16 %v5743_v63, %v5742_v17  ;;  %v9044_v63 = vld [vmem:[#allocation11 + $0x128] ss:$16 sps:$4 sm:$0xff]  }
0x178b   : > { %9541 = vrcp.f32 %v5725_v24 }
0x178c   : > { %9543 = vrcp.f32 %v5731_v22 }
0x178d   : > { %9545 = vrcp.f32 %v5728_v48  ;;  %v9540_v34 = vpop.eup %9539 }
0x178e   : > { %v5757_v55 = vpop.permute.xlu0 %5756  ;;  %v5744_v57 = vmul.f32 %v9540_v34, %v11982_v32 }
0x178f   : > { %8472 = vmatprep.subr.bf16.mxu0 %v5757_v55 }
0x1790   : > { %8473 = vmatpush3.bf16.msra.mxu0 %v5757_v55  ;;  %v9038_v55 = vld [vmem:[#allocation11 + $0x108] ss:$16 sps:$4 sm:$0xff]  }
0x1791   : > { %8474 = vmatprep.subr.bf16.mxu0 %v5759_v18 }
0x1794   : > { %8475 = vmatpush3.bf16.msra.mxu0 %v5759_v18  ;;  %v9046_v18 = vld [vmem:[#allocation11 + $0x12c] ss:$16 sps:$4 sm:$0xff]  }
0x1795   : > { %v9542_v7 = vpop.eup %9541  ;;  %8484 = vmatprep.subr.bf16.mxu0 %v9033_v36 }
0x1796   : > { %v9544_v23 = vpop.eup %9543  ;;  %v5745_v10 = vmul.f32 %v9542_v7, %v11990_v31 }
0x1797   : > { %8477 = vmatmul.mubr.msk.bf16.vlgmr.msra.gmra.mrb[120].mxu0 %vm1041_vm1, %v5749_v46  ;;  %v9546_v51 = vpop.eup %9545  ;;  %v5747_v58 = vmul.f32 %v9544_v23, %v11986_v13 }
0x1798   : > { %v5750_v41 = vpack.c.bf16 %v5745_v10, %v5744_v57  ;;  %8485 = vmatpush3.bf16.msra.mxu0 %v9033_v36  ;;  %v5746_v44 = vmul.f32 %v9546_v51, %v11978_v54 }
0x1799   : > { %8486 = vmatprep.subr.bf16.mxu0 %v9034_v28 }
0x179a   : > { %8480 = vmatprep.mubr.msk.bf16.mxu0 %vm1041_vm1, %v5750_v41  ;;  %v5751_v26 = vpack.c.bf16 %v5747_v58, %v5746_v44 }
0x179c   : > { %8487 = vmatpush3.bf16.msra.mxu0 %v9034_v28 }
0x179d   : > { %6368 = vmatprep.subr.bf16.mxu0 %v9040_v47  ;;  %v9068_v47 = vld [vmem:[#allocation11 + $0x1a8] ss:$16 sps:$4 sm:$0xff]  }
0x179f   : > { %8481 = vmatmul.mubr.msk.bf16.gmra.mrb[124].mxu0 %vm1041_vm1, %v5751_v26 }
0x186a   : > { %v8478_v32 = vpop.f32.mrb[120].mxu0 }
0x186b   : > { %v5810_v19 = vpop.f32.mrb[121].mxu0 }
0x186c   : > { %v8479_v31 = vpop.f32.mrb[122].mxu0 }
0x186d   : > { %v5842_v39 = vpack.c.bf16 %v8479_v31, %v8478_v32  ;;  %v5813_v0 = vpop.f32.mrb[123].mxu0 }
0x186e   : > { %v5841_v6 = vpack.c.bf16 %v5813_v0, %v5810_v19 }
0x1870   : > { %8488 = vmatprep.mubr.msk.bf16.mxu0 %vm963_vm0, %v5841_v6 }
0x1871   : > { %8489 = vmatmul.mubr.msk.bf16.vlgmr.msra.gmra.mrb[104].mxu0 %vm963_vm0, %v5842_v39 }
0x1872   : > { %v8482_v13 = vpop.f32.mrb[124].mxu0  ;;  %6369 = vmatpush1.bf16.msra.mxu0 %v9038_v55  ;;  %v9065_v55 = vld [vmem:[#allocation11 + $0x1a0] ss:$16 sps:$4 sm:$0xff]  }
0x1873   : > { %v5826_v38 = vpop.f32.mrb[125].mxu0  ;;  %6370 = vmatprep.subr.bf16.mxu0 %v9046_v18  ;;  %v9076_v18 = vld [vmem:[#allocation11 + $0x1cc] ss:$16 sps:$4 sm:$0xff]  }
0x1874   : > { %v8483_v3 = vpop.f32.mrb[126].mxu0 }
0x1875   : > { %v5844_v54 = vpack.c.bf16 %v8483_v3, %v8482_v13  ;;  %v5829_v53 = vpop.f32.mrb[127].mxu0 }
0x1876   : > { %v5843_v4 = vpack.c.bf16 %v5829_v53, %v5826_v38  ;;  %6371 = vmatpush1.bf16.msra.mxu0 %v9044_v63  ;;  %v9074_v63 = vld [vmem:[#allocation11 + $0x1c8] ss:$16 sps:$4 sm:$0xff]  }
0x1878   : > { %8492 = vmatprep.mubr.msk.bf16.mxu0 %vm963_vm0, %v5843_v4 }
0x1879   : > { %8493 = vmatmul.mubr.msk.bf16.gmra.mrb[108].mxu0 %vm963_vm0, %v5844_v54 }
0x187a   : > { %6400 = vmatprep.mubr.bf16.mxu0 %v12545_v27 }
0x1944   : > { %v8490_v15 = vpop.f32.mrb[104].mxu0 }
0x1945   : > { %v5908_v45 = vpop.f32.mrb[105].mxu0  ;;  %v8504_v5 = vadd.f32 %v8490_v15, %v7631_v42 }
0x1946   : > { %v8505_v30 = vadd.f32 %v7631_v42, %v5908_v45  ;;  %v8491_v62 = vpop.f32.mrb[106].mxu0 }
0x1947   : > { %v5911_v25 = vpop.f32.mrb[107].mxu0  ;;  %v12044_v60 = vadd.f32 %v8504_v5, %v11372_v20  ;;  %v8506_v12 = vadd.f32 %v8491_v62, %v7631_v42  ;;  %v9052_v5 = vld [vmem:[#allocation11 + $0x14c] ss:$16 sps:$4 sm:$0xff]  }
0x1948   : > { %v12037_v61 = vadd.f32 %v8505_v30, %v11362_v50  ;;  %v8507_v21 = vadd.f32 %v7631_v42, %v5911_v25  ;;  %v9049_v25 = vld [vmem:[#allocation11 + $0x144] ss:$16 sps:$4 sm:$0xff]   ;;  %6372 = vmatprep.subr.bf16.mxu0 %v9052_v5 }
0x1949   : > { %v12049_v50 = vadd.f32 %v8506_v12, %v11376_v2  ;;  %v9050_v12 = vld [vmem:[#allocation11 + $0x148] ss:$16 sps:$4 sm:$0xff]  }
0x194a   : > { %v12040_v29 = vadd.f32 %v8507_v21, %v11366_v37  ;;  %5959 = vadd.xlane.f32.xlu1 %v12037_v61  ;;  %v9047_v21 = vld [vmem:[#allocation11 + $0x140] ss:$16 sps:$4 sm:$0xff]   ;;  %6373 = vmatpush1.bf16.msra.mxu0 %v9050_v12 }
0x194b   : > { %12554 = vst [vmem:[#allocation24_spill] sm:$0xff] %v12049_v50 }
0x194c   : > { %5961 = vadd.xlane.f32.xlu0 %v12040_v29  ;;  %v8494_v48 = vpop.f32.mrb[108].mxu0 }
0x194d   : > { %v5924_v9 = vpop.f32.mrb[109].mxu0  ;;  %v8508_v20 = vadd.f32 %v8494_v48, %v7631_v42  ;;  %v9055_v48 = vld [vmem:[#allocation11 + $0x164] ss:$16 sps:$4 sm:$0xff]  }
0x194e   : > { %5963 = vadd.xlane.f32.xlu1 %v12044_v60  ;;  %v8495_v14 = vpop.f32.mrb[110].mxu0  ;;  %v8509_v22 = vadd.f32 %v7631_v42, %v5924_v9  ;;  %v9058_v9 = vld [vmem:[#allocation11 + $0x16c] ss:$16 sps:$4 sm:$0xff]  }
0x194f   : > { %v5927_v1 = vpop.f32.mrb[111].mxu0  ;;  %v8510_v33 = vadd.f32 %v8495_v14, %v7631_v42  ;;  %v12064_v2 = vadd.f32 %v8508_v20, %v11392_v49  ;;  %v9053_v14 = vld [vmem:[#allocation11 + $0x160] ss:$16 sps:$4 sm:$0xff]   ;;  %6374 = vmatprep.subr.bf16.mxu0 %v9058_v9  ;;  %v9062_v20 = vld [vmem:[#allocation11 + $0x188] ss:$16 sps:$4 sm:$0xff]  }
0x1950   : > { %v8511_v37 = vadd.f32 %v7631_v42, %v5927_v1  ;;  %v12056_v59 = vadd.f32 %v8509_v22, %v11382_v11  ;;  %v9043_v11 = vld [vmem:[#allocation11 + $0x124] ss:$16 sps:$4 sm:$0xff]   ;;  %v9056_v1 = vld [vmem:[#allocation11 + $0x168] ss:$16 sps:$4 sm:$0xff]  }
0x1951   : > { %v12060_v24 = vadd.f32 %v8510_v33, %v11396_v56  ;;  %12558 = vst [vmem:[#allocation27_spill] sm:$0xff] %v12064_v2  ;;  %v9041_v56 = vld [vmem:[#allocation11 + $0x120] ss:$16 sps:$4 sm:$0xff]   ;;  %6375 = vmatpush1.bf16.msra.mxu0 %v9056_v1  ;;  %v9061_v22 = vld [vmem:[#allocation11 + $0x184] ss:$16 sps:$4 sm:$0xff]  }
0x1952   : > { %v12052_v52 = vadd.f32 %v8511_v37, %v11386_v8  ;;  %5965 = vadd.xlane.f32.xlu1 %v12049_v50  ;;  %12556 = vst [vmem:[#allocation25_spill] sm:$0xff] %v12056_v59  ;;  %v9035_v8 = vld [vmem:[#allocation11 + $0x100] ss:$16 sps:$4 sm:$0xff]   ;;  %v9064_v37 = vld [vmem:[#allocation11 + $0x18c] ss:$16 sps:$4 sm:$0xff]  }
0x1953   : > { %12557 = vst [vmem:[#allocation28_spill] sm:$0xff] %v12060_v24  ;;  %6296 = vmatpush1.bf16.msra.mxu1 %v9035_v8  ;;  %v9059_v33 = vld [vmem:[#allocation11 + $0x180] ss:$16 sps:$4 sm:$0xff]   ;;  %6376 = vmatprep.subr.bf16.mxu0 %v9064_v37  ;;  %v9067_v8 = vld [vmem:[#allocation11 + $0x1a4] ss:$16 sps:$4 sm:$0xff]  }
0x1954   : > { %12555 = vst [vmem:[#allocation26_spill] sm:$0xff] %v12052_v52  ;;  %5969 = vadd.xlane.f32.xlu0 %v12052_v52  ;;  %6297 = vmatprep.subr.bf16.mxu1 %v9043_v11  ;;  %v9073_v11 = vld [vmem:[#allocation11 + $0x1c4] ss:$16 sps:$4 sm:$0xff]  }
0x1955   : > { %6377 = vmatpush1.bf16.msra.mxu0 %v9062_v20  ;;  %v7675_v20 = vld [vmem:[#allocation7 + $0x9] ss:$0 sm:$0xff] }
0x1956   : > { %5967 = vadd.xlane.f32.xlu1 %v12056_v59  ;;  %6378 = vmatprep.subr.bf16.mxu0 %v9070_v43 }
0x1957   : > { %6298 = vmatpush1.bf16.msra.mxu1 %v9041_v56  ;;  %v9071_v56 = vld [vmem:[#allocation11 + $0x1c0] ss:$16 sps:$4 sm:$0xff]  }
0x1958   : > { %5973 = vadd.xlane.f32.xlu0 %v12060_v24  ;;  %6299 = vmatprep.subr.bf16.mxu1 %v9049_v25 }
0x1959   : > { %6379 = vmatpush1.bf16.msra.mxu0 %v9068_v47 }
0x195a   : > { %5971 = vadd.xlane.f32.xlu1 %v12064_v2  ;;  %6380 = vmatprep.subr.bf16.mxu0 %v9076_v18 }
0x195b   : > { %6300 = vmatpush1.bf16.msra.mxu1 %v9047_v21 }
0x195c   : > { %6301 = vmatprep.subr.bf16.mxu1 %v9055_v48 }
0x195d   : > { %6381 = vmatpush1.bf16.msra.mxu0 %v9074_v63 }
0x195f   : > { %6302 = vmatpush1.bf16.msra.mxu1 %v9053_v14 }
0x1960   : > { %6303 = vmatprep.subr.bf16.mxu1 %v9061_v22 }
0x1963   : > { %6304 = vmatpush1.bf16.msra.mxu1 %v9059_v33 }
0x1964   : > { %6305 = vmatprep.subr.bf16.mxu1 %v9067_v8 }
0x1967   : > { %6306 = vmatpush1.bf16.msra.mxu1 %v9065_v55 }
0x1968   : > { %6307 = vmatprep.subr.bf16.mxu1 %v9073_v11 }
0x196b   : > { %6308 = vmatpush1.bf16.msra.mxu1 %v9071_v56 }
0x19d7   : > { %v5960_v49 = vpop.xlane.xlu1 %5959 }
0x19d8   : > { %v5975_v36 = vmul.f32 0.0078125, %v5960_v49  ;;  %v9077_v49 = vld [vmem:[#allocation11 + $0x1e0] ss:$16 sps:$4 sm:$0xff]  }
0x19d9   : > { %v5962_v34 = vpop.xlane.xlu0 %5961 }
0x19da   : > { %v12069_v17 = vsub.f32 %v12037_v61, %v5975_v36  ;;  %v5976_v7 = vmul.f32 0.0078125, %v5962_v34  ;;  %v9079_v36 = vld [vmem:[#allocation11 + $0x1e4] ss:$16 sps:$4 sm:$0xff]   ;;  %v9080_v34 = vld [vmem:[#allocation11 + $0x1e8] ss:$16 sps:$4 sm:$0xff]  }
0x19db   : > { %v5964_v46 = vpop.xlane.xlu1 %5963  ;;  %6309 = vmatprep.subr.bf16.mxu1 %v9079_v36 }
0x19dc   : > { %v12072_v23 = vsub.f32 %v12040_v29, %v5976_v7  ;;  %v5977_v57 = vmul.f32 0.0078125, %v5964_v46  ;;  %v5991_v10 = vmul.f32 %v12069_v17, %v12069_v17  ;;  %v9082_v7 = vld [vmem:[#allocation11 + $0x1ec] ss:$16 sps:$4 sm:$0xff]   ;;  %6310 = vmatpush1.bf16.msra.mxu1 %v9077_v49 }
0x19dd   : > { %6382 = vmatprep.subr.bf16.mxu0 %v9082_v7 }
0x19de   : > { %v12077_v51 = vsub.f32 %v12044_v60, %v5977_v57  ;;  %5999 = vadd.xlane.f32.xlu1 %v5991_v10  ;;  %v5992_v41 = vmul.f32 %v12072_v23, %v12072_v23  ;;  %6383 = vmatpush1.bf16.msra.mxu0 %v9080_v34 }
0x19df   : > { %v5966_v58 = vpop.xlane.xlu1 %5965 }
0x19e0   : > { %v5978_v44 = vmul.f32 0.0078125, %v5966_v58  ;;  %6001 = vadd.xlane.f32.xlu0 %v5992_v41  ;;  %v5993_v26 = vmul.f32 %v12077_v51, %v12077_v51 }
0x19e1   : > { %v5970_v28 = vpop.xlane.xlu0 %5969 }
0x19e2   : > { %v12084_v32 = vsub.f32 %v12049_v50, %v5978_v44  ;;  %v5980_v19 = vmul.f32 0.0078125, %v5970_v28  ;;  %6003 = vadd.xlane.f32.xlu1 %v5993_v26 }
0x19e3   : > { %v5968_v31 = vpop.xlane.xlu1 %5967 }
0x19e4   : > { %v12087_v39 = vsub.f32 %v12052_v52, %v5980_v19  ;;  %v5979_v0 = vmul.f32 0.0078125, %v5968_v31  ;;  %v5994_v6 = vmul.f32 %v12084_v32, %v12084_v32 }
0x19e5   : > { %v5974_v13 = vpop.xlane.xlu0 %5973 }
0x19e6   : > { %v12092_v38 = vsub.f32 %v12056_v59, %v5979_v0  ;;  %v5982_v3 = vmul.f32 0.0078125, %v5974_v13  ;;  %6005 = vadd.xlane.f32.xlu0 %v5994_v6  ;;  %v5996_v15 = vmul.f32 %v12087_v39, %v12087_v39 }
0x19e7   : > { %v5972_v54 = vpop.xlane.xlu1 %5971 }
0x19e8   : > { %v12095_v53 = vsub.f32 %v12060_v24, %v5982_v3  ;;  %v5981_v4 = vmul.f32 0.0078125, %v5972_v54  ;;  %v5995_v42 = vmul.f32 %v12092_v38, %v12092_v38 }
0x19ea   : > { %v12102_v45 = vsub.f32 %v12064_v2, %v5981_v4  ;;  %6007 = vadd.xlane.f32.xlu1 %v5995_v42  ;;  %6009 = vadd.xlane.f32.xlu0 %v5996_v15  ;;  %v5998_v62 = vmul.f32 %v12095_v53, %v12095_v53  ;;  %v7674_v15 = vld [vmem:[#allocation7 + $0x8] ss:$0 sm:$0xff] }
0x19ec   : > { %v5997_v30 = vmul.f32 %v12102_v45, %v12102_v45 }
0x19ee   : > { %6011 = vadd.xlane.f32.xlu1 %v5997_v30  ;;  %6013 = vadd.xlane.f32.xlu0 %v5998_v62 }
0x1a6b   : > { %v6000_v46 = vpop.xlane.xlu1 %5999 }
0x1a6c   : > { %v6015_v57 = vmul.f32 0.0078125, %v6000_v46 }
0x1a6d   : > { %v6002_v10 = vpop.xlane.xlu0 %6001 }
0x1a6e   : > { %v6023_v41 = vadd.f32 1e-05, %v6015_v57  ;;  %v6016_v58 = vmul.f32 0.0078125, %v6002_v10 }
0x1a6f   : > { %v6004_v44 = vpop.xlane.xlu1 %6003 }
0x1a70   : > { %9547 = vrsqrt.f32 %v6023_v41  ;;  %v6024_v26 = vadd.f32 1e-05, %v6016_v58  ;;  %v6017_v28 = vmul.f32 0.0078125, %v6004_v44 }
0x1a72   : > { %9549 = vrsqrt.f32 %v6024_v26  ;;  %v6025_v19 = vadd.f32 1e-05, %v6017_v28 }
0x1a73   : > { %v6006_v31 = vpop.xlane.xlu0 %6005 }
0x1a74   : > { %9551 = vrsqrt.f32 %v6025_v19  ;;  %v6018_v0 = vmul.f32 0.0078125, %v6006_v31 }
0x1a76   : > { %v6026_v6 = vadd.f32 1e-05, %v6018_v0 }
0x1a77   : > { %v6008_v13 = vpop.xlane.xlu1 %6007  ;;  %v6010_v3 = vpop.xlane.xlu0 %6009 }
0x1a78   : > { %9553 = vrsqrt.f32 %v6026_v6  ;;  %v6019_v54 = vmul.f32 0.0078125, %v6008_v13  ;;  %v6020_v4 = vmul.f32 0.0078125, %v6010_v3  ;;  %v9083_v13 = vld [vmem:[#allocation13 + $0x140] sm:$0xff]  }
0x1a79   : > { %v9084_v3 = vld [vmem:[#allocation13 + $0x1c0] sm:$0xff]   ;;  %8048 = vmatprep.subr.bf16.mxu1 %v9083_v13 }
0x1a7a   : > { %v9548_v42 = vpop.eup %9547  ;;  %v6027_v30 = vadd.f32 1e-05, %v6019_v54  ;;  %v6028_v62 = vadd.f32 1e-05, %v6020_v4  ;;  %v9085_v54 = vld [vmem:[#allocation13 + $0x100] sm:$0xff]   ;;  %8088 = vmatprep.subr.bf16.mxu0 %v9084_v3  ;;  %v9088_v4 = vld [vmem:[#allocation13 + $0x1c8] sm:$0xff]  }
0x1a7b   : > { %v6039_v25 = vmul.f32 %v9548_v42, %v12069_v17  ;;  %v6012_v5 = vpop.xlane.xlu1 %6011  ;;  %v6014_v21 = vpop.xlane.xlu0 %6013  ;;  %v9089_v42 = vld [vmem:[#allocation13 + $0x108] sm:$0xff]  }
0x1a7c   : > { %v9550_v12 = vpop.eup %9549  ;;  %9555 = vrsqrt.f32 %v6027_v30  ;;  %v6021_v48 = vmul.f32 0.0078125, %v6012_v5  ;;  %v6022_v9 = vmul.f32 0.0078125, %v6014_v21  ;;  %v9092_v30 = vld [vmem:[#allocation13 + $0x1d0] sm:$0xff]   ;;  %v9095_v5 = vld [vmem:[#allocation13 + $0x158] sm:$0xff]  }
0x1a7d   : > { %v6053_v14 = vmul.f32 %v7674_v15, %v6039_v25  ;;  %v6040_v1 = vmul.f32 %v9550_v12, %v12072_v23  ;;  %9557 = vrsqrt.f32 %v6028_v62  ;;  %v9093_v62 = vld [vmem:[#allocation13 + $0x110] sm:$0xff]   ;;  %v9096_v21 = vld [vmem:[#allocation13 + $0x1d8] sm:$0xff]  }
0x1a7e   : > { %v9552_v22 = vpop.eup %9551  ;;  %v6029_v37 = vadd.f32 1e-05, %v6021_v48  ;;  %v6030_v33 = vadd.f32 1e-05, %v6022_v9  ;;  %v9094_v25 = vld [vmem:[#allocation13 + $0x190] sm:$0xff]   ;;  %v9097_v12 = vld [vmem:[#allocation13 + $0x118] sm:$0xff]  }
0x1a7f   : > { %v6054_v8 = vmul.f32 %v7674_v15, %v6040_v1  ;;  %v6067_v43 = vadd.f32 %v7675_v20, %v6053_v14  ;;  %v6041_v17 = vmul.f32 %v9552_v22, %v12077_v51  ;;  %v9098_v48 = vld [vmem:[#allocation13 + $0x198] sm:$0xff]   ;;  %v9099_v9 = vld [vmem:[#allocation13 + $0x160] sm:$0xff]  }
0x1a80   : > { %9559 = vrsqrt.f32 %v6029_v37  ;;  %v9100_v14 = vld [vmem:[#allocation13 + $0x1e0] sm:$0xff]   ;;  %v9103_v37 = vld [vmem:[#allocation13 + $0x168] sm:$0xff]  }
0x1a81   : > { %v6068_v55 = vadd.f32 %v7675_v20, %v6054_v8  ;;  %9561 = vrsqrt.f32 %v6030_v33  ;;  %v6055_v56 = vmul.f32 %v7674_v15, %v6041_v17  ;;  %v9101_v1 = vld [vmem:[#allocation13 + $0x120] sm:$0xff]   ;;  %v9104_v33 = vld [vmem:[#allocation13 + $0x1e8] sm:$0xff]   ;;  %v9109_v17 = vld [vmem:[#allocation13 + $0x130] sm:$0xff]  }
0x1a82   : > { %v9554_v47 = vpop.eup %9553  ;;  %v9102_v22 = vld [vmem:[#allocation13 + $0x1a0] sm:$0xff]   ;;  %v9106_v8 = vld [vmem:[#allocation13 + $0x1a8] sm:$0xff]  }
0x1a83   : > { %v6075_v11 = vpack.c.bf16 %v6068_v55, %v6067_v43  ;;  %v6042_v18 = vmul.f32 %v9554_v47, %v12084_v32  ;;  %v6069_v7 = vadd.f32 %v7675_v20, %v6055_v56  ;;  %v9107_v43 = vld [vmem:[#allocation13 + $0x170] sm:$0xff]   ;;  %v9113_v56 = vld [vmem:[#allocation13 + $0x138] sm:$0xff]  }
0x1a84   : > { %v9108_v55 = vld [vmem:[#allocation13 + $0x1f0] sm:$0xff]  }
0x1a85   : > { %6328 = vmatmul.mubr.bf16.vlgmr.msra.gmra.mrb[128].mxu1 %v6075_v11  ;;  %6401 = vmatmul.mubr.bf16.vlgmr.msra.gmra.mrb[128].mxu0 %v6075_v11  ;;  %v6056_v23 = vmul.f32 %v7674_v15, %v6042_v18  ;;  %v9110_v47 = vld [vmem:[#allocation13 + $0x1b0] sm:$0xff]   ;;  %v9111_v11 = vld [vmem:[#allocation13 + $0x178] sm:$0xff]  }
0x1a86   : > { %v9556_v63 = vpop.eup %9555  ;;  %6337 = vmatprep.mubr.bf16.mxu1 %v12545_v27  ;;  %6410 = vmatprep.mubr.bf16.mxu0 %v12545_v27  ;;  %v9112_v18 = vld [vmem:[#allocation13 + $0x1f8] sm:$0xff]  }
0x1a87   : > { %v9558_v49 = vpop.eup %9557  ;;  %v6070_v36 = vadd.f32 %v7675_v20, %v6056_v23  ;;  %v6043_v34 = vmul.f32 %v9556_v63, %v12092_v38  ;;  %8049 = vmatpush3.bf16.msra.mxu1 %v9085_v54  ;;  %v9114_v23 = vld [vmem:[#allocation13 + $0x1b8] sm:$0xff]  }
0x1a88   : > { %v6044_v51 = vmul.f32 %v9558_v49, %v12087_v39  ;;  %v7676_v63 = vld [vmem:[%s12486_s7 + $0x4] sm:$0xf] }
0x1a89   : > { %v6076_v57 = vpack.c.bf16 %v6070_v36, %v6069_v7  ;;  %v6057_v10 = vmul.f32 %v7674_v15, %v6043_v34  ;;  %v12126_v49 = vrot.slane %v7676_v63, %v12552_v16  ;;  %v12129_v36 = vrot.slane %v7676_v63, %v12553_v40 }
0x1a8a   : > { %v9560_v46 = vpop.eup %9559  ;;  %v6058_v32 = vmul.f32 %v7674_v15, %v6044_v51  ;;  %v12132_v34 = vrot.slane %v7676_v63, %v12551_v35  ;;  %v12559_v51 = vld [vmem:[#allocation20_spill] sm:$0xff] }
0x1a8b   : > { %v9562_v41 = vpop.eup %9561  ;;  %v6071_v58 = vadd.f32 %v7675_v20, %v6057_v10  ;;  %v6045_v26 = vmul.f32 %v9560_v46, %v12102_v45  ;;  %v9086_v45 = vld [vmem:[#allocation13 + $0x180] sm:$0xff]   ;;  %v12560_v7 = vsub.s32 3, %v12559_v51 }
0x1a8c   : > { %v6072_v44 = vadd.f32 %v7675_v20, %v6058_v32  ;;  %v6046_v38 = vmul.f32 %v9562_v41, %v12095_v53  ;;  %8089 = vmatpush3.bf16.msra.mxu0 %v9086_v45  ;;  %v9087_v53 = vld [vmem:[#allocation13 + $0x148] sm:$0xff]  }
0x1a8d   : > { %6338 = vmatmul.mubr.bf16.gmra.mrb[132].mxu1 %v6076_v57  ;;  %6411 = vmatmul.mubr.bf16.gmra.mrb[132].mxu0 %v6076_v57  ;;  %v6059_v39 = vmul.f32 %v7674_v15, %v6045_v26  ;;  %v12136_v46 = vrot.slane %v7676_v63, %v12560_v7 }
0x1a8e   : > { %6347 = vmatprep.mubr.bf16.mxu1 %v12545_v27  ;;  %6420 = vmatprep.mubr.bf16.mxu0 %v12545_v27  ;;  %v6077_v28 = vpack.c.bf16 %v6072_v44, %v6071_v58  ;;  %v6060_v19 = vmul.f32 %v7674_v15, %v6046_v38  ;;  %v9090_v15 = vld [vmem:[#allocation13 + $0x188] sm:$0xff]  }
0x1a8f   : > { %v6073_v31 = vadd.f32 %v7675_v20, %v6059_v39  ;;  %8050 = vmatprep.subr.bf16.mxu1 %v9087_v53  ;;  %8090 = vmatprep.subr.bf16.mxu0 %v9088_v4 }
0x1a90   : > { %v6074_v0 = vadd.f32 %v7675_v20, %v6060_v19  ;;  %8051 = vmatpush3.bf16.msra.mxu1 %v9089_v42  ;;  %8091 = vmatpush3.bf16.msra.mxu0 %v9090_v15  ;;  %v9105_v20 = vld [vmem:[#allocation13 + $0x128] sm:$0xff]  }
0x1a91   : > { %8092 = vmatprep.subr.bf16.mxu0 %v9092_v30 }
0x1a92   : > { %v6078_v6 = vpack.c.bf16 %v6074_v0, %v6073_v31 }
0x1a94   : > { %8093 = vmatpush3.bf16.msra.mxu0 %v9094_v25 }
0x1a95   : > { %6348 = vmatmul.mubr.bf16.gmra.mrb[136].mxu1 %v6077_v28  ;;  %6421 = vmatmul.mubr.bf16.gmra.mrb[136].mxu0 %v6077_v28 }
0x1a96   : > { %6357 = vmatprep.mubr.bf16.mxu1 %v12545_v27  ;;  %6430 = vmatprep.mubr.bf16.mxu0 %v12545_v27  ;;  %v9091_v27 = vld [vmem:[#allocation13 + $0x150] sm:$0xff]  }
0x1a97   : > { %8052 = vmatprep.subr.bf16.mxu1 %v9091_v27  ;;  %8094 = vmatprep.subr.bf16.mxu0 %v9096_v21 }
0x1a98   : > { %8053 = vmatpush3.bf16.msra.mxu1 %v9093_v62  ;;  %8095 = vmatpush3.bf16.msra.mxu0 %v9098_v48 }
0x1a99   : > { %8054 = vmatprep.subr.bf16.mxu1 %v9095_v5  ;;  %8096 = vmatprep.subr.bf16.mxu0 %v9100_v14 }
0x1a9c   : > { %8055 = vmatpush3.bf16.msra.mxu1 %v9097_v12  ;;  %8097 = vmatpush3.bf16.msra.mxu0 %v9102_v22 }
0x1a9d   : > { %6358 = vmatmul.mubr.bf16.gmra.mrb[140].mxu1 %v6078_v6  ;;  %6431 = vmatmul.mubr.bf16.gmra.mrb[140].mxu0 %v6078_v6 }
0x1a9e   : > { %8056 = vmatprep.subr.bf16.mxu1 %v9099_v9  ;;  %8098 = vmatprep.subr.bf16.mxu0 %v9104_v33 }
0x1aa0   : > { %8057 = vmatpush3.bf16.msra.mxu1 %v9101_v1  ;;  %8099 = vmatpush3.bf16.msra.mxu0 %v9106_v8 }
0x1aa1   : > { %8058 = vmatprep.subr.bf16.mxu1 %v9103_v37  ;;  %8100 = vmatprep.subr.bf16.mxu0 %v9108_v55 }
0x1aa4   : > { %8059 = vmatpush3.bf16.msra.mxu1 %v9105_v20  ;;  %8101 = vmatpush3.bf16.msra.mxu0 %v9110_v47 }
0x1aa5   : > { %8060 = vmatprep.subr.bf16.mxu1 %v9107_v43  ;;  %8102 = vmatprep.subr.bf16.mxu0 %v9112_v18 }
0x1aa8   : > { %8061 = vmatpush3.bf16.msra.mxu1 %v9109_v17  ;;  %8103 = vmatpush3.bf16.msra.mxu0 %v9114_v23 }
0x1aa9   : > { %8062 = vmatprep.subr.bf16.mxu1 %v9111_v11 }
0x1aac   : > { %8063 = vmatpush3.bf16.msra.mxu1 %v9113_v56 }
0x1b58   : > { %v6329_v57 = vpop.f32.mrb[128].mxu1  ;;  %v6402_v10 = vpop.f32.mrb[128].mxu0 }
0x1b59   : > { %v12139_v32 = vadd.f32 %v6329_v57, %v12126_v49  ;;  %v12142_v41 = vadd.f32 %v6402_v10, %v12129_v36  ;;  %v6331_v16 = vpop.f32.mrb[129].mxu1  ;;  %v6404_v58 = vpop.f32.mrb[129].mxu0 }
0x1b5a   : > { %v12145_v40 = vadd.f32 %v6331_v16, %v12132_v34  ;;  %v12148_v35 = vadd.f32 %v6404_v58, %v12136_v46  ;;  %v6333_v44 = vpop.f32.mrb[130].mxu1  ;;  %v6406_v26 = vpop.f32.mrb[130].mxu0 }
0x1b5b   : > { %v7709_v38 = vmul.f32 -1.702, %v12139_v32  ;;  %v7711_v28 = vmul.f32 -1.702, %v12142_v41  ;;  %v12153_v39 = vadd.f32 %v6333_v44, %v12126_v49  ;;  %v12156_v19 = vadd.f32 %v6406_v26, %v12129_v36  ;;  %v6335_v31 = vpop.f32.mrb[131].mxu1  ;;  %v6408_v0 = vpop.f32.mrb[131].mxu0 }
0x1b5c   : > { %v7710_v6 = vmul.f32 -1.702, %v12145_v40  ;;  %v7712_v13 = vmul.f32 -1.702, %v12148_v35  ;;  %v12161_v3 = vadd.f32 %v6335_v31, %v12132_v34  ;;  %v12164_v54 = vadd.f32 %v6408_v0, %v12136_v46 }
0x1b5d   : > { %v6505_v45 = vmul.f32 1.442695, %v7709_v38  ;;  %v6509_v53 = vmul.f32 1.442695, %v7711_v28  ;;  %v7713_v4 = vmul.f32 -1.702, %v12153_v39 }
0x1b5e   : > { %v6507_v42 = vmul.f32 1.442695, %v7710_v6  ;;  %v6511_v15 = vmul.f32 1.442695, %v7712_v13  ;;  %v7715_v27 = vmul.f32 -1.702, %v12156_v19 }
0x1b5f   : > { %9563 = vpow2.f32 %v6505_v45  ;;  %v6513_v30 = vmul.f32 1.442695, %v7713_v4  ;;  %v7714_v62 = vmul.f32 -1.702, %v12161_v3  ;;  %v7716_v25 = vmul.f32 -1.702, %v12164_v54 }
0x1b60   : > { %9565 = vpow2.f32 %v6509_v53  ;;  %v6517_v5 = vmul.f32 1.442695, %v7715_v27  ;;  %v6339_v21 = vpop.f32.mrb[132].mxu1  ;;  %v6412_v12 = vpop.f32.mrb[132].mxu0 }
0x1b61   : > { %9567 = vpow2.f32 %v6507_v42  ;;  %v6515_v48 = vmul.f32 1.442695, %v7714_v62  ;;  %v6519_v9 = vmul.f32 1.442695, %v7716_v25  ;;  %v12171_v14 = vadd.f32 %v6339_v21, %v12126_v49  ;;  %v6341_v1 = vpop.f32.mrb[133].mxu1  ;;  %v6414_v22 = vpop.f32.mrb[133].mxu0 }
0x1b62   : > { %9569 = vpow2.f32 %v6511_v15  ;;  %v12174_v37 = vadd.f32 %v6412_v12, %v12129_v36  ;;  %v12177_v33 = vadd.f32 %v6341_v1, %v12132_v34  ;;  %v12180_v20 = vadd.f32 %v6414_v22, %v12136_v46  ;;  %v6343_v8 = vpop.f32.mrb[134].mxu1  ;;  %v6416_v43 = vpop.f32.mrb[134].mxu0 }
0x1b63   : > { %9571 = vpow2.f32 %v6513_v30  ;;  %v7717_v55 = vmul.f32 -1.702, %v12171_v14  ;;  %v12184_v17 = vadd.f32 %v6343_v8, %v12126_v49  ;;  %v6345_v47 = vpop.f32.mrb[135].mxu1  ;;  %v6418_v11 = vpop.f32.mrb[135].mxu0  ;;  %v12191_v7 = vadd.f32 %v6416_v43, %v12129_v36 }
0x1b64   : > { %9573 = vpow2.f32 %v6517_v5  ;;  %v7719_v18 = vmul.f32 -1.702, %v12174_v37  ;;  %v7718_v56 = vmul.f32 -1.702, %v12177_v33  ;;  %v7720_v23 = vmul.f32 -1.702, %v12180_v20 }
0x1b65   : > { %9575 = vpow2.f32 %v6515_v48  ;;  %v6521_v63 = vmul.f32 1.442695, %v7717_v55  ;;  %v7721_v51 = vmul.f32 -1.702, %v12184_v17  ;;  %v7723_v13 = vmul.f32 -1.702, %v12191_v7 }
0x1b66   : > { %9577 = vpow2.f32 %v6519_v9  ;;  %v6525_v57 = vmul.f32 1.442695, %v7719_v18  ;;  %v6523_v10 = vmul.f32 1.442695, %v7718_v56  ;;  %v6527_v16 = vmul.f32 1.442695, %v7720_v23 }
0x1b67   : > { %9579 = vpow2.f32 %v6521_v63  ;;  %v6529_v58 = vmul.f32 1.442695, %v7721_v51  ;;  %v12195_v45 = vadd.f32 %v6345_v47, %v12132_v34  ;;  %v12198_v25 = vadd.f32 %v6418_v11, %v12136_v46 }
0x1b68   : > { %9581 = vpow2.f32 %v6525_v57  ;;  %v6349_v44 = vpop.f32.mrb[136].mxu1  ;;  %v6422_v26 = vpop.f32.mrb[136].mxu0  ;;  %v6533_v1 = vmul.f32 1.442695, %v7723_v13 }
0x1b69   : > { %v9564_v38 = vpop.eup %9563  ;;  %9583 = vpow2.f32 %v6523_v10  ;;  %v6351_v28 = vpop.f32.mrb[137].mxu1  ;;  %v7722_v22 = vmul.f32 -1.702, %v12195_v45  ;;  %v12202_v55 = vadd.f32 %v6349_v44, %v12126_v49  ;;  %v12205_v47 = vadd.f32 %v6422_v26, %v12129_v36 }
0x1b6a   : > { %v6424_v31 = vpop.f32.mrb[137].mxu0  ;;  %v9566_v0 = vpop.eup %9565  ;;  %v6569_v6 = vadd.f32 1.0, %v9564_v38  ;;  %9585 = vpow2.f32 %v6527_v16  ;;  %v7724_v56 = vmul.f32 -1.702, %v12198_v25  ;;  %v12209_v23 = vadd.f32 %v6351_v28, %v12132_v34 }
0x1b6b   : > { %v6353_v53 = vpop.f32.mrb[138].mxu1  ;;  %v6426_v4 = vpop.f32.mrb[138].mxu0  ;;  %v6571_v15 = vadd.f32 1.0, %v9566_v0  ;;  %9587 = vpow2.f32 %v6529_v58  ;;  %v12212_v16 = vadd.f32 %v6424_v31, %v12136_v46  ;;  %v6531_v28 = vmul.f32 1.442695, %v7722_v22 }
0x1b6c   : > { %v9568_v42 = vpop.eup %9567  ;;  %v6355_v27 = vpop.f32.mrb[139].mxu1  ;;  %9589 = vrcp.f32 %v6569_v6  ;;  %v12215_v58 = vadd.f32 %v6353_v53, %v12126_v49  ;;  %v12222_v6 = vadd.f32 %v6426_v4, %v12129_v36  ;;  %v7727_v53 = vmul.f32 -1.702, %v12205_v47 }
0x1b6d   : > { %v9570_v30 = vpop.eup %9569  ;;  %v6570_v62 = vadd.f32 1.0, %v9568_v42  ;;  %v6428_v5 = vpop.f32.mrb[139].mxu0  ;;  %9591 = vrcp.f32 %v6571_v15  ;;  %v7725_v15 = vmul.f32 -1.702, %v12202_v55 }
0x1b6e   : > { %v9572_v21 = vpop.eup %9571  ;;  %v6572_v12 = vadd.f32 1.0, %v9570_v30  ;;  %v6541_v24 = vmul.f32 1.442695, %v7727_v53 }
0x1b6f   : > { %v9574_v48 = vpop.eup %9573  ;;  %9593 = vrcp.f32 %v6570_v62  ;;  %v6573_v9 = vadd.f32 1.0, %v9572_v21 }
0x1b70   : > { %v9576_v8 = vpop.eup %9575  ;;  %9595 = vrcp.f32 %v6572_v12  ;;  %v6575_v43 = vadd.f32 1.0, %v9574_v48  ;;  %v6359_v63 = vpop.f32.mrb[140].mxu1  ;;  %v7726_v12 = vmul.f32 -1.702, %v12209_v23 }
0x1b71   : > { %v9578_v11 = vpop.eup %9577  ;;  %9597 = vrcp.f32 %v6573_v9  ;;  %v6574_v18 = vadd.f32 1.0, %v9576_v8  ;;  %v6432_v51 = vpop.f32.mrb[140].mxu0  ;;  %v7728_v8 = vmul.f32 -1.702, %v12212_v16  ;;  %v12245_v2 = vadd.f32 %v6359_v63, %v12126_v49 }
0x1b72   : > { %v9580_v57 = vpop.eup %9579  ;;  %9599 = vrcp.f32 %v6575_v43  ;;  %v6576_v10 = vadd.f32 1.0, %v9578_v11  ;;  %v12217_v44 = vpop.f32.mrb[141].mxu1  ;;  %v7729_v43 = vmul.f32 -1.702, %v12215_v58 }
0x1b73   : > { %v12219_v26 = vpop.f32.mrb[141].mxu0  ;;  %v9582_v38 = vpop.eup %9581  ;;  %9601 = vrcp.f32 %v6574_v18  ;;  %v6577_v0 = vadd.f32 1.0, %v9580_v57  ;;  %v7731_v57 = vmul.f32 -1.702, %v12222_v6  ;;  %v6543_v52 = vmul.f32 1.442695, %v7728_v8 }
0x1b74   : > { %v12224_v13 = vpop.f32.mrb[142].mxu1  ;;  %v9584_v42 = vpop.eup %9583  ;;  %9603 = vrcp.f32 %v6576_v10  ;;  %v6579_v31 = vadd.f32 1.0, %v9582_v38  ;;  %v12239_v10 = vadd.f32 %v6355_v27, %v12132_v34  ;;  %v12248_v27 = vadd.f32 %v6432_v51, %v12129_v36 }
0x1b75   : > { %v12228_v30 = vpop.f32.mrb[142].mxu0  ;;  %v9586_v62 = vpop.eup %9585  ;;  %9605 = vrcp.f32 %v6577_v0  ;;  %v6578_v21 = vadd.f32 1.0, %v9584_v42  ;;  %v6535_v0 = vmul.f32 1.442695, %v7724_v56  ;;  %v12242_v42 = vadd.f32 %v6428_v5, %v12136_v46 }
0x1b76   : > { %v12231_v48 = vpop.f32.mrb[143].mxu1  ;;  %v12233_v4 = vpop.f32.mrb[143].mxu0  ;;  %9607 = vrcp.f32 %v6579_v31  ;;  %v6580_v22 = vadd.f32 1.0, %v9586_v62  ;;  %v6537_v62 = vmul.f32 1.442695, %v7725_v15 }
0x1b77   : > { %v9588_v9 = vpop.eup %9587  ;;  %9609 = vrcp.f32 %v6578_v21  ;;  %v6545_v56 = vmul.f32 1.442695, %v7729_v43  ;;  %v7730_v5 = vmul.f32 -1.702, %v12239_v10  ;;  %v7732_v63 = vmul.f32 -1.702, %v12242_v42 }
0x1b78   : > { %v9590_v11 = vpop.eup %9589  ;;  %v6581_v18 = vadd.f32 1.0, %v9588_v9  ;;  %9611 = vrcp.f32 %v6580_v22  ;;  %v6539_v9 = vmul.f32 1.442695, %v7726_v12  ;;  %v6549_v22 = vmul.f32 1.442695, %v7731_v57 }
0x1b79   : > { %v9592_v38 = vpop.eup %9591  ;;  %v6665_v15 = vmul.f32 %v9590_v11, %v12139_v32  ;;  %v7735_v32 = vmul.f32 -1.702, %v12248_v27 }
0x1b7a   : > { %v9594_v31 = vpop.eup %9593  ;;  %9613 = vrcp.f32 %v6581_v18  ;;  %v6667_v12 = vmul.f32 %v9592_v38, %v12142_v41 }
0x1b7b   : > { %v9596_v21 = vpop.eup %9595  ;;  %9615 = vpow2.f32 %v6533_v1  ;;  %v6666_v41 = vmul.f32 %v9594_v31, %v12145_v40 }
0x1b7c   : > { %v9598_v59 = vpop.eup %9597  ;;  %9617 = vpow2.f32 %v6531_v28  ;;  %v7733_v28 = vmul.f32 -1.702, %v12245_v2 }
0x1b7d   : > { %v9600_v50 = vpop.eup %9599  ;;  %v6669_v53 = vmul.f32 %v9598_v59, %v12153_v39  ;;  %9619 = vpow2.f32 %v6535_v0  ;;  %v6547_v39 = vmul.f32 1.442695, %v7730_v5 }
0x1b7e   : > { %v9602_v1 = vpop.eup %9601  ;;  %v6671_v51 = vmul.f32 %v9600_v50, %v12156_v19  ;;  %9621 = vpow2.f32 %v6537_v62  ;;  %v6551_v19 = vmul.f32 1.442695, %v7732_v63  ;;  %v6553_v0 = vmul.f32 1.442695, %v7733_v28 }
0x1b7f   : > { %v9604_v8 = vpop.eup %9603  ;;  %v6697_v43 = vpack.c.bf16 %v6669_v53, %v6665_v15  ;;  %v6670_v18 = vmul.f32 %v9602_v1, %v12161_v3  ;;  %9623 = vpow2.f32 %v6541_v24  ;;  %v6668_v24 = vmul.f32 %v9596_v21, %v12148_v35 }
0x1b80   : > { %v9606_v11 = vpop.eup %9605  ;;  %v6699_v59 = vpack.c.bf16 %v6671_v51, %v6667_v12  ;;  %9625 = vpow2.f32 %v6539_v9  ;;  %v6672_v50 = vmul.f32 %v9604_v8, %v12164_v54  ;;  %v6557_v62 = vmul.f32 1.442695, %v7735_v32 }
0x1b81   : > { %v12259_v57 = vpop.eup %9607  ;;  %9627 = vpow2.f32 %v6543_v52  ;;  %v6698_v9 = vpack.c.bf16 %v6670_v18, %v6666_v41  ;;  %v12269_v40 = vmul.f32 %v9606_v11, %v12171_v14  ;;  %v12278_v1 = vadd.f32 %v12217_v44, %v12132_v34 }
0x1b82   : > { %v12263_v38 = vpop.eup %9609  ;;  %9629 = vpow2.f32 %v6545_v56  ;;  %v6700_v54 = vpack.c.bf16 %v6672_v50, %v6668_v24  ;;  %v12282_v28 = vadd.f32 %v12219_v26, %v12136_v46  ;;  %v12286_v18 = vadd.f32 %v12224_v13, %v12126_v49 }
0x1b83   : > { %v12265_v3 = vpop.eup %9611  ;;  %9631 = vpow2.f32 %v6549_v22  ;;  %7010 = vmatprep.mubr.bf16.mxu1 %v6698_v9  ;;  %v12290_v44 = vadd.f32 %v12228_v30, %v12129_v36  ;;  %v7734_v26 = vmul.f32 -1.702, %v12278_v1  ;;  %v12295_v41 = vadd.f32 %v12231_v48, %v12132_v34 }
0x1b84   : > { %v9614_v5 = vpop.eup %9613  ;;  %9633 = vpow2.f32 %v6547_v39  ;;  %7011 = vmatmul.mubr.bf16.vlgmr.msra.gmra.mrb[144].mxu1 %v6697_v43  ;;  %7075 = vmatprep.mubr.bf16.mxu0 %v6700_v54  ;;  %v7736_v13 = vmul.f32 -1.702, %v12282_v28 }
0x1b85   : > { %v9616_v15 = vpop.eup %9615  ;;  %v12272_v52 = vmul.f32 %v9614_v5, %v12184_v17  ;;  %9635 = vpow2.f32 %v6551_v19  ;;  %7076 = vmatmul.mubr.bf16.vlgmr.msra.gmra.mrb[144].mxu0 %v6699_v59  ;;  %v12300_v19 = vadd.f32 %v12233_v4, %v12136_v46  ;;  %v7739_v34 = vmul.f32 -1.702, %v12290_v44 }
0x1b86   : > { %v9618_v31 = vpop.eup %9617  ;;  %v6583_v56 = vadd.f32 1.0, %v9616_v15  ;;  %9637 = vpow2.f32 %v6553_v0  ;;  %v7737_v0 = vmul.f32 -1.702, %v12286_v18  ;;  %v6555_v9 = vmul.f32 1.442695, %v7734_v26 }
0x1b87   : > { %v9620_v35 = vpop.eup %9619  ;;  %v6582_v21 = vadd.f32 1.0, %v9618_v31  ;;  %9639 = vpow2.f32 %v6557_v62  ;;  %v6701_v22 = vpack.c.bf16 %v12272_v52, %v12269_v40  ;;  %v7738_v5 = vmul.f32 -1.702, %v12295_v41 }
0x1b88   : > { %v9622_v53 = vpop.eup %9621  ;;  %9641 = vrcp.f32 %v6583_v56  ;;  %v6584_v14 = vadd.f32 1.0, %v9620_v35  ;;  %v6559_v54 = vmul.f32 1.442695, %v7736_v13  ;;  %v7740_v46 = vmul.f32 -1.702, %v12300_v19 }
0x1b89   : > { %v9624_v17 = vpop.eup %9623  ;;  %9643 = vrcp.f32 %v6582_v21  ;;  %v6585_v63 = vadd.f32 1.0, %v9622_v53  ;;  %v6675_v31 = vmul.f32 %v12259_v57, %v12174_v37  ;;  %v6561_v35 = vmul.f32 1.442695, %v7737_v0 }
0x1b8a   : > { %v9626_v12 = vpop.eup %9625  ;;  %9645 = vrcp.f32 %v6584_v14  ;;  %v6587_v51 = vadd.f32 1.0, %v9624_v17  ;;  %v6674_v53 = vmul.f32 %v12263_v38, %v12177_v33  ;;  %v6676_v14 = vmul.f32 %v12265_v3, %v12180_v20 }
0x1b8b   : > { %v9628_v8 = vpop.eup %9627  ;;  %9647 = vrcp.f32 %v6585_v63  ;;  %v6586_v43 = vadd.f32 1.0, %v9626_v12  ;;  %v6565_v63 = vmul.f32 1.442695, %v7739_v34 }
0x1b8c   : > { %v9630_v32 = vpop.eup %9629  ;;  %9649 = vrcp.f32 %v6587_v51  ;;  %v6588_v11 = vadd.f32 1.0, %v9628_v8  ;;  %v6563_v8 = vmul.f32 1.442695, %v7738_v5 }
0x1b8d   : > { %v9632_v59 = vpop.eup %9631  ;;  %9651 = vrcp.f32 %v6586_v43  ;;  %v6589_v39 = vadd.f32 1.0, %v9630_v32 }
0x1b8e   : > { %v9634_v50 = vpop.eup %9633  ;;  %9653 = vrcp.f32 %v6588_v11  ;;  %v6591_v49 = vadd.f32 1.0, %v9632_v59 }
0x1b8f   : > { %v9636_v36 = vpop.eup %9635  ;;  %9655 = vrcp.f32 %v6589_v39  ;;  %v6590_v30 = vadd.f32 1.0, %v9634_v50 }
0x1b90   : > { %v9638_v24 = vpop.eup %9637  ;;  %9657 = vrcp.f32 %v6591_v49  ;;  %v6592_v62 = vadd.f32 1.0, %v9636_v36 }
0x1b91   : > { %v9640_v48 = vpop.eup %9639  ;;  %9659 = vrcp.f32 %v6590_v30  ;;  %v6593_v13 = vadd.f32 1.0, %v9638_v24 }
0x1b92   : > { %v9642_v15 = vpop.eup %9641  ;;  %9661 = vrcp.f32 %v6592_v62 }
0x1b93   : > { %v9644_v4 = vpop.eup %9643  ;;  %v6679_v56 = vmul.f32 %v9642_v15, %v12191_v7  ;;  %9663 = vpow2.f32 %v6555_v9  ;;  %v6567_v7 = vmul.f32 1.442695, %v7740_v46 }
0x1b94   : > { %v9646_v21 = vpop.eup %9645  ;;  %v6678_v17 = vmul.f32 %v9644_v4, %v12195_v45  ;;  %9665 = vpow2.f32 %v6559_v54 }
0x1b95   : > { %v9648_v12 = vpop.eup %9647  ;;  %v6680_v51 = vmul.f32 %v9646_v21, %v12198_v25  ;;  %v6703_v43 = vpack.c.bf16 %v6679_v56, %v6675_v31  ;;  %9667 = vpow2.f32 %v6561_v35 }
0x1b96   : > { %v9650_v37 = vpop.eup %9649  ;;  %v6702_v57 = vpack.c.bf16 %v6678_v17, %v6674_v53  ;;  %9669 = vpow2.f32 %v6565_v63  ;;  %v6681_v25 = vmul.f32 %v9648_v12, %v12202_v55 }
0x1b97   : > { %v9652_v32 = vpop.eup %9651  ;;  %v6704_v11 = vpack.c.bf16 %v6680_v51, %v6676_v14  ;;  %9671 = vpow2.f32 %v6563_v8  ;;  %v6683_v59 = vmul.f32 %v9650_v37, %v12205_v47 }
0x1b98   : > { %v9654_v33 = vpop.eup %9653  ;;  %7018 = vmatprep.mubr.bf16.mxu1 %v6702_v57  ;;  %9673 = vpow2.f32 %v6567_v7  ;;  %v6682_v50 = vmul.f32 %v9652_v32, %v12209_v23 }
0x1b99   : > { %v9656_v20 = vpop.eup %9655  ;;  %7083 = vmatprep.mubr.bf16.mxu0 %v6704_v11  ;;  %7019 = vmatmul.mubr.bf16.gmra.mrb[148].mxu1 %v6701_v22  ;;  %v6684_v52 = vmul.f32 %v9654_v33, %v12212_v16  ;;  %v6595_v22 = vadd.f32 1.0, %v9640_v48  ;;  %9675 = vrcp.f32 %v6593_v13 }
0x1b9a   : > { %v9658_v45 = vpop.eup %9657  ;;  %v6685_v38 = vmul.f32 %v9656_v20, %v12215_v58  ;;  %7084 = vmatmul.mubr.bf16.gmra.mrb[148].mxu0 %v6703_v43 }
0x1b9b   : > { %v9660_v3 = vpop.eup %9659  ;;  %v6687_v39 = vmul.f32 %v9658_v45, %v12222_v6  ;;  %9677 = vrcp.f32 %v6595_v22 }
0x1b9c   : > { %v9662_v26 = vpop.eup %9661  ;;  %v6686_v49 = vmul.f32 %v9660_v3, %v12239_v10  ;;  %v6705_v40 = vpack.c.bf16 %v6685_v38, %v6681_v25 }
0x1b9d   : > { %v6688_v55 = vmul.f32 %v9662_v26, %v12242_v42  ;;  %v6707_v58 = vpack.c.bf16 %v6687_v39, %v6683_v59  ;;  %v9664_v30 = vpop.eup %9663 }
0x1b9e   : > { %v6706_v36 = vpack.c.bf16 %v6686_v49, %v6682_v50  ;;  %v9666_v62 = vpop.eup %9665  ;;  %v6594_v47 = vadd.f32 1.0, %v9664_v30 }
0x1b9f   : > { %v6708_v0 = vpack.c.bf16 %v6688_v55, %v6684_v52  ;;  %v9668_v6 = vpop.eup %9667  ;;  %v6596_v23 = vadd.f32 1.0, %v9666_v62 }
0x1ba0   : > { %7026 = vmatprep.mubr.bf16.mxu1 %v6706_v36  ;;  %v9670_v10 = vpop.eup %9669  ;;  %9679 = vrcp.f32 %v6594_v47  ;;  %v6597_v24 = vadd.f32 1.0, %v9668_v6 }
0x1ba1   : > { %7091 = vmatprep.mubr.bf16.mxu0 %v6708_v0  ;;  %7027 = vmatmul.mubr.bf16.gmra.mrb[152].mxu1 %v6705_v40  ;;  %v9672_v16 = vpop.eup %9671  ;;  %9681 = vrcp.f32 %v6596_v23  ;;  %v6599_v42 = vadd.f32 1.0, %v9670_v10 }
0x1ba2   : > { %7092 = vmatmul.mubr.bf16.gmra.mrb[152].mxu0 %v6707_v58  ;;  %v9674_v34 = vpop.eup %9673  ;;  %9683 = vrcp.f32 %v6597_v24  ;;  %v6598_v48 = vadd.f32 1.0, %v9672_v16 }
0x1ba3   : > { %9685 = vrcp.f32 %v6599_v42  ;;  %v6600_v9 = vadd.f32 1.0, %v9674_v34  ;;  %v9676_v5 = vpop.eup %9675 }
0x1ba4   : > { %9687 = vrcp.f32 %v6598_v48  ;;  %v6689_v56 = vmul.f32 %v9676_v5, %v12245_v2 }
0x1ba5   : > { %9689 = vrcp.f32 %v6600_v9  ;;  %v9678_v15 = vpop.eup %9677  ;;  %v12561_v9 = vld [vmem:[#allocation24_spill] sm:$0xff] }
0x1ba6   : > { %v6691_v53 = vmul.f32 %v9678_v15, %v12248_v27 }
0x1baa   : > { %v9680_v54 = vpop.eup %9679 }
0x1bab   : > { %v9682_v46 = vpop.eup %9681  ;;  %v6690_v63 = vmul.f32 %v9680_v54, %v12278_v1 }
0x1bac   : > { %v9684_v4 = vpop.eup %9683  ;;  %v6692_v8 = vmul.f32 %v9682_v46, %v12282_v28 }
0x1bad   : > { %v9686_v31 = vpop.eup %9685  ;;  %v6693_v35 = vmul.f32 %v9684_v4, %v12286_v18  ;;  %v12334_v18 = vld [vmem:[#allocation7 + $0xb] ss:$0 sm:$0xff] }
0x1bae   : > { %v9688_v21 = vpop.eup %9687  ;;  %v6695_v14 = vmul.f32 %v9686_v31, %v12290_v44 }
0x1baf   : > { %v9690_v17 = vpop.eup %9689  ;;  %v6694_v12 = vmul.f32 %v9688_v21, %v12295_v41  ;;  %v6709_v51 = vpack.c.bf16 %v6693_v35, %v6689_v56 }
0x1bb0   : > { %v6696_v43 = vmul.f32 %v9690_v17, %v12300_v19  ;;  %v6711_v37 = vpack.c.bf16 %v6695_v14, %v6691_v53  ;;  %v12562_v14 = vld [vmem:[#allocation25_spill] sm:$0xff] }
0x1bb1   : > { %v6710_v7 = vpack.c.bf16 %v6694_v12, %v6690_v63  ;;  %v12563_v63 = vld [vmem:[#allocation26_spill] sm:$0xff] }
0x1bb2   : > { %v6712_v2 = vpack.c.bf16 %v6696_v43, %v6692_v8 }
0x1bb3   : > { %7034 = vmatprep.mubr.bf16.mxu1 %v6710_v7 }
0x1bb4   : > { %7099 = vmatprep.mubr.bf16.mxu0 %v6712_v2  ;;  %7035 = vmatmul.mubr.bf16.gmra.mrb[156].mxu1 %v6709_v51 }
0x1bb5   : > { %7100 = vmatmul.mubr.bf16.gmra.mrb[156].mxu0 %v6711_v37 }
0x1c57   : > { %v8064_v27 = vpop.f32.mrb[144].mxu1 }
0x1c58   : > { %v8065_v44 = vpop.f32.mrb[145].mxu1  ;;  %v8104_v57 = vpop.f32.mrb[144].mxu0 }
0x1c59   : > { %v8066_v1 = vadd.f32 %v8065_v44, %v8064_v27  ;;  %v8067_v32 = vpop.f32.mrb[146].mxu1  ;;  %v8105_v41 = vpop.f32.mrb[145].mxu0 }
0x1c5a   : > { %v8068_v11 = vpop.f32.mrb[147].mxu1  ;;  %v8106_v33 = vadd.f32 %v8105_v41, %v8104_v57  ;;  %v8107_v19 = vpop.f32.mrb[146].mxu0 }
0x1c5b   : > { %v7013_v28 = vadd.f32 %v8066_v1, %v12334_v18  ;;  %v8069_v20 = vadd.f32 %v8068_v11, %v8067_v32  ;;  %v8108_v45 = vpop.f32.mrb[147].mxu0 }
0x1c5c   : > { %v8109_v3 = vadd.f32 %v8108_v45, %v8107_v19 }
0x1c5d   : > { %v7078_v25 = vadd.f32 %v8106_v33, %v7013_v28  ;;  %v7016_v38 = vadd.f32 %v8069_v20, %v12334_v18  ;;  %v12564_v20 = vld [vmem:[#allocation27_spill] sm:$0xff] }
0x1c5f   : > { %v7081_v59 = vadd.f32 %v8109_v3, %v7016_v38  ;;  %v12339_v39 = vadd.f32 %v7078_v25, %v12037_v61  ;;  %v12565_v25 = vld [vmem:[#allocation28_spill] sm:$0xff] }
0x1c61   : > { %7119 = vadd.xlane.f32.xlu1 %v12339_v39  ;;  %v12343_v26 = vadd.f32 %v7081_v59, %v12040_v29 }
0x1c63   : > { %7121 = vadd.xlane.f32.xlu0 %v12343_v26 }
0x1c6c   : > { %v8070_v50 = vpop.f32.mrb[148].mxu1 }
0x1c6d   : > { %v8110_v49 = vpop.f32.mrb[148].mxu0  ;;  %v8071_v13 = vpop.f32.mrb[149].mxu1 }
0x1c6e   : > { %v8072_v40 = vadd.f32 %v8071_v13, %v8070_v50  ;;  %v8111_v52 = vpop.f32.mrb[149].mxu0  ;;  %v8073_v55 = vpop.f32.mrb[150].mxu1 }
0x1c6f   : > { %v8112_v22 = vadd.f32 %v8111_v52, %v8110_v49  ;;  %v8113_v58 = vpop.f32.mrb[150].mxu0  ;;  %v8074_v36 = vpop.f32.mrb[151].mxu1 }
0x1c70   : > { %v7021_v30 = vadd.f32 %v8072_v40, %v12334_v18  ;;  %v8075_v61 = vadd.f32 %v8074_v36, %v8073_v55  ;;  %v8114_v0 = vpop.f32.mrb[151].mxu0 }
0x1c71   : > { %v8115_v62 = vadd.f32 %v8114_v0, %v8113_v58 }
0x1c72   : > { %v7086_v47 = vadd.f32 %v8112_v22, %v7021_v30  ;;  %v7024_v29 = vadd.f32 %v8075_v61, %v12334_v18 }
0x1c74   : > { %v7089_v6 = vadd.f32 %v8115_v62, %v7024_v29  ;;  %v8076_v23 = vpop.f32.mrb[152].mxu1  ;;  %v7110_v10 = vadd.f32 %v7086_v47, %v12044_v60 }
0x1c75   : > { %v8116_v24 = vpop.f32.mrb[152].mxu0  ;;  %v8077_v16 = vpop.f32.mrb[153].mxu1 }
0x1c76   : > { %v8078_v42 = vadd.f32 %v8077_v16, %v8076_v23  ;;  %v8117_v34 = vpop.f32.mrb[153].mxu0  ;;  %v8079_v48 = vpop.f32.mrb[154].mxu1  ;;  %7123 = vadd.xlane.f32.xlu1 %v7110_v10  ;;  %v7111_v5 = vadd.f32 %v7089_v6, %v12561_v9 }
0x1c77   : > { %v8118_v15 = vadd.f32 %v8117_v34, %v8116_v24  ;;  %v8119_v54 = vpop.f32.mrb[154].mxu0  ;;  %v8080_v46 = vpop.f32.mrb[155].mxu1 }
0x1c78   : > { %v7029_v4 = vadd.f32 %v8078_v42, %v12334_v18  ;;  %v8081_v31 = vadd.f32 %v8080_v46, %v8079_v48  ;;  %v8120_v56 = vpop.f32.mrb[155].mxu0  ;;  %7125 = vadd.xlane.f32.xlu0 %v7111_v5 }
0x1c79   : > { %v8121_v35 = vadd.f32 %v8120_v56, %v8119_v54 }
0x1c7a   : > { %v7094_v21 = vadd.f32 %v8118_v15, %v7029_v4  ;;  %v7032_v60 = vadd.f32 %v8081_v31, %v12334_v18 }
0x1c7c   : > { %v7097_v53 = vadd.f32 %v8121_v35, %v7032_v60  ;;  %v7112_v17 = vadd.f32 %v7094_v21, %v12562_v14 }
0x1c7e   : > { %7127 = vadd.xlane.f32.xlu1 %v7112_v17  ;;  %v7113_v12 = vadd.f32 %v7097_v53, %v12563_v63  ;;  %v12387_v53 = vld [vmem:[%s12488_s9] ss:$0 sm:$0xff]  ;;  %v12392_v63 = vld [vmem:[%s12488_s9 + $0x1] ss:$0 sm:$0xff] }
0x1c80   : > { %7129 = vadd.xlane.f32.xlu0 %v7113_v12 }
0x1c87   : > { %v8082_v51 = vpop.f32.mrb[156].mxu1 }
0x1c88   : > { %v8122_v8 = vpop.f32.mrb[156].mxu0  ;;  %v8083_v43 = vpop.f32.mrb[157].mxu1 }
0x1c89   : > { %v8084_v37 = vadd.f32 %v8083_v43, %v8082_v51  ;;  %v8123_v7 = vpop.f32.mrb[157].mxu0  ;;  %v8085_v2 = vpop.f32.mrb[158].mxu1 }
0x1c8a   : > { %v8124_v27 = vadd.f32 %v8123_v7, %v8122_v8  ;;  %v8125_v44 = vpop.f32.mrb[158].mxu0  ;;  %v8086_v57 = vpop.f32.mrb[159].mxu1 }
0x1c8b   : > { %v7037_v1 = vadd.f32 %v8084_v37, %v12334_v18  ;;  %v8087_v32 = vadd.f32 %v8086_v57, %v8085_v2  ;;  %v8126_v41 = vpop.f32.mrb[159].mxu0 }
0x1c8c   : > { %v8127_v11 = vadd.f32 %v8126_v41, %v8125_v44 }
0x1c8d   : > { %v7102_v28 = vadd.f32 %v8124_v27, %v7037_v1  ;;  %v7040_v33 = vadd.f32 %v8087_v32, %v12334_v18 }
0x1c8f   : > { %v7105_v19 = vadd.f32 %v8127_v11, %v7040_v33  ;;  %v7114_v45 = vadd.f32 %v7102_v28, %v12564_v20 }
0x1c91   : > { %7131 = vadd.xlane.f32.xlu1 %v7114_v45  ;;  %v7115_v38 = vadd.f32 %v7105_v19, %v12565_v25 }
0x1c93   : > { %7133 = vadd.xlane.f32.xlu0 %v7115_v38 }
0x1cee   : > { %v7120_v3 = vpop.xlane.xlu1 %7119 }
0x1cef   : > { %v7135_v59 = vmul.f32 0.0078125, %v7120_v3 }
0x1cf0   : > { %v7122_v50 = vpop.xlane.xlu0 %7121 }
0x1cf1   : > { %v7143_v49 = vsub.f32 %v12339_v39, %v7135_v59  ;;  %v7136_v13 = vmul.f32 0.0078125, %v7122_v50 }
0x1cf3   : > { %v7144_v40 = vsub.f32 %v12343_v26, %v7136_v13  ;;  %v7151_v52 = vmul.f32 %v7143_v49, %v7143_v49 }
0x1cf5   : > { %7159 = vadd.xlane.f32.xlu1 %v7151_v52  ;;  %v7152_v55 = vmul.f32 %v7144_v40, %v7144_v40 }
0x1cf7   : > { %7161 = vadd.xlane.f32.xlu0 %v7152_v55 }
0x1d03   : > { %v7124_v18 = vpop.xlane.xlu1 %7123 }
0x1d04   : > { %v7137_v22 = vmul.f32 0.0078125, %v7124_v18 }
0x1d05   : > { %v7126_v58 = vpop.xlane.xlu0 %7125 }
0x1d06   : > { %v12360_v36 = vsub.f32 %v7110_v10, %v7137_v22  ;;  %v7138_v30 = vmul.f32 0.0078125, %v7126_v58 }
0x1d08   : > { %v12362_v61 = vsub.f32 %v7111_v5, %v7138_v30  ;;  %v7153_v0 = vmul.f32 %v12360_v36, %v12360_v36 }
0x1d0a   : > { %7163 = vadd.xlane.f32.xlu1 %v7153_v0  ;;  %v7154_v39 = vmul.f32 %v12362_v61, %v12362_v61 }
0x1d0b   : > { %v7128_v26 = vpop.xlane.xlu1 %7127 }
0x1d0c   : > { %v7139_v62 = vmul.f32 0.0078125, %v7128_v26  ;;  %7165 = vadd.xlane.f32.xlu0 %v7154_v39 }
0x1d0d   : > { %v7130_v47 = vpop.xlane.xlu0 %7129 }
0x1d0e   : > { %v12368_v29 = vsub.f32 %v7112_v17, %v7139_v62  ;;  %v7140_v6 = vmul.f32 0.0078125, %v7130_v47 }
0x1d10   : > { %v12370_v23 = vsub.f32 %v7113_v12, %v7140_v6  ;;  %v7155_v10 = vmul.f32 %v12368_v29, %v12368_v29 }
0x1d12   : > { %7167 = vadd.xlane.f32.xlu1 %v7155_v10  ;;  %v7156_v24 = vmul.f32 %v12370_v23, %v12370_v23 }
0x1d14   : > { %7169 = vadd.xlane.f32.xlu0 %v7156_v24 }
0x1d1e   : > { %v7132_v16 = vpop.xlane.xlu1 %7131 }
0x1d1f   : > { %v7141_v42 = vmul.f32 0.0078125, %v7132_v16 }
0x1d20   : > { %v7134_v34 = vpop.xlane.xlu0 %7133 }
0x1d21   : > { %v12376_v48 = vsub.f32 %v7114_v45, %v7141_v42  ;;  %v7142_v9 = vmul.f32 0.0078125, %v7134_v34 }
0x1d23   : > { %v12378_v5 = vsub.f32 %v7115_v38, %v7142_v9  ;;  %v7157_v15 = vmul.f32 %v12376_v48, %v12376_v48 }
0x1d25   : > { %7171 = vadd.xlane.f32.xlu1 %v7157_v15  ;;  %v7158_v54 = vmul.f32 %v12378_v5, %v12378_v5 }
0x1d27   : > { %7173 = vadd.xlane.f32.xlu0 %v7158_v54 }
0x1d82   : > { %v7160_v46 = vpop.xlane.xlu1 %7159 }
0x1d83   : > { %v7175_v4 = vmul.f32 0.0078125, %v7160_v46 }
0x1d84   : > { %v7162_v31 = vpop.xlane.xlu0 %7161 }
0x1d85   : > { %v7183_v56 = vadd.f32 1e-05, %v7175_v4  ;;  %v7176_v35 = vmul.f32 0.0078125, %v7162_v31 }
0x1d87   : > { %9691 = vrsqrt.f32 %v7183_v56  ;;  %v7184_v21 = vadd.f32 1e-05, %v7176_v35 }
0x1d89   : > { %9693 = vrsqrt.f32 %v7184_v21 }
0x1d91   : > { %v9692_v60 = vpop.eup %9691 }
0x1d92   : > { %v7199_v14 = vmul.f32 %v9692_v60, %v7143_v49 }
0x1d93   : > { %v9694_v17 = vpop.eup %9693 }
0x1d94   : > { %v7213_v12 = vmul.f32 %v12387_v53, %v7199_v14  ;;  %v7200_v51 = vmul.f32 %v9694_v17, %v7144_v40 }
0x1d96   : > { %v7227_v43 = vadd.f32 %v12392_v63, %v7213_v12  ;;  %v7214_v37 = vmul.f32 %v12387_v53, %v7200_v51 }
0x1d97   : > { %v7164_v8 = vpop.xlane.xlu1 %7163 }
0x1d98   : > { %v7177_v7 = vmul.f32 0.0078125, %v7164_v8  ;;  %7235 = vst [vmem:[%s12399_s10] sm:$0xff] %v7227_v43  ;;  %v7228_v27 = vadd.f32 %v12392_v63, %v7214_v37 }
0x1d99   : > { %v7166_v2 = vpop.xlane.xlu0 %7165 }
0x1d9a   : > { %v7185_v44 = vadd.f32 1e-05, %v7177_v7  ;;  %v7178_v57 = vmul.f32 0.0078125, %v7166_v2  ;;  %7236 = vst [vmem:[%s12399_s10 + $0x8] sm:$0xff] %v7228_v27 }
0x1d9c   : > { %9695 = vrsqrt.f32 %v7185_v44  ;;  %v7186_v1 = vadd.f32 1e-05, %v7178_v57 }
0x1d9e   : > { %9697 = vrsqrt.f32 %v7186_v1 }
0x1d9f   : > { %v7168_v32 = vpop.xlane.xlu1 %7167 }
0x1da0   : > { %v7179_v41 = vmul.f32 0.0078125, %v7168_v32 }
0x1da1   : > { %v7170_v11 = vpop.xlane.xlu0 %7169 }
0x1da2   : > { %v7187_v28 = vadd.f32 1e-05, %v7179_v41  ;;  %v7180_v33 = vmul.f32 0.0078125, %v7170_v11 }
0x1da4   : > { %9699 = vrsqrt.f32 %v7187_v28  ;;  %v7188_v19 = vadd.f32 1e-05, %v7180_v33 }
0x1da6   : > { %v9696_v20 = vpop.eup %9695  ;;  %9701 = vrsqrt.f32 %v7188_v19 }
0x1da7   : > { %v7201_v45 = vmul.f32 %v9696_v20, %v12360_v36 }
0x1da8   : > { %v9698_v25 = vpop.eup %9697 }
0x1da9   : > { %v7215_v38 = vmul.f32 %v12387_v53, %v7201_v45  ;;  %v7202_v3 = vmul.f32 %v9698_v25, %v12362_v61 }
0x1dab   : > { %v7229_v59 = vadd.f32 %v12392_v63, %v7215_v38  ;;  %v7216_v50 = vmul.f32 %v12387_v53, %v7202_v3 }
0x1dad   : > { %7237 = vst [vmem:[%s12399_s10 + $0x10] sm:$0xff] %v7229_v59  ;;  %v7230_v49 = vadd.f32 %v12392_v63, %v7216_v50 }
0x1dae   : > { %v9700_v13 = vpop.eup %9699 }
0x1daf   : > { %7238 = vst [vmem:[%s12399_s10 + $0x18] sm:$0xff] %v7230_v49  ;;  %v7203_v40 = vmul.f32 %v9700_v13, %v12368_v29 }
0x1db0   : > { %v9702_v52 = vpop.eup %9701 }
0x1db1   : > { %v7217_v55 = vmul.f32 %v12387_v53, %v7203_v40  ;;  %v7204_v18 = vmul.f32 %v9702_v52, %v12370_v23 }
0x1db2   : > { %v7172_v36 = vpop.xlane.xlu1 %7171 }
0x1db3   : > { %v7231_v22 = vadd.f32 %v12392_v63, %v7217_v55  ;;  %v7218_v58 = vmul.f32 %v12387_v53, %v7204_v18  ;;  %v7181_v61 = vmul.f32 0.0078125, %v7172_v36 }
0x1db4   : > { %v7174_v0 = vpop.xlane.xlu0 %7173 }
0x1db5   : > { %7239 = vst [vmem:[%s12399_s10 + $0x20] sm:$0xff] %v7231_v22  ;;  %v7232_v30 = vadd.f32 %v12392_v63, %v7218_v58  ;;  %v7189_v39 = vadd.f32 1e-05, %v7181_v61  ;;  %v7182_v26 = vmul.f32 0.0078125, %v7174_v0 }
0x1db7   : > { %7240 = vst [vmem:[%s12399_s10 + $0x28] sm:$0xff] %v7232_v30  ;;  %9703 = vrsqrt.f32 %v7189_v39  ;;  %v7190_v62 = vadd.f32 1e-05, %v7182_v26 }
0x1db9   : > { %9705 = vrsqrt.f32 %v7190_v62 }
0x1dc1   : > { %v9704_v47 = vpop.eup %9703 }
0x1dc2   : > { %v7205_v29 = vmul.f32 %v9704_v47, %v12376_v48 }
0x1dc3   : > { %v9706_v6 = vpop.eup %9705 }
0x1dc4   : > { %v7219_v23 = vmul.f32 %v12387_v53, %v7205_v29  ;;  %v7206_v10 = vmul.f32 %v9706_v6, %v12378_v5 }
0x1dc6   : > { %v7233_v24 = vadd.f32 %v12392_v63, %v7219_v23  ;;  %v7220_v16 = vmul.f32 %v12387_v53, %v7206_v10 }
0x1dc8   : > { %7241 = vst [vmem:[%s12399_s10 + $0x30] sm:$0xff] %v7233_v24  ;;  %v7234_v42 = vadd.f32 %v12392_v63, %v7220_v16 }
0x1dca   : > { %7242 = vst [vmem:[%s12399_s10 + $0x38] sm:$0xff] %v7234_v42 }
0x1dcb   : > { %9942 = shalt.err (!%p9939_p8)
}
0x1dcc   : > { %s9943_s21 = scalar_lea.hbm %s12430_s18, 1024  ;;  %s9947_s24 = scalar_lea.hbm %s12566_s28, 2048 }
0x1dcd   : > { %p9944_p6 = scmp.ne.s32.totalorder %s12430_s18, %s9943_s21  ;;  %p9948_p3 = scmp.lt.u32.totalorder %s12430_s18, %s12566_s28 }
0x1dce   : > { %p9949_p0 = scmp.lt.u32.totalorder %s9947_s24, %s9943_s21  ;;  %p9951_p2 = scmp.lt.u32.totalorder %s9943_s21, %s12430_s18 }
0x1dcf   : > { %p9945_p9 = pnand %p9944_p6, %p12567_p7 }
0x1dd0   : > { %p9950_p5 = por %p9949_p0, %p9948_p3 }
0x1dd1   : > { %p9946_p4 = pneg %p9945_p9 }
0x1dd2   : > { %p9952_p10 = por %p9951_p2, %p9950_p5 }
0x1dd4   : > { %p9953_p1 = pnand %p9952_p10, %p9946_p4 }
0x1dd6   : > { %9956 = shalt.err (!%p9953_p1)
}
0x1dd7   : > { %s10030_s29 = smov 128   ;;  %s10031_s12 = smov 8  }
0x1dd8   : > { %8586 = dma.vmem_to_hbm [thread:$0]  (%p12567_p7), %s12432_s22, 1024, %s12430_s18, %s7244_s19, %s10030_s29, %s10030_s29, %s10031_s12  }
0x1dd9 PF: > { %s7272_s26 = sand.u32 1, %s9995_s13   ;;  %p12568_p11 = scmp.ne.s32.totalorder %s12525_s27, 0 }
0x1dda   : > { %p12569_p12 = scmp.ge.s32.totalorder %s10007_s16, 2  ;;  %s7273_s21 = scalar_lea.sflag [#allocation4], %s7272_s26 }
0x1ddc   : > { %p8612_p13 = pnand %p12569_p12, %p12568_p11 }
0x1dde   : > { %9990 = dma.done.wait (!%p8612_p13), %s7273_s21, 1024  }
0x1ddf   : > { %9992 = vsyncadd (!%p8612_p13), %s7273_s21, 4294966272  ;;  %p26_p8 = scmp.ge.s32.totalorder %s10259_s23, 4   ;;  %s12570_s13 = smov %s9999_s14 }
0x1de0   : > { %s12571_s14 = smov %s10003_s15  ;;  %s12572_s15 = smov %s10271_s11 }
0x1de1   : > { %s12573_s16 = smov %s10259_s23  ;;  %28 = sbr.rel (!%p26_p8) target bundleno = 11 (0xb), region = 153 }
0x1de8   :  { %7278 = vsyncpa [#allocation3], 1 }
0x1de9   :  { %7280 = vsyncpa [#allocation3 + $0x1], 1 }
0x1dea   :  { %7281 = vsyncpa [#allocation6], 1 }
0x1deb   :  { %7282 = vsyncpa [#allocation9], 1 }
0x1dec   :  { %7283 = vsyncpa [#allocation12], 1 }
0x1ded   :  { %7284 = vsyncpa [#allocation4], 1 }
0x1dee   :  { %7286 = vsyncpa [#allocation4 + $0x1], 1 }

</bundles_post_ra>
